<compile_context>
chip_gen: v7x
topology: tpu7x:2x2x1
jax: 0.10.0
libtpu: 0.0.40
codegen_flags: <defaults>
</compile_context>

<pallas_src>
import functools

import jax
import jax.numpy as jnp
import numpy as np
from jax.experimental import pallas as pl
from jax.experimental.pallas import tpu as pltpu


# ---------------------------------------------------------------------------
# Fused conv kernel: out = leaky(sum_t x[off_t : off_t+Mo, :] @ w[t] + bias)
# ---------------------------------------------------------------------------

def _conv_kernel(x_ref, w_ref, b_ref, o_ref, acc_ref, *, offs, slope):
    mo = o_ref.shape[0]
    acc_ref[...] = jnp.dot(x_ref[pl.ds(offs[0], mo), :], w_ref[0],
                           preferred_element_type=jnp.float32)
    for t in range(1, len(offs)):
        acc_ref[...] += jnp.dot(x_ref[pl.ds(offs[t], mo), :], w_ref[t],
                                preferred_element_type=jnp.float32)
    out = acc_ref[...] + b_ref[...]
    if slope is not None:
        out = jnp.where(out >= 0.0, out, out * slope)
    o_ref[...] = out.astype(o_ref.dtype)


def _conv_core(xp, w, b, KH, KW, dil, slope):
    """xp: [G, B, Hp, Wp, C] already padded (any float dtype).
       w : [G, KH*KW, C, O] bf16,  b: [1, O] f32.
       Returns [G, B, Ho, Wo, O] in bf16 (stride 1, dilation `dil`)."""
    G, B, Hp, Wp, C = xp.shape
    O = w.shape[-1]
    Ho = Hp - (KH - 1) * dil
    Wo = Wp - (KW - 1) * dil
    extra = (KW - 1) * dil            # guard rows for the tap-shifted slices
    Mo = Ho * Wp                      # output rows incl. (discarded) junk cols
    Mx = Hp * Wp + extra

    xf = xp.astype(jnp.bfloat16).reshape(G, B, Hp * Wp, C)
    if extra:
        xf = jnp.pad(xf, ((0, 0), (0, 0), (0, extra), (0, 0)))

    offs = tuple(i * dil * Wp + j * dil for i in range(KH) for j in range(KW))

    out = pl.pallas_call(
        functools.partial(_conv_kernel, offs=offs, slope=slope),
        out_shape=jax.ShapeDtypeStruct((G, B, Mo, O), jnp.bfloat16),
        grid=(G, B),
        in_specs=[
            pl.BlockSpec((None, None, Mx, C), lambda g, bb: (g, bb, 0, 0)),
            pl.BlockSpec((None, KH * KW, C, O), lambda g, bb: (g, 0, 0, 0)),
            pl.BlockSpec((1, O), lambda g, bb: (0, 0)),
        ],
        out_specs=pl.BlockSpec((None, None, Mo, O), lambda g, bb: (g, bb, 0, 0)),
        scratch_shapes=[pltpu.VMEM((Mo, O), jnp.float32)],
        compiler_params=pltpu.CompilerParams(
            dimension_semantics=("parallel", "parallel")),
    )(xf, w, b)

    out = out.reshape(G, B, Ho, Wp, O)[:, :, :, :Wo, :]
    # TODO(synk): for very large resolutions, tile Mo over a grid axis with a
    # halo (manual DMA) instead of one whole-image block per grid step.
    return out


@functools.partial(jax.jit, static_argnames=("dil", "slope"))
def conv3x3(x, w, b, dil=1, slope=0.1):
    """PyTorch Conv2d k=3, stride=1, padding=dil, dilation=dil. NHWC."""
    xp = jnp.pad(x, ((0, 0), (dil, dil), (dil, dil), (0, 0)))
    return _conv_core(xp[None], w[None], b, 3, 3, dil, slope)[0]


@functools.partial(jax.jit, static_argnames=("slope",))
def conv_s2(x, w, b, slope=0.1):
    """PyTorch Conv2d k=3, stride=2, padding=1 via space-to-depth phase packing
    (2x2 stride-1 conv on the phase-packed image). NHWC, H/W even."""
    B, H, W, C = x.shape
    xp = jnp.pad(x, ((0, 0), (1, 1), (1, 1), (0, 0)))
    Hh, Wh = (H + 2) // 2, (W + 2) // 2
    xs = xp.reshape(B, Hh, 2, Wh, 2, C).transpose(0, 1, 3, 2, 4, 5)
    xs = xs.reshape(B, Hh, Wh, 4 * C)
    return _conv_core(xs[None], w[None], b, 2, 2, 1, slope)[0]


@jax.jit
def deconv4x4(x, w, b):
    """PyTorch ConvTranspose2d k=4, stride=2, padding=1 as 4 sub-pixel 2x2
    convs (single pallas_call, grid over phases) + interleave. NHWC."""
    B, H, W, Cin = x.shape
    Cout = w.shape[-1]
    pads = (((1, 0), (1, 0)), ((1, 0), (0, 1)), ((0, 1), (1, 0)), ((0, 1), (0, 1)))
    xs = jnp.stack([jnp.pad(x, ((0, 0),) + p + ((0, 0),)) for p in pads], axis=0)
    ph = _conv_core(xs, w, b, 2, 2, 1, None)          # [4, B, H, W, Cout]
    ph = ph.reshape(2, 2, B, H, W, Cout)
    return ph.transpose(2, 3, 0, 4, 1, 5).reshape(B, 2 * H, 2 * W, Cout)


# ---------------------------------------------------------------------------
# Cost-volume correlation (max displacement 4 -> 81 channels), fused LeakyReLU
# ---------------------------------------------------------------------------

def _corr_kernel(one_ref, two_ref, out_ref, *, inv_c, slope):
    n_disp, H, W = out_ref.shape

    def body(d, carry):
        dy = d // 9
        dx = d - dy * 9
        a = one_ref[...].astype(jnp.float32)                         # [H, W, C]
        bsl = two_ref[pl.ds(dy, H), pl.ds(dx, W), :].astype(jnp.float32)
        s = jnp.sum(a * bsl, axis=-1) * inv_c                        # [H, W]
        s = jnp.where(s >= 0.0, s, s * slope)
        out_ref[pl.ds(d, 1), :, :] = s[None].astype(out_ref.dtype)
        return carry

    jax.lax.fori_loop(0, n_disp, body, 0)


@jax.jit
def correlation_leaky(one, two):
    """PWC-Net cost volume (disp in [-4,4]^2, mean over channels) with fused
    LeakyReLU(0.1). one, two: [B, H, W, C] NHWC -> [B, H, W, 81]."""
    B, H, W, C = one.shape
    two_p = jnp.pad(two, ((0, 0), (4, 4), (4, 4), (0, 0)))
    out = pl.pallas_call(
        functools.partial(_corr_kernel, inv_c=1.0 / C, slope=0.1),
        out_shape=jax.ShapeDtypeStruct((B, 81, H, W), jnp.bfloat16),
        grid=(B,),
        in_specs=[
            pl.BlockSpec((None, H, W, C), lambda bb: (bb, 0, 0, 0)),
            pl.BlockSpec((None, H + 8, W + 8, C), lambda bb: (bb, 0, 0, 0)),
        ],
        out_specs=pl.BlockSpec((None, 81, H, W), lambda bb: (bb, 0, 0, 0)),
        compiler_params=pltpu.CompilerParams(dimension_semantics=("arbitrary",)),
    )(one.astype(jnp.bfloat16), two_p.astype(jnp.bfloat16))
    return jnp.transpose(out, (0, 2, 3, 1))


# ---------------------------------------------------------------------------
# backwarp (bilinear grid_sample, align_corners=False, zeros padding)
# TODO(synk): data-dependent gather warp stays in plain JAX.
# ---------------------------------------------------------------------------

@jax.jit
def backwarp(ten_input, ten_flow):
    B, H, W, C = ten_input.shape
    flow = ten_flow.astype(jnp.float32)
    hor = jnp.linspace(-1.0 + 1.0 / W, 1.0 - 1.0 / W, W, dtype=jnp.float32)
    ver = jnp.linspace(-1.0 + 1.0 / H, 1.0 - 1.0 / H, H, dtype=jnp.float32)
    gx = hor[None, None, :] + flow[..., 0] / ((W - 1.0) / 2.0)
    gy = ver[None, :, None] + flow[..., 1] / ((H - 1.0) / 2.0)

    inp = jnp.concatenate(
        [ten_input.astype(jnp.float32), jnp.ones((B, H, W, 1), jnp.float32)],
        axis=-1)
    Cp = C + 1
    flat = inp.reshape(B, H * W, Cp)

    x = (gx + 1.0) * W / 2.0 - 0.5
    y = (gy + 1.0) * H / 2.0 - 0.5
    x0 = jnp.floor(x); y0 = jnp.floor(y)
    x1 = x0 + 1.0;     y1 = y0 + 1.0
    wx1 = x - x0; wx0 = 1.0 - wx1
    wy1 = y - y0; wy0 = 1.0 - wy1

    def gather(xi, yi):
        valid = (xi >= 0) & (xi < W) & (yi >= 0) & (yi < H)
        xc = jnp.clip(xi, 0, W - 1).astype(jnp.int32)
        yc = jnp.clip(yi, 0, H - 1).astype(jnp.int32)
        idx = (yc * W + xc).reshape(B, H * W, 1)
        idx = jnp.broadcast_to(idx, (B, H * W, Cp))
        g = jnp.take_along_axis(flat, idx, axis=1).reshape(B, H, W, Cp)
        return g * valid[..., None].astype(jnp.float32)

    out = (gather(x0, y0) * (wx0 * wy0)[..., None]
           + gather(x1, y0) * (wx1 * wy0)[..., None]
           + gather(x0, y1) * (wx0 * wy1)[..., None]
           + gather(x1, y1) * (wx1 * wy1)[..., None])
    mask = out[..., -1:]
    mask = jnp.where(mask > 0.999, 1.0, 0.0)
    return (out[..., :-1] * mask).astype(ten_input.dtype)


# ---------------------------------------------------------------------------
# Parameters (deterministic synthetic init), packed once for the kernels
# ---------------------------------------------------------------------------

def _conv_raw(key, cin, cout, k=3):
    kw_, kb_ = jax.random.split(key)
    w = jax.random.normal(kw_, (cout, cin, k, k), jnp.float32) / np.sqrt(cin * k * k)
    b = jax.random.normal(kb_, (cout,), jnp.float32) * 0.01
    return w, b


def _deconv_raw(key, cin, cout, k=4):
    kw_, kb_ = jax.random.split(key)
    w = jax.random.normal(kw_, (cin, cout, k, k), jnp.float32) / np.sqrt(cin * k * k)
    b = jax.random.normal(kb_, (cout,), jnp.float32) * 0.01
    return w, b


def _prep_conv(w, b):
    w = np.asarray(w)
    O, C, kh, kw = w.shape
    wt = np.transpose(w, (2, 3, 1, 0)).reshape(kh * kw, C, O)   # [taps, C, O]
    return {'w': jnp.asarray(wt, dtype=jnp.bfloat16),
            'b': jnp.asarray(np.asarray(b).reshape(1, O), dtype=jnp.float32)}


def _prep_conv_s2(w, b):
    """3x3 stride-2 conv -> 2x2 stride-1 conv on phase-packed input."""
    w = np.asarray(w)
    O, C, _, _ = w.shape
    wt = np.transpose(w, (2, 3, 1, 0))                          # [3, 3, C, O]
    wp = np.zeros((2, 2, 2, 2, C, O), np.float32)               # [di,dj,a,b,C,O]
    for di in range(2):
        for a in range(2):
            i = 2 * di + a
            if i > 2:
                continue
            for dj in range(2):
                for bb in range(2):
                    j = 2 * dj + bb
                    if j > 2:
                        continue
                    wp[di, dj, a, bb] = wt[i, j]
    wp = wp.reshape(4, 4 * C, O)
    return {'w': jnp.asarray(wp, dtype=jnp.bfloat16),
            'b': jnp.asarray(np.asarray(b).reshape(1, O), dtype=jnp.float32)}


def _prep_deconv(w, b):
    """ConvTranspose2d (k=4,s=2,p=1) -> 4 sub-pixel 2x2 conv kernels."""
    w = np.asarray(w)                                           # [Cin, Cout, 4, 4]
    Cin, Cout, _, _ = w.shape
    taps = {0: (3, 1), 1: (2, 0)}
    phases = np.zeros((4, 4, Cin, Cout), np.float32)            # [phase, tap, C, O]
    for a in range(2):
        for bb in range(2):
            for di in range(2):
                for dj in range(2):
                    phases[a * 2 + bb, di * 2 + dj] = w[:, :, taps[a][di], taps[bb][dj]]
    return {'w': jnp.asarray(phases, dtype=jnp.bfloat16),
            'b': jnp.asarray(np.asarray(b).reshape(1, Cout), dtype=jnp.float32)}


def init_network_params(key):
    keys = iter(jax.random.split(key, 128))
    nxt = lambda: next(keys)
    params = {}

    ext_channels = [(3, 16), (16, 32), (32, 64), (64, 96), (96, 128), (128, 196)]
    extractor = []
    for cin, cout in ext_channels:
        w0, b0 = _conv_raw(nxt(), cin, cout)
        w1, b1 = _conv_raw(nxt(), cout, cout)
        w2, b2 = _conv_raw(nxt(), cout, cout)
        extractor.append([_prep_conv_s2(w0, b0), _prep_conv(w1, b1), _prep_conv(w2, b2)])
    params['extractor'] = extractor

    table = [None, None, 81 + 32 + 4, 81 + 64 + 4, 81 + 96 + 4, 81 + 128 + 4, 81, None]
    flt_table = [None, None, None, 5.0, 2.5, 1.25, 0.625, None]
    decoders = {}
    for lvl in (2, 3, 4, 5, 6):
        prev, cur = table[lvl + 1], table[lvl]
        d = {}
        if lvl < 6:
            wf, bf = _deconv_raw(nxt(), 2, 2)
            d['upflow'] = _prep_deconv(wf, bf)
            wu, bu = _deconv_raw(nxt(), prev + 128 + 128 + 96 + 64 + 32, 2)
            d['upfeat'] = _prep_deconv(wu, bu)
            d['flt'] = flt_table[lvl + 1]
        for name, cin, cout in (('one', cur, 128), ('two', cur + 128, 128),
                                ('thr', cur + 256, 96), ('fou', cur + 352, 64),
                                ('fiv', cur + 416, 32), ('six', cur + 448, 2)):
            wc, bc = _conv_raw(nxt(), cin, cout)
            d[name] = _prep_conv(wc, bc)
        decoders[lvl] = d
    params['decoders'] = decoders

    ref_specs = [(565, 128), (128, 128), (128, 128), (128, 96), (96, 64), (64, 32), (32, 2)]
    params['refiner'] = []
    for cin, cout in ref_specs:
        wr, br = _conv_raw(nxt(), cin, cout)
        params['refiner'].append(_prep_conv(wr, br))
    return params


# ---------------------------------------------------------------------------
# Forward pass (NHWC internally)
# ---------------------------------------------------------------------------

REFINER_DILS = (1, 2, 4, 8, 16, 1, 1)


def extractor_forward(p, x):
    feats = []
    cur = x
    for lvl in range(6):
        c0, c1, c2 = p[lvl]
        cur = conv_s2(cur, c0['w'], c0['b'], slope=0.1)
        cur = conv3x3(cur, c1['w'], c1['b'], dil=1, slope=0.1)
        cur = conv3x3(cur, c2['w'], c2['b'], dil=1, slope=0.1)
        feats.append(cur)
    return feats


def decoder_forward(p, one, two, prev):
    if prev is None:
        feat = correlation_leaky(one, two)
    else:
        flow = deconv4x4(prev['tenFlow'], p['upflow']['w'], p['upflow']['b'])
        feat_up = deconv4x4(prev['tenFeat'], p['upfeat']['w'], p['upfeat']['b'])
        warped = backwarp(two, flow * p['flt'])
        vol = correlation_leaky(one, warped)
        feat = jnp.concatenate([vol, one, flow, feat_up], axis=-1)

    feat = jnp.concatenate([conv3x3(feat, p['one']['w'], p['one']['b']), feat], axis=-1)
    feat = jnp.concatenate([conv3x3(feat, p['two']['w'], p['two']['b']), feat], axis=-1)
    feat = jnp.concatenate([conv3x3(feat, p['thr']['w'], p['thr']['b']), feat], axis=-1)
    feat = jnp.concatenate([conv3x3(feat, p['fou']['w'], p['fou']['b']), feat], axis=-1)
    feat = jnp.concatenate([conv3x3(feat, p['fiv']['w'], p['fiv']['b']), feat], axis=-1)
    flow = conv3x3(feat, p['six']['w'], p['six']['b'], slope=None)
    return {'tenFlow': flow, 'tenFeat': feat}


def refiner_forward(p, x):
    n = len(p)
    for i, cp in enumerate(p):
        slope = 0.1 if i < n - 1 else None
        x = conv3x3(x, cp['w'], cp['b'], dil=REFINER_DILS[i], slope=slope)
    return x


def network_forward(params, ten_one, ten_two):
    x1 = jnp.transpose(ten_one, (0, 2, 3, 1))     # NCHW -> NHWC
    x2 = jnp.transpose(ten_two, (0, 2, 3, 1))

    f1 = extractor_forward(params['extractor'], x1)
    f2 = extractor_forward(params['extractor'], x2)

    obj = decoder_forward(params['decoders'][6], f1[-1], f2[-1], None)
    obj = decoder_forward(params['decoders'][5], f1[-2], f2[-2], obj)
    obj = decoder_forward(params['decoders'][4], f1[-3], f2[-3], obj)
    obj = decoder_forward(params['decoders'][3], f1[-4], f2[-4], obj)
    obj = decoder_forward(params['decoders'][2], f1[-5], f2[-5], obj)

    refined = refiner_forward(params['refiner'], obj['tenFeat'])
    flow = (obj['tenFlow'] + refined) * 20.0
    return jnp.transpose(flow, (0, 3, 1, 2)).astype(jnp.float32)   # back to NCHW


# ---------------------------------------------------------------------------

if __name__ == "__main__":
    root = jax.random.PRNGKey(0)
    k_params, k_one, k_two = jax.random.split(root, 3)

    params = init_network_params(k_params)

    B, H, W = 1, 64, 64          # H, W divisible by 64 (6 stride-2 levels)
    ten_one = jax.random.uniform(k_one, (B, 3, H, W), dtype=jnp.float32)
    ten_two = jax.random.uniform(k_two, (B, 3, H, W), dtype=jnp.float32)

    flow = network_forward(params, ten_one, ten_two)
    flow = jax.block_until_ready(flow)

    assert flow.shape == (B, 2, H // 4, W // 4), flow.shape
    assert bool(jnp.all(jnp.isfinite(flow)))
    print("KERNEL_OK")
</pallas_src>

<mosaic_0001>
module attributes {stable_mosaic.version = 11 : i64} {
  func.func @_conv_kernel(%arg0: i32, %arg1: i32, %arg2: memref<1x1x1090x12xbf16, #tpu.memory_space<vmem>>, %arg3: memref<1x4x12x16xbf16, #tpu.memory_space<vmem>>, %arg4: memref<1x16xf32, #tpu.memory_space<vmem>>, %arg5: memref<1x1x1056x16xbf16, #tpu.memory_space<vmem>>, %arg6: memref<1056x16xf32, #tpu.memory_space<vmem>>) attributes {dimension_semantics = [#tpu.dimension_semantics<parallel>, #tpu.dimension_semantics<parallel>], iteration_bounds = array<i64: 1, 1>, scalar_prefetch = 0 : i64, scratch_operands = 1 : i64, tpu.core_type = #tpu.core_type<tc>, window_params = [{transform_indices = @transform_0, window_bounds = array<i64: 1, 1, 1090, 12>}, {transform_indices = @transform_1, window_bounds = array<i64: 1, 4, 12, 16>}, {pipeline_mode = #tpu.pipeline_mode<synchronous>, transform_indices = @transform_2, window_bounds = array<i64: 1, 16>}, {transform_indices = @transform_3, window_bounds = array<i64: 1, 1, 1056, 16>}]} {
    %c0 = arith.constant 0 : index
    %c0_0 = arith.constant 0 : index
    %c0_1 = arith.constant 0 : index
    %c0_2 = arith.constant 0 : index
    %0 = vector.load %arg2[%c0, %c0_0, %c0_1, %c0_2] : memref<1x1x1090x12xbf16, #tpu.memory_space<vmem>>, vector<1x1x1056x12xbf16>
    %1 = vector.shape_cast %0 : vector<1x1x1056x12xbf16> to vector<1056x12xbf16>
    %c0_3 = arith.constant 0 : index
    %c0_4 = arith.constant 0 : index
    %c0_5 = arith.constant 0 : index
    %c0_6 = arith.constant 0 : index
    %2 = vector.load %arg3[%c0_3, %c0_4, %c0_5, %c0_6] : memref<1x4x12x16xbf16, #tpu.memory_space<vmem>>, vector<1x1x12x16xbf16>
    %3 = vector.shape_cast %2 : vector<1x1x12x16xbf16> to vector<12x16xbf16>
    %cst = arith.constant dense<0.000000e+00> : vector<1056x16xf32>
    %4 = tpu.matmul %1, %3, %cst {dimension_numbers = #tpu.dot_dimension_numbers<[1], [0], [0], [1], [0, 0, 1, 1], [], []>} : vector<1056x12xbf16>, vector<12x16xbf16>, vector<1056x16xf32> -> vector<1056x16xf32>
    %c0_7 = arith.constant 0 : index
    %c0_8 = arith.constant 0 : index
    %5 = vector.load %arg6[%c0_7, %c0_8] : memref<1056x16xf32, #tpu.memory_space<vmem>>, vector<1056x16xf32>
    tpu.vector_store %arg6[%c0_7, %c0_8], %4 {strides = array<i32>} : memref<1056x16xf32, #tpu.memory_space<vmem>>, vector<1056x16xf32>,
    %c0_9 = arith.constant 0 : index
    %c0_10 = arith.constant 0 : index
    %6 = vector.load %arg6[%c0_9, %c0_10] : memref<1056x16xf32, #tpu.memory_space<vmem>>, vector<1056x16xf32>
    %c0_11 = arith.constant 0 : index
    %c0_12 = arith.constant 0 : index
    %c1 = arith.constant 1 : index
    %c0_13 = arith.constant 0 : index
    %7 = vector.load %arg2[%c0_11, %c0_12, %c1, %c0_13] : memref<1x1x1090x12xbf16, #tpu.memory_space<vmem>>, vector<1x1x1056x12xbf16>
    %8 = vector.shape_cast %7 : vector<1x1x1056x12xbf16> to vector<1056x12xbf16>
    %c0_14 = arith.constant 0 : index
    %c1_15 = arith.constant 1 : index
    %c0_16 = arith.constant 0 : index
    %c0_17 = arith.constant 0 : index
    %9 = vector.load %arg3[%c0_14, %c1_15, %c0_16, %c0_17] : memref<1x4x12x16xbf16, #tpu.memory_space<vmem>>, vector<1x1x12x16xbf16>
    %10 = vector.shape_cast %9 : vector<1x1x12x16xbf16> to vector<12x16xbf16>
    %cst_18 = arith.constant dense<0.000000e+00> : vector<1056x16xf32>
    %11 = tpu.matmul %8, %10, %cst_18 {dimension_numbers = #tpu.dot_dimension_numbers<[1], [0], [0], [1], [0, 0, 1, 1], [], []>} : vector<1056x12xbf16>, vector<12x16xbf16>, vector<1056x16xf32> -> vector<1056x16xf32>
    %12 = arith.addf %6, %11 : vector<1056x16xf32>
    %c0_19 = arith.constant 0 : index
    %c0_20 = arith.constant 0 : index
    %13 = vector.load %arg6[%c0_19, %c0_20] : memref<1056x16xf32, #tpu.memory_space<vmem>>, vector<1056x16xf32>
    tpu.vector_store %arg6[%c0_19, %c0_20], %12 {strides = array<i32>} : memref<1056x16xf32, #tpu.memory_space<vmem>>, vector<1056x16xf32>,
    %c0_21 = arith.constant 0 : index
    %c0_22 = arith.constant 0 : index
    %14 = vector.load %arg6[%c0_21, %c0_22] : memref<1056x16xf32, #tpu.memory_space<vmem>>, vector<1056x16xf32>
    %c0_23 = arith.constant 0 : index
    %c0_24 = arith.constant 0 : index
    %c33 = arith.constant 33 : index
    %c0_25 = arith.constant 0 : index
    %15 = vector.load %arg2[%c0_23, %c0_24, %c33, %c0_25] : memref<1x1x1090x12xbf16, #tpu.memory_space<vmem>>, vector<1x1x1056x12xbf16>
    %16 = vector.shape_cast %15 : vector<1x1x1056x12xbf16> to vector<1056x12xbf16>
    %c0_26 = arith.constant 0 : index
    %c2 = arith.constant 2 : index
    %c0_27 = arith.constant 0 : index
    %c0_28 = arith.constant 0 : index
    %17 = vector.load %arg3[%c0_26, %c2, %c0_27, %c0_28] : memref<1x4x12x16xbf16, #tpu.memory_space<vmem>>, vector<1x1x12x16xbf16>
    %18 = vector.shape_cast %17 : vector<1x1x12x16xbf16> to vector<12x16xbf16>
    %cst_29 = arith.constant dense<0.000000e+00> : vector<1056x16xf32>
    %19 = tpu.matmul %16, %18, %cst_29 {dimension_numbers = #tpu.dot_dimension_numbers<[1], [0], [0], [1], [0, 0, 1, 1], [], []>} : vector<1056x12xbf16>, vector<12x16xbf16>, vector<1056x16xf32> -> vector<1056x16xf32>
    %20 = arith.addf %14, %19 : vector<1056x16xf32>
    %c0_30 = arith.constant 0 : index
    %c0_31 = arith.constant 0 : index
    %21 = vector.load %arg6[%c0_30, %c0_31] : memref<1056x16xf32, #tpu.memory_space<vmem>>, vector<1056x16xf32>
    tpu.vector_store %arg6[%c0_30, %c0_31], %20 {strides = array<i32>} : memref<1056x16xf32, #tpu.memory_space<vmem>>, vector<1056x16xf32>,
    %c0_32 = arith.constant 0 : index
    %c0_33 = arith.constant 0 : index
    %22 = vector.load %arg6[%c0_32, %c0_33] : memref<1056x16xf32, #tpu.memory_space<vmem>>, vector<1056x16xf32>
    %c0_34 = arith.constant 0 : index
    %c0_35 = arith.constant 0 : index
    %c34 = arith.constant 34 : index
    %c0_36 = arith.constant 0 : index
    %23 = vector.load %arg2[%c0_34, %c0_35, %c34, %c0_36] : memref<1x1x1090x12xbf16, #tpu.memory_space<vmem>>, vector<1x1x1056x12xbf16>
    %24 = vector.shape_cast %23 : vector<1x1x1056x12xbf16> to vector<1056x12xbf16>
    %c0_37 = arith.constant 0 : index
    %c3 = arith.constant 3 : index
    %c0_38 = arith.constant 0 : index
    %c0_39 = arith.constant 0 : index
    %25 = vector.load %arg3[%c0_37, %c3, %c0_38, %c0_39] : memref<1x4x12x16xbf16, #tpu.memory_space<vmem>>, vector<1x1x12x16xbf16>
    %26 = vector.shape_cast %25 : vector<1x1x12x16xbf16> to vector<12x16xbf16>
    %cst_40 = arith.constant dense<0.000000e+00> : vector<1056x16xf32>
    %27 = tpu.matmul %24, %26, %cst_40 {dimension_numbers = #tpu.dot_dimension_numbers<[1], [0], [0], [1], [0, 0, 1, 1], [], []>} : vector<1056x12xbf16>, vector<12x16xbf16>, vector<1056x16xf32> -> vector<1056x16xf32>
    %28 = arith.addf %22, %27 : vector<1056x16xf32>
    %c0_41 = arith.constant 0 : index
    %c0_42 = arith.constant 0 : index
    %29 = vector.load %arg6[%c0_41, %c0_42] : memref<1056x16xf32, #tpu.memory_space<vmem>>, vector<1056x16xf32>
    tpu.vector_store %arg6[%c0_41, %c0_42], %28 {strides = array<i32>} : memref<1056x16xf32, #tpu.memory_space<vmem>>, vector<1056x16xf32>,
    %c0_43 = arith.constant 0 : index
    %c0_44 = arith.constant 0 : index
    %30 = vector.load %arg6[%c0_43, %c0_44] : memref<1056x16xf32, #tpu.memory_space<vmem>>, vector<1056x16xf32>
    %c0_45 = arith.constant 0 : index
    %c0_46 = arith.constant 0 : index
    %31 = vector.load %arg4[%c0_45, %c0_46] : memref<1x16xf32, #tpu.memory_space<vmem>>, vector<1x16xf32>
    %32 = vector.broadcast %31 : vector<1x16xf32> to vector<1056x16xf32>
    %33 = arith.addf %30, %32 : vector<1056x16xf32>
    %cst_47 = arith.constant 0.000000e+00 : f32
    %34 = vector.broadcast %cst_47 : f32 to vector<1056x16xf32>
    %35 = arith.cmpf oge, %33, %34 : vector<1056x16xf32>
    %cst_48 = arith.constant 1.000000e-01 : f32
    %36 = vector.broadcast %cst_48 : f32 to vector<1056x16xf32>
    %37 = arith.mulf %33, %36 : vector<1056x16xf32>
    %38 = arith.select %35, %33, %37 : vector<1056x16xi1>, vector<1056x16xf32>
    %39 = arith.truncf %38 : vector<1056x16xf32> to vector<1056x16xbf16>
    %c0_49 = arith.constant 0 : index
    %c0_50 = arith.constant 0 : index
    %c0_51 = arith.constant 0 : index
    %c0_52 = arith.constant 0 : index
    %40 = vector.load %arg5[%c0_49, %c0_50, %c0_51, %c0_52] : memref<1x1x1056x16xbf16, #tpu.memory_space<vmem>>, vector<1x1x1056x16xbf16>
    %41 = vector.shape_cast %40 : vector<1x1x1056x16xbf16> to vector<1056x16xbf16>
    %42 = vector.shape_cast %39 : vector<1056x16xbf16> to vector<1x1x1056x16xbf16>
    tpu.vector_store %arg5[%c0_49, %c0_50, %c0_51, %c0_52], %42 {strides = array<i32>} : memref<1x1x1056x16xbf16, #tpu.memory_space<vmem>>, vector<1x1x1056x16xbf16>,
    return
  }
  func.func @transform_0(%arg0: i32, %arg1: i32) -> (i32, i32, i32, i32) {
    %c0_i32 = arith.constant 0 : i32
    %c0_i32_0 = arith.constant 0 : i32
    %c0_i32_1 = arith.constant 0 : i32
    return %arg0, %arg1, %c0_i32, %c0_i32_0 : i32, i32, i32, i32
  }
  func.func @transform_1(%arg0: i32, %arg1: i32) -> (i32, i32, i32, i32) {
    %c0_i32 = arith.constant 0 : i32
    %c0_i32_0 = arith.constant 0 : i32
    %c0_i32_1 = arith.constant 0 : i32
    %c0_i32_2 = arith.constant 0 : i32
    return %arg0, %c0_i32, %c0_i32_0, %c0_i32_1 : i32, i32, i32, i32
  }
  func.func @transform_2(%arg0: i32, %arg1: i32) -> (i32, i32) {
    %c0_i32 = arith.constant 0 : i32
    %c0_i32_0 = arith.constant 0 : i32
    %c0_i32_1 = arith.constant 0 : i32
    return %c0_i32, %c0_i32_0 : i32, i32
  }
  func.func @transform_3(%arg0: i32, %arg1: i32) -> (i32, i32, i32, i32) {
    %c0_i32 = arith.constant 0 : i32
    %c0_i32_0 = arith.constant 0 : i32
    %c0_i32_1 = arith.constant 0 : i32
    return %arg0, %arg1, %c0_i32, %c0_i32_0 : i32, i32, i32, i32
  }
}

</mosaic_0001>

<bundles_post_ra>
// kernel: conv_s2.1
= control target key start
LH: loop header
LB: loop body
LE: loop exit
PB: predicated region body
PF: predicated region fallthrough
CT: control target
= control target key end

     0   :  { %vm683_vm0 = vcmask 1045504   ;;  %vm484_vm1 = vcmask 97280   ;;  %vm1982_vm2 = vsmask.f32 7424  ;;  %vm1248_vm3 = vcmask 130048   ;;  %s13808_s1 = inlined_call_operand.vmem [shape: bf16[1,4,12,16], index: 1, kind: input, shape index: {}]   ;;  %s13809_s0 = inlined_call_operand.vmem [shape: bf16[1,1,1090,12], index: 0, kind: input, shape index: {}]   ;;  %s13810_s2 = inlined_call_operand.vmem [shape: f32[1,16], index: 2, kind: input, shape index: {}]   ;;  %s13811_s3 = inlined_call_operand.vmem [shape: bf16[1,1,1056,16], index: 3, kind: output, shape index: {}]  }
   0x1   :  { %v10422_v0 = vld [vmem:[%s13808_s1] sm:$0x3f]   ;;  %v10424_v3 = vld [vmem:[%s13809_s0 + $0x8] sm:$0xff]   ;;  %v10425_v4 = vld [vmem:[%s13808_s1 + $0x10] sm:$0x3f]   ;;  %vm6311_vm4 = vcmask 1046528  }
   0x2   :  { %v10423_v1 = vld [vmem:[%s13809_s0] sm:$0xff]   ;;  %10418 = vmatprep.subr.msk.bf16.mxu0 %vm683_vm0, %v10422_v0  ;;  %v685_v2 = vsel %vm683_vm0, %v10422_v0, 0  ;;  %v10426_v5 = vld [vmem:[%s13808_s1 + $0x8] sm:$0x3f]   ;;  %v4883_v6 = vsel %vm683_vm0, %v10425_v4, 0  ;;  %v10427_v7 = vld [vmem:[%s13809_s0 + $0x10] sm:$0xff]  }
   0x3   :  { %9883 = vmatpush3.bf16.msra.mxu0 %v685_v2  ;;  %9884 = vmatprep.mubr.msk.bf16.mxu0 %vm484_vm1, %v10423_v1  ;;  %v2719_v8 = vsel %vm683_vm0, %v10426_v5, 0  ;;  %v10428_v9 = vld [vmem:[%s13809_s0] sm:$0xff]   ;;  %v10429_v10 = vld [vmem:[%s13809_s0 + $0x8] sm:$0xff]   ;;  %v10430_v15 = vld [vmem:[%s13809_s0 + $0x18] sm:$0xff]   ;;  %vm8671_vm5 = vcmask 125952  }
   0x4   :  { %10420 = vmatprep.subr.msk.bf16.mxu0 %vm683_vm0, %v10425_v4  ;;  %10419 = vmatprep.subr.msk.bf16.mxu1 %vm683_vm0, %v10426_v5  ;;  %v1984_v11 = vshrl.u32 %v10428_v9, 16  ;;  %v1986_v12 = vshll.u32 %v10428_v9, 16  ;;  %v1991_v13 = vshll.u32 %v10429_v10, 16  ;;  %v1995_v14 = vshrl.u32 %v10429_v10, 16  ;;  %v10431_v16 = vld [vmem:[%s13809_s0 + $0x10] sm:$0xff]   ;;  %v10433_v18 = vld [vmem:[%s13809_s0 + $0x20] sm:$0xff]  }
   0x5   :  { %10017 = vmatpush3.bf16.msra.mxu1 %v2719_v8  ;;  %v1999_v20 = vshll.u32 %v10431_v16, 16  ;;  %v10432_v21 = vld [vmem:[%s13808_s1 + $0x18] sm:$0x3f]   ;;  %v2003_v26 = vshrl.u32 %v10431_v16, 16  ;;  %v10436_v32 = vld [vmem:[%s13809_s0 + $0x20] sm:$0xff]   ;;  %v10435_v33 = vld [vmem:[%s13809_s0 + $0x28] sm:$0xff]  }
   0x6   :  { %9885 = vmatmul.mubr.msk.bf16.vlgmr.msra.gmra.mrb[0].mxu0 %vm484_vm1, %v10424_v3  ;;  %v1988_v17 = vrot.slane %v1986_v12, 1  ;;  %v1993_v19 = vrot.slane %v1991_v13, 1  ;;  %10421 = vmatprep.subr.msk.bf16.mxu1 %vm683_vm0, %v10432_v21  ;;  %v10434_v25 = vld [vmem:[%s13809_s0 + $0x18] sm:$0xff]   ;;  %v6649_v28 = vsel %vm683_vm0, %v10432_v21, 0  ;;  %v2015_v36 = vshll.u32 %v10436_v32, 16  ;;  %v10438_v37 = vld [vmem:[%s13809_s0 + $0x28] sm:$0xff]  }
   0x7   :  { %10151 = vmatpush3.bf16.msra.mxu0 %v4883_v6  ;;  %9888 = vmatprep.mubr.msk.bf16.mxu0 %vm484_vm1, %v10427_v7  ;;  %v2001_v24 = vrot.slane %v1999_v20, 1  ;;  %v2007_v31 = vshll.u32 %v10434_v25, 16  ;;  %v2011_v34 = vshrl.u32 %v10434_v25, 16  ;;  %v2019_v38 = vshrl.u32 %v10436_v32, 16  ;;  %v10437_v42 = vld [vmem:[%s13809_s0 + $0x30] sm:$0xff]   ;;  %v10442_v50 = vld [vmem:[%s13809_s0 + $0x38] sm:$0xff]  }
   0x8   :  { %v1989_v22 = vor.u32 %v1988_v17, %v1984_v11  ;;  %v1997_v23 = vor.u32 %v1995_v14, %v1993_v19  ;;  %v2017_v41 = vrot.slane %v2015_v36, 1  ;;  %v2023_v43 = vshll.u32 %v10438_v37, 16  ;;  %v10440_v44 = vld [vmem:[%s13809_s0 + $0x30] sm:$0xff]   ;;  %v10444_v55 = vld [vmem:[%s13809_s0 + $0x40] sm:$0xff]   ;;  %v10446_v57 = vld [vmem:[%s13809_s0 + $0x48] sm:$0xff]  }
   0x9   :  { %v2005_v30 = vor.u32 %v2003_v26, %v2001_v24  ;;  %v2009_v35 = vrot.slane %v2007_v31, 1  ;;  %v2027_v45 = vshrl.u32 %v10438_v37, 16  ;;  %v2031_v49 = vshll.u32 %v10440_v44, 16  ;;  %v10439_v58 = vld [vmem:[%s13809_s0 + $0x38] sm:$0xff]   ;;  %v10441_v61 = vld [vmem:[%s13809_s0 + $0x40] sm:$0xff]   ;;  %v10448_v5 = vld [vmem:[%s13809_s0 + $0x50] sm:$0xff]  }
   0xa   :  { %v1994_v27 = vsel %vm1982_vm2, %v1989_v22, %v1993_v19  ;;  %v2002_v29 = vsel %vm1982_vm2, %v1997_v23, %v2001_v24  ;;  %v2021_v47 = vor.u32 %v2019_v38, %v2017_v41  ;;  %v2025_v48 = vrot.slane %v2023_v43, 1  ;;  %v10443_v6 = vld [vmem:[%s13809_s0 + $0x48] sm:$0xff]   ;;  %v10450_v10 = vld [vmem:[%s13809_s0 + $0x58] sm:$0xff]   ;;  %v10445_v11 = vld [vmem:[%s13809_s0 + $0x50] sm:$0xff]  }
   0xb   :  { %10018 = vmatprep.mubr.msk.bf16.mxu1 %vm484_vm1, %v1994_v27  ;;  %v2010_v39 = vsel %vm1982_vm2, %v2005_v30, %v2009_v35  ;;  %v2013_v40 = vor.u32 %v2011_v34, %v2009_v35  ;;  %v2035_v51 = vshrl.u32 %v10440_v44, 16  ;;  %v2033_v53 = vrot.slane %v2031_v49, 1  ;;  %v10452_v20 = vld [vmem:[%s13809_s0 + $0x60] sm:$0xff]   ;;  %v10454_v25 = vld [vmem:[%s13809_s0 + $0x68] sm:$0xff]   ;;  %v10456_v32 = vld [vmem:[%s13809_s0 + $0x70] sm:$0xff]  }
   0xc   :  { %10019 = vmatmul.mubr.msk.bf16.vlgmr.msra.gmra.mrb[0].mxu1 %vm484_vm1, %v2002_v29  ;;  %v2026_v52 = vsel %vm1982_vm2, %v2021_v47, %v2025_v48  ;;  %v2039_v54 = vshll.u32 %v10442_v50, 16  ;;  %v2029_v56 = vor.u32 %v2027_v45, %v2025_v48  ;;  %v2047_v62 = vshll.u32 %v10444_v55, 16  ;;  %v10449_v22 = vld [vmem:[%s13809_s0 + $0x60] sm:$0xff]   ;;  %v10458_v35 = vld [vmem:[%s13809_s0 + $0x78] sm:$0xff]   ;;  %v10451_v36 = vld [vmem:[%s13809_s0 + $0x68] sm:$0xff]  }
   0xd   :  { %10285 = vmatpush3.bf16.msra.mxu1 %v6649_v28  ;;  %10022 = vmatprep.mubr.msk.bf16.mxu1 %vm484_vm1, %v2010_v39  ;;  %v2018_v46 = vsel %vm1982_vm2, %v2013_v40, %v2017_v41  ;;  %v2037_v59 = vor.u32 %v2035_v51, %v2033_v53  ;;  %v2043_v0 = vshrl.u32 %v10442_v50, 16  ;;  %v2051_v1 = vshrl.u32 %v10444_v55, 16  ;;  %v10453_v39 = vld [vmem:[%s13809_s0 + $0x70] sm:$0xff]   ;;  %v10460_v47 = vld [vmem:[%s13809_s0 + $0x80] sm:$0xff]   ;;  %v10455_v48 = vld [vmem:[%s13809_s0 + $0x78] sm:$0xff]  }
   0xe   :  { %9889 = vmatmul.mubr.msk.bf16.gmra.mrb[4].mxu0 %vm484_vm1, %v10430_v15  ;;  %v2041_v60 = vrot.slane %v2039_v54, 1  ;;  %v2034_v63 = vsel %vm1982_vm2, %v2029_v56, %v2033_v53  ;;  %v2055_v2 = vshll.u32 %v10446_v57, 16  ;;  %v2049_v4 = vrot.slane %v2047_v62, 1  ;;  %v10457_v53 = vld [vmem:[%s13809_s0 + $0x80] sm:$0xff]   ;;  %v10466_v62 = vld [vmem:[%s13809_s0 + $0x98] sm:$0xff]  }
   0xf   :  { %9892 = vmatprep.mubr.msk.bf16.mxu0 %vm484_vm1, %v10433_v18  ;;  %v2063_v12 = vshll.u32 %v10448_v5, 16  ;;  %v2059_v14 = vshrl.u32 %v10446_v57, 16  ;;  %v2067_v16 = vshrl.u32 %v10448_v5, 16  ;;  %v2071_v17 = vshll.u32 %v10450_v10, 16  ;;  %v10447_v18 = vld [vmem:[%s13809_s0 + $0x58] sm:$0xff]  }
  0x10   :  { %v2042_v3 = vsel %vm1982_vm2, %v2037_v59, %v2041_v60  ;;  %v2045_v7 = vor.u32 %v2043_v0, %v2041_v60  ;;  %v2053_v8 = vor.u32 %v2051_v1, %v2049_v4  ;;  %v2057_v9 = vrot.slane %v2055_v2, 1  ;;  %v10459_v0 = vld [vmem:[%s13809_s0 + $0x88] sm:$0xff]  }
  0x11   :  { %v2065_v19 = vrot.slane %v2063_v12, 1  ;;  %v2073_v24 = vrot.slane %v2071_v17, 1  ;;  %v2079_v26 = vshll.u32 %v10452_v20, 16  ;;  %v2075_v28 = vshrl.u32 %v10450_v10, 16  ;;  %v10468_v10 = vld [vmem:[%s13809_s0 + $0xa0] sm:$0xff]   ;;  %v10463_v12 = vld [vmem:[%s13809_s0 + $0x98] sm:$0xff]  }
  0x12   :  { %v2050_v13 = vsel %vm1982_vm2, %v2045_v7, %v2049_v4  ;;  %v2058_v15 = vsel %vm1982_vm2, %v2053_v8, %v2057_v9  ;;  %v2061_v21 = vor.u32 %v2059_v14, %v2057_v9  ;;  %v2083_v30 = vshrl.u32 %v10452_v20, 16  ;;  %v10465_v17 = vld [vmem:[%s13809_s0 + $0xa0] sm:$0xff]  }
  0x13   :  { %v2069_v23 = vor.u32 %v2067_v16, %v2065_v19  ;;  %v2087_v31 = vshll.u32 %v10454_v25, 16  ;;  %v2077_v34 = vor.u32 %v2075_v28, %v2073_v24  ;;  %v2095_v40 = vshll.u32 %v10456_v32, 16 }
  0x14   :  { %10023 = vmatmul.mubr.msk.bf16.gmra.mrb[4].mxu1 %vm484_vm1, %v2018_v46  ;;  %v2066_v27 = vsel %vm1982_vm2, %v2061_v21, %v2065_v19  ;;  %v2099_v43 = vshrl.u32 %v10456_v32, 16  ;;  %v2103_v44 = vshll.u32 %v10458_v35, 16  ;;  %v2111_v54 = vshll.u32 %v10460_v47, 16 }
  0x15   :  { %10026 = vmatprep.mubr.msk.bf16.mxu1 %vm484_vm1, %v2026_v52  ;;  %v2074_v29 = vsel %vm1982_vm2, %v2069_v23, %v2073_v24  ;;  %v2089_v38 = vrot.slane %v2087_v31, 1  ;;  %v2097_v46 = vrot.slane %v2095_v40, 1  ;;  %v10462_v52 = vld [vmem:[%s13809_s0 + $0x88] sm:$0xff]   ;;  %v2107_v56 = vshrl.u32 %v10458_v35, 16  ;;  %v10469_v31 = vld [vmem:[%s13809_s0 + $0xb0] sm:$0xff]  }
  0x16   :  { %9893 = vmatmul.mubr.msk.bf16.gmra.mrb[8].mxu0 %vm484_vm1, %v10435_v33  ;;  %v2081_v33 = vrot.slane %v2079_v26, 1  ;;  %v2105_v51 = vrot.slane %v2103_v44, 1  ;;  %v2119_v59 = vshll.u32 %v10462_v52, 16  ;;  %v2113_v60 = vrot.slane %v2111_v54, 1  ;;  %v10467_v26 = vld [vmem:[%s13809_s0 + $0xa8] sm:$0xff]  }
  0x17   :  { %9896 = vmatprep.mubr.msk.bf16.mxu0 %vm484_vm1, %v10437_v42  ;;  %v2091_v42 = vshrl.u32 %v10454_v25, 16  ;;  %v2101_v50 = vor.u32 %v2099_v43, %v2097_v46  ;;  %v2135_v7 = vshll.u32 %v10466_v62, 16  ;;  %v2139_v20 = vshrl.u32 %v10466_v62, 16  ;;  %v10472_v25 = vld [vmem:[%s13809_s0 + $0xb0] sm:$0xff]   ;;  %v10475_v54 = vld [vmem:[%s13809_s0 + $0xc8] sm:$0xff]  }
  0x18   :  { %v2085_v37 = vor.u32 %v2083_v30, %v2081_v33  ;;  %v2082_v41 = vsel %vm1982_vm2, %v2077_v34, %v2081_v33  ;;  %v2121_v2 = vrot.slane %v2119_v59, 1  ;;  %v10474_v30 = vld [vmem:[%s13809_s0 + $0xb8] sm:$0xff]   ;;  %v2159_v33 = vshll.u32 %v10472_v25, 16  ;;  %v10477_v59 = vld [vmem:[%s13809_s0 + $0xd0] sm:$0xff]  }
  0x19   :  { %v2093_v49 = vor.u32 %v2091_v42, %v2089_v38  ;;  %v2106_v57 = vsel %vm1982_vm2, %v2101_v50, %v2105_v51  ;;  %v2137_v14 = vrot.slane %v2135_v7, 1  ;;  %v10471_v42 = vld [vmem:[%s13809_s0 + $0xb8] sm:$0xff]  }
  0x1a   :  { %v2090_v45 = vsel %vm1982_vm2, %v2085_v37, %v2089_v38  ;;  %v2167_v37 = vshll.u32 %v10474_v30, 16  ;;  %v10476_v38 = vld [vmem:[%s13809_s0 + $0xc0] sm:$0xff]  }
  0x1b   :  { %v2098_v55 = vsel %vm1982_vm2, %v2093_v49, %v2097_v46  ;;  %v2175_v46 = vshll.u32 %v10476_v38, 16 }
  0x1c   :  { %10027 = vmatmul.mubr.msk.bf16.gmra.mrb[8].mxu1 %vm484_vm1, %v2034_v63  ;;  %v2109_v63 = vor.u32 %v2107_v56, %v2105_v51  ;;  %v2169_v44 = vrot.slane %v2167_v37, 1  ;;  %v2179_v51 = vshrl.u32 %v10476_v38, 16  ;;  %v10489_v37 = vld [vmem:[%s13809_s0 + $0x100] sm:$0xff]  }
  0x1d   :  { %10030 = vmatprep.mubr.msk.bf16.mxu1 %vm484_vm1, %v2042_v3  ;;  %v10461_v3 = vld [vmem:[%s13809_s0 + $0x90] sm:$0xff]  }
  0x1e   :  { %9897 = vmatmul.mubr.msk.bf16.gmra.mrb[12].mxu0 %vm484_vm1, %v10439_v58  ;;  %v2115_v58 = vshrl.u32 %v10460_v47, 16  ;;  %v2114_v5 = vsel %vm1982_vm2, %v2109_v63, %v2113_v60 }
  0x1f   :  { %9900 = vmatprep.mubr.msk.bf16.mxu0 %vm484_vm1, %v10441_v61  ;;  %v10464_v61 = vld [vmem:[%s13809_s0 + $0x90] sm:$0xff]  }
  0x20   :  { %v2117_v1 = vor.u32 %v2115_v58, %v2113_v60  ;;  %v2127_v4 = vshll.u32 %v10464_v61, 16  ;;  %v2131_v9 = vshrl.u32 %v10464_v61, 16 }
  0x22   :  { %v2122_v8 = vsel %vm1982_vm2, %v2117_v1, %v2121_v2 }
  0x24   :  { %10031 = vmatmul.mubr.msk.bf16.gmra.mrb[12].mxu1 %vm484_vm1, %v2050_v13 }
  0x25   :  { %10034 = vmatprep.mubr.msk.bf16.mxu1 %vm484_vm1, %v2058_v15  ;;  %v10470_v15 = vld [vmem:[%s13809_s0 + $0xa8] sm:$0xff]  }
  0x26   :  { %9901 = vmatmul.mubr.msk.bf16.gmra.mrb[16].mxu0 %vm484_vm1, %v10443_v6  ;;  %v2123_v6 = vshrl.u32 %v10462_v52, 16  ;;  %v2151_v23 = vshll.u32 %v10470_v15, 16  ;;  %v2155_v32 = vshrl.u32 %v10470_v15, 16  ;;  %v2177_v52 = vrot.slane %v2175_v46, 1  ;;  %v10496_v46 = vld [vmem:[%s13809_s0 + $0x110] sm:$0xff]  }
  0x27   :  { %9904 = vmatprep.mubr.msk.bf16.mxu0 %vm484_vm1, %v10445_v11  ;;  %v2129_v11 = vrot.slane %v2127_v4, 1  ;;  %v10479_v4 = vld [vmem:[%s13809_s0 + $0xd8] sm:$0xff]  }
  0x28   :  { %v2125_v13 = vor.u32 %v2123_v6, %v2121_v2  ;;  %v2181_v58 = vor.u32 %v2179_v51, %v2177_v52  ;;  %v10481_v6 = vld [vmem:[%s13809_s0 + $0xe0] sm:$0xff]   ;;  %v10498_v51 = vld [vmem:[%s13809_s0 + $0x118] sm:$0xff]  }
  0x29   :  { %v2133_v16 = vor.u32 %v2131_v9, %v2129_v11  ;;  %v10486_v9 = vld [vmem:[%s13809_s0 + $0xe8] sm:$0xff]  }
  0x2a   :  { %v2130_v19 = vsel %vm1982_vm2, %v2125_v13, %v2129_v11  ;;  %v2215_v15 = vshll.u32 %v10486_v9, 16 }
  0x2b   :  { %v2138_v21 = vsel %vm1982_vm2, %v2133_v16, %v2137_v14  ;;  %v10488_v16 = vld [vmem:[%s13809_s0 + $0xf0] sm:$0xff]  }
  0x2c   :  { %10035 = vmatmul.mubr.msk.bf16.gmra.mrb[16].mxu1 %vm484_vm1, %v2066_v27  ;;  %v2141_v27 = vor.u32 %v2139_v20, %v2137_v14  ;;  %v10483_v20 = vld [vmem:[%s13809_s0 + $0xe8] sm:$0xff]  }
  0x2d   :  { %10038 = vmatprep.mubr.msk.bf16.mxu1 %vm484_vm1, %v2074_v29  ;;  %v2153_v29 = vrot.slane %v2151_v23, 1  ;;  %v10485_v23 = vld [vmem:[%s13809_s0 + $0xf0] sm:$0xff]  }
  0x2e   :  { %9905 = vmatmul.mubr.msk.bf16.gmra.mrb[20].mxu0 %vm484_vm1, %v10447_v18  ;;  %v2143_v18 = vshll.u32 %v10468_v10, 16 }
  0x2f   :  { %9908 = vmatprep.mubr.msk.bf16.mxu0 %vm484_vm1, %v10449_v22  ;;  %v2147_v22 = vshrl.u32 %v10468_v10, 16  ;;  %v2157_v40 = vor.u32 %v2155_v32, %v2153_v29  ;;  %v10487_v32 = vld [vmem:[%s13809_s0 + $0xf8] sm:$0xff]  }
  0x30   :  { %v2145_v24 = vrot.slane %v2143_v18, 1 }
  0x32   :  { %v2149_v28 = vor.u32 %v2147_v22, %v2145_v24  ;;  %v2146_v34 = vsel %vm1982_vm2, %v2141_v27, %v2145_v24  ;;  %v2217_v22 = vrot.slane %v2215_v15, 1  ;;  %v2223_v24 = vshll.u32 %v10488_v16, 16  ;;  %v10501_v15 = vld [vmem:[%s13809_s0 + $0x130] sm:$0xff]  }
  0x33   :  { %v2227_v27 = vshrl.u32 %v10488_v16, 16 }
  0x34   :  { %10039 = vmatmul.mubr.msk.bf16.gmra.mrb[20].mxu1 %vm484_vm1, %v2082_v41  ;;  %v2154_v35 = vsel %vm1982_vm2, %v2149_v28, %v2153_v29  ;;  %v10478_v41 = vld [vmem:[%s13809_s0 + $0xc8] sm:$0xff]  }
  0x35   :  { %10042 = vmatprep.mubr.msk.bf16.mxu1 %vm484_vm1, %v2090_v45  ;;  %v10473_v45 = vld [vmem:[%s13809_s0 + $0xc0] sm:$0xff]   ;;  %v2183_v49 = vshll.u32 %v10478_v41, 16  ;;  %v2187_v62 = vshrl.u32 %v10478_v41, 16 }
  0x36   :  { %9909 = vmatmul.mubr.msk.bf16.gmra.mrb[24].mxu0 %vm484_vm1, %v10451_v36  ;;  %v2163_v36 = vshrl.u32 %v10472_v25, 16 }
  0x37   :  { %9912 = vmatprep.mubr.msk.bf16.mxu0 %vm484_vm1, %v10453_v39  ;;  %v2161_v39 = vrot.slane %v2159_v33, 1  ;;  %v2185_v56 = vrot.slane %v2183_v49, 1 }
  0x39   :  { %v2165_v43 = vor.u32 %v2163_v36, %v2161_v39  ;;  %v2162_v47 = vsel %vm1982_vm2, %v2157_v40, %v2161_v39  ;;  %v2186_v63 = vsel %vm1982_vm2, %v2181_v58, %v2185_v56  ;;  %v10494_v36 = vld [vmem:[%s13809_s0 + $0x108] sm:$0xff]   ;;  %v10500_v58 = vld [vmem:[%s13809_s0 + $0x120] sm:$0xff]  }
  0x3b   :  { %v2170_v50 = vsel %vm1982_vm2, %v2165_v43, %v2169_v44  ;;  %v2247_v43 = vshll.u32 %v10494_v36, 16 }
  0x3c   :  { %10043 = vmatmul.mubr.msk.bf16.gmra.mrb[24].mxu1 %vm484_vm1, %v2098_v55 }
  0x3d   :  { %10046 = vmatprep.mubr.msk.bf16.mxu1 %vm484_vm1, %v2106_v57  ;;  %v10482_v57 = vld [vmem:[%s13809_s0 + $0xd8] sm:$0xff]  }
  0x3e   :  { %9913 = vmatmul.mubr.msk.bf16.gmra.mrb[28].mxu0 %vm484_vm1, %v10455_v48  ;;  %v2171_v48 = vshrl.u32 %v10474_v30, 16  ;;  %v2199_v1 = vshll.u32 %v10482_v57, 16  ;;  %v2203_v10 = vshrl.u32 %v10482_v57, 16  ;;  %v2225_v30 = vrot.slane %v2223_v24, 1 }
  0x3f   :  { %9916 = vmatprep.mubr.msk.bf16.mxu0 %vm484_vm1, %v10457_v53  ;;  %v10480_v53 = vld [vmem:[%s13809_s0 + $0xd0] sm:$0xff]   ;;  %v2263_v57 = vshll.u32 %v10498_v51, 16 }
  0x40   :  { %v2173_v55 = vor.u32 %v2171_v48, %v2169_v44  ;;  %v2191_v60 = vshll.u32 %v10480_v53, 16  ;;  %v10491_v44 = vld [vmem:[%s13809_s0 + $0x108] sm:$0xff]   ;;  %v10493_v48 = vld [vmem:[%s13809_s0 + $0x110] sm:$0xff]  }
  0x42   :  { %v2178_v61 = vsel %vm1982_vm2, %v2173_v55, %v2177_v52  ;;  %v2193_v2 = vrot.slane %v2191_v60, 1  ;;  %v2255_v52 = vshll.u32 %v10496_v46, 16 }
  0x44   :  { %10047 = vmatmul.mubr.msk.bf16.gmra.mrb[28].mxu1 %vm484_vm1, %v2114_v5  ;;  %v2189_v5 = vor.u32 %v2187_v62, %v2185_v56  ;;  %v2259_v56 = vshrl.u32 %v10496_v46, 16  ;;  %v10495_v62 = vld [vmem:[%s13809_s0 + $0x118] sm:$0xff]  }
  0x45   :  { %10050 = vmatprep.mubr.msk.bf16.mxu1 %vm484_vm1, %v2122_v8  ;;  %v2201_v8 = vrot.slane %v2199_v1, 1  ;;  %v10497_v1 = vld [vmem:[%s13809_s0 + $0x120] sm:$0xff]  }
  0x46   :  { %9917 = vmatmul.mubr.msk.bf16.gmra.mrb[32].mxu0 %vm484_vm1, %v10459_v0  ;;  %v2195_v0 = vshrl.u32 %v10480_v53, 16 }
  0x47   :  { %9920 = vmatprep.mubr.msk.bf16.mxu0 %vm484_vm1, %v10461_v3  ;;  %v10484_v3 = vld [vmem:[%s13809_s0 + $0xe0] sm:$0xff]   ;;  %v2205_v18 = vor.u32 %v2203_v10, %v2201_v8  ;;  %v10499_v10 = vld [vmem:[%s13809_s0 + $0x128] sm:$0xff]  }
  0x48   :  { %v2197_v7 = vor.u32 %v2195_v0, %v2193_v2  ;;  %v2207_v11 = vshll.u32 %v10484_v3, 16  ;;  %v2211_v14 = vshrl.u32 %v10484_v3, 16  ;;  %v2265_v0 = vrot.slane %v2263_v57, 1  ;;  %v10513_v57 = vld [vmem:[%s13809_s0 + $0x160] sm:$0xff]  }
  0x4a   :  { %v2202_v13 = vsel %vm1982_vm2, %v2197_v7, %v2201_v8 }
  0x4c   :  { %10051 = vmatmul.mubr.msk.bf16.gmra.mrb[32].mxu1 %vm484_vm1, %v2130_v19  ;;  %v10490_v19 = vld [vmem:[%s13809_s0 + $0xf8] sm:$0xff]  }
  0x4d   :  { %10054 = vmatprep.mubr.msk.bf16.mxu1 %vm484_vm1, %v2138_v21  ;;  %v2231_v28 = vshll.u32 %v10490_v19, 16  ;;  %v2235_v40 = vshrl.u32 %v10490_v19, 16 }
  0x4e   :  { %9921 = vmatmul.mubr.msk.bf16.gmra.mrb[36].mxu0 %vm484_vm1, %v10463_v12  ;;  %v2194_v12 = vsel %vm1982_vm2, %v2189_v5, %v2193_v2  ;;  %v2271_v2 = vshll.u32 %v10500_v58, 16  ;;  %v2275_v5 = vshrl.u32 %v10500_v58, 16 }
  0x4f   :  { %9924 = vmatprep.mubr.msk.bf16.mxu0 %vm484_vm1, %v10465_v17  ;;  %v2209_v17 = vrot.slane %v2207_v11, 1 }
  0x50   :  { %v2273_v8 = vrot.slane %v2271_v2, 1 }
  0x51   :  { %v2213_v21 = vor.u32 %v2211_v14, %v2209_v17  ;;  %v2210_v25 = vsel %vm1982_vm2, %v2205_v18, %v2209_v17  ;;  %v10506_v14 = vld [vmem:[%s13809_s0 + $0x138] sm:$0xff]  }
  0x53   :  { %v2218_v29 = vsel %vm1982_vm2, %v2213_v21, %v2217_v22  ;;  %v2295_v21 = vshll.u32 %v10506_v14, 16 }
  0x54   :  { %10055 = vmatmul.mubr.msk.bf16.gmra.mrb[36].mxu1 %vm484_vm1, %v2146_v34  ;;  %v2229_v34 = vor.u32 %v2227_v27, %v2225_v30 }
  0x55   :  { %10058 = vmatprep.mubr.msk.bf16.mxu1 %vm484_vm1, %v2154_v35  ;;  %v2233_v35 = vrot.slane %v2231_v28, 1  ;;  %v2297_v27 = vrot.slane %v2295_v21, 1  ;;  %v10510_v28 = vld [vmem:[%s13809_s0 + $0x148] sm:$0xff]   ;;  %v10521_v21 = vld [vmem:[%s13809_s0 + $0x180] sm:$0xff]  }
  0x56   :  { %9925 = vmatmul.mubr.msk.bf16.gmra.mrb[40].mxu0 %vm484_vm1, %v10467_v26  ;;  %v2219_v26 = vshrl.u32 %v10486_v9, 16  ;;  %v10504_v9 = vld [vmem:[%s13809_s0 + $0x130] sm:$0xff]   ;;  %v2315_v46 = vshrl.u32 %v10510_v28, 16 }
  0x57   :  { %9928 = vmatprep.mubr.msk.bf16.mxu0 %vm484_vm1, %v10469_v31  ;;  %v10492_v31 = vld [vmem:[%s13809_s0 + $0x100] sm:$0xff]   ;;  %v2234_v41 = vsel %vm1982_vm2, %v2229_v34, %v2233_v35  ;;  %v2287_v16 = vshll.u32 %v10504_v9, 16 }
  0x58   :  { %v2221_v33 = vor.u32 %v2219_v26, %v2217_v22  ;;  %v2239_v38 = vshll.u32 %v10492_v31, 16 }
  0x59   :  { %v2289_v22 = vrot.slane %v2287_v16, 1 }
  0x5a   :  { %v2226_v39 = vsel %vm1982_vm2, %v2221_v33, %v2225_v30 }
  0x5c   :  { %10059 = vmatmul.mubr.msk.bf16.gmra.mrb[40].mxu1 %vm484_vm1, %v2162_v47  ;;  %v2237_v47 = vor.u32 %v2235_v40, %v2233_v35  ;;  %v2311_v35 = vshll.u32 %v10510_v28, 16 }
  0x5d   :  { %10062 = vmatprep.mubr.msk.bf16.mxu1 %vm484_vm1, %v2170_v50  ;;  %v2249_v50 = vrot.slane %v2247_v43, 1  ;;  %v10509_v43 = vld [vmem:[%s13809_s0 + $0x150] sm:$0xff]  }
  0x5e   :  { %9929 = vmatmul.mubr.msk.bf16.gmra.mrb[44].mxu0 %vm484_vm1, %v10471_v42  ;;  %v2243_v42 = vshrl.u32 %v10492_v31, 16 }
  0x5f   :  { %9932 = vmatprep.mubr.msk.bf16.mxu0 %vm484_vm1, %v10473_v45  ;;  %v2241_v45 = vrot.slane %v2239_v38, 1  ;;  %v10507_v38 = vld [vmem:[%s13809_s0 + $0x148] sm:$0xff]  }
  0x61   :  { %v2245_v49 = vor.u32 %v2243_v42, %v2241_v45  ;;  %v2242_v53 = vsel %vm1982_vm2, %v2237_v47, %v2241_v45  ;;  %v10514_v42 = vld [vmem:[%s13809_s0 + $0x158] sm:$0xff]  }
  0x63   :  { %v2250_v55 = vsel %vm1982_vm2, %v2245_v49, %v2249_v50  ;;  %v2327_v49 = vshll.u32 %v10514_v42, 16 }
  0x64   :  { %10063 = vmatmul.mubr.msk.bf16.gmra.mrb[44].mxu1 %vm484_vm1, %v2178_v61  ;;  %v10502_v61 = vld [vmem:[%s13809_s0 + $0x128] sm:$0xff]  }
  0x65   :  { %10066 = vmatprep.mubr.msk.bf16.mxu1 %vm484_vm1, %v2186_v63  ;;  %v2283_v18 = vshrl.u32 %v10502_v61, 16 }
  0x66   :  { %9933 = vmatmul.mubr.msk.bf16.gmra.mrb[48].mxu0 %vm484_vm1, %v10475_v54  ;;  %v2251_v54 = vshrl.u32 %v10494_v36, 16 }
  0x67   :  { %9936 = vmatprep.mubr.msk.bf16.mxu0 %vm484_vm1, %v10477_v59  ;;  %v2257_v59 = vrot.slane %v2255_v52, 1  ;;  %v10511_v52 = vld [vmem:[%s13809_s0 + $0x158] sm:$0xff]  }
  0x68   :  { %v2253_v60 = vor.u32 %v2251_v54, %v2249_v50 }
  0x69   :  { %v2261_v63 = vor.u32 %v2259_v56, %v2257_v59  ;;  %v10518_v56 = vld [vmem:[%s13809_s0 + $0x168] sm:$0xff]  }
  0x6a   :  { %v2258_v3 = vsel %vm1982_vm2, %v2253_v60, %v2257_v59  ;;  %v2331_v60 = vshrl.u32 %v10514_v42, 16 }
  0x6b   :  { %v2266_v7 = vsel %vm1982_vm2, %v2261_v63, %v2265_v0  ;;  %v2343_v63 = vshll.u32 %v10518_v56, 16 }
  0x6c   :  { %10067 = vmatmul.mubr.msk.bf16.gmra.mrb[48].mxu1 %vm484_vm1, %v2194_v12  ;;  %v2277_v12 = vor.u32 %v2275_v5, %v2273_v8 }
  0x6d   :  { %10070 = vmatprep.mubr.msk.bf16.mxu1 %vm484_vm1, %v2202_v13  ;;  %v2345_v5 = vrot.slane %v2343_v63, 1  ;;  %v10533_v63 = vld [vmem:[%s13809_s0 + $0x1b0] sm:$0xff]  }
  0x6e   :  { %9937 = vmatmul.mubr.msk.bf16.gmra.mrb[52].mxu0 %vm484_vm1, %v10479_v4  ;;  %v2267_v4 = vshrl.u32 %v10498_v51, 16  ;;  %v10516_v51 = vld [vmem:[%s13809_s0 + $0x160] sm:$0xff]  }
  0x6f   :  { %9940 = vmatprep.mubr.msk.bf16.mxu0 %vm484_vm1, %v10481_v6  ;;  %v2279_v6 = vshll.u32 %v10502_v61, 16  ;;  %v2335_v58 = vshll.u32 %v10516_v51, 16 }
  0x70   :  { %v2269_v11 = vor.u32 %v2267_v4, %v2265_v0 }
  0x71   :  { %v2281_v13 = vrot.slane %v2279_v6, 1  ;;  %v2337_v0 = vrot.slane %v2335_v58, 1  ;;  %v10522_v6 = vld [vmem:[%s13809_s0 + $0x178] sm:$0xff]  }
  0x72   :  { %v2274_v17 = vsel %vm1982_vm2, %v2269_v11, %v2273_v8 }
  0x73   :  { %v2282_v19 = vsel %vm1982_vm2, %v2277_v12, %v2281_v13  ;;  %v2285_v24 = vor.u32 %v2283_v18, %v2281_v13  ;;  %v2359_v13 = vshll.u32 %v10522_v6, 16 }
  0x74   :  { %10071 = vmatmul.mubr.msk.bf16.gmra.mrb[52].mxu1 %vm484_vm1, %v2210_v25  ;;  %v10503_v25 = vld [vmem:[%s13809_s0 + $0x138] sm:$0xff]  }
  0x75   :  { %10074 = vmatprep.mubr.msk.bf16.mxu1 %vm484_vm1, %v2218_v29  ;;  %v10505_v29 = vld [vmem:[%s13809_s0 + $0x140] sm:$0xff]   ;;  %v2290_v31 = vsel %vm1982_vm2, %v2285_v24, %v2289_v22  ;;  %v2363_v24 = vshrl.u32 %v10522_v6, 16 }
  0x76   :  { %9941 = vmatmul.mubr.msk.bf16.gmra.mrb[56].mxu0 %vm484_vm1, %v10483_v20  ;;  %v2291_v20 = vshrl.u32 %v10504_v9, 16 }
  0x77   :  { %9944 = vmatprep.mubr.msk.bf16.mxu0 %vm484_vm1, %v10485_v23  ;;  %v10508_v23 = vld [vmem:[%s13809_s0 + $0x140] sm:$0xff]  }
  0x78   :  { %v2293_v26 = vor.u32 %v2291_v20, %v2289_v22  ;;  %v2303_v30 = vshll.u32 %v10508_v23, 16  ;;  %v2307_v34 = vshrl.u32 %v10508_v23, 16  ;;  %v10526_v20 = vld [vmem:[%s13809_s0 + $0x188] sm:$0xff]  }
  0x7a   :  { %v2298_v33 = vsel %vm1982_vm2, %v2293_v26, %v2297_v27  ;;  %v2305_v36 = vrot.slane %v2303_v30, 1 }
  0x7c   :  { %10075 = vmatmul.mubr.msk.bf16.gmra.mrb[56].mxu1 %vm484_vm1, %v2226_v39  ;;  %v2309_v40 = vor.u32 %v2307_v34, %v2305_v36  ;;  %v10530_v34 = vld [vmem:[%s13809_s0 + $0x198] sm:$0xff]  }
  0x7d   :  { %10078 = vmatprep.mubr.msk.bf16.mxu1 %vm484_vm1, %v2234_v41  ;;  %v2313_v41 = vrot.slane %v2311_v35, 1  ;;  %v10525_v35 = vld [vmem:[%s13809_s0 + $0x190] sm:$0xff]  }
  0x7e   :  { %9945 = vmatmul.mubr.msk.bf16.gmra.mrb[60].mxu0 %vm484_vm1, %v10487_v32  ;;  %v2299_v32 = vshrl.u32 %v10506_v14, 16 }
  0x7f   :  { %9948 = vmatprep.mubr.msk.bf16.mxu0 %vm484_vm1, %v10489_v37  ;;  %v10512_v37 = vld [vmem:[%s13809_s0 + $0x150] sm:$0xff]   ;;  %v2314_v47 = vsel %vm1982_vm2, %v2309_v40, %v2313_v41 }
  0x80   :  { %v2301_v39 = vor.u32 %v2299_v32, %v2297_v27  ;;  %v2375_v27 = vshll.u32 %v10526_v20, 16 }
  0x82   :  { %v2306_v45 = vsel %vm1982_vm2, %v2301_v39, %v2305_v36 }
  0x84   :  { %10079 = vmatmul.mubr.msk.bf16.gmra.mrb[60].mxu1 %vm484_vm1, %v2242_v53  ;;  %v2317_v53 = vor.u32 %v2315_v46, %v2313_v41  ;;  %v2391_v41 = vshll.u32 %v10530_v34, 16 }
  0x85   :  { %10082 = vmatprep.mubr.msk.bf16.mxu1 %vm484_vm1, %v2250_v55  ;;  %v2329_v55 = vrot.slane %v2327_v49, 1  ;;  %v10529_v49 = vld [vmem:[%s13809_s0 + $0x1a0] sm:$0xff]  }
  0x86   :  { %9949 = vmatmul.mubr.msk.bf16.gmra.mrb[64].mxu0 %vm484_vm1, %v10491_v44  ;;  %v2319_v44 = vshll.u32 %v10512_v37, 16 }
  0x87   :  { %9952 = vmatprep.mubr.msk.bf16.mxu0 %vm484_vm1, %v10493_v48  ;;  %v2323_v48 = vshrl.u32 %v10512_v37, 16  ;;  %v2333_v2 = vor.u32 %v2331_v60, %v2329_v55 }
  0x88   :  { %v2321_v50 = vrot.slane %v2319_v44, 1 }
  0x89   :  { %v2338_v9 = vsel %vm1982_vm2, %v2333_v2, %v2337_v0 }
  0x8a   :  { %v2325_v54 = vor.u32 %v2323_v48, %v2321_v50  ;;  %v2322_v59 = vsel %vm1982_vm2, %v2317_v53, %v2321_v50  ;;  %v10534_v48 = vld [vmem:[%s13809_s0 + $0x1a8] sm:$0xff]  }
  0x8b   :  { %v2411_v2 = vshrl.u32 %v10534_v48, 16 }
  0x8c   :  { %10083 = vmatmul.mubr.msk.bf16.gmra.mrb[64].mxu1 %vm484_vm1, %v2258_v3  ;;  %v2330_v61 = vsel %vm1982_vm2, %v2325_v54, %v2329_v55  ;;  %v10515_v3 = vld [vmem:[%s13809_s0 + $0x168] sm:$0xff]   ;;  %v2407_v55 = vshll.u32 %v10534_v48, 16 }
  0x8d   :  { %10086 = vmatprep.mubr.msk.bf16.mxu1 %vm484_vm1, %v2266_v7  ;;  %v10517_v7 = vld [vmem:[%s13809_s0 + $0x170] sm:$0xff]  }
  0x8e   :  { %9953 = vmatmul.mubr.msk.bf16.gmra.mrb[68].mxu0 %vm484_vm1, %v10495_v62  ;;  %v2339_v62 = vshrl.u32 %v10516_v51, 16 }
  0x8f   :  { %9956 = vmatprep.mubr.msk.bf16.mxu0 %vm484_vm1, %v10497_v1  ;;  %v10520_v1 = vld [vmem:[%s13809_s0 + $0x170] sm:$0xff]  }
  0x90   :  { %v2341_v4 = vor.u32 %v2339_v62, %v2337_v0  ;;  %v2351_v8 = vshll.u32 %v10520_v1, 16  ;;  %v2355_v12 = vshrl.u32 %v10520_v1, 16  ;;  %v10538_v62 = vld [vmem:[%s13809_s0 + $0x1b8] sm:$0xff]  }
  0x92   :  { %v2346_v11 = vsel %vm1982_vm2, %v2341_v4, %v2345_v5  ;;  %v2353_v14 = vrot.slane %v2351_v8, 1 }
  0x94   :  { %10087 = vmatmul.mubr.msk.bf16.gmra.mrb[68].mxu1 %vm484_vm1, %v2274_v17  ;;  %v10519_v17 = vld [vmem:[%s13809_s0 + $0x178] sm:$0xff]   ;;  %v2357_v18 = vor.u32 %v2355_v12, %v2353_v14 }
  0x95   :  { %10090 = vmatprep.mubr.msk.bf16.mxu1 %vm484_vm1, %v2282_v19  ;;  %v2361_v19 = vrot.slane %v2359_v13, 1 }
  0x96   :  { %9957 = vmatmul.mubr.msk.bf16.gmra.mrb[72].mxu0 %vm484_vm1, %v10499_v10  ;;  %v2347_v10 = vshrl.u32 %v10518_v56, 16 }
  0x97   :  { %9960 = vmatprep.mubr.msk.bf16.mxu0 %vm484_vm1, %v10501_v15  ;;  %v10524_v15 = vld [vmem:[%s13809_s0 + $0x180] sm:$0xff]   ;;  %v2365_v30 = vor.u32 %v2363_v24, %v2361_v19 }
  0x98   :  { %v2349_v16 = vor.u32 %v2347_v10, %v2345_v5  ;;  %v2367_v22 = vshll.u32 %v10524_v15, 16  ;;  %v2371_v26 = vshrl.u32 %v10524_v15, 16  ;;  %v2423_v5 = vshll.u32 %v10538_v62, 16 }
  0x9a   :  { %v2354_v23 = vsel %vm1982_vm2, %v2349_v16, %v2353_v14  ;;  %v2369_v28 = vrot.slane %v2367_v22, 1  ;;  %v2425_v13 = vrot.slane %v2423_v5, 1  ;;  %v11240_v14 = vld [vmem:[%s13809_s0 + $0x1c8] sm:$0xff]   ;;  %v10537_v16 = vld [vmem:[%s13809_s0 + $0x1c0] sm:$0xff]  }
  0x9c   :  { %10091 = vmatmul.mubr.msk.bf16.gmra.mrb[72].mxu1 %vm484_vm1, %v2290_v31  ;;  %v10523_v31 = vld [vmem:[%s13809_s0 + $0x188] sm:$0xff]   ;;  %v2373_v32 = vor.u32 %v2371_v26, %v2369_v28  ;;  %v2370_v37 = vsel %vm1982_vm2, %v2365_v30, %v2369_v28 }
  0x9d   :  { %10094 = vmatprep.mubr.msk.bf16.mxu1 %vm484_vm1, %v2298_v33  ;;  %v2377_v33 = vrot.slane %v2375_v27, 1 }
  0x9e   :  { %9961 = vmatmul.mubr.msk.bf16.gmra.mrb[76].mxu0 %vm484_vm1, %v10503_v25  ;;  %v2362_v25 = vsel %vm1982_vm2, %v2357_v18, %v2361_v19 }
  0x9f   :  { %9964 = vmatprep.mubr.msk.bf16.mxu0 %vm484_vm1, %v10505_v29  ;;  %v10528_v29 = vld [vmem:[%s13809_s0 + $0x190] sm:$0xff]   ;;  %v2378_v39 = vsel %vm1982_vm2, %v2373_v32, %v2377_v33 }
  0xa0   :  { %v2383_v36 = vshll.u32 %v10528_v29, 16  ;;  %v2387_v40 = vshrl.u32 %v10528_v29, 16 }
  0xa2   :  { %v2385_v42 = vrot.slane %v2383_v36, 1 }
  0xa4   :  { %10095 = vmatmul.mubr.msk.bf16.gmra.mrb[76].mxu1 %vm484_vm1, %v2306_v45  ;;  %v10527_v45 = vld [vmem:[%s13809_s0 + $0x198] sm:$0xff]   ;;  %v2389_v46 = vor.u32 %v2387_v40, %v2385_v42 }
  0xa5   :  { %10098 = vmatprep.mubr.msk.bf16.mxu1 %vm484_vm1, %v2314_v47  ;;  %v2393_v47 = vrot.slane %v2391_v41, 1 }
  0xa6   :  { %9965 = vmatmul.mubr.msk.bf16.gmra.mrb[80].mxu0 %vm484_vm1, %v10507_v38  ;;  %v2379_v38 = vshrl.u32 %v10526_v20, 16  ;;  %v2427_v20 = vshrl.u32 %v10538_v62, 16 }
  0xa7   :  { %9968 = vmatprep.mubr.msk.bf16.mxu0 %vm484_vm1, %v10509_v43  ;;  %v10532_v43 = vld [vmem:[%s13809_s0 + $0x1a0] sm:$0xff]   ;;  %v2394_v53 = vsel %vm1982_vm2, %v2389_v46, %v2393_v47 }
  0xa8   :  { %v2381_v44 = vor.u32 %v2379_v38, %v2377_v33  ;;  %v2399_v50 = vshll.u32 %v10532_v43, 16  ;;  %v2403_v54 = vshrl.u32 %v10532_v43, 16  ;;  %v2429_v28 = vor.u32 %v2427_v20, %v2425_v13  ;;  %v10541_v38 = vld [vmem:[%s13809_s0 + $0x1d0] sm:$0xff]  }
  0xaa   :  { %v2386_v51 = vsel %vm1982_vm2, %v2381_v44, %v2385_v42  ;;  %v2401_v56 = vrot.slane %v2399_v50, 1 }
  0xac   :  { %10099 = vmatmul.mubr.msk.bf16.gmra.mrb[80].mxu1 %vm484_vm1, %v2322_v59  ;;  %v10531_v59 = vld [vmem:[%s13809_s0 + $0x1a8] sm:$0xff]   ;;  %v2405_v60 = vor.u32 %v2403_v54, %v2401_v56 }
  0xad   :  { %10102 = vmatprep.mubr.msk.bf16.mxu1 %vm484_vm1, %v2330_v61  ;;  %v2409_v61 = vrot.slane %v2407_v55, 1  ;;  %v10548_v55 = vld [vmem:[%s13809_s0 + $0x1e0] sm:$0xff]  }
  0xae   :  { %9969 = vmatmul.mubr.msk.bf16.gmra.mrb[84].mxu0 %vm484_vm1, %v10511_v52  ;;  %v2395_v52 = vshrl.u32 %v10530_v34, 16  ;;  %v11265_v34 = vld [vmem:[%s13809_s0 + $0x1d8] sm:$0xff]  }
  0xaf   :  { %9972 = vmatprep.mubr.msk.bf16.mxu0 %vm484_vm1, %v10513_v57  ;;  %v10536_v57 = vld [vmem:[%s13809_s0 + $0x1b0] sm:$0xff]  }
  0xb0   :  { %v2397_v58 = vor.u32 %v2395_v52, %v2393_v47  ;;  %v2415_v0 = vshll.u32 %v10536_v57, 16  ;;  %v2419_v4 = vshrl.u32 %v10536_v57, 16  ;;  %v2443_v47 = vshrl.u32 %v11240_v14, 16 }
  0xb1   :  { %v2455_v52 = vshll.u32 %v11265_v34, 16 }
  0xb2   :  { %v2402_v1 = vsel %vm1982_vm2, %v2397_v58, %v2401_v56  ;;  %v2417_v6 = vrot.slane %v2415_v0, 1  ;;  %v11295_v0 = vld [vmem:[%s13809_s0 + $0x1e8] sm:$0xff]  }
  0xb4   :  { %10103 = vmatmul.mubr.msk.bf16.gmra.mrb[84].mxu1 %vm484_vm1, %v2338_v9  ;;  %v2413_v9 = vor.u32 %v2411_v2, %v2409_v61  ;;  %v2421_v12 = vor.u32 %v2419_v4, %v2417_v6  ;;  %v10545_v4 = vld [vmem:[%s13809_s0 + $0x1e0] sm:$0xff]  }
  0xb5   :  { %10106 = vmatprep.mubr.msk.bf16.mxu1 %vm484_vm1, %v2346_v11  ;;  %v10535_v11 = vld [vmem:[%s13809_s0 + $0x1b8] sm:$0xff]  }
  0xb6   :  { %9973 = vmatmul.mubr.msk.bf16.gmra.mrb[88].mxu0 %vm484_vm1, %v10515_v3  ;;  %v2410_v3 = vsel %vm1982_vm2, %v2405_v60, %v2409_v61  ;;  %v2418_v19 = vsel %vm1982_vm2, %v2413_v9, %v2417_v6  ;;  %v10543_v61 = vld [vmem:[%s13809_s0 + $0x1d8] sm:$0xff]   ;;  %v2463_v9 = vshll.u32 %v10548_v55, 16 }
  0xb7   :  { %9976 = vmatprep.mubr.msk.bf16.mxu0 %vm484_vm1, %v10517_v7  ;;  %v10540_v7 = vld [vmem:[%s13809_s0 + $0x1c0] sm:$0xff]  }
  0xb8   :  { %v2431_v18 = vshll.u32 %v10540_v7, 16  ;;  %v2435_v22 = vshrl.u32 %v10540_v7, 16  ;;  %v2465_v20 = vrot.slane %v2463_v9, 1 }
  0xba   :  { %v2433_v24 = vrot.slane %v2431_v18, 1  ;;  %v2471_v18 = vshll.u32 %v11295_v0, 16 }
  0xbc   :  { %10107 = vmatmul.mubr.msk.bf16.gmra.mrb[88].mxu1 %vm484_vm1, %v2354_v23  ;;  %v2439_v23 = vshll.u32 %v11240_v14, 16  ;;  %v2437_v32 = vor.u32 %v2435_v22, %v2433_v24  ;;  %v2434_v46 = vsel %vm1982_vm2, %v2429_v28, %v2433_v24  ;;  %v2467_v14 = vshrl.u32 %v10548_v55, 16 }
  0xbd   :  { %10110 = vmatprep.mubr.msk.bf16.mxu1 %vm484_vm1, %v2362_v25  ;;  %v10544_v25 = vld [vmem:[%s13809_s0 + $0x1d0] sm:$0xff]  }
  0xbe   :  { %9977 = vmatmul.mubr.msk.bf16.gmra.mrb[92].mxu0 %vm484_vm1, %v10519_v17  ;;  %v2441_v33 = vrot.slane %v2439_v23, 1  ;;  %v2447_v43 = vshll.u32 %v10544_v25, 16  ;;  %v2451_v48 = vshrl.u32 %v10544_v25, 16  ;;  %v2469_v28 = vor.u32 %v2467_v14, %v2465_v20  ;;  %v11383_v14 = vld [vmem:[%s13809_s0 + $0x20] sm:$0xff]  }
  0xbf   :  { %9980 = vmatprep.mubr.msk.bf16.mxu0 %vm484_vm1, %v10521_v21  ;;  %v2426_v21 = vsel %vm1982_vm2, %v2421_v12, %v2425_v13  ;;  %v2459_v13 = vshrl.u32 %v11265_v34, 16  ;;  %v10549_v34 = vld [vmem:[%s13809_s0 + $0x1f0] sm:$0xff]  }
  0xc0   :  { %v2449_v54 = vrot.slane %v2447_v43, 1  ;;  %v2445_v58 = vor.u32 %v2443_v47, %v2441_v33 }
  0xc2   :  { %v2453_v62 = vor.u32 %v2451_v48, %v2449_v54  ;;  %v2450_v12 = vsel %vm1982_vm2, %v2445_v58, %v2449_v54 }
  0xc4   :  { %10111 = vmatmul.mubr.msk.bf16.gmra.mrb[92].mxu1 %vm484_vm1, %v2370_v37 }
  0xc5   :  { %10114 = vmatprep.mubr.msk.bf16.mxu1 %vm484_vm1, %v2378_v39 }
  0xc6   :  { %9981 = vmatmul.mubr.msk.bf16.gmra.mrb[96].mxu0 %vm484_vm1, %v10523_v31  ;;  %v10539_v31 = vld [vmem:[%s13809_s0 + $0x1c8] sm:$0xff]  }
  0xc7   :  { %9984 = vmatprep.mubr.msk.bf16.mxu0 %vm484_vm1, %v10525_v35 }
  0xcc   :  { %10115 = vmatmul.mubr.msk.bf16.gmra.mrb[96].mxu1 %vm484_vm1, %v2386_v51  ;;  %v2442_v51 = vsel %vm1982_vm2, %v2437_v32, %v2441_v33 }
  0xcd   :  { %10118 = vmatprep.mubr.msk.bf16.mxu1 %vm484_vm1, %v2394_v53 }
  0xce   :  { %9985 = vmatmul.mubr.msk.bf16.gmra.mrb[100].mxu0 %vm484_vm1, %v10527_v45 }
  0xcf   :  { %9988 = vmatprep.mubr.msk.bf16.mxu0 %vm484_vm1, %v10529_v49 }
  0xd4   :  { %10119 = vmatmul.mubr.msk.bf16.gmra.mrb[100].mxu1 %vm484_vm1, %v2402_v1 }
  0xd5   :  { %10122 = vmatprep.mubr.msk.bf16.mxu1 %vm484_vm1, %v2410_v3 }
  0xd6   :  { %9989 = vmatmul.mubr.msk.bf16.gmra.mrb[104].mxu0 %vm484_vm1, %v10531_v59 }
  0xd7   :  { %9992 = vmatprep.mubr.msk.bf16.mxu0 %vm484_vm1, %v10533_v63  ;;  %v2457_v63 = vrot.slane %v2455_v52, 1  ;;  %v11354_v52 = vld [vmem:[%s13809_s0 + $0x18] sm:$0xff]  }
  0xd9   :  { %v9886_v8 = vpop.f32.mrb[0].mxu0  ;;  %v2461_v24 = vor.u32 %v2459_v13, %v2457_v63 }
  0xda   :  { %1251 = vst.msk [vmem:[#allocation2 + $0x10] sm:$0xff] %vm1248_vm3, %v9886_v8  ;;  %v721_v10 = vpop.f32.mrb[1].mxu0 }
  0xdb   :  { %1249 = vst.msk [vmem:[#allocation2] sm:$0xff] %vm1248_vm3, %v721_v10  ;;  %v9887_v15 = vpop.f32.mrb[2].mxu0  ;;  %v2466_v43 = vsel %vm1982_vm2, %v2461_v24, %v2465_v20 }
  0xdc   :  { %1252 = vst.msk [vmem:[#allocation2 + $0x18] sm:$0xff] %vm1248_vm3, %v9887_v15  ;;  %v724_v17 = vpop.f32.mrb[3].mxu0  ;;  %10123 = vmatmul.mubr.msk.bf16.gmra.mrb[104].mxu1 %vm484_vm1, %v2418_v19 }
  0xdd   :  { %1250 = vst.msk [vmem:[#allocation2 + $0x8] sm:$0xff] %vm1248_vm3, %v724_v17  ;;  %10126 = vmatprep.mubr.msk.bf16.mxu1 %vm484_vm1, %v2426_v21  ;;  %v2458_v17 = vsel %vm1982_vm2, %v2453_v62, %v2457_v63  ;;  %v10552_v21 = vld [vmem:[%s13809_s0 + $0x1f0] sm:$0xff]  }
  0xde   :  { %9993 = vmatmul.mubr.msk.bf16.gmra.mrb[108].mxu0 %vm484_vm1, %v10535_v11 }
  0xdf   :  { %9996 = vmatprep.mubr.msk.bf16.mxu0 %vm484_vm1, %v10537_v16  ;;  %v10020_v35 = vpop.f32.mrb[0].mxu1 }
  0xe0   :  { %v2755_v40 = vpop.f32.mrb[1].mxu1 }
  0xe1   :  { %v9890_v26 = vpop.f32.mrb[4].mxu0  ;;  %v1383_v27 = vld [vmem:[#allocation2 + $0x10] sm:$0xff]  ;;  %v10021_v45 = vpop.f32.mrb[2].mxu1 }
  0xe2   :  { %1255 = vst.msk [vmem:[#allocation2 + $0x30] sm:$0xff] %vm1248_vm3, %v9890_v26  ;;  %v737_v29 = vpop.f32.mrb[5].mxu0  ;;  %v1381_v30 = vld [vmem:[#allocation2] sm:$0xff]  ;;  %v3284_v39 = vadd.f32 %v10020_v35, %v1383_v27  ;;  %v2758_v50 = vpop.f32.mrb[3].mxu1  ;;  %v10547_v27 = vld [vmem:[%s13809_s0 + $0x1e8] sm:$0xff]  }
  0xe3   :  { %1253 = vst.msk [vmem:[#allocation2 + $0x20] sm:$0xff] %vm1248_vm3, %v737_v29  ;;  %v9891_v36 = vpop.f32.mrb[6].mxu0  ;;  %v1384_v37 = vld [vmem:[#allocation2 + $0x18] sm:$0xff]  ;;  %v3282_v44 = vadd.f32 %v2755_v40, %v1381_v30  ;;  %v2473_v29 = vrot.slane %v2471_v18, 1  ;;  %v11335_v40 = vld [vmem:[%s13809_s0 + $0x10] sm:$0xff]  }
  0xe4   :  { %1256 = vst.msk [vmem:[#allocation2 + $0x38] sm:$0xff] %vm1248_vm3, %v9891_v36  ;;  %v740_v41 = vpop.f32.mrb[7].mxu0  ;;  %v1382_v42 = vld [vmem:[#allocation2 + $0x8] sm:$0xff]  ;;  %3416 = vst.msk [vmem:[#allocation2 + $0x10] sm:$0xff] %vm1248_vm3, %v3284_v39  ;;  %v3285_v49 = vadd.f32 %v10021_v45, %v1384_v37  ;;  %10127 = vmatmul.mubr.msk.bf16.gmra.mrb[108].mxu1 %vm484_vm1, %v2434_v46  ;;  %v11325_v30 = vld [vmem:[%s13809_s0 + $0x1f8] sm:$0xff]   ;;  %v2479_v39 = vshll.u32 %v10552_v21, 16 }
  0xe5   :  { %1254 = vst.msk [vmem:[#allocation2 + $0x28] sm:$0xff] %vm1248_vm3, %v740_v41  ;;  %3414 = vst.msk [vmem:[#allocation2] sm:$0xff] %vm1248_vm3, %v3282_v44  ;;  %v3283_v53 = vadd.f32 %v2758_v50, %v1382_v42  ;;  %10130 = vmatprep.mubr.msk.bf16.mxu1 %vm484_vm1, %v2442_v51  ;;  %v2475_v44 = vshrl.u32 %v11295_v0, 16  ;;  %v2483_v45 = vshrl.u32 %v10552_v21, 16  ;;  %v11343_v46 = vld [vmem:[%s13809_s0 + $0x200] sm:$0xff]   ;;  %v2487_v50 = vshll.u32 %v11325_v30, 16 }
  0xe6   :  { %9997 = vmatmul.mubr.msk.bf16.gmra.mrb[112].mxu0 %vm484_vm1, %v10539_v31  ;;  %3417 = vst.msk [vmem:[#allocation2 + $0x18] sm:$0xff] %vm1248_vm3, %v3285_v49  ;;  %v2474_v49 = vsel %vm1982_vm2, %v2469_v28, %v2473_v29  ;;  %v2481_v54 = vrot.slane %v2479_v39, 1  ;;  %v4150_v55 = vshll.u32 %v11335_v40, 16  ;;  %v2491_v0 = vshrl.u32 %v11325_v30, 16  ;;  %v11402_v28 = vld [vmem:[%s13809_s0 + $0x28] sm:$0xff]  }
  0xe7   :  { %10000 = vmatprep.mubr.msk.bf16.mxu0 %vm484_vm1, %v10541_v38  ;;  %3415 = vst.msk [vmem:[#allocation2 + $0x8] sm:$0xff] %vm1248_vm3, %v3283_v53  ;;  %v10024_v1 = vpop.f32.mrb[4].mxu1  ;;  %v10551_v53 = vld [vmem:[%s13809_s0 + $0x1f8] sm:$0xff]   ;;  %v2477_v58 = vor.u32 %v2475_v44, %v2473_v29  ;;  %v2489_v63 = vrot.slane %v2487_v50, 1 }
  0xe8   :  { %v2771_v6 = vpop.f32.mrb[5].mxu1  ;;  %v2485_v62 = vor.u32 %v2483_v45, %v2481_v54  ;;  %v4152_v13 = vrot.slane %v4150_v55, 1  ;;  %v10560_v18 = vld [vmem:[%s13809_s0 + $0x210] ss:$0 sps:$4 sm:$0x11]   ;;  %v11427_v55 = vld [vmem:[%s13809_s0 + $0x18] sm:$0xff]  }
  0xe9   :  { %v9894_v56 = vpop.f32.mrb[8].mxu0  ;;  %v1387_v57 = vld [vmem:[#allocation2 + $0x30] sm:$0xff]  ;;  %v10025_v11 = vpop.f32.mrb[6].mxu1 }
  0xea   :  { %1259 = vst.msk [vmem:[#allocation2 + $0x50] sm:$0xff] %vm1248_vm3, %v9894_v56  ;;  %v753_v59 = vpop.f32.mrb[9].mxu0  ;;  %v1385_v60 = vld [vmem:[#allocation2 + $0x20] sm:$0xff]  ;;  %v3288_v5 = vadd.f32 %v10024_v1, %v1387_v57  ;;  %v2774_v16 = vpop.f32.mrb[7].mxu1  ;;  %v11372_v1 = vld [vmem:[%s13809_s0 + $0x208] sm:$0xff]   ;;  %v2490_v21 = vsel %vm1982_vm2, %v2485_v62, %v2489_v63 }
  0xeb   :  { %1257 = vst.msk [vmem:[#allocation2 + $0x40] sm:$0xff] %vm1248_vm3, %v753_v59  ;;  %v9895_v2 = vpop.f32.mrb[10].mxu0  ;;  %v1388_v3 = vld [vmem:[#allocation2 + $0x38] sm:$0xff]  ;;  %v3286_v10 = vadd.f32 %v2771_v6, %v1385_v60  ;;  %v2499_v6 = vshrl.u32 %v11343_v46, 16 }
  0xec   :  { %1260 = vst.msk [vmem:[#allocation2 + $0x58] sm:$0xff] %vm1248_vm3, %v9895_v2  ;;  %v756_v7 = vpop.f32.mrb[11].mxu0  ;;  %v1386_v8 = vld [vmem:[#allocation2 + $0x28] sm:$0xff]  ;;  %3420 = vst.msk [vmem:[#allocation2 + $0x30] sm:$0xff] %vm1248_vm3, %v3288_v5  ;;  %v3289_v15 = vadd.f32 %v10025_v11, %v1388_v3  ;;  %10131 = vmatmul.mubr.msk.bf16.gmra.mrb[112].mxu1 %vm484_vm1, %v2450_v12  ;;  %v2495_v5 = vshll.u32 %v11343_v46, 16  ;;  %v4148_v12 = vshrl.u32 %v11335_v40, 16 }
  0xed   :  { %1258 = vst.msk [vmem:[#allocation2 + $0x48] sm:$0xff] %vm1248_vm3, %v756_v7  ;;  %3418 = vst.msk [vmem:[#allocation2 + $0x20] sm:$0xff] %vm1248_vm3, %v3286_v10  ;;  %v3287_v19 = vadd.f32 %v2774_v16, %v1386_v8  ;;  %10134 = vmatprep.mubr.msk.bf16.mxu1 %vm484_vm1, %v2458_v17  ;;  %v4155_v7 = vshll.u32 %v11354_v52, 16  ;;  %v2482_v17 = vsel %vm1982_vm2, %v2477_v58, %v2481_v54  ;;  %v4159_v40 = vshrl.u32 %v11354_v52, 16 }
  0xee   :  { %10001 = vmatmul.mubr.msk.bf16.gmra.mrb[116].mxu0 %vm484_vm1, %v10543_v61  ;;  %3421 = vst.msk [vmem:[#allocation2 + $0x38] sm:$0xff] %vm1248_vm3, %v3289_v15  ;;  %v10553_v61 = vld [vmem:[%s13809_s0 + $0x200] sm:$0xff]   ;;  %v2497_v24 = vrot.slane %v2495_v5, 1 }
  0xef   :  { %10004 = vmatprep.mubr.msk.bf16.mxu0 %vm484_vm1, %v10545_v4  ;;  %3419 = vst.msk [vmem:[#allocation2 + $0x28] sm:$0xff] %vm1248_vm3, %v3287_v19  ;;  %v10028_v31 = vpop.f32.mrb[8].mxu1 }
  0xf0   :  { %v2787_v36 = vpop.f32.mrb[9].mxu1 }
  0xf1   :  { %v9898_v22 = vpop.f32.mrb[12].mxu0  ;;  %v1391_v23 = vld [vmem:[#allocation2 + $0x50] sm:$0xff]  ;;  %v10029_v42 = vpop.f32.mrb[10].mxu1 }
  0xf2   :  { %1263 = vst.msk [vmem:[#allocation2 + $0x70] sm:$0xff] %vm1248_vm3, %v9898_v22  ;;  %v769_v25 = vpop.f32.mrb[13].mxu0  ;;  %v1389_v26 = vld [vmem:[#allocation2 + $0x40] sm:$0xff]  ;;  %v3292_v35 = vadd.f32 %v10028_v31, %v1391_v23  ;;  %v2790_v48 = vpop.f32.mrb[11].mxu1  ;;  %v2503_v22 = vshll.u32 %v11372_v1, 16  ;;  %v2493_v31 = vor.u32 %v2491_v0, %v2489_v63 }
  0xf3   :  { %1261 = vst.msk [vmem:[#allocation2 + $0x60] sm:$0xff] %vm1248_vm3, %v769_v25  ;;  %v9899_v32 = vpop.f32.mrb[14].mxu0  ;;  %v1392_v33 = vld [vmem:[#allocation2 + $0x58] sm:$0xff]  ;;  %v3290_v41 = vadd.f32 %v2787_v36, %v1389_v26  ;;  %v4157_v25 = vrot.slane %v4155_v7, 1  ;;  %v4153_v26 = vor.u32 %v4152_v13, %v4148_v12 }
  0xf4   :  { %1264 = vst.msk [vmem:[#allocation2 + $0x78] sm:$0xff] %vm1248_vm3, %v9899_v32  ;;  %v772_v37 = vpop.f32.mrb[15].mxu0  ;;  %v1390_v38 = vld [vmem:[#allocation2 + $0x48] sm:$0xff]  ;;  %3424 = vst.msk [vmem:[#allocation2 + $0x50] sm:$0xff] %vm1248_vm3, %v3292_v35  ;;  %v3293_v47 = vadd.f32 %v10029_v42, %v1392_v33  ;;  %10135 = vmatmul.mubr.msk.bf16.gmra.mrb[116].mxu1 %vm484_vm1, %v2466_v43  ;;  %v2501_v35 = vor.u32 %v2499_v6, %v2497_v24  ;;  %v2505_v36 = vrot.slane %v2503_v22, 1  ;;  %v4167_v42 = vshrl.u32 %v11383_v14, 16 }
  0xf5   :  { %1262 = vst.msk [vmem:[#allocation2 + $0x68] sm:$0xff] %vm1248_vm3, %v772_v37  ;;  %3422 = vst.msk [vmem:[#allocation2 + $0x40] sm:$0xff] %vm1248_vm3, %v3290_v41  ;;  %v3291_v51 = vadd.f32 %v2790_v48, %v1390_v38  ;;  %10138 = vmatprep.mubr.msk.bf16.mxu1 %vm484_vm1, %v2474_v49  ;;  %v2511_v41 = vshll.u32 %v10560_v18, 16  ;;  %v4171_v48 = vshll.u32 %v11402_v28, 16  ;;  %v11419_v49 = vld [vmem:[%s13809_s0 + $0x10] sm:$0xfe]   ;;  %v2498_v52 = vsel %vm1982_vm2, %v2493_v31, %v2497_v24 }
  0xf6   :  { %10005 = vmatmul.mubr.msk.bf16.gmra.mrb[120].mxu0 %vm484_vm1, %v10547_v27  ;;  %3425 = vst.msk [vmem:[#allocation2 + $0x58] sm:$0xff] %vm1248_vm3, %v3293_v47  ;;  %v4163_v27 = vshll.u32 %v11383_v14, 16  ;;  %v4158_v47 = vsel %vm1982_vm2, %v4153_v26, %v4157_v25  ;;  %v2506_v58 = vsel %vm1982_vm2, %v2501_v35, %v2505_v36  ;;  %v6312_v7 = vrot.slane %v11419_v49, 1  ;;  %v11483_v35 = vld [vmem:[%s13809_s0 + $0x48] sm:$0xff]   ;;  %v11498_v49 = vld [vmem:[%s13809_s0 + $0x30] sm:$0xff]  }
  0xf7   :  { %10008 = vmatprep.mubr.msk.bf16.mxu0 %vm484_vm1, %v10549_v34  ;;  %3423 = vst.msk [vmem:[#allocation2 + $0x48] sm:$0xff] %vm1248_vm3, %v3291_v51  ;;  %v10032_v2 = vpop.f32.mrb[12].mxu1  ;;  %v10555_v34 = vld [vmem:[%s13809_s0 + $0x208] sm:$0xff]   ;;  %v2513_v62 = vrot.slane %v2511_v41, 1  ;;  %v4173_v0 = vrot.slane %v4171_v48, 1  ;;  %v4175_v14 = vshrl.u32 %v11402_v28, 16 }
  0xf8   :  { %v2803_v9 = vpop.f32.mrb[13].mxu1  ;;  %v4165_v54 = vrot.slane %v4163_v27, 1  ;;  %v11470_v27 = vld [vmem:[%s13809_s0 + $0x28] sm:$0xff]  }
  0xf9   :  { %v9902_v56 = vpop.f32.mrb[16].mxu0  ;;  %v1395_v57 = vld [vmem:[#allocation2 + $0x70] sm:$0xff]  ;;  %v10033_v16 = vpop.f32.mrb[14].mxu1 }
  0xfa   :  { %1267 = vst.msk [vmem:[#allocation2 + $0x90] sm:$0xff] %vm1248_vm3, %v9902_v56  ;;  %v785_v59 = vpop.f32.mrb[17].mxu0  ;;  %v1393_v60 = vld [vmem:[#allocation2 + $0x60] sm:$0xff]  ;;  %v3296_v8 = vadd.f32 %v10032_v2, %v1395_v57  ;;  %v2806_v20 = vpop.f32.mrb[15].mxu1  ;;  %v4169_v63 = vor.u32 %v4167_v42, %v4165_v54 }
  0xfb   :  { %1265 = vst.msk [vmem:[#allocation2 + $0x80] sm:$0xff] %vm1248_vm3, %v785_v59  ;;  %v9903_v3 = vpop.f32.mrb[18].mxu0  ;;  %v1396_v4 = vld [vmem:[#allocation2 + $0x78] sm:$0xff]  ;;  %v3294_v15 = vadd.f32 %v2803_v9, %v1393_v60  ;;  %v10565_v59 = vld [vmem:[%s13809_s0 + $0x30] sm:$0xff]  }
  0xfc   :  { %1268 = vst.msk [vmem:[#allocation2 + $0x98] sm:$0xff] %vm1248_vm3, %v9903_v3  ;;  %v788_v10 = vpop.f32.mrb[19].mxu0  ;;  %v1394_v11 = vld [vmem:[#allocation2 + $0x68] sm:$0xff]  ;;  %3428 = vst.msk [vmem:[#allocation2 + $0x70] sm:$0xff] %vm1248_vm3, %v3296_v8  ;;  %v3297_v19 = vadd.f32 %v10033_v16, %v1396_v4  ;;  %10139 = vmatmul.mubr.msk.bf16.gmra.mrb[120].mxu1 %vm484_vm1, %v2482_v17  ;;  %v6313_v8 = vrot.slane %v11427_v55, 1  ;;  %v4179_v9 = vshll.u32 %v10565_v59, 16 }
  0xfd   :  { %1266 = vst.msk [vmem:[#allocation2 + $0x88] sm:$0xff] %vm1248_vm3, %v788_v10  ;;  %3426 = vst.msk [vmem:[#allocation2 + $0x60] sm:$0xff] %vm1248_vm3, %v3294_v15  ;;  %v3295_v23 = vadd.f32 %v2806_v20, %v1394_v11  ;;  %10142 = vmatprep.mubr.msk.bf16.mxu1 %vm484_vm1, %v2490_v21  ;;  %v11455_v15 = vld [vmem:[%s13809_s0 + $0x20] sm:$0xff]   ;;  %v4174_v20 = vsel %vm1982_vm2, %v4169_v63, %v4173_v0  ;;  %v4183_v21 = vshrl.u32 %v10565_v59, 16 }
  0xfe   :  { %10009 = vmatmul.mubr.msk.bf16.gmra.mrb[124].mxu0 %vm484_vm1, %v10551_v53  ;;  %3429 = vst.msk [vmem:[#allocation2 + $0x78] sm:$0xff] %vm1248_vm3, %v3297_v19  ;;  %v2507_v53 = vshrl.u32 %v11372_v1, 16  ;;  %v11442_v1 = vld [vmem:[%s13809_s0 + $0x38] sm:$0xff]   ;;  %v4181_v31 = vrot.slane %v4179_v9, 1 }
  0xff   :  { %10012 = vmatprep.mubr.msk.bf16.mxu0 %vm484_vm1, %v10553_v61  ;;  %3427 = vst.msk [vmem:[#allocation2 + $0x68] sm:$0xff] %vm1248_vm3, %v3295_v23  ;;  %v10036_v37 = vpop.f32.mrb[16].mxu1  ;;  %v4161_v61 = vor.u32 %v4159_v40, %v4157_v25  ;;  %v4187_v22 = vshll.u32 %v11442_v1, 16  ;;  %v11463_v23 = vld [vmem:[%s13809_s0 + $0x40] sm:$0xff]   ;;  %v4191_v48 = vshrl.u32 %v11442_v1, 16 }
 0x100   :  { %v2819_v44 = vpop.f32.mrb[17].mxu1  ;;  %v2509_v4 = vor.u32 %v2507_v53, %v2505_v36  ;;  %v4185_v36 = vor.u32 %v4183_v21, %v4181_v31 }
 0x101   :  { %v9906_v29 = vpop.f32.mrb[20].mxu0  ;;  %v1399_v30 = vld [vmem:[#allocation2 + $0x90] sm:$0xff]  ;;  %v10037_v51 = vpop.f32.mrb[18].mxu1  ;;  %v4166_v13 = vsel %vm1982_vm2, %v4161_v61, %v4165_v54 }
 0x102   :  { %1271 = vst.msk [vmem:[#allocation2 + $0xb0] sm:$0xff] %vm1248_vm3, %v9906_v29  ;;  %v801_v32 = vpop.f32.mrb[21].mxu0  ;;  %v1397_v33 = vld [vmem:[#allocation2 + $0x80] sm:$0xff]  ;;  %v3300_v43 = vadd.f32 %v10036_v37, %v1399_v30  ;;  %v2822_v57 = vpop.f32.mrb[19].mxu1  ;;  %v2514_v26 = vsel %vm1982_vm2, %v2509_v4, %v2513_v62  ;;  %v6314_v30 = vsel %vm6311_vm4, %v6312_v7, %v6313_v8  ;;  %v4189_v37 = vrot.slane %v4187_v22, 1 }
 0x103   :  { %1269 = vst.msk [vmem:[#allocation2 + $0xa0] sm:$0xff] %vm1248_vm3, %v801_v32  ;;  %v9907_v38 = vpop.f32.mrb[22].mxu0  ;;  %v1400_v39 = vld [vmem:[#allocation2 + $0x98] sm:$0xff]  ;;  %v3298_v50 = vadd.f32 %v2819_v44, %v1397_v33  ;;  %v4177_v33 = vor.u32 %v4175_v14, %v4173_v0  ;;  %v6319_v4 = vrot.slane %v11498_v49, 1 }
 0x104   :  { %1272 = vst.msk [vmem:[#allocation2 + $0xb8] sm:$0xff] %vm1248_vm3, %v9907_v38  ;;  %v804_v45 = vpop.f32.mrb[23].mxu0  ;;  %v1398_v46 = vld [vmem:[#allocation2 + $0x88] sm:$0xff]  ;;  %3432 = vst.msk [vmem:[#allocation2 + $0x90] sm:$0xff] %vm1248_vm3, %v3300_v43  ;;  %v3301_v56 = vadd.f32 %v10037_v51, %v1400_v39  ;;  %10143 = vmatmul.mubr.msk.bf16.gmra.mrb[124].mxu1 %vm484_vm1, %v2498_v52  ;;  %v4195_v38 = vshll.u32 %v11463_v23, 16  ;;  %v6317_v43 = vrot.slane %v11470_v27, 1 }
 0x105   :  { %1270 = vst.msk [vmem:[#allocation2 + $0xa8] sm:$0xff] %vm1248_vm3, %v804_v45  ;;  %3430 = vst.msk [vmem:[#allocation2 + $0x80] sm:$0xff] %vm1248_vm3, %v3298_v50  ;;  %v3299_v60 = vadd.f32 %v2822_v57, %v1398_v46  ;;  %10146 = vmatprep.mubr.msk.bf16.mxu1 %vm484_vm1, %v2506_v58  ;;  %v4203_v50 = vshll.u32 %v11483_v35, 16  ;;  %v4199_v57 = vshrl.u32 %v11463_v23, 16  ;;  %v11507_v58 = vld [vmem:[%s13809_s0 + $0x50] sm:$0xff]  }
 0x106   :  { %10013 = vmatmul.mubr.msk.bf16.gmra.mrb[128].mxu0 %vm484_vm1, %v10555_v34  ;;  %3433 = vst.msk [vmem:[#allocation2 + $0x98] sm:$0xff] %vm1248_vm3, %v3301_v56  ;;  %v6315_v34 = vrot.slane %v11455_v15, 1  ;;  %v4190_v56 = vsel %vm1982_vm2, %v4185_v36, %v4189_v37  ;;  %v4197_v62 = vrot.slane %v4195_v38, 1  ;;  %v4211_v7 = vshll.u32 %v11507_v58, 16  ;;  %v11567_v36 = vld [vmem:[%s13809_s0 + $0x48] sm:$0xff]  }
 0x107   :  { %10152 = vmatprep.mubr.msk.bf16.mxu0 %vm484_vm1, %v4158_v47  ;;  %3431 = vst.msk [vmem:[#allocation2 + $0x88] sm:$0xff] %vm1248_vm3, %v3299_v60  ;;  %v10040_v10 = vpop.f32.mrb[20].mxu1  ;;  %v4182_v47 = vsel %vm1982_vm2, %v4177_v33, %v4181_v31  ;;  %v6320_v31 = vsel %vm6311_vm4, %v6317_v43, %v6319_v4 }
 0x108   :  { %v2835_v17 = vpop.f32.mrb[21].mxu1  ;;  %v6316_v61 = vsel %vm6311_vm4, %v6313_v8, %v6315_v34  ;;  %v6318_v1 = vsel %vm6311_vm4, %v6315_v34, %v6317_v43  ;;  %v11532_v8 = vld [vmem:[%s13809_s0 + $0x58] sm:$0xff]  }
 0x109   :  { %v9910_v2 = vpop.f32.mrb[24].mxu0  ;;  %v1403_v3 = vld [vmem:[#allocation2 + $0xb0] sm:$0xff]  ;;  %v10041_v25 = vpop.f32.mrb[22].mxu1 }
 0x10a   :  { %1275 = vst.msk [vmem:[#allocation2 + $0xd0] sm:$0xff] %vm1248_vm3, %v9910_v2  ;;  %v817_v5 = vpop.f32.mrb[25].mxu0  ;;  %v1401_v6 = vld [vmem:[#allocation2 + $0xa0] sm:$0xff]  ;;  %v3304_v16 = vadd.f32 %v10040_v10, %v1403_v3  ;;  %v2838_v29 = vpop.f32.mrb[23].mxu1  ;;  %v11521_v2 = vld [vmem:[%s13809_s0 + $0x38] sm:$0xff]   ;;  %v4193_v3 = vor.u32 %v4191_v48, %v4189_v37 }
 0x10b   :  { %1273 = vst.msk [vmem:[#allocation2 + $0xc0] sm:$0xff] %vm1248_vm3, %v817_v5  ;;  %v9911_v11 = vpop.f32.mrb[26].mxu0  ;;  %v1404_v12 = vld [vmem:[#allocation2 + $0xb8] sm:$0xff]  ;;  %v3302_v24 = vadd.f32 %v2835_v17, %v1401_v6  ;;  %v4205_v5 = vrot.slane %v4203_v50, 1  ;;  %v4201_v6 = vor.u32 %v4199_v57, %v4197_v62 }
 0x10c   :  { %1276 = vst.msk [vmem:[#allocation2 + $0xd8] sm:$0xff] %vm1248_vm3, %v9911_v11  ;;  %v820_v18 = vpop.f32.mrb[27].mxu0  ;;  %v1402_v19 = vld [vmem:[#allocation2 + $0xa8] sm:$0xff]  ;;  %3436 = vst.msk [vmem:[#allocation2 + $0xb0] sm:$0xff] %vm1248_vm3, %v3304_v16  ;;  %v3305_v28 = vadd.f32 %v10041_v25, %v1404_v12  ;;  %10147 = vmatmul.mubr.msk.bf16.gmra.mrb[128].mxu1 %vm484_vm1, %v2514_v26  ;;  %v4198_v17 = vsel %vm1982_vm2, %v4193_v3, %v4197_v62  ;;  %v4215_v25 = vshrl.u32 %v11507_v58, 16  ;;  %v4219_v26 = vshll.u32 %v11532_v8, 16 }
 0x10d   :  { %1274 = vst.msk [vmem:[#allocation2 + $0xc8] sm:$0xff] %vm1248_vm3, %v820_v18  ;;  %3434 = vst.msk [vmem:[#allocation2 + $0xa0] sm:$0xff] %vm1248_vm3, %v3302_v24  ;;  %v3303_v32 = vadd.f32 %v2838_v29, %v1402_v19  ;;  %10286 = vmatprep.mubr.msk.bf16.mxu1 %vm484_vm1, %v6314_v30  ;;  %v4207_v18 = vshrl.u32 %v11483_v35, 16  ;;  %v11544_v19 = vld [vmem:[%s13809_s0 + $0x40] sm:$0xff]   ;;  %v4206_v24 = vsel %vm1982_vm2, %v4201_v6, %v4205_v5  ;;  %v11599_v62 = vld [vmem:[%s13809_s0 + $0x70] sm:$0xff]  }
 0x10e   :  { %10153 = vmatmul.mubr.msk.bf16.vlgmr.msra.gmra.mrb[132].mxu0 %vm484_vm1, %v4166_v13  ;;  %3437 = vst.msk [vmem:[#allocation2 + $0xb8] sm:$0xff] %vm1248_vm3, %v3305_v28  ;;  %v6321_v13 = vrot.slane %v11521_v2, 1  ;;  %v11553_v28 = vld [vmem:[%s13809_s0 + $0x60] sm:$0xff]   ;;  %v6323_v38 = vrot.slane %v11544_v19, 1  ;;  %v11613_v6 = vld [vmem:[%s13809_s0 + $0x58] sm:$0xff]  }
 0x10f   :  { %10156 = vmatprep.mubr.msk.bf16.mxu0 %vm484_vm1, %v4174_v20  ;;  %3435 = vst.msk [vmem:[#allocation2 + $0xa8] sm:$0xff] %vm1248_vm3, %v3303_v32  ;;  %v10044_v44 = vpop.f32.mrb[24].mxu1  ;;  %v4213_v32 = vrot.slane %v4211_v7, 1  ;;  %v4209_v37 = vor.u32 %v4207_v18, %v4205_v5 }
 0x110   :  { %v2851_v52 = vpop.f32.mrb[25].mxu1  ;;  %v6322_v35 = vsel %vm6311_vm4, %v6319_v4, %v6321_v13 }
 0x111   :  { %v9914_v39 = vpop.f32.mrb[28].mxu0  ;;  %v1407_v40 = vld [vmem:[#allocation2 + $0xd0] sm:$0xff]  ;;  %v10045_v60 = vpop.f32.mrb[26].mxu1 }
 0x112   :  { %1279 = vst.msk [vmem:[#allocation2 + $0xf0] sm:$0xff] %vm1248_vm3, %v9914_v39  ;;  %v833_v41 = vpop.f32.mrb[29].mxu0  ;;  %v1405_v42 = vld [vmem:[#allocation2 + $0xc0] sm:$0xff]  ;;  %v3308_v51 = vadd.f32 %v10044_v44, %v1407_v40  ;;  %v2854_v0 = vpop.f32.mrb[27].mxu1  ;;  %v11575_v39 = vld [vmem:[%s13809_s0 + $0x68] sm:$0xff]   ;;  %v4217_v40 = vor.u32 %v4215_v25, %v4213_v32 }
 0x113   :  { %1277 = vst.msk [vmem:[#allocation2 + $0xe0] sm:$0xff] %vm1248_vm3, %v833_v41  ;;  %v9915_v45 = vpop.f32.mrb[30].mxu0  ;;  %v1408_v46 = vld [vmem:[#allocation2 + $0xd8] sm:$0xff]  ;;  %v3306_v59 = vadd.f32 %v2851_v52, %v1405_v42  ;;  %v4221_v41 = vrot.slane %v4219_v26, 1  ;;  %v4227_v42 = vshll.u32 %v11553_v28, 16  ;;  %v4223_v52 = vshrl.u32 %v11532_v8, 16 }
 0x114   :  { %1280 = vst.msk [vmem:[#allocation2 + $0xf8] sm:$0xff] %vm1248_vm3, %v9915_v45  ;;  %v836_v53 = vpop.f32.mrb[31].mxu0  ;;  %v1406_v54 = vld [vmem:[#allocation2 + $0xc8] sm:$0xff]  ;;  %3440 = vst.msk [vmem:[#allocation2 + $0xd0] sm:$0xff] %vm1248_vm3, %v3308_v51  ;;  %v3309_v63 = vadd.f32 %v10045_v60, %v1408_v46  ;;  %10287 = vmatmul.mubr.msk.bf16.vlgmr.msra.gmra.mrb[132].mxu1 %vm484_vm1, %v6316_v61  ;;  %v4214_v51 = vsel %vm1982_vm2, %v4209_v37, %v4213_v32  ;;  %v4231_v61 = vshrl.u32 %v11553_v28, 16  ;;  %v11645_v32 = vld [vmem:[%s13809_s0 + $0x80] sm:$0xff]  }
 0x115   :  { %1278 = vst.msk [vmem:[#allocation2 + $0xe8] sm:$0xff] %vm1248_vm3, %v836_v53  ;;  %3438 = vst.msk [vmem:[#allocation2 + $0xc0] sm:$0xff] %vm1248_vm3, %v3306_v59  ;;  %v3307_v55 = vadd.f32 %v2854_v0, %v1406_v54  ;;  %10290 = vmatprep.mubr.msk.bf16.mxu1 %vm484_vm1, %v6318_v1  ;;  %v11590_v53 = vld [vmem:[%s13809_s0 + $0x50] sm:$0xff]   ;;  %v4235_v54 = vshll.u32 %v11575_v39, 16  ;;  %v4222_v60 = vsel %vm1982_vm2, %v4217_v40, %v4221_v41  ;;  %v11659_v40 = vld [vmem:[%s13809_s0 + $0x68] sm:$0xff]  }
 0x116   :  { %10157 = vmatmul.mubr.msk.bf16.gmra.mrb[136].mxu0 %vm484_vm1, %v4182_v47  ;;  %3441 = vst.msk [vmem:[#allocation2 + $0xd8] sm:$0xff] %vm1248_vm3, %v3309_v63  ;;  %v6325_v47 = vrot.slane %v11567_v36, 1  ;;  %v6324_v1 = vsel %vm6311_vm4, %v6321_v13, %v6323_v38  ;;  %v4225_v7 = vor.u32 %v4223_v52, %v4221_v41  ;;  %v6327_v8 = vrot.slane %v11590_v53, 1 }
 0x117   :  { %10160 = vmatprep.mubr.msk.bf16.mxu0 %vm484_vm1, %v4190_v56  ;;  %3439 = vst.msk [vmem:[#allocation2 + $0xc8] sm:$0xff] %vm1248_vm3, %v3307_v55  ;;  %v10048_v14 = vpop.f32.mrb[28].mxu1  ;;  %v4229_v55 = vrot.slane %v4227_v42, 1 }
 0x118   :  { %v2867_v21 = vpop.f32.mrb[29].mxu1  ;;  %v6326_v5 = vsel %vm6311_vm4, %v6323_v38, %v6325_v47 }
 0x119   :  { %v9918_v9 = vpop.f32.mrb[32].mxu0  ;;  %v1411_v10 = vld [vmem:[#allocation2 + $0xf0] sm:$0xff]  ;;  %v10049_v30 = vpop.f32.mrb[30].mxu1 }
 0x11a   :  { %1283 = vst.msk [vmem:[#allocation2 + $0x110] sm:$0xff] %vm1248_vm3, %v9918_v9  ;;  %v849_v11 = vpop.f32.mrb[33].mxu0  ;;  %v1409_v12 = vld [vmem:[#allocation2 + $0xe0] sm:$0xff]  ;;  %v3312_v20 = vadd.f32 %v10048_v14, %v1411_v10  ;;  %v2870_v34 = vpop.f32.mrb[31].mxu1  ;;  %v4237_v9 = vrot.slane %v4235_v54, 1  ;;  %v4233_v10 = vor.u32 %v4231_v61, %v4229_v55 }
 0x11b   :  { %1281 = vst.msk [vmem:[#allocation2 + $0x100] sm:$0xff] %vm1248_vm3, %v849_v11  ;;  %v9919_v15 = vpop.f32.mrb[34].mxu0  ;;  %v1412_v16 = vld [vmem:[#allocation2 + $0xf8] sm:$0xff]  ;;  %v3310_v29 = vadd.f32 %v2867_v21, %v1409_v12  ;;  %v4243_v11 = vshll.u32 %v11599_v62, 16  ;;  %v4230_v21 = vsel %vm1982_vm2, %v4225_v7, %v4229_v55  ;;  %v11691_v55 = vld [vmem:[%s13809_s0 + $0x90] sm:$0xff]  }
 0x11c   :  { %1284 = vst.msk [vmem:[#allocation2 + $0x118] sm:$0xff] %vm1248_vm3, %v9919_v15  ;;  %v852_v22 = vpop.f32.mrb[35].mxu0  ;;  %v1410_v23 = vld [vmem:[#allocation2 + $0xe8] sm:$0xff]  ;;  %3444 = vst.msk [vmem:[#allocation2 + $0xf0] sm:$0xff] %vm1248_vm3, %v3312_v20  ;;  %v3313_v33 = vadd.f32 %v10049_v30, %v1412_v16  ;;  %10291 = vmatmul.mubr.msk.bf16.gmra.mrb[136].mxu1 %vm484_vm1, %v6320_v31  ;;  %v11624_v12 = vld [vmem:[%s13809_s0 + $0x78] sm:$0xff]   ;;  %v4247_v30 = vshrl.u32 %v11599_v62, 16 }
 0x11d   :  { %1282 = vst.msk [vmem:[#allocation2 + $0x108] sm:$0xff] %vm1248_vm3, %v852_v22  ;;  %3442 = vst.msk [vmem:[#allocation2 + $0xe0] sm:$0xff] %vm1248_vm3, %v3310_v29  ;;  %v3311_v27 = vadd.f32 %v2870_v34, %v1410_v23  ;;  %10294 = vmatprep.mubr.msk.bf16.mxu1 %vm484_vm1, %v6322_v35  ;;  %v4239_v22 = vshrl.u32 %v11575_v39, 16  ;;  %v11636_v23 = vld [vmem:[%s13809_s0 + $0x60] sm:$0xff]   ;;  %v4238_v29 = vsel %vm1982_vm2, %v4233_v10, %v4237_v9  ;;  %v4251_v31 = vshll.u32 %v11624_v12, 16  ;;  %v11705_v10 = vld [vmem:[%s13809_s0 + $0x78] sm:$0xff]  }
 0x11e   :  { %10161 = vmatmul.mubr.msk.bf16.gmra.mrb[140].mxu0 %vm484_vm1, %v4198_v17  ;;  %3445 = vst.msk [vmem:[#allocation2 + $0xf8] sm:$0xff] %vm1248_vm3, %v3313_v33  ;;  %v6329_v17 = vrot.slane %v11613_v6, 1  ;;  %v6328_v35 = vsel %vm6311_vm4, %v6325_v47, %v6327_v8  ;;  %v6331_v42 = vrot.slane %v11636_v23, 1 }
 0x11f   :  { %10164 = vmatprep.mubr.msk.bf16.mxu0 %vm484_vm1, %v4206_v24  ;;  %3443 = vst.msk [vmem:[#allocation2 + $0xe8] sm:$0xff] %vm1248_vm3, %v3311_v27  ;;  %v10052_v48 = vpop.f32.mrb[32].mxu1  ;;  %v4245_v27 = vrot.slane %v4243_v11, 1  ;;  %v4241_v41 = vor.u32 %v4239_v22, %v4237_v9 }
 0x120   :  { %v2883_v57 = vpop.f32.mrb[33].mxu1  ;;  %v6330_v39 = vsel %vm6311_vm4, %v6327_v8, %v6329_v17 }
 0x121   :  { %v9922_v43 = vpop.f32.mrb[36].mxu0  ;;  %v1415_v44 = vld [vmem:[#allocation2 + $0x110] sm:$0xff]  ;;  %v10053_v0 = vpop.f32.mrb[34].mxu1 }
 0x122   :  { %1287 = vst.msk [vmem:[#allocation2 + $0x130] sm:$0xff] %vm1248_vm3, %v9922_v43  ;;  %v865_v45 = vpop.f32.mrb[37].mxu0  ;;  %v1413_v46 = vld [vmem:[#allocation2 + $0x100] sm:$0xff]  ;;  %v3316_v56 = vadd.f32 %v10052_v48, %v1415_v44  ;;  %v2886_v4 = vpop.f32.mrb[35].mxu1  ;;  %v11667_v43 = vld [vmem:[%s13809_s0 + $0x88] sm:$0xff]   ;;  %v4249_v44 = vor.u32 %v4247_v30, %v4245_v27 }
 0x123   :  { %1285 = vst.msk [vmem:[#allocation2 + $0x120] sm:$0xff] %vm1248_vm3, %v865_v45  ;;  %v9923_v49 = vpop.f32.mrb[38].mxu0  ;;  %v1416_v50 = vld [vmem:[#allocation2 + $0x118] sm:$0xff]  ;;  %v3314_v63 = vadd.f32 %v2883_v57, %v1413_v46  ;;  %v4253_v45 = vrot.slane %v4251_v31, 1  ;;  %v4259_v46 = vshll.u32 %v11645_v32, 16  ;;  %v4255_v57 = vshrl.u32 %v11624_v12, 16 }
 0x124   :  { %1288 = vst.msk [vmem:[#allocation2 + $0x138] sm:$0xff] %vm1248_vm3, %v9923_v49  ;;  %v868_v58 = vpop.f32.mrb[39].mxu0  ;;  %v1414_v59 = vld [vmem:[#allocation2 + $0x108] sm:$0xff]  ;;  %3448 = vst.msk [vmem:[#allocation2 + $0x110] sm:$0xff] %vm1248_vm3, %v3316_v56  ;;  %v3317_v3 = vadd.f32 %v10053_v0, %v1416_v50  ;;  %10295 = vmatmul.mubr.msk.bf16.gmra.mrb[140].mxu1 %vm484_vm1, %v6324_v1  ;;  %v4246_v56 = vsel %vm1982_vm2, %v4241_v41, %v4245_v27  ;;  %v4263_v1 = vshrl.u32 %v11645_v32, 16  ;;  %v11737_v27 = vld [vmem:[%s13809_s0 + $0xa0] sm:$0xff]  }
 0x125   :  { %1286 = vst.msk [vmem:[#allocation2 + $0x128] sm:$0xff] %vm1248_vm3, %v868_v58  ;;  %3446 = vst.msk [vmem:[#allocation2 + $0x100] sm:$0xff] %vm1248_vm3, %v3314_v63  ;;  %v3315_v2 = vadd.f32 %v2886_v4, %v1414_v59  ;;  %10298 = vmatprep.mubr.msk.bf16.mxu1 %vm484_vm1, %v6326_v5  ;;  %v11682_v58 = vld [vmem:[%s13809_s0 + $0x70] sm:$0xff]   ;;  %v4267_v59 = vshll.u32 %v11667_v43, 16  ;;  %v4254_v0 = vsel %vm1982_vm2, %v4249_v44, %v4253_v45  ;;  %v11751_v44 = vld [vmem:[%s13809_s0 + $0x88] sm:$0xff]  }
 0x126   :  { %10165 = vmatmul.mubr.msk.bf16.gmra.mrb[144].mxu0 %vm484_vm1, %v4214_v51  ;;  %3449 = vst.msk [vmem:[#allocation2 + $0x118] sm:$0xff] %vm1248_vm3, %v3317_v3  ;;  %v6333_v51 = vrot.slane %v11659_v40, 1  ;;  %v6332_v5 = vsel %vm6311_vm4, %v6329_v17, %v6331_v42  ;;  %v4257_v11 = vor.u32 %v4255_v57, %v4253_v45  ;;  %v6335_v12 = vrot.slane %v11682_v58, 1 }
 0x127   :  { %10168 = vmatprep.mubr.msk.bf16.mxu0 %vm484_vm1, %v4222_v60  ;;  %3447 = vst.msk [vmem:[#allocation2 + $0x108] sm:$0xff] %vm1248_vm3, %v3315_v2  ;;  %v10056_v18 = vpop.f32.mrb[36].mxu1  ;;  %v4261_v2 = vrot.slane %v4259_v46, 1 }
 0x128   :  { %v2899_v25 = vpop.f32.mrb[37].mxu1  ;;  %v6334_v9 = vsel %vm6311_vm4, %v6331_v42, %v6333_v51 }
 0x129   :  { %v9926_v13 = vpop.f32.mrb[40].mxu0  ;;  %v1419_v14 = vld [vmem:[#allocation2 + $0x130] sm:$0xff]  ;;  %v10057_v34 = vpop.f32.mrb[38].mxu1 }
 0x12a   :  { %1291 = vst.msk [vmem:[#allocation2 + $0x150] sm:$0xff] %vm1248_vm3, %v9926_v13  ;;  %v881_v15 = vpop.f32.mrb[41].mxu0  ;;  %v1417_v16 = vld [vmem:[#allocation2 + $0x120] sm:$0xff]  ;;  %v3320_v24 = vadd.f32 %v10056_v18, %v1419_v14  ;;  %v2902_v38 = vpop.f32.mrb[39].mxu1  ;;  %v4269_v13 = vrot.slane %v4267_v59, 1  ;;  %v4265_v14 = vor.u32 %v4263_v1, %v4261_v2 }
 0x12b   :  { %1289 = vst.msk [vmem:[#allocation2 + $0x140] sm:$0xff] %vm1248_vm3, %v881_v15  ;;  %v9927_v19 = vpop.f32.mrb[42].mxu0  ;;  %v1420_v20 = vld [vmem:[#allocation2 + $0x138] sm:$0xff]  ;;  %v3318_v33 = vadd.f32 %v2899_v25, %v1417_v16  ;;  %v4275_v15 = vshll.u32 %v11691_v55, 16  ;;  %v4262_v25 = vsel %vm1982_vm2, %v4257_v11, %v4261_v2  ;;  %v11783_v2 = vld [vmem:[%s13809_s0 + $0xb0] sm:$0xff]  }
 0x12c   :  { %1292 = vst.msk [vmem:[#allocation2 + $0x158] sm:$0xff] %vm1248_vm3, %v9927_v19  ;;  %v884_v26 = vpop.f32.mrb[43].mxu0  ;;  %v1418_v28 = vld [vmem:[#allocation2 + $0x128] sm:$0xff]  ;;  %3452 = vst.msk [vmem:[#allocation2 + $0x130] sm:$0xff] %vm1248_vm3, %v3320_v24  ;;  %v3321_v37 = vadd.f32 %v10057_v34, %v1420_v20  ;;  %10299 = vmatmul.mubr.msk.bf16.gmra.mrb[144].mxu1 %vm484_vm1, %v6328_v35  ;;  %v11716_v16 = vld [vmem:[%s13809_s0 + $0x98] sm:$0xff]   ;;  %v4279_v34 = vshrl.u32 %v11691_v55, 16 }
 0x12d   :  { %1290 = vst.msk [vmem:[#allocation2 + $0x148] sm:$0xff] %vm1248_vm3, %v884_v26  ;;  %3450 = vst.msk [vmem:[#allocation2 + $0x120] sm:$0xff] %vm1248_vm3, %v3318_v33  ;;  %v3319_v36 = vadd.f32 %v2902_v38, %v1418_v28  ;;  %10302 = vmatprep.mubr.msk.bf16.mxu1 %vm484_vm1, %v6330_v39  ;;  %v4271_v26 = vshrl.u32 %v11667_v43, 16  ;;  %v11728_v28 = vld [vmem:[%s13809_s0 + $0x80] sm:$0xff]   ;;  %v4270_v33 = vsel %vm1982_vm2, %v4265_v14, %v4269_v13  ;;  %v4283_v35 = vshll.u32 %v11716_v16, 16  ;;  %v11797_v14 = vld [vmem:[%s13809_s0 + $0x98] sm:$0xff]  }
 0x12e   :  { %10169 = vmatmul.mubr.msk.bf16.gmra.mrb[148].mxu0 %vm484_vm1, %v4230_v21  ;;  %3453 = vst.msk [vmem:[#allocation2 + $0x138] sm:$0xff] %vm1248_vm3, %v3321_v37  ;;  %v6337_v21 = vrot.slane %v11705_v10, 1  ;;  %v6336_v39 = vsel %vm6311_vm4, %v6333_v51, %v6335_v12  ;;  %v6339_v46 = vrot.slane %v11728_v28, 1 }
 0x12f   :  { %10172 = vmatprep.mubr.msk.bf16.mxu0 %vm484_vm1, %v4238_v29  ;;  %3451 = vst.msk [vmem:[#allocation2 + $0x128] sm:$0xff] %vm1248_vm3, %v3319_v36  ;;  %v10060_v52 = vpop.f32.mrb[40].mxu1  ;;  %v4277_v36 = vrot.slane %v4275_v15, 1  ;;  %v4273_v45 = vor.u32 %v4271_v26, %v4269_v13 }
 0x130   :  { %v2915_v61 = vpop.f32.mrb[41].mxu1  ;;  %v6338_v43 = vsel %vm6311_vm4, %v6335_v12, %v6337_v21 }
 0x131   :  { %v9930_v47 = vpop.f32.mrb[44].mxu0  ;;  %v1423_v48 = vld [vmem:[#allocation2 + $0x150] sm:$0xff]  ;;  %v10061_v4 = vpop.f32.mrb[42].mxu1 }
 0x132   :  { %1295 = vst.msk [vmem:[#allocation2 + $0x170] sm:$0xff] %vm1248_vm3, %v9930_v47  ;;  %v897_v49 = vpop.f32.mrb[45].mxu0  ;;  %v1421_v50 = vld [vmem:[#allocation2 + $0x140] sm:$0xff]  ;;  %v3324_v60 = vadd.f32 %v10060_v52, %v1423_v48  ;;  %v2918_v8 = vpop.f32.mrb[43].mxu1  ;;  %v11759_v47 = vld [vmem:[%s13809_s0 + $0xa8] sm:$0xff]   ;;  %v4281_v48 = vor.u32 %v4279_v34, %v4277_v36 }
 0x133   :  { %1293 = vst.msk [vmem:[#allocation2 + $0x160] sm:$0xff] %vm1248_vm3, %v897_v49  ;;  %v9931_v53 = vpop.f32.mrb[46].mxu0  ;;  %v1424_v54 = vld [vmem:[#allocation2 + $0x158] sm:$0xff]  ;;  %v3322_v3 = vadd.f32 %v2915_v61, %v1421_v50  ;;  %v4285_v49 = vrot.slane %v4283_v35, 1  ;;  %v4291_v50 = vshll.u32 %v11737_v27, 16  ;;  %v4287_v61 = vshrl.u32 %v11716_v16, 16 }
 0x134   :  { %1296 = vst.msk [vmem:[#allocation2 + $0x178] sm:$0xff] %vm1248_vm3, %v9931_v53  ;;  %v900_v62 = vpop.f32.mrb[47].mxu0  ;;  %v1422_v63 = vld [vmem:[#allocation2 + $0x148] sm:$0xff]  ;;  %3456 = vst.msk [vmem:[#allocation2 + $0x150] sm:$0xff] %vm1248_vm3, %v3324_v60  ;;  %v3325_v7 = vadd.f32 %v10061_v4, %v1424_v54  ;;  %10303 = vmatmul.mubr.msk.bf16.gmra.mrb[148].mxu1 %vm484_vm1, %v6332_v5  ;;  %v4278_v60 = vsel %vm1982_vm2, %v4273_v45, %v4277_v36  ;;  %v4295_v5 = vshrl.u32 %v11737_v27, 16 }
 0x135   :  { %1294 = vst.msk [vmem:[#allocation2 + $0x168] sm:$0xff] %vm1248_vm3, %v900_v62  ;;  %3454 = vst.msk [vmem:[#allocation2 + $0x140] sm:$0xff] %vm1248_vm3, %v3322_v3  ;;  %v3323_v6 = vadd.f32 %v2918_v8, %v1422_v63  ;;  %10306 = vmatprep.mubr.msk.bf16.mxu1 %vm484_vm1, %v6334_v9  ;;  %v11774_v62 = vld [vmem:[%s13809_s0 + $0x90] sm:$0xff]   ;;  %v4299_v63 = vshll.u32 %v11759_v47, 16  ;;  %v4286_v4 = vsel %vm1982_vm2, %v4281_v48, %v4285_v49 }
 0x136   :  { %10173 = vmatmul.mubr.msk.bf16.gmra.mrb[152].mxu0 %vm484_vm1, %v4246_v56  ;;  %3457 = vst.msk [vmem:[#allocation2 + $0x158] sm:$0xff] %vm1248_vm3, %v3325_v7  ;;  %v6341_v56 = vrot.slane %v11751_v44, 1  ;;  %v6340_v9 = vsel %vm6311_vm4, %v6337_v21, %v6339_v46  ;;  %v4289_v15 = vor.u32 %v4287_v61, %v4285_v49  ;;  %v6343_v16 = vrot.slane %v11774_v62, 1  ;;  %v10601_v44 = vld [vmem:[%s13809_s0 + $0xc0] sm:$0xff]  }
 0x137   :  { %10176 = vmatprep.mubr.msk.bf16.mxu0 %vm484_vm1, %v4254_v0  ;;  %3455 = vst.msk [vmem:[#allocation2 + $0x148] sm:$0xff] %vm1248_vm3, %v3323_v6  ;;  %v10064_v22 = vpop.f32.mrb[44].mxu1  ;;  %v4293_v6 = vrot.slane %v4291_v50, 1 }
 0x138   :  { %v2931_v30 = vpop.f32.mrb[45].mxu1  ;;  %v6342_v13 = vsel %vm6311_vm4, %v6339_v46, %v6341_v56 }
 0x139   :  { %v9934_v17 = vpop.f32.mrb[48].mxu0  ;;  %v1427_v18 = vld [vmem:[#allocation2 + $0x170] sm:$0xff]  ;;  %v10065_v38 = vpop.f32.mrb[46].mxu1 }
 0x13a   :  { %1299 = vst.msk [vmem:[#allocation2 + $0x190] sm:$0xff] %vm1248_vm3, %v9934_v17  ;;  %v913_v19 = vpop.f32.mrb[49].mxu0  ;;  %v1425_v20 = vld [vmem:[#allocation2 + $0x160] sm:$0xff]  ;;  %v3328_v29 = vadd.f32 %v10064_v22, %v1427_v18  ;;  %v2934_v42 = vpop.f32.mrb[47].mxu1  ;;  %v4301_v17 = vrot.slane %v4299_v63, 1  ;;  %v4297_v18 = vor.u32 %v4295_v5, %v4293_v6 }
 0x13b   :  { %1297 = vst.msk [vmem:[#allocation2 + $0x180] sm:$0xff] %vm1248_vm3, %v913_v19  ;;  %v9935_v23 = vpop.f32.mrb[50].mxu0  ;;  %v1428_v24 = vld [vmem:[#allocation2 + $0x178] sm:$0xff]  ;;  %v3326_v37 = vadd.f32 %v2931_v30, %v1425_v20  ;;  %v4307_v19 = vshll.u32 %v11783_v2, 16  ;;  %v4294_v30 = vsel %vm1982_vm2, %v4289_v15, %v4293_v6 }
 0x13c   :  { %1300 = vst.msk [vmem:[#allocation2 + $0x198] sm:$0xff] %vm1248_vm3, %v9935_v23  ;;  %v916_v31 = vpop.f32.mrb[51].mxu0  ;;  %v1426_v32 = vld [vmem:[#allocation2 + $0x168] sm:$0xff]  ;;  %3460 = vst.msk [vmem:[#allocation2 + $0x170] sm:$0xff] %vm1248_vm3, %v3328_v29  ;;  %v3329_v41 = vadd.f32 %v10065_v38, %v1428_v24  ;;  %10307 = vmatmul.mubr.msk.bf16.gmra.mrb[152].mxu1 %vm484_vm1, %v6336_v39  ;;  %v11808_v20 = vld [vmem:[%s13809_s0 + $0xb8] sm:$0xff]   ;;  %v4311_v38 = vshrl.u32 %v11783_v2, 16 }
 0x13d   :  { %1298 = vst.msk [vmem:[#allocation2 + $0x188] sm:$0xff] %vm1248_vm3, %v916_v31  ;;  %3458 = vst.msk [vmem:[#allocation2 + $0x160] sm:$0xff] %vm1248_vm3, %v3326_v37  ;;  %v3327_v40 = vadd.f32 %v2934_v42, %v1426_v32  ;;  %10310 = vmatprep.mubr.msk.bf16.mxu1 %vm484_vm1, %v6338_v43  ;;  %v4303_v31 = vshrl.u32 %v11759_v47, 16  ;;  %v11820_v32 = vld [vmem:[%s13809_s0 + $0xa0] sm:$0xff]   ;;  %v4302_v37 = vsel %vm1982_vm2, %v4297_v18, %v4301_v17  ;;  %v4315_v39 = vshll.u32 %v11808_v20, 16 }
 0x13e   :  { %10177 = vmatmul.mubr.msk.bf16.gmra.mrb[156].mxu0 %vm484_vm1, %v4262_v25  ;;  %3461 = vst.msk [vmem:[#allocation2 + $0x178] sm:$0xff] %vm1248_vm3, %v3329_v41  ;;  %v6345_v25 = vrot.slane %v11797_v14, 1  ;;  %v6344_v42 = vsel %vm6311_vm4, %v6341_v56, %v6343_v16  ;;  %v4309_v43 = vrot.slane %v4307_v19, 1  ;;  %v6347_v50 = vrot.slane %v11820_v32, 1  ;;  %v11878_v14 = vld [vmem:[%s13809_s0 + $0xb8] sm:$0xff]  }
 0x13f   :  { %10180 = vmatprep.mubr.msk.bf16.mxu0 %vm484_vm1, %v4270_v33  ;;  %3459 = vst.msk [vmem:[#allocation2 + $0x168] sm:$0xff] %vm1248_vm3, %v3327_v40  ;;  %v10068_v57 = vpop.f32.mrb[48].mxu1  ;;  %v11833_v40 = vld [vmem:[%s13809_s0 + $0xa8] sm:$0xff]   ;;  %v4305_v49 = vor.u32 %v4303_v31, %v4301_v17  ;;  %v10605_v17 = vld [vmem:[%s13809_s0 + $0xd0] sm:$0xff]  }
 0x140   :  { %v2947_v1 = vpop.f32.mrb[49].mxu1  ;;  %v6346_v47 = vsel %vm6311_vm4, %v6343_v16, %v6345_v25 }
 0x141   :  { %v9938_v51 = vpop.f32.mrb[52].mxu0  ;;  %v1431_v52 = vld [vmem:[#allocation2 + $0x190] sm:$0xff]  ;;  %v10069_v8 = vpop.f32.mrb[50].mxu1 }
 0x142   :  { %1303 = vst.msk [vmem:[#allocation2 + $0x1b0] sm:$0xff] %vm1248_vm3, %v9938_v51  ;;  %v929_v53 = vpop.f32.mrb[53].mxu0  ;;  %v1429_v54 = vld [vmem:[#allocation2 + $0x180] sm:$0xff]  ;;  %v3332_v0 = vadd.f32 %v10068_v57, %v1431_v52  ;;  %v2950_v12 = vpop.f32.mrb[51].mxu1  ;;  %v4313_v51 = vor.u32 %v4311_v38, %v4309_v43  ;;  %v4317_v52 = vrot.slane %v4315_v39, 1 }
 0x143   :  { %1301 = vst.msk [vmem:[#allocation2 + $0x1a0] sm:$0xff] %vm1248_vm3, %v929_v53  ;;  %v9939_v58 = vpop.f32.mrb[54].mxu0  ;;  %v1432_v59 = vld [vmem:[#allocation2 + $0x198] sm:$0xff]  ;;  %v3330_v7 = vadd.f32 %v2947_v1, %v1429_v54  ;;  %v11851_v53 = vld [vmem:[%s13809_s0 + $0xc8] sm:$0xff]   ;;  %v4319_v1 = vshrl.u32 %v11808_v20, 16 }
 0x144   :  { %1304 = vst.msk [vmem:[#allocation2 + $0x1b8] sm:$0xff] %vm1248_vm3, %v9939_v58  ;;  %v932_v55 = vpop.f32.mrb[55].mxu0  ;;  %v1430_v3 = vld [vmem:[#allocation2 + $0x188] sm:$0xff]  ;;  %3464 = vst.msk [vmem:[#allocation2 + $0x190] sm:$0xff] %vm1248_vm3, %v3332_v0  ;;  %v3333_v11 = vadd.f32 %v10069_v8, %v1432_v59  ;;  %10311 = vmatmul.mubr.msk.bf16.gmra.mrb[156].mxu1 %vm484_vm1, %v6340_v9  ;;  %v6349_v59 = vrot.slane %v11833_v40, 1  ;;  %v4310_v0 = vsel %vm1982_vm2, %v4305_v49, %v4309_v43  ;;  %v4331_v8 = vshll.u32 %v11851_v53, 16 }
 0x145   :  { %1302 = vst.msk [vmem:[#allocation2 + $0x1a8] sm:$0xff] %vm1248_vm3, %v932_v55  ;;  %3462 = vst.msk [vmem:[#allocation2 + $0x180] sm:$0xff] %vm1248_vm3, %v3330_v7  ;;  %v3331_v10 = vadd.f32 %v2950_v12, %v1430_v3  ;;  %10314 = vmatprep.mubr.msk.bf16.mxu1 %vm484_vm1, %v6342_v13  ;;  %v4318_v2 = vsel %vm1982_vm2, %v4313_v51, %v4317_v52  ;;  %v4327_v7 = vshrl.u32 %v10601_v44, 16  ;;  %v10602_v12 = vld [vmem:[%s13809_s0 + $0xb0] sm:$0xff]   ;;  %v11917_v40 = vld [vmem:[%s13809_s0 + $0xc8] sm:$0xff]  }
 0x146   :  { %10181 = vmatmul.mubr.msk.bf16.gmra.mrb[160].mxu0 %vm484_vm1, %v4278_v60  ;;  %3465 = vst.msk [vmem:[#allocation2 + $0x198] sm:$0xff] %vm1248_vm3, %v3333_v11  ;;  %v4323_v60 = vshll.u32 %v10601_v44, 16  ;;  %v6348_v11 = vsel %vm6311_vm4, %v6345_v25, %v6347_v50  ;;  %v6350_v15 = vsel %vm6311_vm4, %v6347_v50, %v6349_v59  ;;  %v4321_v19 = vor.u32 %v4319_v1, %v4317_v52  ;;  %v10609_v51 = vld [vmem:[%s13809_s0 + $0xe0] sm:$0xff]  }
 0x147   :  { %10184 = vmatprep.mubr.msk.bf16.mxu0 %vm484_vm1, %v4286_v4  ;;  %3463 = vst.msk [vmem:[#allocation2 + $0x188] sm:$0xff] %vm1248_vm3, %v3331_v10  ;;  %v10072_v26 = vpop.f32.mrb[52].mxu1  ;;  %v6351_v25 = vrot.slane %v10602_v12, 1 }
 0x148   :  { %v2963_v34 = vpop.f32.mrb[53].mxu1  ;;  %v4325_v16 = vrot.slane %v4323_v60, 1 }
 0x149   :  { %v9942_v21 = vpop.f32.mrb[56].mxu0  ;;  %v1435_v22 = vld [vmem:[#allocation2 + $0x1b0] sm:$0xff]  ;;  %v10073_v41 = vpop.f32.mrb[54].mxu1 }
 0x14a   :  { %1307 = vst.msk [vmem:[#allocation2 + $0x1d0] sm:$0xff] %vm1248_vm3, %v9942_v21  ;;  %v945_v23 = vpop.f32.mrb[57].mxu0  ;;  %v1433_v24 = vld [vmem:[#allocation2 + $0x1a0] sm:$0xff]  ;;  %v3336_v33 = vadd.f32 %v10072_v26, %v1435_v22  ;;  %v2966_v46 = vpop.f32.mrb[55].mxu1  ;;  %v4329_v20 = vor.u32 %v4327_v7, %v4325_v16  ;;  %v4333_v21 = vrot.slane %v4331_v8, 1  ;;  %v11890_v22 = vld [vmem:[%s13809_s0 + $0xd8] sm:$0xff]  }
 0x14b   :  { %1305 = vst.msk [vmem:[#allocation2 + $0x1c0] sm:$0xff] %vm1248_vm3, %v945_v23  ;;  %v9943_v28 = vpop.f32.mrb[58].mxu0  ;;  %v1436_v29 = vld [vmem:[#allocation2 + $0x1b8] sm:$0xff]  ;;  %v3334_v36 = vadd.f32 %v2963_v34, %v1433_v24  ;;  %v4326_v34 = vsel %vm1982_vm2, %v4321_v19, %v4325_v16  ;;  %v10610_v16 = vld [vmem:[%s13809_s0 + $0xd0] sm:$0xff]  }
 0x14c   :  { %1308 = vst.msk [vmem:[#allocation2 + $0x1d8] sm:$0xff] %vm1248_vm3, %v9943_v28  ;;  %v948_v35 = vpop.f32.mrb[59].mxu0  ;;  %v1434_v27 = vld [vmem:[#allocation2 + $0x1a8] sm:$0xff]  ;;  %3468 = vst.msk [vmem:[#allocation2 + $0x1b0] sm:$0xff] %vm1248_vm3, %v3336_v33  ;;  %v3337_v45 = vadd.f32 %v10073_v41, %v1436_v29  ;;  %10315 = vmatmul.mubr.msk.bf16.gmra.mrb[160].mxu1 %vm484_vm1, %v6344_v42  ;;  %v6353_v29 = vrot.slane %v11878_v14, 1  ;;  %v4343_v41 = vshrl.u32 %v10605_v17, 16 }
 0x14d   :  { %1306 = vst.msk [vmem:[#allocation2 + $0x1c8] sm:$0xff] %vm1248_vm3, %v948_v35  ;;  %3466 = vst.msk [vmem:[#allocation2 + $0x1a0] sm:$0xff] %vm1248_vm3, %v3334_v36  ;;  %v3335_v48 = vadd.f32 %v2966_v46, %v1434_v27  ;;  %10318 = vmatprep.mubr.msk.bf16.mxu1 %vm484_vm1, %v6346_v47  ;;  %v4335_v35 = vshrl.u32 %v11851_v53, 16  ;;  %v4334_v36 = vsel %vm1982_vm2, %v4329_v20, %v4333_v21  ;;  %v4347_v42 = vshll.u32 %v11890_v22, 16  ;;  %v10606_v47 = vld [vmem:[%s13809_s0 + $0xc0] sm:$0xff]   ;;  %v11956_v14 = vld [vmem:[%s13809_s0 + $0xd8] sm:$0xff]  }
 0x14e   :  { %10185 = vmatmul.mubr.msk.bf16.gmra.mrb[164].mxu0 %vm484_vm1, %v4294_v30  ;;  %3469 = vst.msk [vmem:[#allocation2 + $0x1b8] sm:$0xff] %vm1248_vm3, %v3337_v45  ;;  %v4339_v30 = vshll.u32 %v10605_v17, 16  ;;  %v6352_v46 = vsel %vm6311_vm4, %v6349_v59, %v6351_v25  ;;  %v6354_v49 = vsel %vm6311_vm4, %v6351_v25, %v6353_v29  ;;  %v6355_v60 = vrot.slane %v10606_v47, 1 }
 0x14f   :  { %10188 = vmatprep.mubr.msk.bf16.mxu0 %vm484_vm1, %v4302_v37  ;;  %3467 = vst.msk [vmem:[#allocation2 + $0x1a8] sm:$0xff] %vm1248_vm3, %v3335_v48  ;;  %v10076_v61 = vpop.f32.mrb[56].mxu1  ;;  %v4337_v53 = vor.u32 %v4335_v35, %v4333_v21  ;;  %v10613_v21 = vld [vmem:[%s13809_s0 + $0xf0] sm:$0xff]  }
 0x150   :  { %v2979_v3 = vpop.f32.mrb[57].mxu1  ;;  %v4341_v50 = vrot.slane %v4339_v30, 1  ;;  %v6359_v30 = vrot.slane %v10610_v16, 1 }
 0x151   :  { %v9946_v54 = vpop.f32.mrb[60].mxu0  ;;  %v1439_v56 = vld [vmem:[#allocation2 + $0x1d0] sm:$0xff]  ;;  %v10077_v6 = vpop.f32.mrb[58].mxu1 }
 0x152   :  { %1311 = vst.msk [vmem:[#allocation2 + $0x1f0] sm:$0xff] %vm1248_vm3, %v9946_v54  ;;  %v961_v57 = vpop.f32.mrb[61].mxu0  ;;  %v1437_v58 = vld [vmem:[#allocation2 + $0x1c0] sm:$0xff]  ;;  %v3340_v55 = vadd.f32 %v10076_v61, %v1439_v56  ;;  %v2982_v10 = vpop.f32.mrb[59].mxu1  ;;  %v4345_v54 = vor.u32 %v4343_v41, %v4341_v50  ;;  %v4349_v56 = vrot.slane %v4347_v42, 1 }
 0x153   :  { %1309 = vst.msk [vmem:[#allocation2 + $0x1e0] sm:$0xff] %vm1248_vm3, %v961_v57  ;;  %v9947_v62 = vpop.f32.mrb[62].mxu0  ;;  %v1440_v63 = vld [vmem:[#allocation2 + $0x1d8] sm:$0xff]  ;;  %v3338_v9 = vadd.f32 %v2979_v3, %v1437_v58  ;;  %v11929_v57 = vld [vmem:[%s13809_s0 + $0xe8] sm:$0xff]  }
 0x154   :  { %1312 = vst.msk [vmem:[#allocation2 + $0x1f8] sm:$0xff] %vm1248_vm3, %v9947_v62  ;;  %v964_v4 = vpop.f32.mrb[63].mxu0  ;;  %v1438_v5 = vld [vmem:[#allocation2 + $0x1c8] sm:$0xff]  ;;  %3472 = vst.msk [vmem:[#allocation2 + $0x1d0] sm:$0xff] %vm1248_vm3, %v3340_v55  ;;  %v3341_v13 = vadd.f32 %v10077_v6, %v1440_v63  ;;  %10319 = vmatmul.mubr.msk.bf16.gmra.mrb[164].mxu1 %vm484_vm1, %v6348_v11  ;;  %v6357_v63 = vrot.slane %v11917_v40, 1  ;;  %v4350_v6 = vsel %vm1982_vm2, %v4345_v54, %v4349_v56  ;;  %v4359_v11 = vshrl.u32 %v10609_v51, 16 }
 0x155   :  { %1310 = vst.msk [vmem:[#allocation2 + $0x1e8] sm:$0xff] %vm1248_vm3, %v964_v4  ;;  %3470 = vst.msk [vmem:[#allocation2 + $0x1c0] sm:$0xff] %vm1248_vm3, %v3338_v9  ;;  %v3339_v18 = vadd.f32 %v2982_v10, %v1438_v5  ;;  %10322 = vmatprep.mubr.msk.bf16.mxu1 %vm484_vm1, %v6350_v15  ;;  %v4342_v4 = vsel %vm1982_vm2, %v4337_v53, %v4341_v50  ;;  %v4351_v5 = vshrl.u32 %v11890_v22, 16  ;;  %v4363_v12 = vshll.u32 %v11929_v57, 16  ;;  %v10614_v50 = vld [vmem:[%s13809_s0 + $0xe0] sm:$0xff]   ;;  %v11995_v40 = vld [vmem:[%s13809_s0 + $0xe8] sm:$0xff]  }
 0x156   :  { %10189 = vmatmul.mubr.msk.bf16.gmra.mrb[168].mxu0 %vm484_vm1, %v4310_v0  ;;  %3473 = vst.msk [vmem:[#allocation2 + $0x1d8] sm:$0xff] %vm1248_vm3, %v3341_v13  ;;  %v4355_v0 = vshll.u32 %v10609_v51, 16  ;;  %v6356_v15 = vsel %vm6311_vm4, %v6353_v29, %v6355_v60  ;;  %v6358_v19 = vsel %vm6311_vm4, %v6355_v60, %v6357_v63 }
 0x157   :  { %10192 = vmatprep.mubr.msk.bf16.mxu0 %vm484_vm1, %v4318_v2  ;;  %3471 = vst.msk [vmem:[#allocation2 + $0x1c8] sm:$0xff] %vm1248_vm3, %v3339_v18  ;;  %v10080_v31 = vpop.f32.mrb[60].mxu1  ;;  %v4365_v25 = vrot.slane %v4363_v12, 1 }
 0x158   :  { %v2995_v37 = vpop.f32.mrb[61].mxu1  ;;  %v4357_v20 = vrot.slane %v4355_v0, 1  ;;  %v6363_v0 = vrot.slane %v10614_v50, 1 }
 0x159   :  { %v9950_v23 = vpop.f32.mrb[64].mxu0  ;;  %v1443_v24 = vld [vmem:[#allocation2 + $0x1f0] sm:$0xff]  ;;  %v10081_v45 = vpop.f32.mrb[62].mxu1 }
 0x15a   :  { %1315 = vst.msk [vmem:[#allocation2 + $0x210] sm:$0xff] %vm1248_vm3, %v9950_v23  ;;  %v977_v26 = vpop.f32.mrb[65].mxu0  ;;  %v1441_v28 = vld [vmem:[#allocation2 + $0x1e0] sm:$0xff]  ;;  %v3344_v27 = vadd.f32 %v10080_v31, %v1443_v24  ;;  %v2998_v48 = vpop.f32.mrb[63].mxu1  ;;  %v4353_v23 = vor.u32 %v4351_v5, %v4349_v56  ;;  %v4361_v24 = vor.u32 %v4359_v11, %v4357_v20 }
 0x15b   :  { %1313 = vst.msk [vmem:[#allocation2 + $0x200] sm:$0xff] %vm1248_vm3, %v977_v26  ;;  %v9951_v32 = vpop.f32.mrb[66].mxu0  ;;  %v1444_v33 = vld [vmem:[#allocation2 + $0x1f8] sm:$0xff]  ;;  %v3342_v43 = vadd.f32 %v2995_v37, %v1441_v28  ;;  %v10617_v56 = vld [vmem:[%s13809_s0 + $0x100] sm:$0xff]  }
 0x15c   :  { %1316 = vst.msk [vmem:[#allocation2 + $0x218] sm:$0xff] %vm1248_vm3, %v9951_v32  ;;  %v980_v38 = vpop.f32.mrb[67].mxu0  ;;  %v1442_v39 = vld [vmem:[#allocation2 + $0x1e8] sm:$0xff]  ;;  %3476 = vst.msk [vmem:[#allocation2 + $0x1f0] sm:$0xff] %vm1248_vm3, %v3344_v27  ;;  %v3345_v44 = vadd.f32 %v10081_v45, %v1444_v33  ;;  %10323 = vmatmul.mubr.msk.bf16.gmra.mrb[168].mxu1 %vm484_vm1, %v6352_v46  ;;  %v11968_v26 = vld [vmem:[%s13809_s0 + $0xf8] sm:$0xff]   ;;  %v6361_v33 = vrot.slane %v11956_v14, 1  ;;  %v4366_v45 = vsel %vm1982_vm2, %v4361_v24, %v4365_v25 }
 0x15d   :  { %1314 = vst.msk [vmem:[#allocation2 + $0x208] sm:$0xff] %vm1248_vm3, %v980_v38  ;;  %3474 = vst.msk [vmem:[#allocation2 + $0x1e0] sm:$0xff] %vm1248_vm3, %v3342_v43  ;;  %v3343_v52 = vadd.f32 %v2998_v48, %v1442_v39  ;;  %10326 = vmatprep.mubr.msk.bf16.mxu1 %vm484_vm1, %v6354_v49  ;;  %v4358_v38 = vsel %vm1982_vm2, %v4353_v23, %v4357_v20  ;;  %v4367_v39 = vshrl.u32 %v11929_v57, 16  ;;  %v4375_v46 = vshrl.u32 %v10613_v21, 16  ;;  %v10618_v20 = vld [vmem:[%s13809_s0 + $0xf0] sm:$0xff]   ;;  %v12034_v14 = vld [vmem:[%s13809_s0 + $0xf8] sm:$0xff]  }
 0x15e   :  { %10193 = vmatmul.mubr.msk.bf16.gmra.mrb[172].mxu0 %vm484_vm1, %v4326_v34  ;;  %3477 = vst.msk [vmem:[#allocation2 + $0x1f8] sm:$0xff] %vm1248_vm3, %v3345_v44  ;;  %v4371_v34 = vshll.u32 %v10613_v21, 16  ;;  %v4379_v47 = vshll.u32 %v11968_v26, 16  ;;  %v6360_v49 = vsel %vm6311_vm4, %v6357_v63, %v6359_v30  ;;  %v6362_v53 = vsel %vm6311_vm4, %v6359_v30, %v6361_v33 }
 0x15f   :  { %10196 = vmatprep.mubr.msk.bf16.mxu0 %vm484_vm1, %v4334_v36  ;;  %3475 = vst.msk [vmem:[#allocation2 + $0x1e8] sm:$0xff] %vm1248_vm3, %v3343_v52  ;;  %v10084_v1 = vpop.f32.mrb[64].mxu1 }
 0x160   :  { %v3011_v7 = vpop.f32.mrb[65].mxu1  ;;  %v4373_v54 = vrot.slane %v4371_v34, 1  ;;  %v4381_v60 = vrot.slane %v4379_v47, 1  ;;  %v6367_v34 = vrot.slane %v10618_v20, 1 }
 0x161   :  { %v9954_v58 = vpop.f32.mrb[68].mxu0  ;;  %v1447_v59 = vld [vmem:[#allocation2 + $0x210] sm:$0xff]  ;;  %v10085_v10 = vpop.f32.mrb[66].mxu1 }
 0x162   :  { %1319 = vst.msk [vmem:[#allocation2 + $0x230] sm:$0xff] %vm1248_vm3, %v9954_v58  ;;  %v993_v61 = vpop.f32.mrb[69].mxu0  ;;  %v1445_v62 = vld [vmem:[#allocation2 + $0x200] sm:$0xff]  ;;  %v3348_v2 = vadd.f32 %v10084_v1, %v1447_v59  ;;  %v3014_v18 = vpop.f32.mrb[67].mxu1  ;;  %v4369_v58 = vor.u32 %v4367_v39, %v4365_v25  ;;  %v4377_v59 = vor.u32 %v4375_v46, %v4373_v54  ;;  %v10621_v25 = vld [vmem:[%s13809_s0 + $0x110] sm:$0xff]  }
 0x163   :  { %1317 = vst.msk [vmem:[#allocation2 + $0x220] sm:$0xff] %vm1248_vm3, %v993_v61  ;;  %v9955_v55 = vpop.f32.mrb[70].mxu0  ;;  %v1448_v3 = vld [vmem:[#allocation2 + $0x218] sm:$0xff]  ;;  %v3346_v13 = vadd.f32 %v3011_v7, %v1445_v62  ;;  %v12007_v61 = vld [vmem:[%s13809_s0 + $0x108] sm:$0xff]  }
 0x164   :  { %1320 = vst.msk [vmem:[#allocation2 + $0x238] sm:$0xff] %vm1248_vm3, %v9955_v55  ;;  %v996_v8 = vpop.f32.mrb[71].mxu0  ;;  %v1446_v9 = vld [vmem:[#allocation2 + $0x208] sm:$0xff]  ;;  %3480 = vst.msk [vmem:[#allocation2 + $0x210] sm:$0xff] %vm1248_vm3, %v3348_v2  ;;  %v3349_v17 = vadd.f32 %v10085_v10, %v1448_v3  ;;  %10327 = vmatmul.mubr.msk.bf16.gmra.mrb[172].mxu1 %vm484_vm1, %v6356_v15  ;;  %v6365_v3 = vrot.slane %v11995_v40, 1  ;;  %v4382_v10 = vsel %vm1982_vm2, %v4377_v59, %v4381_v60  ;;  %v4391_v15 = vshrl.u32 %v10617_v56, 16 }
 0x165   :  { %1318 = vst.msk [vmem:[#allocation2 + $0x228] sm:$0xff] %vm1248_vm3, %v996_v8  ;;  %3478 = vst.msk [vmem:[#allocation2 + $0x200] sm:$0xff] %vm1248_vm3, %v3346_v13  ;;  %v3347_v22 = vadd.f32 %v3014_v18, %v1446_v9  ;;  %10330 = vmatprep.mubr.msk.bf16.mxu1 %vm484_vm1, %v6358_v19  ;;  %v4374_v8 = vsel %vm1982_vm2, %v4369_v58, %v4373_v54  ;;  %v4383_v9 = vshrl.u32 %v11968_v26, 16  ;;  %v4395_v16 = vshll.u32 %v12007_v61, 16  ;;  %v10622_v54 = vld [vmem:[%s13809_s0 + $0x100] sm:$0xff]   ;;  %v12073_v40 = vld [vmem:[%s13809_s0 + $0x108] sm:$0xff]  }
 0x166   :  { %10197 = vmatmul.mubr.msk.bf16.gmra.mrb[176].mxu0 %vm484_vm1, %v4342_v4  ;;  %3481 = vst.msk [vmem:[#allocation2 + $0x218] sm:$0xff] %vm1248_vm3, %v3349_v17  ;;  %v4387_v4 = vshll.u32 %v10617_v56, 16  ;;  %v6364_v19 = vsel %vm6311_vm4, %v6361_v33, %v6363_v0  ;;  %v6366_v23 = vsel %vm6311_vm4, %v6363_v0, %v6365_v3 }
 0x167   :  { %10200 = vmatprep.mubr.msk.bf16.mxu0 %vm484_vm1, %v4350_v6  ;;  %3479 = vst.msk [vmem:[#allocation2 + $0x208] sm:$0xff] %vm1248_vm3, %v3347_v22  ;;  %v10088_v35 = vpop.f32.mrb[68].mxu1  ;;  %v4397_v30 = vrot.slane %v4395_v16, 1 }
 0x168   :  { %v3027_v41 = vpop.f32.mrb[69].mxu1  ;;  %v4389_v24 = vrot.slane %v4387_v4, 1  ;;  %v6371_v4 = vrot.slane %v10622_v54, 1 }
 0x169   :  { %v9958_v28 = vpop.f32.mrb[72].mxu0  ;;  %v1451_v29 = vld [vmem:[#allocation2 + $0x230] sm:$0xff]  ;;  %v10089_v48 = vpop.f32.mrb[70].mxu1 }
 0x16a   :  { %1323 = vst.msk [vmem:[#allocation2 + $0x250] sm:$0xff] %vm1248_vm3, %v9958_v28  ;;  %v1009_v31 = vpop.f32.mrb[73].mxu0  ;;  %v1449_v32 = vld [vmem:[#allocation2 + $0x220] sm:$0xff]  ;;  %v3352_v36 = vadd.f32 %v10088_v35, %v1451_v29  ;;  %v3030_v52 = vpop.f32.mrb[71].mxu1  ;;  %v4385_v28 = vor.u32 %v4383_v9, %v4381_v60  ;;  %v4393_v29 = vor.u32 %v4391_v15, %v4389_v24 }
 0x16b   :  { %1321 = vst.msk [vmem:[#allocation2 + $0x240] sm:$0xff] %vm1248_vm3, %v1009_v31  ;;  %v9959_v27 = vpop.f32.mrb[74].mxu0  ;;  %v1452_v37 = vld [vmem:[#allocation2 + $0x238] sm:$0xff]  ;;  %v3350_v44 = vadd.f32 %v3027_v41, %v1449_v32  ;;  %v10625_v60 = vld [vmem:[%s13809_s0 + $0x120] sm:$0xff]  }
 0x16c   :  { %1324 = vst.msk [vmem:[#allocation2 + $0x258] sm:$0xff] %vm1248_vm3, %v9959_v27  ;;  %v1012_v42 = vpop.f32.mrb[75].mxu0  ;;  %v1450_v43 = vld [vmem:[#allocation2 + $0x228] sm:$0xff]  ;;  %3484 = vst.msk [vmem:[#allocation2 + $0x230] sm:$0xff] %vm1248_vm3, %v3352_v36  ;;  %v3353_v51 = vadd.f32 %v10089_v48, %v1452_v37  ;;  %10331 = vmatmul.mubr.msk.bf16.gmra.mrb[176].mxu1 %vm484_vm1, %v6360_v49  ;;  %v12046_v31 = vld [vmem:[%s13809_s0 + $0x118] sm:$0xff]   ;;  %v6369_v37 = vrot.slane %v12034_v14, 1  ;;  %v4398_v48 = vsel %vm1982_vm2, %v4393_v29, %v4397_v30 }
 0x16d   :  { %1322 = vst.msk [vmem:[#allocation2 + $0x248] sm:$0xff] %vm1248_vm3, %v1012_v42  ;;  %3482 = vst.msk [vmem:[#allocation2 + $0x220] sm:$0xff] %vm1248_vm3, %v3350_v44  ;;  %v3351_v57 = vadd.f32 %v3030_v52, %v1450_v43  ;;  %10334 = vmatprep.mubr.msk.bf16.mxu1 %vm484_vm1, %v6362_v53  ;;  %v4390_v42 = vsel %vm1982_vm2, %v4385_v28, %v4389_v24  ;;  %v4399_v43 = vshrl.u32 %v12007_v61, 16  ;;  %v4407_v49 = vshrl.u32 %v10621_v25, 16  ;;  %v10626_v24 = vld [vmem:[%s13809_s0 + $0x110] sm:$0xff]   ;;  %v12112_v14 = vld [vmem:[%s13809_s0 + $0x118] sm:$0xff]  }
 0x16e   :  { %10201 = vmatmul.mubr.msk.bf16.gmra.mrb[180].mxu0 %vm484_vm1, %v4358_v38  ;;  %3485 = vst.msk [vmem:[#allocation2 + $0x238] sm:$0xff] %vm1248_vm3, %v3353_v51  ;;  %v4403_v38 = vshll.u32 %v10621_v25, 16  ;;  %v4411_v50 = vshll.u32 %v12046_v31, 16  ;;  %v6368_v53 = vsel %vm6311_vm4, %v6365_v3, %v6367_v34  ;;  %v6370_v58 = vsel %vm6311_vm4, %v6367_v34, %v6369_v37 }
 0x16f   :  { %10204 = vmatprep.mubr.msk.bf16.mxu0 %vm484_vm1, %v4366_v45  ;;  %3483 = vst.msk [vmem:[#allocation2 + $0x228] sm:$0xff] %vm1248_vm3, %v3351_v57  ;;  %v10092_v5 = vpop.f32.mrb[72].mxu1 }
 0x170   :  { %v3043_v11 = vpop.f32.mrb[73].mxu1  ;;  %v4405_v59 = vrot.slane %v4403_v38, 1  ;;  %v4413_v0 = vrot.slane %v4411_v50, 1  ;;  %v6375_v38 = vrot.slane %v10626_v24, 1 }
 0x171   :  { %v9962_v62 = vpop.f32.mrb[76].mxu0  ;;  %v1455_v63 = vld [vmem:[#allocation2 + $0x250] sm:$0xff]  ;;  %v10093_v18 = vpop.f32.mrb[74].mxu1 }
 0x172   :  { %1327 = vst.msk [vmem:[#allocation2 + $0x270] sm:$0xff] %vm1248_vm3, %v9962_v62  ;;  %v1025_v1 = vpop.f32.mrb[77].mxu0  ;;  %v1453_v55 = vld [vmem:[#allocation2 + $0x240] sm:$0xff]  ;;  %v3356_v6 = vadd.f32 %v10092_v5, %v1455_v63  ;;  %v3046_v22 = vpop.f32.mrb[75].mxu1  ;;  %v4401_v62 = vor.u32 %v4399_v43, %v4397_v30  ;;  %v4409_v63 = vor.u32 %v4407_v49, %v4405_v59  ;;  %v10629_v30 = vld [vmem:[%s13809_s0 + $0x130] sm:$0xff]  }
 0x173   :  { %1325 = vst.msk [vmem:[#allocation2 + $0x260] sm:$0xff] %vm1248_vm3, %v1025_v1  ;;  %v9963_v2 = vpop.f32.mrb[78].mxu0  ;;  %v1456_v7 = vld [vmem:[#allocation2 + $0x258] sm:$0xff]  ;;  %v3354_v17 = vadd.f32 %v3043_v11, %v1453_v55  ;;  %v12085_v1 = vld [vmem:[%s13809_s0 + $0x128] sm:$0xff]  }
 0x174   :  { %1328 = vst.msk [vmem:[#allocation2 + $0x278] sm:$0xff] %vm1248_vm3, %v9963_v2  ;;  %v1028_v12 = vpop.f32.mrb[79].mxu0  ;;  %v1454_v13 = vld [vmem:[#allocation2 + $0x248] sm:$0xff]  ;;  %3488 = vst.msk [vmem:[#allocation2 + $0x250] sm:$0xff] %vm1248_vm3, %v3356_v6  ;;  %v3357_v21 = vadd.f32 %v10093_v18, %v1456_v7  ;;  %10335 = vmatmul.mubr.msk.bf16.gmra.mrb[180].mxu1 %vm484_vm1, %v6364_v19  ;;  %v6373_v7 = vrot.slane %v12073_v40, 1  ;;  %v4414_v18 = vsel %vm1982_vm2, %v4409_v63, %v4413_v0  ;;  %v4423_v19 = vshrl.u32 %v10625_v60, 16 }
 0x175   :  { %1326 = vst.msk [vmem:[#allocation2 + $0x268] sm:$0xff] %vm1248_vm3, %v1028_v12  ;;  %3486 = vst.msk [vmem:[#allocation2 + $0x240] sm:$0xff] %vm1248_vm3, %v3354_v17  ;;  %v3355_v26 = vadd.f32 %v3046_v22, %v1454_v13  ;;  %10338 = vmatprep.mubr.msk.bf16.mxu1 %vm484_vm1, %v6366_v23  ;;  %v4406_v12 = vsel %vm1982_vm2, %v4401_v62, %v4405_v59  ;;  %v4415_v13 = vshrl.u32 %v12046_v31, 16  ;;  %v4427_v20 = vshll.u32 %v12085_v1, 16  ;;  %v10630_v59 = vld [vmem:[%s13809_s0 + $0x120] sm:$0xff]   ;;  %v12151_v40 = vld [vmem:[%s13809_s0 + $0x128] sm:$0xff]  }
 0x176   :  { %10205 = vmatmul.mubr.msk.bf16.gmra.mrb[184].mxu0 %vm484_vm1, %v4374_v8  ;;  %3489 = vst.msk [vmem:[#allocation2 + $0x258] sm:$0xff] %vm1248_vm3, %v3357_v21  ;;  %v4419_v8 = vshll.u32 %v10625_v60, 16  ;;  %v6372_v23 = vsel %vm6311_vm4, %v6369_v37, %v6371_v4  ;;  %v6374_v28 = vsel %vm6311_vm4, %v6371_v4, %v6373_v7 }
 0x177   :  { %10208 = vmatprep.mubr.msk.bf16.mxu0 %vm484_vm1, %v4382_v10  ;;  %3487 = vst.msk [vmem:[#allocation2 + $0x248] sm:$0xff] %vm1248_vm3, %v3355_v26  ;;  %v10096_v39 = vpop.f32.mrb[76].mxu1  ;;  %v4429_v34 = vrot.slane %v4427_v20, 1 }
 0x178   :  { %v3059_v46 = vpop.f32.mrb[77].mxu1  ;;  %v4421_v29 = vrot.slane %v4419_v8, 1  ;;  %v6379_v8 = vrot.slane %v10630_v59, 1 }
 0x179   :  { %v9966_v32 = vpop.f32.mrb[80].mxu0  ;;  %v1459_v33 = vld [vmem:[#allocation2 + $0x270] sm:$0xff]  ;;  %v10097_v52 = vpop.f32.mrb[78].mxu1 }
 0x17a   :  { %1331 = vst.msk [vmem:[#allocation2 + $0x290] sm:$0xff] %vm1248_vm3, %v9966_v32  ;;  %v1041_v35 = vpop.f32.mrb[81].mxu0  ;;  %v1457_v27 = vld [vmem:[#allocation2 + $0x260] sm:$0xff]  ;;  %v3360_v45 = vadd.f32 %v10096_v39, %v1459_v33  ;;  %v3062_v57 = vpop.f32.mrb[79].mxu1  ;;  %v4417_v32 = vor.u32 %v4415_v13, %v4413_v0  ;;  %v4425_v33 = vor.u32 %v4423_v19, %v4421_v29 }
 0x17b   :  { %1329 = vst.msk [vmem:[#allocation2 + $0x280] sm:$0xff] %vm1248_vm3, %v1041_v35  ;;  %v9967_v36 = vpop.f32.mrb[82].mxu0  ;;  %v1460_v41 = vld [vmem:[#allocation2 + $0x278] sm:$0xff]  ;;  %v3358_v51 = vadd.f32 %v3059_v46, %v1457_v27  ;;  %v10633_v0 = vld [vmem:[%s13809_s0 + $0x140] sm:$0xff]  }
 0x17c   :  { %1332 = vst.msk [vmem:[#allocation2 + $0x298] sm:$0xff] %vm1248_vm3, %v9967_v36  ;;  %v1044_v47 = vpop.f32.mrb[83].mxu0  ;;  %v1458_v44 = vld [vmem:[#allocation2 + $0x268] sm:$0xff]  ;;  %3492 = vst.msk [vmem:[#allocation2 + $0x270] sm:$0xff] %vm1248_vm3, %v3360_v45  ;;  %v3361_v56 = vadd.f32 %v10097_v52, %v1460_v41  ;;  %10339 = vmatmul.mubr.msk.bf16.gmra.mrb[184].mxu1 %vm484_vm1, %v6368_v53  ;;  %v12124_v35 = vld [vmem:[%s13809_s0 + $0x138] sm:$0xff]   ;;  %v6377_v41 = vrot.slane %v12112_v14, 1  ;;  %v4430_v52 = vsel %vm1982_vm2, %v4425_v33, %v4429_v34 }
 0x17d   :  { %1330 = vst.msk [vmem:[#allocation2 + $0x288] sm:$0xff] %vm1248_vm3, %v1044_v47  ;;  %3490 = vst.msk [vmem:[#allocation2 + $0x260] sm:$0xff] %vm1248_vm3, %v3358_v51  ;;  %v3359_v61 = vadd.f32 %v3062_v57, %v1458_v44  ;;  %10342 = vmatprep.mubr.msk.bf16.mxu1 %vm484_vm1, %v6370_v58  ;;  %v4422_v47 = vsel %vm1982_vm2, %v4417_v32, %v4421_v29  ;;  %v4431_v44 = vshrl.u32 %v12085_v1, 16  ;;  %v4439_v53 = vshrl.u32 %v10629_v30, 16  ;;  %v10634_v29 = vld [vmem:[%s13809_s0 + $0x130] sm:$0xff]   ;;  %v12190_v14 = vld [vmem:[%s13809_s0 + $0x138] sm:$0xff]  }
 0x17e   :  { %10209 = vmatmul.mubr.msk.bf16.gmra.mrb[188].mxu0 %vm484_vm1, %v4390_v42  ;;  %3493 = vst.msk [vmem:[#allocation2 + $0x278] sm:$0xff] %vm1248_vm3, %v3361_v56  ;;  %v4435_v42 = vshll.u32 %v10629_v30, 16  ;;  %v4443_v54 = vshll.u32 %v12124_v35, 16  ;;  %v6376_v58 = vsel %vm6311_vm4, %v6373_v7, %v6375_v38  ;;  %v6378_v62 = vsel %vm6311_vm4, %v6375_v38, %v6377_v41 }
 0x17f   :  { %10212 = vmatprep.mubr.msk.bf16.mxu0 %vm484_vm1, %v4398_v48  ;;  %3491 = vst.msk [vmem:[#allocation2 + $0x268] sm:$0xff] %vm1248_vm3, %v3359_v61  ;;  %v10100_v9 = vpop.f32.mrb[80].mxu1 }
 0x180   :  { %v3075_v15 = vpop.f32.mrb[81].mxu1  ;;  %v4437_v63 = vrot.slane %v4435_v42, 1  ;;  %v4445_v4 = vrot.slane %v4443_v54, 1  ;;  %v6383_v42 = vrot.slane %v10634_v29, 1 }
 0x181   :  { %v9970_v55 = vpop.f32.mrb[84].mxu0  ;;  %v1463_v3 = vld [vmem:[#allocation2 + $0x290] sm:$0xff]  ;;  %v10101_v22 = vpop.f32.mrb[82].mxu1 }
 0x182   :  { %1335 = vst.msk [vmem:[#allocation2 + $0x2b0] sm:$0xff] %vm1248_vm3, %v9970_v55  ;;  %v1057_v5 = vpop.f32.mrb[85].mxu0  ;;  %v1461_v2 = vld [vmem:[#allocation2 + $0x280] sm:$0xff]  ;;  %v3364_v10 = vadd.f32 %v10100_v9, %v1463_v3  ;;  %v3078_v26 = vpop.f32.mrb[83].mxu1  ;;  %v4433_v55 = vor.u32 %v4431_v44, %v4429_v34  ;;  %v4441_v3 = vor.u32 %v4439_v53, %v4437_v63  ;;  %v10637_v34 = vld [vmem:[%s13809_s0 + $0x150] sm:$0xff]  }
 0x183   :  { %1333 = vst.msk [vmem:[#allocation2 + $0x2a0] sm:$0xff] %vm1248_vm3, %v1057_v5  ;;  %v9971_v6 = vpop.f32.mrb[86].mxu0  ;;  %v1464_v11 = vld [vmem:[#allocation2 + $0x298] sm:$0xff]  ;;  %v3362_v21 = vadd.f32 %v3075_v15, %v1461_v2  ;;  %v12163_v5 = vld [vmem:[%s13809_s0 + $0x148] sm:$0xff]  }
 0x184   :  { %1336 = vst.msk [vmem:[#allocation2 + $0x2b8] sm:$0xff] %vm1248_vm3, %v9971_v6  ;;  %v1060_v16 = vpop.f32.mrb[87].mxu0  ;;  %v1462_v17 = vld [vmem:[#allocation2 + $0x288] sm:$0xff]  ;;  %3496 = vst.msk [vmem:[#allocation2 + $0x290] sm:$0xff] %vm1248_vm3, %v3364_v10  ;;  %v3365_v25 = vadd.f32 %v10101_v22, %v1464_v11  ;;  %10343 = vmatmul.mubr.msk.bf16.gmra.mrb[188].mxu1 %vm484_vm1, %v6372_v23  ;;  %v6381_v11 = vrot.slane %v12151_v40, 1  ;;  %v4446_v22 = vsel %vm1982_vm2, %v4441_v3, %v4445_v4  ;;  %v4455_v23 = vshrl.u32 %v10633_v0, 16 }
 0x185   :  { %1334 = vst.msk [vmem:[#allocation2 + $0x2a8] sm:$0xff] %vm1248_vm3, %v1060_v16  ;;  %3494 = vst.msk [vmem:[#allocation2 + $0x280] sm:$0xff] %vm1248_vm3, %v3362_v21  ;;  %v3363_v31 = vadd.f32 %v3078_v26, %v1462_v17  ;;  %10346 = vmatprep.mubr.msk.bf16.mxu1 %vm484_vm1, %v6374_v28  ;;  %v4438_v16 = vsel %vm1982_vm2, %v4433_v55, %v4437_v63  ;;  %v4447_v17 = vshrl.u32 %v12124_v35, 16  ;;  %v4459_v24 = vshll.u32 %v12163_v5, 16  ;;  %v10638_v63 = vld [vmem:[%s13809_s0 + $0x140] sm:$0xff]   ;;  %v12229_v40 = vld [vmem:[%s13809_s0 + $0x148] sm:$0xff]  }
 0x186   :  { %10213 = vmatmul.mubr.msk.bf16.gmra.mrb[192].mxu0 %vm484_vm1, %v4406_v12  ;;  %3497 = vst.msk [vmem:[#allocation2 + $0x298] sm:$0xff] %vm1248_vm3, %v3365_v25  ;;  %v4451_v12 = vshll.u32 %v10633_v0, 16  ;;  %v6380_v28 = vsel %vm6311_vm4, %v6377_v41, %v6379_v8  ;;  %v6382_v32 = vsel %vm6311_vm4, %v6379_v8, %v6381_v11 }
 0x187   :  { %10216 = vmatprep.mubr.msk.bf16.mxu0 %vm484_vm1, %v4414_v18  ;;  %3495 = vst.msk [vmem:[#allocation2 + $0x288] sm:$0xff] %vm1248_vm3, %v3363_v31  ;;  %v10104_v43 = vpop.f32.mrb[84].mxu1  ;;  %v4461_v38 = vrot.slane %v4459_v24, 1 }
 0x188   :  { %v3091_v49 = vpop.f32.mrb[85].mxu1  ;;  %v4453_v33 = vrot.slane %v4451_v12, 1  ;;  %v6387_v12 = vrot.slane %v10638_v63, 1 }
 0x189   :  { %v9974_v27 = vpop.f32.mrb[88].mxu0  ;;  %v1467_v37 = vld [vmem:[#allocation2 + $0x2b0] sm:$0xff]  ;;  %v10105_v57 = vpop.f32.mrb[86].mxu1 }
 0x18a   :  { %1339 = vst.msk [vmem:[#allocation2 + $0x2d0] sm:$0xff] %vm1248_vm3, %v9974_v27  ;;  %v1073_v39 = vpop.f32.mrb[89].mxu0  ;;  %v1465_v36 = vld [vmem:[#allocation2 + $0x2a0] sm:$0xff]  ;;  %v3368_v48 = vadd.f32 %v10104_v43, %v1467_v37  ;;  %v3094_v61 = vpop.f32.mrb[87].mxu1  ;;  %v4449_v27 = vor.u32 %v4447_v17, %v4445_v4  ;;  %v4457_v37 = vor.u32 %v4455_v23, %v4453_v33 }
 0x18b   :  { %1337 = vst.msk [vmem:[#allocation2 + $0x2c0] sm:$0xff] %vm1248_vm3, %v1073_v39  ;;  %v9975_v45 = vpop.f32.mrb[90].mxu0  ;;  %v1468_v46 = vld [vmem:[#allocation2 + $0x2b8] sm:$0xff]  ;;  %v3366_v56 = vadd.f32 %v3091_v49, %v1465_v36  ;;  %v10641_v4 = vld [vmem:[%s13809_s0 + $0x160] sm:$0xff]  }
 0x18c   :  { %1340 = vst.msk [vmem:[#allocation2 + $0x2d8] sm:$0xff] %vm1248_vm3, %v9975_v45  ;;  %v1076_v50 = vpop.f32.mrb[91].mxu0  ;;  %v1466_v51 = vld [vmem:[#allocation2 + $0x2a8] sm:$0xff]  ;;  %3500 = vst.msk [vmem:[#allocation2 + $0x2b0] sm:$0xff] %vm1248_vm3, %v3368_v48  ;;  %v3369_v60 = vadd.f32 %v10105_v57, %v1468_v46  ;;  %10347 = vmatmul.mubr.msk.bf16.gmra.mrb[192].mxu1 %vm484_vm1, %v6376_v58  ;;  %v12202_v39 = vld [vmem:[%s13809_s0 + $0x158] sm:$0xff]   ;;  %v6385_v46 = vrot.slane %v12190_v14, 1  ;;  %v4462_v57 = vsel %vm1982_vm2, %v4457_v37, %v4461_v38 }
 0x18d   :  { %1338 = vst.msk [vmem:[#allocation2 + $0x2c8] sm:$0xff] %vm1248_vm3, %v1076_v50  ;;  %3498 = vst.msk [vmem:[#allocation2 + $0x2a0] sm:$0xff] %vm1248_vm3, %v3366_v56  ;;  %v3367_v1 = vadd.f32 %v3094_v61, %v1466_v51  ;;  %10350 = vmatprep.mubr.msk.bf16.mxu1 %vm484_vm1, %v6378_v62  ;;  %v4454_v50 = vsel %vm1982_vm2, %v4449_v27, %v4453_v33  ;;  %v4463_v51 = vshrl.u32 %v12163_v5, 16  ;;  %v4471_v58 = vshrl.u32 %v10637_v34, 16  ;;  %v10642_v33 = vld [vmem:[%s13809_s0 + $0x150] sm:$0xff]   ;;  %v12268_v14 = vld [vmem:[%s13809_s0 + $0x158] sm:$0xff]  }
 0x18e   :  { %10217 = vmatmul.mubr.msk.bf16.gmra.mrb[196].mxu0 %vm484_vm1, %v4422_v47  ;;  %3501 = vst.msk [vmem:[#allocation2 + $0x2b8] sm:$0xff] %vm1248_vm3, %v3369_v60  ;;  %v4467_v47 = vshll.u32 %v10637_v34, 16  ;;  %v4475_v59 = vshll.u32 %v12202_v39, 16  ;;  %v6384_v62 = vsel %vm6311_vm4, %v6381_v11, %v6383_v42  ;;  %v6386_v55 = vsel %vm6311_vm4, %v6383_v42, %v6385_v46 }
 0x18f   :  { %10220 = vmatprep.mubr.msk.bf16.mxu0 %vm484_vm1, %v4430_v52  ;;  %3499 = vst.msk [vmem:[#allocation2 + $0x2a8] sm:$0xff] %vm1248_vm3, %v3367_v1  ;;  %v10108_v13 = vpop.f32.mrb[88].mxu1 }
 0x190   :  { %v3107_v19 = vpop.f32.mrb[89].mxu1  ;;  %v4469_v3 = vrot.slane %v4467_v47, 1  ;;  %v4477_v8 = vrot.slane %v4475_v59, 1  ;;  %v6391_v47 = vrot.slane %v10642_v33, 1 }
 0x191   :  { %v9978_v2 = vpop.f32.mrb[92].mxu0  ;;  %v1471_v7 = vld [vmem:[#allocation2 + $0x2d0] sm:$0xff]  ;;  %v10109_v26 = vpop.f32.mrb[90].mxu1 }
 0x192   :  { %1343 = vst.msk [vmem:[#allocation2 + $0x2f0] sm:$0xff] %vm1248_vm3, %v9978_v2  ;;  %v1089_v9 = vpop.f32.mrb[93].mxu0  ;;  %v1469_v6 = vld [vmem:[#allocation2 + $0x2c0] sm:$0xff]  ;;  %v3372_v18 = vadd.f32 %v10108_v13, %v1471_v7  ;;  %v3110_v31 = vpop.f32.mrb[91].mxu1  ;;  %v4465_v2 = vor.u32 %v4463_v51, %v4461_v38  ;;  %v4473_v7 = vor.u32 %v4471_v58, %v4469_v3  ;;  %v10645_v38 = vld [vmem:[%s13809_s0 + $0x170] sm:$0xff]  }
 0x193   :  { %1341 = vst.msk [vmem:[#allocation2 + $0x2e0] sm:$0xff] %vm1248_vm3, %v1089_v9  ;;  %v9979_v10 = vpop.f32.mrb[94].mxu0  ;;  %v1472_v15 = vld [vmem:[#allocation2 + $0x2d8] sm:$0xff]  ;;  %v3370_v25 = vadd.f32 %v3107_v19, %v1469_v6  ;;  %v12241_v9 = vld [vmem:[%s13809_s0 + $0x168] sm:$0xff]  }
 0x194   :  { %1344 = vst.msk [vmem:[#allocation2 + $0x2f8] sm:$0xff] %vm1248_vm3, %v9979_v10  ;;  %v1092_v20 = vpop.f32.mrb[95].mxu0  ;;  %v1470_v21 = vld [vmem:[#allocation2 + $0x2c8] sm:$0xff]  ;;  %3504 = vst.msk [vmem:[#allocation2 + $0x2d0] sm:$0xff] %vm1248_vm3, %v3372_v18  ;;  %v3373_v30 = vadd.f32 %v10109_v26, %v1472_v15  ;;  %10351 = vmatmul.mubr.msk.bf16.gmra.mrb[196].mxu1 %vm484_vm1, %v6380_v28  ;;  %v6389_v15 = vrot.slane %v12229_v40, 1  ;;  %v4478_v26 = vsel %vm1982_vm2, %v4473_v7, %v4477_v8  ;;  %v4487_v28 = vshrl.u32 %v10641_v4, 16 }
 0x195   :  { %1342 = vst.msk [vmem:[#allocation2 + $0x2e8] sm:$0xff] %vm1248_vm3, %v1092_v20  ;;  %3502 = vst.msk [vmem:[#allocation2 + $0x2c0] sm:$0xff] %vm1248_vm3, %v3370_v25  ;;  %v3371_v35 = vadd.f32 %v3110_v31, %v1470_v21  ;;  %10354 = vmatprep.mubr.msk.bf16.mxu1 %vm484_vm1, %v6382_v32  ;;  %v4470_v20 = vsel %vm1982_vm2, %v4465_v2, %v4469_v3  ;;  %v4479_v21 = vshrl.u32 %v12202_v39, 16  ;;  %v4491_v29 = vshll.u32 %v12241_v9, 16  ;;  %v10646_v3 = vld [vmem:[%s13809_s0 + $0x160] sm:$0xff]   ;;  %v12307_v40 = vld [vmem:[%s13809_s0 + $0x168] sm:$0xff]  }
 0x196   :  { %10221 = vmatmul.mubr.msk.bf16.gmra.mrb[200].mxu0 %vm484_vm1, %v4438_v16  ;;  %3505 = vst.msk [vmem:[#allocation2 + $0x2d8] sm:$0xff] %vm1248_vm3, %v3373_v30  ;;  %v4483_v16 = vshll.u32 %v10641_v4, 16  ;;  %v6388_v32 = vsel %vm6311_vm4, %v6385_v46, %v6387_v12  ;;  %v6390_v27 = vsel %vm6311_vm4, %v6387_v12, %v6389_v15 }
 0x197   :  { %10224 = vmatprep.mubr.msk.bf16.mxu0 %vm484_vm1, %v4446_v22  ;;  %3503 = vst.msk [vmem:[#allocation2 + $0x2c8] sm:$0xff] %vm1248_vm3, %v3371_v35  ;;  %v10112_v44 = vpop.f32.mrb[92].mxu1  ;;  %v4493_v42 = vrot.slane %v4491_v29, 1 }
 0x198   :  { %v3123_v53 = vpop.f32.mrb[93].mxu1  ;;  %v4485_v37 = vrot.slane %v4483_v16, 1  ;;  %v6395_v16 = vrot.slane %v10646_v3, 1 }
 0x199   :  { %v9982_v36 = vpop.f32.mrb[96].mxu0  ;;  %v1475_v41 = vld [vmem:[#allocation2 + $0x2f0] sm:$0xff]  ;;  %v10113_v61 = vpop.f32.mrb[94].mxu1 }
 0x19a   :  { %1347 = vst.msk [vmem:[#allocation2 + $0x310] sm:$0xff] %vm1248_vm3, %v9982_v36  ;;  %v1105_v43 = vpop.f32.mrb[97].mxu0  ;;  %v1473_v45 = vld [vmem:[#allocation2 + $0x2e0] sm:$0xff]  ;;  %v3376_v52 = vadd.f32 %v10112_v44, %v1475_v41  ;;  %v3126_v1 = vpop.f32.mrb[95].mxu1  ;;  %v4481_v36 = vor.u32 %v4479_v21, %v4477_v8  ;;  %v4489_v41 = vor.u32 %v4487_v28, %v4485_v37 }
 0x19b   :  { %1345 = vst.msk [vmem:[#allocation2 + $0x300] sm:$0xff] %vm1248_vm3, %v1105_v43  ;;  %v9983_v48 = vpop.f32.mrb[98].mxu0  ;;  %v1476_v49 = vld [vmem:[#allocation2 + $0x2f8] sm:$0xff]  ;;  %v3374_v60 = vadd.f32 %v3123_v53, %v1473_v45  ;;  %v10649_v8 = vld [vmem:[%s13809_s0 + $0x180] sm:$0xff]  }
 0x19c   :  { %1348 = vst.msk [vmem:[#allocation2 + $0x318] sm:$0xff] %vm1248_vm3, %v9983_v48  ;;  %v1108_v54 = vpop.f32.mrb[99].mxu0  ;;  %v1474_v56 = vld [vmem:[#allocation2 + $0x2e8] sm:$0xff]  ;;  %3508 = vst.msk [vmem:[#allocation2 + $0x2f0] sm:$0xff] %vm1248_vm3, %v3376_v52  ;;  %v3377_v0 = vadd.f32 %v10113_v61, %v1476_v49  ;;  %10355 = vmatmul.mubr.msk.bf16.gmra.mrb[200].mxu1 %vm484_vm1, %v6384_v62  ;;  %v12280_v43 = vld [vmem:[%s13809_s0 + $0x178] sm:$0xff]   ;;  %v6393_v49 = vrot.slane %v12268_v14, 1  ;;  %v4494_v61 = vsel %vm1982_vm2, %v4489_v41, %v4493_v42 }
 0x19d   :  { %1346 = vst.msk [vmem:[#allocation2 + $0x308] sm:$0xff] %vm1248_vm3, %v1108_v54  ;;  %3506 = vst.msk [vmem:[#allocation2 + $0x2e0] sm:$0xff] %vm1248_vm3, %v3374_v60  ;;  %v3375_v5 = vadd.f32 %v3126_v1, %v1474_v56  ;;  %10358 = vmatprep.mubr.msk.bf16.mxu1 %vm484_vm1, %v6386_v55  ;;  %v4486_v54 = vsel %vm1982_vm2, %v4481_v36, %v4485_v37  ;;  %v4495_v56 = vshrl.u32 %v12241_v9, 16  ;;  %v4503_v62 = vshrl.u32 %v10645_v38, 16  ;;  %v10650_v37 = vld [vmem:[%s13809_s0 + $0x170] sm:$0xff]   ;;  %v12346_v14 = vld [vmem:[%s13809_s0 + $0x178] sm:$0xff]  }
 0x19e   :  { %10225 = vmatmul.mubr.msk.bf16.gmra.mrb[204].mxu0 %vm484_vm1, %v4454_v50  ;;  %3509 = vst.msk [vmem:[#allocation2 + $0x2f8] sm:$0xff] %vm1248_vm3, %v3377_v0  ;;  %v4499_v50 = vshll.u32 %v10645_v38, 16  ;;  %v4507_v63 = vshll.u32 %v12280_v43, 16  ;;  %v6392_v55 = vsel %vm6311_vm4, %v6389_v15, %v6391_v47  ;;  %v6394_v2 = vsel %vm6311_vm4, %v6391_v47, %v6393_v49 }
 0x19f   :  { %10228 = vmatprep.mubr.msk.bf16.mxu0 %vm484_vm1, %v4462_v57  ;;  %3507 = vst.msk [vmem:[#allocation2 + $0x2e8] sm:$0xff] %vm1248_vm3, %v3375_v5  ;;  %v10116_v17 = vpop.f32.mrb[96].mxu1 }
 0x1a0   :  { %v3139_v23 = vpop.f32.mrb[97].mxu1  ;;  %v4501_v7 = vrot.slane %v4499_v50, 1  ;;  %v4509_v12 = vrot.slane %v4507_v63, 1  ;;  %v6399_v50 = vrot.slane %v10650_v37, 1 }
 0x1a1   :  { %v9986_v6 = vpop.f32.mrb[100].mxu0  ;;  %v1479_v11 = vld [vmem:[#allocation2 + $0x310] sm:$0xff]  ;;  %v10117_v31 = vpop.f32.mrb[98].mxu1 }
 0x1a2   :  { %1351 = vst.msk [vmem:[#allocation2 + $0x330] sm:$0xff] %vm1248_vm3, %v9986_v6  ;;  %v1121_v13 = vpop.f32.mrb[101].mxu0  ;;  %v1477_v10 = vld [vmem:[#allocation2 + $0x300] sm:$0xff]  ;;  %v3380_v22 = vadd.f32 %v10116_v17, %v1479_v11  ;;  %v3142_v35 = vpop.f32.mrb[99].mxu1  ;;  %v4497_v6 = vor.u32 %v4495_v56, %v4493_v42  ;;  %v4505_v11 = vor.u32 %v4503_v62, %v4501_v7  ;;  %v10653_v42 = vld [vmem:[%s13809_s0 + $0x190] sm:$0xff]  }
 0x1a3   :  { %1349 = vst.msk [vmem:[#allocation2 + $0x320] sm:$0xff] %vm1248_vm3, %v1121_v13  ;;  %v9987_v18 = vpop.f32.mrb[102].mxu0  ;;  %v1480_v19 = vld [vmem:[#allocation2 + $0x318] sm:$0xff]  ;;  %v3378_v30 = vadd.f32 %v3139_v23, %v1477_v10  ;;  %v12319_v13 = vld [vmem:[%s13809_s0 + $0x188] sm:$0xff]  }
 0x1a4   :  { %1352 = vst.msk [vmem:[#allocation2 + $0x338] sm:$0xff] %vm1248_vm3, %v9987_v18  ;;  %v1124_v24 = vpop.f32.mrb[103].mxu0  ;;  %v1478_v25 = vld [vmem:[#allocation2 + $0x308] sm:$0xff]  ;;  %3512 = vst.msk [vmem:[#allocation2 + $0x310] sm:$0xff] %vm1248_vm3, %v3380_v22  ;;  %v3381_v34 = vadd.f32 %v10117_v31, %v1480_v19  ;;  %10359 = vmatmul.mubr.msk.bf16.gmra.mrb[204].mxu1 %vm484_vm1, %v6388_v32  ;;  %v6397_v19 = vrot.slane %v12307_v40, 1  ;;  %v4510_v31 = vsel %vm1982_vm2, %v4505_v11, %v4509_v12  ;;  %v4519_v32 = vshrl.u32 %v10649_v8, 16 }
 0x1a5   :  { %1350 = vst.msk [vmem:[#allocation2 + $0x328] sm:$0xff] %vm1248_vm3, %v1124_v24  ;;  %3510 = vst.msk [vmem:[#allocation2 + $0x300] sm:$0xff] %vm1248_vm3, %v3378_v30  ;;  %v3379_v39 = vadd.f32 %v3142_v35, %v1478_v25  ;;  %10362 = vmatprep.mubr.msk.bf16.mxu1 %vm484_vm1, %v6390_v27  ;;  %v4502_v24 = vsel %vm1982_vm2, %v4497_v6, %v4501_v7  ;;  %v4511_v25 = vshrl.u32 %v12280_v43, 16  ;;  %v4523_v33 = vshll.u32 %v12319_v13, 16  ;;  %v10654_v7 = vld [vmem:[%s13809_s0 + $0x180] sm:$0xff]   ;;  %v12385_v40 = vld [vmem:[%s13809_s0 + $0x188] sm:$0xff]  }
 0x1a6   :  { %10229 = vmatmul.mubr.msk.bf16.gmra.mrb[208].mxu0 %vm484_vm1, %v4470_v20  ;;  %3513 = vst.msk [vmem:[#allocation2 + $0x318] sm:$0xff] %vm1248_vm3, %v3381_v34  ;;  %v4515_v20 = vshll.u32 %v10649_v8, 16  ;;  %v6396_v27 = vsel %vm6311_vm4, %v6393_v49, %v6395_v16  ;;  %v6398_v36 = vsel %vm6311_vm4, %v6395_v16, %v6397_v19 }
 0x1a7   :  { %10232 = vmatprep.mubr.msk.bf16.mxu0 %vm484_vm1, %v4478_v26  ;;  %3511 = vst.msk [vmem:[#allocation2 + $0x308] sm:$0xff] %vm1248_vm3, %v3379_v39  ;;  %v10120_v51 = vpop.f32.mrb[100].mxu1  ;;  %v4525_v47 = vrot.slane %v4523_v33, 1 }
 0x1a8   :  { %v3155_v58 = vpop.f32.mrb[101].mxu1  ;;  %v4517_v41 = vrot.slane %v4515_v20, 1  ;;  %v6403_v20 = vrot.slane %v10654_v7, 1 }
 0x1a9   :  { %v9990_v45 = vpop.f32.mrb[104].mxu0  ;;  %v1483_v46 = vld [vmem:[#allocation2 + $0x330] sm:$0xff]  ;;  %v10121_v1 = vpop.f32.mrb[102].mxu1 }
 0x1aa   :  { %1355 = vst.msk [vmem:[#allocation2 + $0x350] sm:$0xff] %vm1248_vm3, %v9990_v45  ;;  %v1137_v44 = vpop.f32.mrb[105].mxu0  ;;  %v1481_v48 = vld [vmem:[#allocation2 + $0x320] sm:$0xff]  ;;  %v3384_v57 = vadd.f32 %v10120_v51, %v1483_v46  ;;  %v3158_v5 = vpop.f32.mrb[103].mxu1  ;;  %v4513_v45 = vor.u32 %v4511_v25, %v4509_v12  ;;  %v4521_v46 = vor.u32 %v4519_v32, %v4517_v41 }
 0x1ab   :  { %1353 = vst.msk [vmem:[#allocation2 + $0x340] sm:$0xff] %vm1248_vm3, %v1137_v44  ;;  %v9991_v52 = vpop.f32.mrb[106].mxu0  ;;  %v1484_v53 = vld [vmem:[#allocation2 + $0x338] sm:$0xff]  ;;  %v3382_v0 = vadd.f32 %v3155_v58, %v1481_v48  ;;  %v10657_v12 = vld [vmem:[%s13809_s0 + $0x1a0] sm:$0xff]  }
 0x1ac   :  { %1356 = vst.msk [vmem:[#allocation2 + $0x358] sm:$0xff] %vm1248_vm3, %v9991_v52  ;;  %v1140_v59 = vpop.f32.mrb[107].mxu0  ;;  %v1482_v60 = vld [vmem:[#allocation2 + $0x328] sm:$0xff]  ;;  %3516 = vst.msk [vmem:[#allocation2 + $0x330] sm:$0xff] %vm1248_vm3, %v3384_v57  ;;  %v3385_v4 = vadd.f32 %v10121_v1, %v1484_v53  ;;  %10363 = vmatmul.mubr.msk.bf16.gmra.mrb[208].mxu1 %vm484_vm1, %v6392_v55  ;;  %v12358_v44 = vld [vmem:[%s13809_s0 + $0x198] sm:$0xff]   ;;  %v6401_v53 = vrot.slane %v12346_v14, 1  ;;  %v4526_v1 = vsel %vm1982_vm2, %v4521_v46, %v4525_v47 }
 0x1ad   :  { %1354 = vst.msk [vmem:[#allocation2 + $0x348] sm:$0xff] %vm1248_vm3, %v1140_v59  ;;  %3514 = vst.msk [vmem:[#allocation2 + $0x320] sm:$0xff] %vm1248_vm3, %v3382_v0  ;;  %v3383_v9 = vadd.f32 %v3158_v5, %v1482_v60  ;;  %10366 = vmatprep.mubr.msk.bf16.mxu1 %vm484_vm1, %v6394_v2  ;;  %v4518_v59 = vsel %vm1982_vm2, %v4513_v45, %v4517_v41  ;;  %v4527_v60 = vshrl.u32 %v12319_v13, 16  ;;  %v4535_v55 = vshrl.u32 %v10653_v42, 16  ;;  %v10658_v41 = vld [vmem:[%s13809_s0 + $0x190] sm:$0xff]   ;;  %v12424_v14 = vld [vmem:[%s13809_s0 + $0x198] sm:$0xff]  }
 0x1ae   :  { %10233 = vmatmul.mubr.msk.bf16.gmra.mrb[212].mxu0 %vm484_vm1, %v4486_v54  ;;  %3517 = vst.msk [vmem:[#allocation2 + $0x338] sm:$0xff] %vm1248_vm3, %v3385_v4  ;;  %v4531_v54 = vshll.u32 %v10653_v42, 16  ;;  %v4539_v3 = vshll.u32 %v12358_v44, 16  ;;  %v6400_v2 = vsel %vm6311_vm4, %v6397_v19, %v6399_v50  ;;  %v6402_v6 = vsel %vm6311_vm4, %v6399_v50, %v6401_v53 }
 0x1af   :  { %10236 = vmatprep.mubr.msk.bf16.mxu0 %vm484_vm1, %v4494_v61  ;;  %3515 = vst.msk [vmem:[#allocation2 + $0x328] sm:$0xff] %vm1248_vm3, %v3383_v9  ;;  %v10124_v21 = vpop.f32.mrb[104].mxu1 }
 0x1b0   :  { %v3171_v28 = vpop.f32.mrb[105].mxu1  ;;  %v4533_v11 = vrot.slane %v4531_v54, 1  ;;  %v4541_v16 = vrot.slane %v4539_v3, 1  ;;  %v6407_v54 = vrot.slane %v10658_v41, 1 }
 0x1b1   :  { %v9994_v10 = vpop.f32.mrb[108].mxu0  ;;  %v1487_v15 = vld [vmem:[#allocation2 + $0x350] sm:$0xff]  ;;  %v10125_v35 = vpop.f32.mrb[106].mxu1 }
 0x1b2   :  { %1359 = vst.msk [vmem:[#allocation2 + $0x370] sm:$0xff] %vm1248_vm3, %v9994_v10  ;;  %v1153_v17 = vpop.f32.mrb[109].mxu0  ;;  %v1485_v18 = vld [vmem:[#allocation2 + $0x340] sm:$0xff]  ;;  %v3388_v26 = vadd.f32 %v10124_v21, %v1487_v15  ;;  %v3174_v39 = vpop.f32.mrb[107].mxu1  ;;  %v4529_v10 = vor.u32 %v4527_v60, %v4525_v47  ;;  %v4537_v15 = vor.u32 %v4535_v55, %v4533_v11  ;;  %v10661_v47 = vld [vmem:[%s13809_s0 + $0x1b0] sm:$0xff]  }
 0x1b3   :  { %1357 = vst.msk [vmem:[#allocation2 + $0x360] sm:$0xff] %vm1248_vm3, %v1153_v17  ;;  %v9995_v22 = vpop.f32.mrb[110].mxu0  ;;  %v1488_v23 = vld [vmem:[#allocation2 + $0x358] sm:$0xff]  ;;  %v3386_v34 = vadd.f32 %v3171_v28, %v1485_v18  ;;  %v12397_v17 = vld [vmem:[%s13809_s0 + $0x1a8] sm:$0xff]  }
 0x1b4   :  { %1360 = vst.msk [vmem:[#allocation2 + $0x378] sm:$0xff] %vm1248_vm3, %v9995_v22  ;;  %v1156_v29 = vpop.f32.mrb[111].mxu0  ;;  %v1486_v30 = vld [vmem:[#allocation2 + $0x348] sm:$0xff]  ;;  %3520 = vst.msk [vmem:[#allocation2 + $0x350] sm:$0xff] %vm1248_vm3, %v3388_v26  ;;  %v3389_v38 = vadd.f32 %v10125_v35, %v1488_v23  ;;  %10367 = vmatmul.mubr.msk.bf16.gmra.mrb[212].mxu1 %vm484_vm1, %v6396_v27  ;;  %v6405_v23 = vrot.slane %v12385_v40, 1  ;;  %v4542_v35 = vsel %vm1982_vm2, %v4537_v15, %v4541_v16  ;;  %v4551_v27 = vshrl.u32 %v10657_v12, 16 }
 0x1b5   :  { %1358 = vst.msk [vmem:[#allocation2 + $0x368] sm:$0xff] %vm1248_vm3, %v1156_v29  ;;  %3518 = vst.msk [vmem:[#allocation2 + $0x340] sm:$0xff] %vm1248_vm3, %v3386_v34  ;;  %v3387_v43 = vadd.f32 %v3174_v39, %v1486_v30  ;;  %10370 = vmatprep.mubr.msk.bf16.mxu1 %vm484_vm1, %v6398_v36  ;;  %v4534_v29 = vsel %vm1982_vm2, %v4529_v10, %v4533_v11  ;;  %v4543_v30 = vshrl.u32 %v12358_v44, 16  ;;  %v4555_v37 = vshll.u32 %v12397_v17, 16  ;;  %v10662_v11 = vld [vmem:[%s13809_s0 + $0x1a0] sm:$0xff]   ;;  %v12463_v40 = vld [vmem:[%s13809_s0 + $0x1a8] sm:$0xff]  }
 0x1b6   :  { %10237 = vmatmul.mubr.msk.bf16.gmra.mrb[216].mxu0 %vm484_vm1, %v4502_v24  ;;  %3521 = vst.msk [vmem:[#allocation2 + $0x358] sm:$0xff] %vm1248_vm3, %v3389_v38  ;;  %v4547_v24 = vshll.u32 %v10657_v12, 16  ;;  %v6404_v36 = vsel %vm6311_vm4, %v6401_v53, %v6403_v20  ;;  %v6406_v45 = vsel %vm6311_vm4, %v6403_v20, %v6405_v23 }
 0x1b7   :  { %10240 = vmatprep.mubr.msk.bf16.mxu0 %vm484_vm1, %v4510_v31  ;;  %3519 = vst.msk [vmem:[#allocation2 + $0x348] sm:$0xff] %vm1248_vm3, %v3387_v43  ;;  %v10128_v56 = vpop.f32.mrb[108].mxu1  ;;  %v4557_v50 = vrot.slane %v4555_v37, 1 }
 0x1b8   :  { %v3187_v62 = vpop.f32.mrb[109].mxu1  ;;  %v4549_v46 = vrot.slane %v4547_v24, 1  ;;  %v6411_v24 = vrot.slane %v10662_v11, 1 }
 0x1b9   :  { %v9998_v48 = vpop.f32.mrb[112].mxu0  ;;  %v1491_v49 = vld [vmem:[#allocation2 + $0x370] sm:$0xff]  ;;  %v10129_v5 = vpop.f32.mrb[110].mxu1 }
 0x1ba   :  { %1363 = vst.msk [vmem:[#allocation2 + $0x390] sm:$0xff] %vm1248_vm3, %v9998_v48  ;;  %v1169_v51 = vpop.f32.mrb[113].mxu0  ;;  %v1489_v52 = vld [vmem:[#allocation2 + $0x360] sm:$0xff]  ;;  %v3392_v61 = vadd.f32 %v10128_v56, %v1491_v49  ;;  %v3190_v9 = vpop.f32.mrb[111].mxu1  ;;  %v4545_v48 = vor.u32 %v4543_v30, %v4541_v16  ;;  %v4553_v49 = vor.u32 %v4551_v27, %v4549_v46 }
 0x1bb   :  { %1361 = vst.msk [vmem:[#allocation2 + $0x380] sm:$0xff] %vm1248_vm3, %v1169_v51  ;;  %v9999_v57 = vpop.f32.mrb[114].mxu0  ;;  %v1492_v58 = vld [vmem:[#allocation2 + $0x378] sm:$0xff]  ;;  %v3390_v4 = vadd.f32 %v3187_v62, %v1489_v52  ;;  %v10665_v16 = vld [vmem:[%s13809_s0 + $0x1c0] sm:$0xff]  }
 0x1bc   :  { %1364 = vst.msk [vmem:[#allocation2 + $0x398] sm:$0xff] %vm1248_vm3, %v9999_v57  ;;  %v1172_v63 = vpop.f32.mrb[115].mxu0  ;;  %v1490_v0 = vld [vmem:[#allocation2 + $0x368] sm:$0xff]  ;;  %3524 = vst.msk [vmem:[#allocation2 + $0x370] sm:$0xff] %vm1248_vm3, %v3392_v61  ;;  %v3393_v8 = vadd.f32 %v10129_v5, %v1492_v58  ;;  %10371 = vmatmul.mubr.msk.bf16.gmra.mrb[216].mxu1 %vm484_vm1, %v6400_v2  ;;  %v12436_v51 = vld [vmem:[%s13809_s0 + $0x1b8] sm:$0xff]   ;;  %v6409_v58 = vrot.slane %v12424_v14, 1  ;;  %v4558_v5 = vsel %vm1982_vm2, %v4553_v49, %v4557_v50 }
 0x1bd   :  { %1362 = vst.msk [vmem:[#allocation2 + $0x388] sm:$0xff] %vm1248_vm3, %v1172_v63  ;;  %3522 = vst.msk [vmem:[#allocation2 + $0x360] sm:$0xff] %vm1248_vm3, %v3390_v4  ;;  %v3391_v13 = vadd.f32 %v3190_v9, %v1490_v0  ;;  %10374 = vmatprep.mubr.msk.bf16.mxu1 %vm484_vm1, %v6402_v6  ;;  %v4550_v63 = vsel %vm1982_vm2, %v4545_v48, %v4549_v46  ;;  %v4559_v0 = vshrl.u32 %v12397_v17, 16  ;;  %v4567_v2 = vshrl.u32 %v10661_v47, 16  ;;  %v10666_v46 = vld [vmem:[%s13809_s0 + $0x1b0] sm:$0xff]  }
 0x1be   :  { %10241 = vmatmul.mubr.msk.bf16.gmra.mrb[220].mxu0 %vm484_vm1, %v4518_v59  ;;  %3525 = vst.msk [vmem:[#allocation2 + $0x378] sm:$0xff] %vm1248_vm3, %v3393_v8  ;;  %v4563_v59 = vshll.u32 %v10661_v47, 16  ;;  %v4571_v7 = vshll.u32 %v12436_v51, 16  ;;  %v6408_v6 = vsel %vm6311_vm4, %v6405_v23, %v6407_v54  ;;  %v6410_v10 = vsel %vm6311_vm4, %v6407_v54, %v6409_v58  ;;  %v10669_v47 = vld [vmem:[%s13809_s0 + $0x1d0] sm:$0xff]  }
 0x1bf   :  { %10244 = vmatprep.mubr.msk.bf16.mxu0 %vm484_vm1, %v4526_v1  ;;  %3523 = vst.msk [vmem:[#allocation2 + $0x368] sm:$0xff] %vm1248_vm3, %v3391_v13  ;;  %v10132_v25 = vpop.f32.mrb[112].mxu1 }
 0x1c0   :  { %v3203_v32 = vpop.f32.mrb[113].mxu1  ;;  %v4565_v15 = vrot.slane %v4563_v59, 1  ;;  %v4573_v20 = vrot.slane %v4571_v7, 1  ;;  %v6415_v59 = vrot.slane %v10666_v46, 1 }
 0x1c1   :  { %v10002_v18 = vpop.f32.mrb[116].mxu0  ;;  %v1495_v19 = vld [vmem:[#allocation2 + $0x390] sm:$0xff]  ;;  %v10133_v39 = vpop.f32.mrb[114].mxu1 }
 0x1c2   :  { %1367 = vst.msk [vmem:[#allocation2 + $0x3b0] sm:$0xff] %vm1248_vm3, %v10002_v18  ;;  %v1185_v21 = vpop.f32.mrb[117].mxu0  ;;  %v1493_v22 = vld [vmem:[#allocation2 + $0x380] sm:$0xff]  ;;  %v3396_v31 = vadd.f32 %v10132_v25, %v1495_v19  ;;  %v3206_v43 = vpop.f32.mrb[115].mxu1  ;;  %v4561_v18 = vor.u32 %v4559_v0, %v4557_v50  ;;  %v4569_v19 = vor.u32 %v4567_v2, %v4565_v15  ;;  %v12505_v50 = vld [vmem:[%s13809_s0 + $0x1b8] sm:$0xff]   ;;  %v4599_v2 = vshrl.u32 %v10669_v47, 16 }
 0x1c3   :  { %1365 = vst.msk [vmem:[#allocation2 + $0x3a0] sm:$0xff] %vm1248_vm3, %v1185_v21  ;;  %v10003_v26 = vpop.f32.mrb[118].mxu0  ;;  %v1496_v28 = vld [vmem:[#allocation2 + $0x398] sm:$0xff]  ;;  %v3394_v38 = vadd.f32 %v3203_v32, %v1493_v22  ;;  %v12475_v21 = vld [vmem:[%s13809_s0 + $0x1c8] sm:$0xff]   ;;  %v6417_v0 = vrot.slane %v12505_v50, 1 }
 0x1c4   :  { %1368 = vst.msk [vmem:[#allocation2 + $0x3b8] sm:$0xff] %vm1248_vm3, %v10003_v26  ;;  %v1188_v33 = vpop.f32.mrb[119].mxu0  ;;  %v1494_v34 = vld [vmem:[#allocation2 + $0x388] sm:$0xff]  ;;  %3528 = vst.msk [vmem:[#allocation2 + $0x390] sm:$0xff] %vm1248_vm3, %v3396_v31  ;;  %v3397_v42 = vadd.f32 %v10133_v39, %v1496_v28  ;;  %10375 = vmatmul.mubr.msk.bf16.gmra.mrb[220].mxu1 %vm484_vm1, %v6404_v36  ;;  %v6413_v28 = vrot.slane %v12463_v40, 1  ;;  %v4574_v39 = vsel %vm1982_vm2, %v4569_v19, %v4573_v20  ;;  %v4583_v36 = vshrl.u32 %v10665_v16, 16 }
 0x1c5   :  { %1366 = vst.msk [vmem:[#allocation2 + $0x3a8] sm:$0xff] %vm1248_vm3, %v1188_v33  ;;  %3526 = vst.msk [vmem:[#allocation2 + $0x380] sm:$0xff] %vm1248_vm3, %v3394_v38  ;;  %v3395_v44 = vadd.f32 %v3206_v43, %v1494_v34  ;;  %10378 = vmatprep.mubr.msk.bf16.mxu1 %vm484_vm1, %v6406_v45  ;;  %v4566_v33 = vsel %vm1982_vm2, %v4561_v18, %v4565_v15  ;;  %v4575_v34 = vshrl.u32 %v12436_v51, 16  ;;  %v4587_v41 = vshll.u32 %v12475_v21, 16 }
 0x1c6   :  { %10245 = vmatmul.mubr.msk.bf16.gmra.mrb[224].mxu0 %vm484_vm1, %v4534_v29  ;;  %3529 = vst.msk [vmem:[#allocation2 + $0x398] sm:$0xff] %vm1248_vm3, %v3397_v42  ;;  %v4579_v29 = vshll.u32 %v10665_v16, 16  ;;  %v6412_v45 = vsel %vm6311_vm4, %v6409_v58, %v6411_v24  ;;  %v6414_v14 = vsel %vm6311_vm4, %v6411_v24, %v6413_v28  ;;  %v12552_v24 = vld [vmem:[%s13809_s0 + $0x1c8] sm:$0xff]  }
 0x1c7   :  { %10248 = vmatprep.mubr.msk.bf16.mxu0 %vm484_vm1, %v4542_v35  ;;  %3527 = vst.msk [vmem:[#allocation2 + $0x388] sm:$0xff] %vm1248_vm3, %v3395_v44  ;;  %v10136_v60 = vpop.f32.mrb[116].mxu1 }
 0x1c8   :  { %v3219_v55 = vpop.f32.mrb[117].mxu1  ;;  %v4581_v49 = vrot.slane %v4579_v29, 1  ;;  %v12560_v29 = vld [vmem:[%s13809_s0 + $0x1d0] sm:$0xff]  }
 0x1c9   :  { %v10006_v52 = vpop.f32.mrb[120].mxu0  ;;  %v1499_v53 = vld [vmem:[#allocation2 + $0x3b0] sm:$0xff]  ;;  %v10137_v9 = vpop.f32.mrb[118].mxu1 }
 0x1ca   :  { %1371 = vst.msk [vmem:[#allocation2 + $0x3d0] sm:$0xff] %vm1248_vm3, %v10006_v52  ;;  %v1201_v56 = vpop.f32.mrb[121].mxu0  ;;  %v1497_v57 = vld [vmem:[#allocation2 + $0x3a0] sm:$0xff]  ;;  %v3400_v1 = vadd.f32 %v10136_v60, %v1499_v53  ;;  %v3222_v13 = vpop.f32.mrb[119].mxu1  ;;  %v4577_v52 = vor.u32 %v4575_v34, %v4573_v20  ;;  %v12512_v53 = vld [vmem:[%s13809_s0 + $0x1d8] sm:$0xff]   ;;  %v4585_v54 = vor.u32 %v4583_v36, %v4581_v49  ;;  %v4595_v60 = vshll.u32 %v10669_v47, 16 }
 0x1cb   :  { %1369 = vst.msk [vmem:[#allocation2 + $0x3c0] sm:$0xff] %vm1248_vm3, %v1201_v56  ;;  %v10007_v61 = vpop.f32.mrb[122].mxu0  ;;  %v1500_v62 = vld [vmem:[#allocation2 + $0x3b8] sm:$0xff]  ;;  %v3398_v8 = vadd.f32 %v3219_v55, %v1497_v57  ;;  %v4589_v56 = vrot.slane %v4587_v41, 1  ;;  %v4603_v7 = vshll.u32 %v12512_v53, 16 }
 0x1cc   :  { %1372 = vst.msk [vmem:[#allocation2 + $0x3d8] sm:$0xff] %vm1248_vm3, %v10007_v61  ;;  %v1204_v3 = vpop.f32.mrb[123].mxu0  ;;  %v1498_v4 = vld [vmem:[#allocation2 + $0x3a8] sm:$0xff]  ;;  %3532 = vst.msk [vmem:[#allocation2 + $0x3b0] sm:$0xff] %vm1248_vm3, %v3400_v1  ;;  %v3401_v12 = vadd.f32 %v10137_v9, %v1500_v62  ;;  %10379 = vmatmul.mubr.msk.bf16.gmra.mrb[224].mxu1 %vm484_vm1, %v6408_v6  ;;  %v12521_v61 = vld [vmem:[%s13809_s0 + $0x1c0] sm:$0xff]   ;;  %v4591_v1 = vshrl.u32 %v12475_v21, 16 }
 0x1cd   :  { %1370 = vst.msk [vmem:[#allocation2 + $0x3c8] sm:$0xff] %vm1248_vm3, %v1204_v3  ;;  %3530 = vst.msk [vmem:[#allocation2 + $0x3a0] sm:$0xff] %vm1248_vm3, %v3398_v8  ;;  %v3399_v17 = vadd.f32 %v3222_v13, %v1498_v4  ;;  %10382 = vmatprep.mubr.msk.bf16.mxu1 %vm484_vm1, %v6410_v10  ;;  %v12534_v13 = vld [vmem:[%s13809_s0 + $0x1e0] sm:$0xff]   ;;  %v12539_v10 = vld [vmem:[%s13809_s0 + $0x1e8] sm:$0xff]   ;;  %v4597_v18 = vrot.slane %v4595_v60, 1  ;;  %v6419_v19 = vrot.slane %v12521_v61, 1 }
 0x1ce   :  { %10249 = vmatmul.mubr.msk.bf16.gmra.mrb[228].mxu0 %vm484_vm1, %v4550_v63  ;;  %3533 = vst.msk [vmem:[#allocation2 + $0x3b8] sm:$0xff] %vm1248_vm3, %v3401_v12  ;;  %v4590_v12 = vsel %vm1982_vm2, %v4585_v54, %v4589_v56  ;;  %v12624_v61 = vld [vmem:[%s13809_s0 + $0x1e8] sm:$0xff]  }
 0x1cf   :  { %10252 = vmatprep.mubr.msk.bf16.mxu0 %vm484_vm1, %v4558_v5  ;;  %3531 = vst.msk [vmem:[#allocation2 + $0x3a8] sm:$0xff] %vm1248_vm3, %v3399_v17  ;;  %v10140_v30 = vpop.f32.mrb[120].mxu1  ;;  %v4582_v5 = vsel %vm1982_vm2, %v4577_v52, %v4581_v49  ;;  %v6416_v17 = vsel %vm6311_vm4, %v6413_v28, %v6415_v59  ;;  %v4607_v28 = vshrl.u32 %v12512_v53, 16  ;;  %v12589_v52 = vld [vmem:[%s13809_s0 + $0x1f8] sm:$0xff]  }
 0x1d0   :  { %v3235_v27 = vpop.f32.mrb[121].mxu1 }
 0x1d1   :  { %v10010_v22 = vpop.f32.mrb[124].mxu0  ;;  %v1503_v23 = vld [vmem:[#allocation2 + $0x3d0] sm:$0xff]  ;;  %v10141_v43 = vpop.f32.mrb[122].mxu1 }
 0x1d2   :  { %1375 = vst.msk [vmem:[#allocation2 + $0x3f0] sm:$0xff] %vm1248_vm3, %v10010_v22  ;;  %v1217_v25 = vpop.f32.mrb[125].mxu0  ;;  %v1501_v26 = vld [vmem:[#allocation2 + $0x3c0] sm:$0xff]  ;;  %v3404_v35 = vadd.f32 %v10140_v30, %v1503_v23  ;;  %v3238_v48 = vpop.f32.mrb[123].mxu1  ;;  %v6418_v22 = vsel %vm6311_vm4, %v6415_v59, %v6417_v0  ;;  %v4593_v23 = vor.u32 %v4591_v1, %v4589_v56  ;;  %v4611_v30 = vshll.u32 %v12534_v13, 16 }
 0x1d3   :  { %1373 = vst.msk [vmem:[#allocation2 + $0x3e0] sm:$0xff] %vm1248_vm3, %v1217_v25  ;;  %v10011_v31 = vpop.f32.mrb[126].mxu0  ;;  %v1504_v32 = vld [vmem:[#allocation2 + $0x3d8] sm:$0xff]  ;;  %v3402_v42 = vadd.f32 %v3235_v27, %v1501_v26  ;;  %v4601_v25 = vor.u32 %v4599_v2, %v4597_v18  ;;  %v4605_v26 = vrot.slane %v4603_v7, 1 }
 0x1d4   :  { %1376 = vst.msk [vmem:[#allocation2 + $0x3f8] sm:$0xff] %vm1248_vm3, %v10011_v31  ;;  %v1220_v37 = vpop.f32.mrb[127].mxu0  ;;  %v1502_v38 = vld [vmem:[#allocation2 + $0x3c8] sm:$0xff]  ;;  %3536 = vst.msk [vmem:[#allocation2 + $0x3d0] sm:$0xff] %vm1248_vm3, %v3404_v35  ;;  %v3405_v44 = vadd.f32 %v10141_v43, %v1504_v32  ;;  %10383 = vmatmul.mubr.msk.bf16.gmra.mrb[228].mxu1 %vm484_vm1, %v6412_v45  ;;  %v4619_v31 = vshll.u32 %v12539_v10, 16  ;;  %v6420_v35 = vsel %vm6311_vm4, %v6417_v0, %v6419_v19  ;;  %v12574_v27 = vld [vmem:[%s13809_s0 + $0x1d8] sm:$0xff]  }
 0x1d5   :  { %1374 = vst.msk [vmem:[#allocation2 + $0x3e8] sm:$0xff] %vm1248_vm3, %v1220_v37  ;;  %3534 = vst.msk [vmem:[#allocation2 + $0x3c0] sm:$0xff] %vm1248_vm3, %v3402_v42  ;;  %v3403_v51 = vadd.f32 %v3238_v48, %v1502_v38  ;;  %10386 = vmatprep.mubr.msk.bf16.mxu1 %vm484_vm1, %v6414_v14  ;;  %v4598_v41 = vsel %vm1982_vm2, %v4593_v23, %v4597_v18  ;;  %v6421_v42 = vrot.slane %v12552_v24, 1  ;;  %v4615_v43 = vshrl.u32 %v12534_v13, 16  ;;  %v12582_v45 = vld [vmem:[%s13809_s0 + $0x1f0] sm:$0xff]   ;;  %v3549_v48 = vld [vmem:[#allocation2 + $0x18] sm:$0xff] }
 0x1d6   :  { %10253 = vmatmul.mubr.msk.bf16.gmra.mrb[232].mxu0 %vm484_vm1, %v4566_v33  ;;  %3537 = vst.msk [vmem:[#allocation2 + $0x3d8] sm:$0xff] %vm1248_vm3, %v3405_v44  ;;  %v3548_v33 = vld [vmem:[#allocation2 + $0x10] sm:$0xff]  ;;  %v4606_v49 = vsel %vm1982_vm2, %v4601_v25, %v4605_v26  ;;  %v4609_v50 = vor.u32 %v4607_v28, %v4605_v26  ;;  %v4613_v60 = vrot.slane %v4611_v30, 1  ;;  %v4635_v13 = vshll.u32 %v12589_v52, 16  ;;  %v3553_v26 = vld [vmem:[#allocation2 + $0x38] sm:$0xff] }
 0x1d7   :  { %10256 = vmatprep.mubr.msk.bf16.mxu0 %vm484_vm1, %v4574_v39  ;;  %3535 = vst.msk [vmem:[#allocation2 + $0x3c8] sm:$0xff] %vm1248_vm3, %v3403_v51  ;;  %v10144_v55 = vpop.f32.mrb[124].mxu1  ;;  %v3546_v39 = vld [vmem:[#allocation2] sm:$0xff]  ;;  %v6423_v51 = vrot.slane %v12560_v29, 1  ;;  %v12643_v23 = vld [vmem:[%s13809_s0 + $0x1f0] sm:$0xff]  }
 0x1d8   :  { %v3251_v9 = vpop.f32.mrb[125].mxu1  ;;  %v12649_v30 = vld [vmem:[%s13809_s0 + $0x210] sm:$0xff]  }
 0x1d9   :  { %v10014_v57 = vpop.f32.mrb[128].mxu0  ;;  %v1507_v58 = vld [vmem:[#allocation2 + $0x3f0] sm:$0xff]  ;;  %v10145_v16 = vpop.f32.mrb[126].mxu1 }
 0x1da   :  { %1379 = vst.msk [vmem:[#allocation2 + $0x410] sm:$0xff] %vm1248_vm3, %v10014_v57  ;;  %v1233_v62 = vpop.f32.mrb[129].mxu0  ;;  %v1505_v63 = vld [vmem:[#allocation2 + $0x3e0] sm:$0xff]  ;;  %v3408_v8 = vadd.f32 %v10144_v55, %v1507_v58  ;;  %v3254_v21 = vpop.f32.mrb[127].mxu1  ;;  %v3547_v58 = vld [vmem:[#allocation2 + $0x8] sm:$0xff]  ;;  %v6425_v55 = vrot.slane %v12574_v27, 1 }
 0x1db   :  { %1377 = vst.msk [vmem:[#allocation2 + $0x400] sm:$0xff] %vm1248_vm3, %v1233_v62  ;;  %v10015_v3 = vpop.f32.mrb[130].mxu0  ;;  %v1508_v4 = vld [vmem:[#allocation2 + $0x3f8] sm:$0xff]  ;;  %v3406_v15 = vadd.f32 %v3251_v9, %v1505_v63  ;;  %v4621_v62 = vrot.slane %v4619_v31, 1  ;;  %v4617_v9 = vor.u32 %v4615_v43, %v4613_v60 }
 0x1dc   :  { %1380 = vst.msk [vmem:[#allocation2 + $0x418] sm:$0xff] %vm1248_vm3, %v10015_v3  ;;  %v1236_v6 = vpop.f32.mrb[131].mxu0  ;;  %v1506_v11 = vld [vmem:[#allocation2 + $0x3e8] sm:$0xff]  ;;  %3540 = vst.msk [vmem:[#allocation2 + $0x3f0] sm:$0xff] %vm1248_vm3, %v3408_v8  ;;  %v3409_v20 = vadd.f32 %v10145_v16, %v1508_v4  ;;  %10387 = vmatmul.mubr.msk.bf16.gmra.mrb[232].mxu1 %vm484_vm1, %v6416_v17  ;;  %v4623_v3 = vshrl.u32 %v12539_v10, 16  ;;  %v12598_v4 = vld [vmem:[%s13809_s0 + $0x1e0] sm:$0xff]   ;;  %v6422_v8 = vsel %vm6311_vm4, %v6419_v19, %v6421_v42 }
 0x1dd   :  { %1378 = vst.msk [vmem:[#allocation2 + $0x408] sm:$0xff] %vm1248_vm3, %v1236_v6  ;;  %3538 = vst.msk [vmem:[#allocation2 + $0x3e0] sm:$0xff] %vm1248_vm3, %v3406_v15  ;;  %v3407_v40 = vadd.f32 %v3254_v21, %v1506_v11  ;;  %10390 = vmatprep.mubr.msk.bf16.mxu1 %vm484_vm1, %v6418_v22  ;;  %v4627_v6 = vshll.u32 %v12582_v45, 16  ;;  %v12615_v11 = vld [vmem:[%s13809_s0 + $0x208] sm:$0xff]   ;;  %v4614_v10 = vsel %vm1982_vm2, %v4609_v50, %v4613_v60  ;;  %v4631_v16 = vshrl.u32 %v12582_v45, 16  ;;  %v3552_v17 = vld [vmem:[#allocation2 + $0x30] sm:$0xff] }
 0x1de   :  { %10257 = vmatmul.mubr.msk.bf16.gmra.mrb[236].mxu0 %vm484_vm1, %v4582_v5  ;;  %3541 = vst.msk [vmem:[#allocation2 + $0x3f8] sm:$0xff] %vm1248_vm3, %v3409_v20  ;;  %v12603_v5 = vld [vmem:[%s13809_s0 + $0x200] sm:$0xff]   ;;  %v6424_v15 = vsel %vm6311_vm4, %v6421_v42, %v6423_v51  ;;  %v6426_v19 = vsel %vm6311_vm4, %v6423_v51, %v6425_v55  ;;  %v12636_v20 = vor.u32 %v4623_v3, %v4621_v62  ;;  %v6427_v21 = vrot.slane %v12598_v4, 1  ;;  %v3551_v45 = vld [vmem:[#allocation2 + $0x28] sm:$0xff] }
 0x1df   :  { %10260 = vmatprep.mubr.msk.bf16.mxu0 %vm484_vm1, %v4590_v12  ;;  %3539 = vst.msk [vmem:[#allocation2 + $0x3e8] sm:$0xff] %vm1248_vm3, %v3407_v40  ;;  %v10148_v46 = vpop.f32.mrb[128].mxu1  ;;  %v4643_v22 = vshll.u32 %v12603_v5, 16  ;;  %v3550_v40 = vld [vmem:[#allocation2 + $0x20] sm:$0xff]  ;;  %v4622_v28 = vsel %vm1982_vm2, %v4617_v9, %v4621_v62  ;;  %v4629_v29 = vrot.slane %v4627_v6, 1  ;;  %v4651_v31 = vshll.u32 %v12615_v11, 16 }
 0x1e0   :  { %v3267_v54 = vpop.f32.mrb[129].mxu1  ;;  %v4655_v60 = vshrl.u32 %v12615_v11, 16  ;;  %v4659_v62 = vshll.u32 %v12649_v30, 16  ;;  %v12688_v3 = vsel %vm6311_vm4, %v6425_v55, %v6427_v21  ;;  %v12705_v11 = vld [vmem:[%s13809_s0 + $0x220] ss:$0 sps:$4 sm:$0x11]  }
 0x1e1   :  { %v1511_v32 = vld [vmem:[#allocation2 + $0x410] sm:$0xff]  ;;  %v10154_v34 = vpop.f32.mrb[132].mxu0  ;;  %v10149_v0 = vpop.f32.mrb[130].mxu1  ;;  %v4630_v9 = vsel %vm1982_vm2, %v12636_v20, %v4629_v29  ;;  %v3557_v20 = vld [vmem:[#allocation2 + $0x58] sm:$0xff] }
 0x1e2   :  { %v5448_v37 = vadd.f32 %v10154_v34, %v3548_v33  ;;  %v1509_v38 = vld [vmem:[#allocation2 + $0x400] sm:$0xff]  ;;  %v4919_v36 = vpop.f32.mrb[133].mxu0  ;;  %v3412_v53 = vadd.f32 %v10148_v46, %v1511_v32  ;;  %v3270_v7 = vpop.f32.mrb[131].mxu1 }
 0x1e3   :  { %v5446_v47 = vadd.f32 %v4919_v36, %v3546_v39  ;;  %v1512_v44 = vld [vmem:[#allocation2 + $0x418] sm:$0xff]  ;;  %v10155_v14 = vpop.f32.mrb[134].mxu0  ;;  %v3410_v63 = vadd.f32 %v3267_v54, %v1509_v38  ;;  %v6429_v38 = vrot.slane %v12624_v61, 1  ;;  %v4639_v39 = vshrl.u32 %v12589_v52, 16  ;;  %v12666_v54 = vld [vmem:[%s13809_s0 + $0x200] sm:$0xff]  }
 0x1e4   :  { %5580 = vst.msk [vmem:[#allocation2 + $0x10] sm:$0xff] %vm1248_vm3, %v5448_v37  ;;  %v5449_v56 = vadd.f32 %v10155_v14, %v3549_v48  ;;  %v1510_v57 = vld [vmem:[#allocation2 + $0x408] sm:$0xff]  ;;  %v4922_v59 = vpop.f32.mrb[135].mxu0  ;;  %3544 = vst.msk [vmem:[#allocation2 + $0x410] sm:$0xff] %vm1248_vm3, %v3412_v53  ;;  %v3413_v2 = vadd.f32 %v10149_v0, %v1512_v44  ;;  %10391 = vmatmul.mubr.msk.bf16.gmra.mrb[236].mxu1 %vm484_vm1, %v6420_v35  ;;  %v4637_v37 = vrot.slane %v4635_v13, 1  ;;  %v4647_v44 = vshrl.u32 %v12603_v5, 16 }
 0x1e5   :  { %5578 = vst.msk [vmem:[#allocation2] sm:$0xff] %vm1248_vm3, %v5446_v47  ;;  %v5447_v1 = vadd.f32 %v4922_v59, %v3547_v58  ;;  %3542 = vst.msk [vmem:[#allocation2 + $0x400] sm:$0xff] %vm1248_vm3, %v3410_v63  ;;  %v3411_v12 = vadd.f32 %v3270_v7, %v1510_v57  ;;  %10394 = vmatprep.mubr.msk.bf16.mxu1 %vm484_vm1, %v6422_v8  ;;  %v4633_v47 = vor.u32 %v4631_v16, %v4629_v29  ;;  %v12659_v48 = vld [vmem:[%s13809_s0 + $0x1f8] sm:$0xff]   ;;  %v3556_v7 = vld [vmem:[#allocation2 + $0x50] sm:$0xff] }
 0x1e6   :  { %5581 = vst.msk [vmem:[#allocation2 + $0x18] sm:$0xff] %vm1248_vm3, %v5449_v56  ;;  %10261 = vmatmul.mubr.msk.bf16.gmra.mrb[240].mxu0 %vm484_vm1, %v4598_v41  ;;  %3545 = vst.msk [vmem:[#allocation2 + $0x418] sm:$0xff] %vm1248_vm3, %v3413_v2  ;;  %v4645_v52 = vrot.slane %v4643_v22, 1  ;;  %v6431_v53 = vrot.slane %v12643_v23, 1  ;;  %v4653_v59 = vrot.slane %v4651_v31, 1  ;;  %v4641_v0 = vor.u32 %v4639_v39, %v4637_v37  ;;  %v3554_v61 = vld [vmem:[#allocation2 + $0x40] sm:$0xff] }
 0x1e7   :  { %5579 = vst.msk [vmem:[#allocation2 + $0x8] sm:$0xff] %vm1248_vm3, %v5447_v1  ;;  %10264 = vmatprep.mubr.msk.bf16.mxu0 %vm484_vm1, %v4606_v49  ;;  %3543 = vst.msk [vmem:[#allocation2 + $0x408] sm:$0xff] %vm1248_vm3, %v3411_v12  ;;  %v10288_v33 = vpop.f32.mrb[132].mxu1  ;;  %v12679_v1 = vld [vmem:[%s13809_s0 + $0x218] sm:$0xff]   ;;  %v6433_v2 = vrot.slane %v12659_v48, 1  ;;  %v4638_v6 = vsel %vm1982_vm2, %v4633_v47, %v4637_v37  ;;  %v12699_v27 = vsel %vm6311_vm4, %v6427_v21, %v6429_v38  ;;  %v6435_v55 = vrot.slane %v12666_v54, 1 }
 0x1e8   :  { %v6685_v42 = vpop.f32.mrb[133].mxu1  ;;  %v4649_v5 = vor.u32 %v4647_v44, %v4645_v52  ;;  %v12710_v12 = vld [vmem:[%s13810_s2] ss:$0 sm:$0xff]  ;;  %v12713_v4 = vsel %vm6311_vm4, %v6429_v38, %v6431_v53  ;;  %v4661_v16 = vrot.slane %v4659_v62, 1  ;;  %v12716_v22 = vsel %vm1982_vm2, %v4641_v0, %v4645_v52  ;;  %v3555_v29 = vld [vmem:[#allocation2 + $0x48] sm:$0xff]  ;;  %v3560_v62 = vld [vmem:[#allocation2 + $0x70] sm:$0xff] }
 0x1e9   :  { %v10158_v18 = vpop.f32.mrb[136].mxu0  ;;  %v10289_v50 = vpop.f32.mrb[134].mxu1  ;;  %v4663_v23 = vshrl.u32 %v12649_v30, 16  ;;  %v12730_v30 = vld [vmem:[%s13809_s0 + $0x208] sm:$0xff]   ;;  %v4671_v48 = vshrl.u32 %v12679_v1, 16 }
 0x1ea   :  { %v5452_v24 = vadd.f32 %v10158_v18, %v3552_v17  ;;  %v4935_v25 = vpop.f32.mrb[137].mxu0  ;;  %v6688_v58 = vpop.f32.mrb[135].mxu1 }
 0x1eb   :  { %v5712_v32 = vld [vmem:[#allocation2 + $0x10] sm:$0xff]  ;;  %v5450_v34 = vadd.f32 %v4935_v25, %v3550_v40  ;;  %v10159_v35 = vpop.f32.mrb[138].mxu0 }
 0x1ec   :  { %5584 = vst.msk [vmem:[#allocation2 + $0x30] sm:$0xff] %vm1248_vm3, %v5452_v24  ;;  %v7214_v36 = vadd.f32 %v10288_v33, %v5712_v32  ;;  %v5710_v41 = vld [vmem:[#allocation2] sm:$0xff]  ;;  %v5453_v43 = vadd.f32 %v10159_v35, %v3553_v26  ;;  %v4938_v46 = vpop.f32.mrb[139].mxu0  ;;  %10395 = vmatmul.mubr.msk.bf16.gmra.mrb[240].mxu1 %vm484_vm1, %v6424_v15  ;;  %v4657_v15 = vor.u32 %v4655_v60, %v4653_v59  ;;  %v4667_v24 = vshll.u32 %v12679_v1, 16 }
 0x1ed   :  { %5582 = vst.msk [vmem:[#allocation2 + $0x20] sm:$0xff] %vm1248_vm3, %v5450_v34  ;;  %v7212_v14 = vadd.f32 %v6685_v42, %v5710_v41  ;;  %v5713_v49 = vld [vmem:[#allocation2 + $0x18] sm:$0xff]  ;;  %v5451_v51 = vadd.f32 %v4938_v46, %v3551_v45  ;;  %10398 = vmatprep.mubr.msk.bf16.mxu1 %vm484_vm1, %v6426_v19  ;;  %v12722_v32 = vsel %vm1982_vm2, %v4649_v5, %v4653_v59  ;;  %v4675_v41 = vshll.u32 %v12705_v11, 16 }
 0x1ee   :  { %7346 = vst.msk [vmem:[#allocation2 + $0x10] sm:$0xff] %vm1248_vm3, %v7214_v36  ;;  %5585 = vst.msk [vmem:[#allocation2 + $0x38] sm:$0xff] %vm1248_vm3, %v5453_v43  ;;  %v7215_v56 = vadd.f32 %v10289_v50, %v5713_v49  ;;  %v5711_v57 = vld [vmem:[#allocation2 + $0x8] sm:$0xff]  ;;  %10265 = vmatmul.mubr.msk.bf16.gmra.mrb[244].mxu0 %vm484_vm1, %v4614_v10  ;;  %v12725_v33 = vsel %vm6311_vm4, %v6431_v53, %v6433_v2  ;;  %v12736_v36 = vsel %vm6311_vm4, %v6433_v2, %v6435_v55 }
 0x1ef   :  { %7344 = vst.msk [vmem:[#allocation2] sm:$0xff] %vm1248_vm3, %v7212_v14  ;;  %5583 = vst.msk [vmem:[#allocation2 + $0x28] sm:$0xff] %vm1248_vm3, %v5451_v51  ;;  %v7213_v63 = vadd.f32 %v6688_v58, %v5711_v57  ;;  %10268 = vmatprep.mubr.msk.bf16.mxu0 %vm484_vm1, %v4622_v28  ;;  %v10292_v18 = vpop.f32.mrb[136].mxu1  ;;  %v12744_v44 = vsel %vm1982_vm2, %v4657_v15, %v4661_v16  ;;  %v12751_v51 = vor.u32 %v4663_v23, %v4661_v16 }
 0x1f0   :  { %7347 = vst.msk [vmem:[#allocation2 + $0x18] sm:$0xff] %vm1248_vm3, %v7215_v56  ;;  %v6701_v26 = vpop.f32.mrb[137].mxu1  ;;  %v12753_v52 = vrot.slane %v4667_v24, 1  ;;  %v6437_v58 = vrot.slane %v12730_v30, 1  ;;  %v12764_v0 = vrot.slane %v4675_v41, 1 }
 0x1f1   :  { %7345 = vst.msk [vmem:[#allocation2 + $0x8] sm:$0xff] %vm1248_vm3, %v7213_v63  ;;  %v10162_v8 = vpop.f32.mrb[140].mxu0  ;;  %v10293_v38 = vpop.f32.mrb[138].mxu1 }
 0x1f2   :  { %v5456_v13 = vadd.f32 %v10162_v8, %v3556_v7  ;;  %v4951_v10 = vpop.f32.mrb[141].mxu0  ;;  %v6704_v47 = vpop.f32.mrb[139].mxu1  ;;  %v3558_v7 = vld [vmem:[#allocation2 + $0x60] sm:$0xff] }
 0x1f3   :  { %v5716_v17 = vld [vmem:[#allocation2 + $0x30] sm:$0xff]  ;;  %v5454_v19 = vadd.f32 %v4951_v10, %v3554_v61  ;;  %v10163_v21 = vpop.f32.mrb[142].mxu0 }
 0x1f4   :  { %5588 = vst.msk [vmem:[#allocation2 + $0x50] sm:$0xff] %vm1248_vm3, %v5456_v13  ;;  %v7218_v40 = vadd.f32 %v10292_v18, %v5716_v17  ;;  %v5714_v25 = vld [vmem:[#allocation2 + $0x20] sm:$0xff]  ;;  %v5457_v28 = vadd.f32 %v10163_v21, %v3557_v20  ;;  %v4954_v31 = vpop.f32.mrb[143].mxu0  ;;  %10399 = vmatmul.mubr.msk.bf16.gmra.mrb[244].mxu1 %vm484_vm1, %v12688_v3  ;;  %v3561_v21 = vld [vmem:[#allocation2 + $0x78] sm:$0xff] }
 0x1f5   :  { %v7478_v34 = vld [vmem:[#allocation2 + $0x10] sm:$0xff]  ;;  %5586 = vst.msk [vmem:[#allocation2 + $0x40] sm:$0xff] %vm1248_vm3, %v5454_v19  ;;  %v7216_v35 = vadd.f32 %v6701_v26, %v5714_v25  ;;  %v5717_v37 = vld [vmem:[#allocation2 + $0x38] sm:$0xff]  ;;  %v5455_v39 = vadd.f32 %v4954_v31, %v3555_v29  ;;  %10402 = vmatprep.mubr.msk.bf16.mxu1 %vm484_vm1, %v12699_v27 }
 0x1f6   :  { %v7617_v42 = vadd.f32 %v12710_v12, %v7478_v34  ;;  %v7476_v43 = vld [vmem:[#allocation2] sm:$0xff]  ;;  %7350 = vst.msk [vmem:[#allocation2 + $0x30] sm:$0xff] %vm1248_vm3, %v7218_v40  ;;  %5589 = vst.msk [vmem:[#allocation2 + $0x58] sm:$0xff] %vm1248_vm3, %v5457_v28  ;;  %v7219_v45 = vadd.f32 %v10293_v38, %v5717_v37  ;;  %v5715_v46 = vld [vmem:[#allocation2 + $0x28] sm:$0xff]  ;;  %10269 = vmatmul.mubr.msk.bf16.gmra.mrb[248].mxu0 %vm484_vm1, %v4630_v9 }
 0x1f7   :  { %v7615_v14 = vadd.f32 %v12710_v12, %v7476_v43  ;;  %v7479_v49 = vld [vmem:[#allocation2 + $0x18] sm:$0xff]  ;;  %7348 = vst.msk [vmem:[#allocation2 + $0x20] sm:$0xff] %vm1248_vm3, %v7216_v35  ;;  %5587 = vst.msk [vmem:[#allocation2 + $0x48] sm:$0xff] %vm1248_vm3, %v5455_v39  ;;  %v7217_v50 = vadd.f32 %v6704_v47, %v5715_v46  ;;  %10272 = vmatprep.mubr.msk.bf16.mxu0 %vm484_vm1, %v4638_v6  ;;  %v12770_v9 = vld [vmem:[%s13809_s0 + $0x210] sm:$0xff]   ;;  %v10296_v61 = vpop.f32.mrb[140].mxu1 }
 0x1f8   :  { %vm7749_vm6 = vcmp.ge.f32.partialorder %v7617_v42, 0.0  ;;  %v7881_v53 = vmul.f32 0.1, %v7617_v42  ;;  %v7618_v56 = vadd.f32 %v12710_v12, %v7479_v49  ;;  %v7477_v57 = vld [vmem:[#allocation2 + $0x8] sm:$0xff]  ;;  %7351 = vst.msk [vmem:[#allocation2 + $0x38] sm:$0xff] %vm1248_vm3, %v7219_v45  ;;  %v6717_v20 = vpop.f32.mrb[141].mxu1 }
 0x1f9   :  { %vm7747_vm7 = vcmp.ge.f32.partialorder %v7615_v14, 0.0  ;;  %v7879_v59 = vmul.f32 0.1, %v7615_v14  ;;  %v7616_v60 = vadd.f32 %v12710_v12, %v7477_v57  ;;  %7349 = vst.msk [vmem:[#allocation2 + $0x28] sm:$0xff] %vm1248_vm3, %v7217_v50  ;;  %v10166_v63 = vpop.f32.mrb[144].mxu0  ;;  %v10297_v31 = vpop.f32.mrb[142].mxu1 }
 0x1fa   :  { %v8013_v5 = vsel %vm7749_vm6, %v7617_v42, %v7881_v53  ;;  %vm7750_vm8 = vcmp.ge.f32.partialorder %v7618_v56, 0.0  ;;  %v7882_v2 = vmul.f32 0.1, %v7618_v56  ;;  %v5460_v3 = vadd.f32 %v10166_v63, %v3560_v62  ;;  %v4967_v8 = vpop.f32.mrb[145].mxu0  ;;  %v3559_v34 = vld [vmem:[#allocation2 + $0x68] sm:$0xff]  ;;  %v6720_v43 = vpop.f32.mrb[143].mxu1 }
 0x1fb   :  { %v9484_v6 = vpack.c.bf16 %v8013_v5, %v8013_v5  ;;  %v8011_v11 = vsel %vm7747_vm7, %v7615_v14, %v7879_v59  ;;  %vm7748_vm9 = vcmp.ge.f32.partialorder %v7616_v60, 0.0  ;;  %v7880_v13 = vmul.f32 0.1, %v7616_v60  ;;  %v5720_v27 = vld [vmem:[#allocation2 + $0x50] sm:$0xff]  ;;  %v10167_v10 = vpop.f32.mrb[146].mxu0  ;;  %v12830_v63 = vld [vmem:[%s13809_s0 + $0x218] sm:$0xff]  }
 0x1fc   :  { %v9482_v15 = vpack.c.bf16 %v8011_v11, %v8011_v11  ;;  %v8014_v16 = vsel %vm7750_vm8, %v7618_v56, %v7882_v2  ;;  %5592 = vst.msk [vmem:[#allocation2 + $0x70] sm:$0xff] %vm1248_vm3, %v5460_v3  ;;  %v7222_v17 = vadd.f32 %v10296_v61, %v5720_v27  ;;  %v5458_v18 = vadd.f32 %v4967_v8, %v3558_v7  ;;  %v5718_v19 = vld [vmem:[#allocation2 + $0x40] sm:$0xff]  ;;  %v4970_v23 = vpop.f32.mrb[147].mxu0  ;;  %v3564_v57 = vld [vmem:[#allocation2 + $0x90] sm:$0xff]  ;;  %v3565_v27 = vld [vmem:[#allocation2 + $0x98] sm:$0xff] }
 0x1fd   :  { %8674 = vst.msk [vmem:[%s13811_s3 + $0x8] sm:$0xf] %vm8671_vm5, %v9484_v6  ;;  %v9485_v24 = vpack.c.bf16 %v8014_v16, %v8014_v16  ;;  %v8012_v40 = vsel %vm7748_vm9, %v7616_v60, %v7880_v13  ;;  %v7482_v25 = vld [vmem:[#allocation2 + $0x30] sm:$0xff]  ;;  %v7220_v26 = vadd.f32 %v6717_v20, %v5718_v19  ;;  %v5461_v28 = vadd.f32 %v10167_v10, %v3561_v21  ;;  %v5721_v29 = vld [vmem:[#allocation2 + $0x58] sm:$0xff]  ;;  %v3562_v60 = vld [vmem:[#allocation2 + $0x80] sm:$0xff] }
 0x1fe   :  { %8672 = vst.msk [vmem:[%s13811_s3] sm:$0xf] %vm8671_vm5, %v9482_v15  ;;  %v9483_v35 = vpack.c.bf16 %v8012_v40, %v8012_v40  ;;  %v7621_v37 = vadd.f32 %v12710_v12, %v7482_v25  ;;  %v7480_v38 = vld [vmem:[#allocation2 + $0x20] sm:$0xff]  ;;  %v7223_v39 = vadd.f32 %v10297_v31, %v5721_v29  ;;  %v5459_v41 = vadd.f32 %v4970_v23, %v3559_v34  ;;  %v5719_v42 = vld [vmem:[#allocation2 + $0x48] sm:$0xff] }
 0x1ff   :  { %7354 = vst.msk [vmem:[#allocation2 + $0x50] sm:$0xff] %vm1248_vm3, %v7222_v17  ;;  %5590 = vst.msk [vmem:[#allocation2 + $0x60] sm:$0xff] %vm1248_vm3, %v5458_v18  ;;  %10273 = vmatmul.mubr.msk.bf16.gmra.mrb[252].mxu0 %vm484_vm1, %v12716_v22  ;;  %v7619_v45 = vadd.f32 %v12710_v12, %v7480_v38  ;;  %v7483_v46 = vld [vmem:[#allocation2 + $0x38] sm:$0xff]  ;;  %v7221_v47 = vadd.f32 %v6720_v43, %v5719_v42  ;;  %v12800_v22 = vsel %vm1982_vm2, %v12751_v51, %v12753_v52  ;;  %v3563_v61 = vld [vmem:[#allocation2 + $0x88] sm:$0xff] }
 0x200   :  { %8675 = vst.msk [vmem:[%s13811_s3 + $0xc] sm:$0xf] %vm8671_vm5, %v9485_v24  ;;  %10276 = vmatprep.mubr.msk.bf16.mxu0 %vm484_vm1, %v12722_v32  ;;  %v6439_v14 = vrot.slane %v12770_v9, 1  ;;  %8673 = vst.msk [vmem:[%s13811_s3 + $0x4] sm:$0xf] %vm8671_vm5, %v9483_v35  ;;  %vm7753_vm10 = vcmp.ge.f32.partialorder %v7621_v37, 0.0  ;;  %v7622_v50 = vadd.f32 %v12710_v12, %v7483_v46  ;;  %10403 = vmatmul.mubr.msk.bf16.gmra.mrb[248].mxu1 %vm484_vm1, %v12713_v4 }
 0x201   :  { %7352 = vst.msk [vmem:[#allocation2 + $0x40] sm:$0xff] %vm1248_vm3, %v7220_v26  ;;  %5593 = vst.msk [vmem:[#allocation2 + $0x78] sm:$0xff] %vm1248_vm3, %v5461_v28  ;;  %v7885_v49 = vmul.f32 0.1, %v7621_v37  ;;  %v7481_v53 = vld [vmem:[#allocation2 + $0x28] sm:$0xff]  ;;  %v4673_v32 = vor.u32 %v4671_v48, %v12753_v52  ;;  %vm7751_vm11 = vcmp.ge.f32.partialorder %v7619_v45, 0.0  ;;  %10406 = vmatprep.mubr.msk.bf16.mxu1 %vm484_vm1, %v12725_v33  ;;  %v12824_v4 = vsel %vm6311_vm4, %v6435_v55, %v6437_v58 }
 0x202   :  { %7355 = vst.msk [vmem:[#allocation2 + $0x58] sm:$0xff] %vm1248_vm3, %v7223_v39  ;;  %5591 = vst.msk [vmem:[#allocation2 + $0x68] sm:$0xff] %vm1248_vm3, %v5459_v41  ;;  %v7883_v51 = vmul.f32 0.1, %v7619_v45  ;;  %v7620_v56 = vadd.f32 %v12710_v12, %v7481_v53  ;;  %v10170_v59 = vpop.f32.mrb[148].mxu0  ;;  %vm7754_vm12 = vcmp.ge.f32.partialorder %v7622_v50, 0.0  ;;  %v12858_v31 = vsel %vm6311_vm4, %v6437_v58, %v6439_v14 }
 0x203   :  { %7353 = vst.msk [vmem:[#allocation2 + $0x48] sm:$0xff] %vm1248_vm3, %v7221_v47  ;;  %v8017_v1 = vsel %vm7753_vm10, %v7621_v37, %v7885_v49  ;;  %v7886_v48 = vmul.f32 0.1, %v7622_v50  ;;  %v5464_v52 = vadd.f32 %v10170_v59, %v3564_v57  ;;  %v4983_v62 = vpop.f32.mrb[149].mxu0  ;;  %v5724_v2 = vld [vmem:[#allocation2 + $0x70] sm:$0xff]  ;;  %v10300_v55 = vpop.f32.mrb[144].mxu1  ;;  %v4678_v30 = vsel %vm1982_vm2, %v4673_v32, %v12764_v0 }
 0x204   :  { %v9488_v33 = vpack.c.bf16 %v8017_v1, %v8017_v1  ;;  %v8015_v5 = vsel %vm7751_vm11, %v7619_v45, %v7883_v51  ;;  %vm7752_vm13 = vcmp.ge.f32.partialorder %v7620_v56, 0.0  ;;  %v7884_v54 = vmul.f32 0.1, %v7620_v56  ;;  %v10171_v3 = vpop.f32.mrb[150].mxu0  ;;  %v6733_v13 = vpop.f32.mrb[145].mxu1  ;;  %v3568_v45 = vld [vmem:[#allocation2 + $0xb0] sm:$0xff] }
 0x205   :  { %v9486_v7 = vpack.c.bf16 %v8015_v5, %v8015_v5  ;;  %v8018_v8 = vsel %vm7754_vm12, %v7622_v50, %v7886_v48  ;;  %5596 = vst.msk [vmem:[#allocation2 + $0x90] sm:$0xff] %vm1248_vm3, %v5464_v52  ;;  %v7226_v6 = vadd.f32 %v10300_v55, %v5724_v2  ;;  %v5462_v11 = vadd.f32 %v4983_v62, %v3562_v60  ;;  %v4986_v10 = vpop.f32.mrb[151].mxu0  ;;  %v10301_v20 = vpop.f32.mrb[146].mxu1  ;;  %v12842_v23 = vld [vmem:[%s13809_s0 + $0x220] ss:$0 sps:$4 sm:$0x11]  }
 0x206   :  { %8678 = vst.msk [vmem:[%s13811_s3 + $0x18] sm:$0xf] %vm8671_vm5, %v9488_v33  ;;  %v9489_v15 = vpack.c.bf16 %v8018_v8, %v8018_v8  ;;  %v8016_v16 = vsel %vm7752_vm13, %v7620_v56, %v7884_v54  ;;  %v7486_v17 = vld [vmem:[#allocation2 + $0x50] sm:$0xff]  ;;  %v5722_v18 = vld [vmem:[#allocation2 + $0x60] sm:$0xff]  ;;  %v5465_v19 = vadd.f32 %v10171_v3, %v3565_v27  ;;  %v5463_v21 = vadd.f32 %v4986_v10, %v3563_v61  ;;  %v6736_v29 = vpop.f32.mrb[147].mxu1  ;;  %v3569_v33 = vld [vmem:[#allocation2 + $0xb8] sm:$0xff] }
 0x207   :  { %8676 = vst.msk [vmem:[%s13811_s3 + $0x10] sm:$0xf] %vm8671_vm5, %v9486_v7  ;;  %v9487_v24 = vpack.c.bf16 %v8016_v16, %v8016_v16  ;;  %v7625_v40 = vadd.f32 %v12710_v12, %v7486_v17  ;;  %v7224_v26 = vadd.f32 %v6733_v13, %v5722_v18  ;;  %10277 = vmatmul.mubr.msk.bf16.gmra.mrb[0].mxu0 %vm484_vm1, %v12744_v44  ;;  %v6441_v58 = vrot.slane %v12830_v63, 1  ;;  %v10304_v59 = vpop.f32.mrb[148].mxu1  ;;  %v3567_v5 = vld [vmem:[#allocation2 + $0xa8] sm:$0xff] }
 0x208   :  { %v7484_v25 = vld [vmem:[#allocation2 + $0x40] sm:$0xff]  ;;  %7358 = vst.msk [vmem:[#allocation2 + $0x70] sm:$0xff] %vm1248_vm3, %v7226_v6  ;;  %5594 = vst.msk [vmem:[#allocation2 + $0x80] sm:$0xff] %vm1248_vm3, %v5462_v11  ;;  %v5725_v28 = vld [vmem:[#allocation2 + $0x78] sm:$0xff]  ;;  %10280 = vmatprep.mubr.msk.bf16.mxu0 %vm484_vm1, %v12800_v22  ;;  %10407 = vmatmul.mubr.msk.bf16.gmra.mrb[252].mxu1 %vm484_vm1, %v12736_v36  ;;  %v6443_v47 = vrot.slane %v12842_v23, 1  ;;  %v6749_v62 = vpop.f32.mrb[149].mxu1 }
 0x209   :  { %8679 = vst.msk [vmem:[%s13811_s3 + $0x1c] sm:$0xf] %vm8671_vm5, %v9489_v15  ;;  %v7623_v34 = vadd.f32 %v12710_v12, %v7484_v25  ;;  %v7487_v35 = vld [vmem:[#allocation2 + $0x58] sm:$0xff]  ;;  %v7227_v37 = vadd.f32 %v10301_v20, %v5725_v28  ;;  %v5723_v44 = vld [vmem:[#allocation2 + $0x68] sm:$0xff]  ;;  %8677 = vst.msk [vmem:[%s13811_s3 + $0x14] sm:$0xf] %vm8671_vm5, %v9487_v24  ;;  %10410 = vmatprep.mubr.msk.bf16.mxu1 %vm484_vm1, %v12824_v4  ;;  %v6442_v17 = vsel %vm6311_vm4, %v6439_v14, %v6441_v58 }
 0x20a   :  { %5597 = vst.msk [vmem:[#allocation2 + $0x98] sm:$0xff] %vm1248_vm3, %v5465_v19  ;;  %5595 = vst.msk [vmem:[#allocation2 + $0x88] sm:$0xff] %vm1248_vm3, %v5463_v21  ;;  %vm7757_vm14 = vcmp.ge.f32.partialorder %v7625_v40, 0.0  ;;  %v7889_v38 = vmul.f32 0.1, %v7625_v40  ;;  %v7626_v39 = vadd.f32 %v12710_v12, %v7487_v35  ;;  %v7485_v41 = vld [vmem:[#allocation2 + $0x48] sm:$0xff]  ;;  %v7225_v42 = vadd.f32 %v6736_v29, %v5723_v44 }
 0x20b   :  { %7356 = vst.msk [vmem:[#allocation2 + $0x60] sm:$0xff] %vm1248_vm3, %v7224_v26  ;;  %vm7755_vm15 = vcmp.ge.f32.partialorder %v7623_v34, 0.0  ;;  %v7887_v0 = vmul.f32 0.1, %v7623_v34  ;;  %v7624_v43 = vadd.f32 %v12710_v12, %v7485_v41  ;;  %7359 = vst.msk [vmem:[#allocation2 + $0x78] sm:$0xff] %vm1248_vm3, %v7227_v37  ;;  %v10174_v46 = vpop.f32.mrb[152].mxu0  ;;  %v6444_v25 = vsel %vm6311_vm4, %v6441_v58, %v6443_v47 }
 0x20c   :  { %v8021_v22 = vsel %vm7757_vm14, %v7625_v40, %v7889_v38  ;;  %vm7758_vm0 = vcmp.ge.f32.partialorder %v7626_v39, 0.0  ;;  %v7890_v49 = vmul.f32 0.1, %v7626_v39  ;;  %7357 = vst.msk [vmem:[#allocation2 + $0x68] sm:$0xff] %vm1248_vm3, %v7225_v42  ;;  %v5468_v50 = vadd.f32 %v10174_v46, %v3568_v45  ;;  %v3566_v36 = vld [vmem:[#allocation2 + $0xa0] sm:$0xff]  ;;  %v4999_v53 = vpop.f32.mrb[153].mxu0 }
 0x20d   :  { %v9492_v32 = vpack.c.bf16 %v8021_v22, %v8021_v22  ;;  %v8019_v51 = vsel %vm7755_vm15, %v7623_v34, %v7887_v0  ;;  %vm7756_vm2 = vcmp.ge.f32.partialorder %v7624_v43, 0.0  ;;  %v7888_v56 = vmul.f32 0.1, %v7624_v43  ;;  %v5728_v57 = vld [vmem:[#allocation2 + $0x90] sm:$0xff]  ;;  %v10175_v1 = vpop.f32.mrb[154].mxu0  ;;  %v10305_v6 = vpop.f32.mrb[150].mxu1 }
 0x20e   :  { %v9490_v48 = vpack.c.bf16 %v8019_v51, %v8019_v51  ;;  %v8022_v4 = vsel %vm7758_vm0, %v7626_v39, %v7890_v49  ;;  %5600 = vst.msk [vmem:[#allocation2 + $0xb0] sm:$0xff] %vm1248_vm3, %v5468_v50  ;;  %v7230_v52 = vadd.f32 %v10304_v59, %v5728_v57  ;;  %v5466_v60 = vadd.f32 %v4999_v53, %v3566_v36  ;;  %v5002_v54 = vpop.f32.mrb[155].mxu0  ;;  %v6752_v16 = vpop.f32.mrb[151].mxu1  ;;  %v3570_v34 = vld [vmem:[#allocation2 + $0xc0] sm:$0xff] }
 0x20f   :  { %8682 = vst.msk [vmem:[%s13811_s3 + $0x28] sm:$0xf] %vm8671_vm5, %v9492_v32  ;;  %v9493_v2 = vpack.c.bf16 %v8022_v4, %v8022_v4  ;;  %v8020_v55 = vsel %vm7756_vm2, %v7624_v43, %v7888_v56  ;;  %v7490_v3 = vld [vmem:[#allocation2 + $0x70] sm:$0xff]  ;;  %v5726_v7 = vld [vmem:[#allocation2 + $0x80] sm:$0xff]  ;;  %v5469_v8 = vadd.f32 %v10175_v1, %v3569_v33  ;;  %v5467_v11 = vadd.f32 %v5002_v54, %v3567_v5  ;;  %v10308_v39 = vpop.f32.mrb[152].mxu1  ;;  %v3573_v43 = vld [vmem:[#allocation2 + $0xd8] sm:$0xff] }
 0x210   :  { %8680 = vst.msk [vmem:[%s13811_s3 + $0x20] sm:$0xf] %vm8671_vm5, %v9490_v48  ;;  %v9491_v13 = vpack.c.bf16 %v8020_v55, %v8020_v55  ;;  %v7629_v27 = vadd.f32 %v12710_v12, %v7490_v3  ;;  %v7228_v61 = vadd.f32 %v6749_v62, %v5726_v7  ;;  %10281 = vmatmul.mubr.msk.bf16.gmra.mrb[4].mxu0 %vm484_vm1, %v4678_v30  ;;  %v6765_v0 = vpop.f32.mrb[153].mxu1  ;;  %v3571_v1 = vld [vmem:[#allocation2 + $0xc8] sm:$0xff] }
 0x211   :  { %7362 = vst.msk [vmem:[#allocation2 + $0x90] sm:$0xff] %vm1248_vm3, %v7230_v52  ;;  %5598 = vst.msk [vmem:[#allocation2 + $0xa0] sm:$0xff] %vm1248_vm3, %v5466_v60  ;;  %v5729_v10 = vld [vmem:[#allocation2 + $0x98] sm:$0xff]  ;;  %v5727_v15 = vld [vmem:[#allocation2 + $0x88] sm:$0xff]  ;;  %10411 = vmatmul.mubr.msk.bf16.gmra.mrb[0].mxu1 %vm484_vm1, %v12858_v31  ;;  %v10178_v40 = vpop.f32.mrb[156].mxu0  ;;  %v10309_v53 = vpop.f32.mrb[154].mxu1 }
 0x212   :  { %8683 = vst.msk [vmem:[%s13811_s3 + $0x2c] sm:$0xf] %vm8671_vm5, %v9493_v2  ;;  %v7488_v18 = vld [vmem:[#allocation2 + $0x60] sm:$0xff]  ;;  %v7231_v19 = vadd.f32 %v10305_v6, %v5729_v10  ;;  %v7229_v20 = vadd.f32 %v6752_v16, %v5727_v15  ;;  %8681 = vst.msk [vmem:[%s13811_s3 + $0x24] sm:$0xf] %vm8671_vm5, %v9491_v13  ;;  %vm7761_vm6 = vcmp.ge.f32.partialorder %v7629_v27, 0.0  ;;  %10414 = vmatprep.mubr.msk.bf16.mxu1 %vm484_vm1, %v6442_v17 }
 0x213   :  { %5601 = vst.msk [vmem:[#allocation2 + $0xb8] sm:$0xff] %vm1248_vm3, %v5469_v8  ;;  %5599 = vst.msk [vmem:[#allocation2 + $0xa8] sm:$0xff] %vm1248_vm3, %v5467_v11  ;;  %v7893_v9 = vmul.f32 0.1, %v7629_v27  ;;  %v7627_v14 = vadd.f32 %v12710_v12, %v7488_v18  ;;  %v7491_v21 = vld [vmem:[#allocation2 + $0x78] sm:$0xff]  ;;  %v7489_v24 = vld [vmem:[#allocation2 + $0x68] sm:$0xff] }
 0x214   :  { %7360 = vst.msk [vmem:[#allocation2 + $0x80] sm:$0xff] %vm1248_vm3, %v7228_v61  ;;  %v7630_v23 = vadd.f32 %v12710_v12, %v7491_v21  ;;  %7363 = vst.msk [vmem:[#allocation2 + $0x98] sm:$0xff] %vm1248_vm3, %v7231_v19  ;;  %v7628_v29 = vadd.f32 %v12710_v12, %v7489_v24  ;;  %v3572_v31 = vld [vmem:[#allocation2 + $0xd0] sm:$0xff]  ;;  %v5015_v35 = vpop.f32.mrb[157].mxu0  ;;  %v6768_v4 = vpop.f32.mrb[155].mxu1  ;;  %v3574_v10 = vld [vmem:[#allocation2 + $0xe0] sm:$0xff] }
 0x215   :  { %7361 = vst.msk [vmem:[#allocation2 + $0x88] sm:$0xff] %vm1248_vm3, %v7229_v20  ;;  %v8025_v26 = vsel %vm7761_vm6, %v7629_v27, %v7893_v9  ;;  %vm7759_vm7 = vcmp.ge.f32.partialorder %v7627_v14, 0.0  ;;  %v7891_v28 = vmul.f32 0.1, %v7627_v14  ;;  %v5472_v30 = vadd.f32 %v10178_v40, %v3572_v31  ;;  %v5732_v38 = vld [vmem:[#allocation2 + $0xb0] sm:$0xff]  ;;  %v10179_v41 = vpop.f32.mrb[158].mxu0 }
 0x216   :  { %v9496_v37 = vpack.c.bf16 %v8025_v26, %v8025_v26  ;;  %vm7762_vm8 = vcmp.ge.f32.partialorder %v7630_v23, 0.0  ;;  %v7894_v44 = vmul.f32 0.1, %v7630_v23  ;;  %vm7760_vm9 = vcmp.ge.f32.partialorder %v7628_v29, 0.0  ;;  %v5018_v45 = vpop.f32.mrb[159].mxu0  ;;  %v3576_v6 = vld [vmem:[#allocation2 + $0xf0] sm:$0xff] }
 0x217   :  { %v8023_v63 = vsel %vm7759_vm7, %v7627_v14, %v7891_v28  ;;  %v7892_v58 = vmul.f32 0.1, %v7628_v29  ;;  %v7234_v42 = vadd.f32 %v10308_v39, %v5732_v38  ;;  %5604 = vst.msk [vmem:[#allocation2 + $0xd0] sm:$0xff] %vm1248_vm3, %v5472_v30  ;;  %v5470_v49 = vadd.f32 %v5015_v35, %v3570_v34  ;;  %v3577_v16 = vld [vmem:[#allocation2 + $0xf8] sm:$0xff]  ;;  %v10312_v19 = vpop.f32.mrb[156].mxu1 }
 0x218   :  { %8686 = vst.msk [vmem:[%s13811_s3 + $0x38] sm:$0xf] %vm8671_vm5, %v9496_v37  ;;  %v9494_v46 = vpack.c.bf16 %v8023_v63, %v8023_v63  ;;  %v8026_v47 = vsel %vm7762_vm8, %v7630_v23, %v7894_v44  ;;  %v7494_v22 = vld [vmem:[#allocation2 + $0x90] sm:$0xff]  ;;  %v5730_v50 = vld [vmem:[#allocation2 + $0xa0] sm:$0xff]  ;;  %v5473_v36 = vadd.f32 %v10179_v41, %v3573_v43  ;;  %v5471_v33 = vadd.f32 %v5018_v45, %v3571_v1  ;;  %v6781_v24 = vpop.f32.mrb[157].mxu1 }
 0x219   :  { %v9497_v32 = vpack.c.bf16 %v8026_v47, %v8026_v47  ;;  %v8024_v51 = vsel %vm7760_vm9, %v7628_v29, %v7892_v58  ;;  %v7633_v56 = vadd.f32 %v12710_v12, %v7494_v22  ;;  %7366 = vst.msk [vmem:[#allocation2 + $0xb0] sm:$0xff] %vm1248_vm3, %v7234_v42  ;;  %v7232_v57 = vadd.f32 %v6765_v0, %v5730_v50  ;;  %v10182_v11 = vpop.f32.mrb[160].mxu0  ;;  %v10313_v35 = vpop.f32.mrb[158].mxu1  ;;  %v3578_v1 = vld [vmem:[#allocation2 + $0x100] sm:$0xff] }
 0x21a   :  { %v5733_v59 = vld [vmem:[#allocation2 + $0xb8] sm:$0xff]  ;;  %v5731_v48 = vld [vmem:[#allocation2 + $0xa8] sm:$0xff]  ;;  %8684 = vst.msk [vmem:[%s13811_s3 + $0x30] sm:$0xf] %vm8671_vm5, %v9494_v46  ;;  %v9495_v52 = vpack.c.bf16 %v8024_v51, %v8024_v51  ;;  %10415 = vmatmul.mubr.msk.bf16.gmra.mrb[4].mxu1 %vm484_vm1, %v6444_v25  ;;  %v5476_v61 = vadd.f32 %v10182_v11, %v3576_v6  ;;  %v5031_v15 = vpop.f32.mrb[161].mxu0  ;;  %v6784_v63 = vpop.f32.mrb[159].mxu1 }
 0x21b   :  { %v7492_v60 = vld [vmem:[#allocation2 + $0x80] sm:$0xff]  ;;  %5602 = vst.msk [vmem:[#allocation2 + $0xc0] sm:$0xff] %vm1248_vm3, %v5470_v49  ;;  %5605 = vst.msk [vmem:[#allocation2 + $0xd8] sm:$0xff] %vm1248_vm3, %v5473_v36  ;;  %v7235_v62 = vadd.f32 %v10309_v53, %v5733_v59  ;;  %v7233_v5 = vadd.f32 %v6768_v4, %v5731_v48  ;;  %vm7765_vm4 = vcmp.ge.f32.partialorder %v7633_v56, 0.0  ;;  %v7897_v54 = vmul.f32 0.1, %v7633_v56 }
 0x21c   :  { %8687 = vst.msk [vmem:[%s13811_s3 + $0x3c] sm:$0xf] %vm8671_vm5, %v9497_v32  ;;  %v7631_v2 = vadd.f32 %v12710_v12, %v7492_v60  ;;  %v7495_v55 = vld [vmem:[#allocation2 + $0x98] sm:$0xff]  ;;  %v7493_v3 = vld [vmem:[#allocation2 + $0x88] sm:$0xff]  ;;  %8685 = vst.msk [vmem:[%s13811_s3 + $0x34] sm:$0xf] %vm8671_vm5, %v9495_v52  ;;  %v5474_v23 = vadd.f32 %v5031_v15, %v3574_v10 }
 0x21d   :  { %7364 = vst.msk [vmem:[#allocation2 + $0xa0] sm:$0xff] %vm1248_vm3, %v7232_v57  ;;  %v7634_v7 = vadd.f32 %v12710_v12, %v7495_v55  ;;  %v7632_v8 = vadd.f32 %v12710_v12, %v7493_v3  ;;  %7367 = vst.msk [vmem:[#allocation2 + $0xb8] sm:$0xff] %vm1248_vm3, %v7235_v62  ;;  %v8029_v13 = vsel %vm7765_vm4, %v7633_v56, %v7897_v54  ;;  %v10183_v20 = vpop.f32.mrb[162].mxu0  ;;  %v3575_v25 = vld [vmem:[#allocation2 + $0xe8] sm:$0xff]  ;;  %v3580_v32 = vld [vmem:[#allocation2 + $0x110] sm:$0xff] }
 0x21e   :  { %5603 = vst.msk [vmem:[#allocation2 + $0xc8] sm:$0xff] %vm1248_vm3, %v5471_v33  ;;  %7365 = vst.msk [vmem:[#allocation2 + $0xa8] sm:$0xff] %vm1248_vm3, %v7233_v5  ;;  %vm7763_vm10 = vcmp.ge.f32.partialorder %v7631_v2, 0.0  ;;  %v7895_v27 = vmul.f32 0.1, %v7631_v2  ;;  %v9500_v17 = vpack.c.bf16 %v8029_v13, %v8029_v13  ;;  %v5736_v21 = vld [vmem:[#allocation2 + $0xd0] sm:$0xff]  ;;  %v5477_v40 = vadd.f32 %v10183_v20, %v3577_v16 }
 0x21f   :  { %vm7766_vm1 = vcmp.ge.f32.partialorder %v7634_v7, 0.0  ;;  %v7898_v18 = vmul.f32 0.1, %v7634_v7  ;;  %vm7764_vm11 = vcmp.ge.f32.partialorder %v7632_v8, 0.0  ;;  %v7896_v14 = vmul.f32 0.1, %v7632_v8 }
 0x220   :  { %v8027_v9 = vsel %vm7763_vm10, %v7631_v2, %v7895_v27  ;;  %5608 = vst.msk [vmem:[#allocation2 + $0xf0] sm:$0xff] %vm1248_vm3, %v5476_v61  ;;  %v5034_v26 = vpop.f32.mrb[163].mxu0  ;;  %v7498_v31 = vld [vmem:[#allocation2 + $0xb0] sm:$0xff]  ;;  %v7238_v34 = vadd.f32 %v10312_v19, %v5736_v21  ;;  %5606 = vst.msk [vmem:[#allocation2 + $0xe0] sm:$0xff] %vm1248_vm3, %v5474_v23  ;;  %v10316_v62 = vpop.f32.mrb[160].mxu1  ;;  %v3581_v3 = vld [vmem:[#allocation2 + $0x118] sm:$0xff] }
 0x221   :  { %8690 = vst.msk [vmem:[%s13811_s3 + $0x48] sm:$0xf] %vm8671_vm5, %v9500_v17  ;;  %v9498_v28 = vpack.c.bf16 %v8027_v9, %v8027_v9  ;;  %v8030_v29 = vsel %vm7766_vm1, %v7634_v7, %v7898_v18  ;;  %v5475_v37 = vadd.f32 %v5034_v26, %v3575_v25  ;;  %v8028_v30 = vsel %vm7764_vm11, %v7632_v8, %v7896_v14  ;;  %v10186_v51 = vpop.f32.mrb[164].mxu0  ;;  %v6797_v55 = vpop.f32.mrb[161].mxu1  ;;  %v3579_v20 = vld [vmem:[#allocation2 + $0x108] sm:$0xff] }
 0x222   :  { %v9501_v44 = vpack.c.bf16 %v8030_v29, %v8030_v29  ;;  %v7637_v38 = vadd.f32 %v12710_v12, %v7498_v31  ;;  %v5734_v39 = vld [vmem:[#allocation2 + $0xc0] sm:$0xff]  ;;  %5609 = vst.msk [vmem:[#allocation2 + $0xf8] sm:$0xff] %vm1248_vm3, %v5477_v40  ;;  %v5737_v41 = vld [vmem:[#allocation2 + $0xd8] sm:$0xff]  ;;  %v9499_v58 = vpack.c.bf16 %v8028_v30, %v8028_v30  ;;  %7370 = vst.msk [vmem:[#allocation2 + $0xd0] sm:$0xff] %vm1248_vm3, %v7238_v34  ;;  %v5047_v48 = vpop.f32.mrb[165].mxu0  ;;  %v10317_v61 = vpop.f32.mrb[162].mxu1 }
 0x223   :  { %8688 = vst.msk [vmem:[%s13811_s3 + $0x40] sm:$0xf] %vm8671_vm5, %v9498_v28  ;;  %v7236_v0 = vadd.f32 %v6781_v24, %v5734_v39  ;;  %v7239_v43 = vadd.f32 %v10313_v35, %v5737_v41  ;;  %v5480_v59 = vadd.f32 %v10186_v51, %v3580_v32  ;;  %v5478_v2 = vadd.f32 %v5047_v48, %v3578_v1  ;;  %v10187_v7 = vpop.f32.mrb[166].mxu0  ;;  %v6800_v14 = vpop.f32.mrb[163].mxu1  ;;  %v3584_v34 = vld [vmem:[#allocation2 + $0x130] sm:$0xff] }
 0x224   :  { %v7496_v42 = vld [vmem:[#allocation2 + $0xa0] sm:$0xff]  ;;  %5607 = vst.msk [vmem:[#allocation2 + $0xe8] sm:$0xff] %vm1248_vm3, %v5475_v37  ;;  %vm7769_vm12 = vcmp.ge.f32.partialorder %v7637_v38, 0.0  ;;  %v7901_v45 = vmul.f32 0.1, %v7637_v38  ;;  %v7499_v47 = vld [vmem:[#allocation2 + $0xb8] sm:$0xff]  ;;  %v5481_v13 = vadd.f32 %v10187_v7, %v3581_v3 }
 0x225   :  { %8691 = vst.msk [vmem:[%s13811_s3 + $0x4c] sm:$0xf] %vm8671_vm5, %v9501_v44  ;;  %v7635_v46 = vadd.f32 %v12710_v12, %v7496_v42  ;;  %v7497_v22 = vld [vmem:[#allocation2 + $0xa8] sm:$0xff]  ;;  %8689 = vst.msk [vmem:[%s13811_s3 + $0x44] sm:$0xf] %vm8671_vm5, %v9499_v58  ;;  %v7638_v50 = vadd.f32 %v12710_v12, %v7499_v47  ;;  %v5050_v10 = vpop.f32.mrb[167].mxu0 }
 0x226   :  { %v5735_v49 = vld [vmem:[#allocation2 + $0xc8] sm:$0xff]  ;;  %v7636_v36 = vadd.f32 %v12710_v12, %v7497_v22  ;;  %7368 = vst.msk [vmem:[#allocation2 + $0xc0] sm:$0xff] %vm1248_vm3, %v7236_v0  ;;  %7371 = vst.msk [vmem:[#allocation2 + $0xd8] sm:$0xff] %vm1248_vm3, %v7239_v43  ;;  %v8033_v56 = vsel %vm7769_vm12, %v7637_v38, %v7901_v45  ;;  %v5479_v24 = vadd.f32 %v5050_v10, %v3579_v20  ;;  %v3582_v45 = vld [vmem:[#allocation2 + $0x120] sm:$0xff] }
 0x227   :  { %v7237_v53 = vadd.f32 %v6784_v63, %v5735_v49  ;;  %vm7767_vm13 = vcmp.ge.f32.partialorder %v7635_v46, 0.0  ;;  %v7899_v57 = vmul.f32 0.1, %v7635_v46  ;;  %v9504_v4 = vpack.c.bf16 %v8033_v56, %v8033_v56  ;;  %v5740_v60 = vld [vmem:[#allocation2 + $0xf0] sm:$0xff]  ;;  %5612 = vst.msk [vmem:[#allocation2 + $0x110] sm:$0xff] %vm1248_vm3, %v5480_v59  ;;  %v5738_v11 = vld [vmem:[#allocation2 + $0xe0] sm:$0xff] }
 0x228   :  { %vm7770_vm14 = vcmp.ge.f32.partialorder %v7638_v50, 0.0  ;;  %v7902_v52 = vmul.f32 0.1, %v7638_v50  ;;  %vm7768_vm15 = vcmp.ge.f32.partialorder %v7636_v36, 0.0  ;;  %v7900_v5 = vmul.f32 0.1, %v7636_v36 }
 0x229   :  { %7369 = vst.msk [vmem:[#allocation2 + $0xc8] sm:$0xff] %vm1248_vm3, %v7237_v53  ;;  %v8031_v33 = vsel %vm7767_vm13, %v7635_v46, %v7899_v57  ;;  %v7242_v54 = vadd.f32 %v10316_v62, %v5740_v60  ;;  %v5741_v27 = vld [vmem:[#allocation2 + $0xf8] sm:$0xff]  ;;  %v7502_v17 = vld [vmem:[#allocation2 + $0xd0] sm:$0xff]  ;;  %5610 = vst.msk [vmem:[#allocation2 + $0x100] sm:$0xff] %vm1248_vm3, %v5478_v2  ;;  %v7240_v18 = vadd.f32 %v6797_v55, %v5738_v11  ;;  %v10190_v35 = vpop.f32.mrb[168].mxu0  ;;  %v10320_v63 = vpop.f32.mrb[164].mxu1 }
 0x22a   :  { %8694 = vst.msk [vmem:[%s13811_s3 + $0x58] sm:$0xf] %vm8671_vm5, %v9504_v4  ;;  %v9502_v8 = vpack.c.bf16 %v8031_v33, %v8031_v33  ;;  %v8034_v6 = vsel %vm7770_vm14, %v7638_v50, %v7902_v52  ;;  %v8032_v16 = vsel %vm7768_vm15, %v7636_v36, %v7900_v5  ;;  %v7243_v19 = vadd.f32 %v10317_v61, %v5741_v27  ;;  %v5063_v30 = vpop.f32.mrb[169].mxu0  ;;  %v6813_v46 = vpop.f32.mrb[165].mxu1  ;;  %v3585_v47 = vld [vmem:[#allocation2 + $0x138] sm:$0xff]  ;;  %v3583_v2 = vld [vmem:[#allocation2 + $0x128] sm:$0xff] }
 0x22b   :  { %v9505_v15 = vpack.c.bf16 %v8034_v6, %v8034_v6  ;;  %7374 = vst.msk [vmem:[#allocation2 + $0xf0] sm:$0xff] %vm1248_vm3, %v7242_v54  ;;  %v5739_v9 = vld [vmem:[#allocation2 + $0xe8] sm:$0xff]  ;;  %v9503_v21 = vpack.c.bf16 %v8032_v16, %v8032_v16  ;;  %v7641_v23 = vadd.f32 %v12710_v12, %v7502_v17  ;;  %5613 = vst.msk [vmem:[#allocation2 + $0x118] sm:$0xff] %vm1248_vm3, %v5481_v13  ;;  %v10191_v22 = vpop.f32.mrb[170].mxu0  ;;  %v10321_v51 = vpop.f32.mrb[166].mxu1  ;;  %v3588_v10 = vld [vmem:[#allocation2 + $0x150] sm:$0xff] }
 0x22c   :  { %8692 = vst.msk [vmem:[%s13811_s3 + $0x50] sm:$0xf] %vm8671_vm5, %v9502_v8  ;;  %v7241_v40 = vadd.f32 %v6800_v14, %v5739_v9  ;;  %v5484_v44 = vadd.f32 %v10190_v35, %v3584_v34  ;;  %v5482_v36 = vadd.f32 %v5063_v30, %v3582_v45  ;;  %v5485_v32 = vadd.f32 %v10191_v22, %v3585_v47  ;;  %v5066_v56 = vpop.f32.mrb[171].mxu0  ;;  %v6816_v4 = vpop.f32.mrb[167].mxu1  ;;  %v3587_v45 = vld [vmem:[#allocation2 + $0x148] sm:$0xff] }
 0x22d   :  { %8695 = vst.msk [vmem:[%s13811_s3 + $0x5c] sm:$0xf] %vm8671_vm5, %v9505_v15  ;;  %v7500_v25 = vld [vmem:[#allocation2 + $0xc0] sm:$0xff]  ;;  %v7503_v26 = vld [vmem:[#allocation2 + $0xd8] sm:$0xff]  ;;  %8693 = vst.msk [vmem:[%s13811_s3 + $0x54] sm:$0xf] %vm8671_vm5, %v9503_v21  ;;  %v5483_v6 = vadd.f32 %v5066_v56, %v3583_v2 }
 0x22e   :  { %7372 = vst.msk [vmem:[#allocation2 + $0xe0] sm:$0xff] %vm1248_vm3, %v7240_v18  ;;  %7375 = vst.msk [vmem:[#allocation2 + $0xf8] sm:$0xff] %vm1248_vm3, %v7243_v19  ;;  %vm7773_vm0 = vcmp.ge.f32.partialorder %v7641_v23, 0.0  ;;  %v7905_v28 = vmul.f32 0.1, %v7641_v23  ;;  %v7639_v29 = vadd.f32 %v12710_v12, %v7500_v25  ;;  %v7642_v31 = vadd.f32 %v12710_v12, %v7503_v26  ;;  %v5744_v41 = vld [vmem:[#allocation2 + $0x110] sm:$0xff] }
 0x22f   :  { %5611 = vst.msk [vmem:[#allocation2 + $0x108] sm:$0xff] %vm1248_vm3, %v5479_v24  ;;  %7373 = vst.msk [vmem:[#allocation2 + $0xe8] sm:$0xff] %vm1248_vm3, %v7241_v40  ;;  %v7246_v43 = vadd.f32 %v10320_v63, %v5744_v41  ;;  %v10324_v9 = vpop.f32.mrb[168].mxu1  ;;  %v13054_v41 = vld [vmem:[%s13810_s2] ss:$0 sm:$0xff] }
 0x230   :  { %v7501_v37 = vld [vmem:[#allocation2 + $0xc8] sm:$0xff]  ;;  %v8037_v38 = vsel %vm7773_vm0, %v7641_v23, %v7905_v28  ;;  %vm7771_vm2 = vcmp.ge.f32.partialorder %v7639_v29, 0.0  ;;  %v7903_v39 = vmul.f32 0.1, %v7639_v29  ;;  %vm7774_vm6 = vcmp.ge.f32.partialorder %v7642_v31, 0.0  ;;  %5616 = vst.msk [vmem:[#allocation2 + $0x130] sm:$0xff] %vm1248_vm3, %v5484_v44 }
 0x231   :  { %v9508_v58 = vpack.c.bf16 %v8037_v38, %v8037_v38  ;;  %v7906_v42 = vmul.f32 0.1, %v7642_v31  ;;  %v7640_v0 = vadd.f32 %v12710_v12, %v7501_v37  ;;  %v5742_v53 = vld [vmem:[#allocation2 + $0x100] sm:$0xff]  ;;  %7378 = vst.msk [vmem:[#allocation2 + $0x110] sm:$0xff] %vm1248_vm3, %v7246_v43  ;;  %5614 = vst.msk [vmem:[#allocation2 + $0x120] sm:$0xff] %vm1248_vm3, %v5482_v36  ;;  %v10194_v15 = vpop.f32.mrb[172].mxu0 }
 0x232   :  { %v8035_v49 = vsel %vm7771_vm2, %v7639_v29, %v7903_v39  ;;  %v7506_v50 = vld [vmem:[#allocation2 + $0xf0] sm:$0xff]  ;;  %v5745_v48 = vld [vmem:[#allocation2 + $0x118] sm:$0xff]  ;;  %v7244_v5 = vadd.f32 %v6813_v46, %v5742_v53  ;;  %5617 = vst.msk [vmem:[#allocation2 + $0x138] sm:$0xff] %vm1248_vm3, %v5485_v32  ;;  %5615 = vst.msk [vmem:[#allocation2 + $0x128] sm:$0xff] %vm1248_vm3, %v5483_v6  ;;  %v5079_v14 = vpop.f32.mrb[173].mxu0  ;;  %v5488_v40 = vadd.f32 %v10194_v15, %v3588_v10  ;;  %v6829_v25 = vpop.f32.mrb[169].mxu1 }
 0x233   :  { %8698 = vst.msk [vmem:[%s13811_s3 + $0x68] sm:$0xf] %vm8671_vm5, %v9508_v58  ;;  %v9506_v57 = vpack.c.bf16 %v8035_v49, %v8035_v49  ;;  %v8038_v59 = vsel %vm7774_vm6, %v7642_v31, %v7906_v42  ;;  %vm7772_vm7 = vcmp.ge.f32.partialorder %v7640_v0, 0.0  ;;  %v7904_v1 = vmul.f32 0.1, %v7640_v0  ;;  %v10195_v26 = vpop.f32.mrb[174].mxu0 }
 0x234   :  { %v9509_v52 = vpack.c.bf16 %v8038_v59, %v8038_v59  ;;  %v7645_v60 = vadd.f32 %v12710_v12, %v7506_v50  ;;  %v7247_v54 = vadd.f32 %v10321_v51, %v5745_v48  ;;  %7376 = vst.msk [vmem:[#allocation2 + $0x100] sm:$0xff] %vm1248_vm3, %v7244_v5  ;;  %v3586_v37 = vld [vmem:[#allocation2 + $0x140] sm:$0xff]  ;;  %v3589_v44 = vld [vmem:[#allocation2 + $0x158] sm:$0xff]  ;;  %v10325_v30 = vpop.f32.mrb[170].mxu1  ;;  %v5082_v38 = vpop.f32.mrb[175].mxu0  ;;  %5620 = vst.msk [vmem:[#allocation2 + $0x150] sm:$0xff] %vm1248_vm3, %v5488_v40 }
 0x235   :  { %v7504_v62 = vld [vmem:[#allocation2 + $0xe0] sm:$0xff]  ;;  %v7507_v33 = vld [vmem:[#allocation2 + $0xf8] sm:$0xff]  ;;  %8696 = vst.msk [vmem:[%s13811_s3 + $0x60] sm:$0xf] %vm8671_vm5, %v9506_v57  ;;  %v8036_v55 = vsel %vm7772_vm7, %v7640_v0, %v7904_v1  ;;  %v5486_v58 = vadd.f32 %v5079_v14, %v3586_v37  ;;  %v5489_v0 = vadd.f32 %v10195_v26, %v3589_v44  ;;  %v6832_v46 = vpop.f32.mrb[171].mxu1  ;;  %v5487_v49 = vadd.f32 %v5082_v38, %v3587_v45  ;;  %v3592_v57 = vld [vmem:[#allocation2 + $0x170] sm:$0xff] }
 0x236   :  { %v7643_v3 = vadd.f32 %v12710_v12, %v7504_v62  ;;  %v7646_v7 = vadd.f32 %v12710_v12, %v7507_v33  ;;  %v7505_v8 = vld [vmem:[#allocation2 + $0xe8] sm:$0xff]  ;;  %8699 = vst.msk [vmem:[%s13811_s3 + $0x6c] sm:$0xf] %vm8671_vm5, %v9509_v52  ;;  %v9507_v13 = vpack.c.bf16 %v8036_v55, %v8036_v55  ;;  %vm7777_vm8 = vcmp.ge.f32.partialorder %v7645_v60, 0.0  ;;  %v3590_v52 = vld [vmem:[#allocation2 + $0x160] sm:$0xff]  ;;  %v3593_v62 = vld [vmem:[#allocation2 + $0x178] sm:$0xff] }
 0x237   :  { %v5743_v11 = vld [vmem:[#allocation2 + $0x108] sm:$0xff]  ;;  %v7909_v27 = vmul.f32 0.1, %v7645_v60  ;;  %v7644_v61 = vadd.f32 %v12710_v12, %v7505_v8  ;;  %7379 = vst.msk [vmem:[#allocation2 + $0x118] sm:$0xff] %vm1248_vm3, %v7247_v54  ;;  %v5748_v20 = vld [vmem:[#allocation2 + $0x130] sm:$0xff]  ;;  %5618 = vst.msk [vmem:[#allocation2 + $0x140] sm:$0xff] %vm1248_vm3, %v5486_v58 }
 0x238   :  { %vm7775_vm9 = vcmp.ge.f32.partialorder %v7643_v3, 0.0  ;;  %v7907_v16 = vmul.f32 0.1, %v7643_v3  ;;  %vm7778_vm4 = vcmp.ge.f32.partialorder %v7646_v7, 0.0  ;;  %v7910_v17 = vmul.f32 0.1, %v7646_v7 }
 0x239   :  { %8697 = vst.msk [vmem:[%s13811_s3 + $0x64] sm:$0xf] %vm8671_vm5, %v9507_v13  ;;  %v8041_v18 = vsel %vm7777_vm8, %v7645_v60, %v7909_v27  ;;  %vm7776_vm10 = vcmp.ge.f32.partialorder %v7644_v61, 0.0  ;;  %v7908_v12 = vmul.f32 0.1, %v7644_v61  ;;  %v7245_v19 = vadd.f32 %v6816_v4, %v5743_v11  ;;  %v7510_v34 = vld [vmem:[#allocation2 + $0x110] sm:$0xff] }
 0x23a   :  { %v9512_v21 = vpack.c.bf16 %v8041_v18, %v8041_v18  ;;  %v8039_v23 = vsel %vm7775_vm9, %v7643_v3, %v7907_v16  ;;  %v8042_v24 = vsel %vm7778_vm4, %v7646_v7, %v7910_v17  ;;  %v7250_v35 = vadd.f32 %v10324_v9, %v5748_v20  ;;  %v5746_v42 = vld [vmem:[#allocation2 + $0x120] sm:$0xff]  ;;  %v5749_v43 = vld [vmem:[#allocation2 + $0x138] sm:$0xff]  ;;  %5621 = vst.msk [vmem:[#allocation2 + $0x158] sm:$0xff] %vm1248_vm3, %v5489_v0  ;;  %v5747_v56 = vld [vmem:[#allocation2 + $0x128] sm:$0xff]  ;;  %v10198_v59 = vpop.f32.mrb[176].mxu0  ;;  %v10328_v54 = vpop.f32.mrb[172].mxu1 }
 0x23b   :  { %v9510_v28 = vpack.c.bf16 %v8039_v23, %v8039_v23  ;;  %v9513_v29 = vpack.c.bf16 %v8042_v24, %v8042_v24  ;;  %v8040_v31 = vsel %vm7776_vm10, %v7644_v61, %v7908_v12  ;;  %7377 = vst.msk [vmem:[#allocation2 + $0x108] sm:$0xff] %vm1248_vm3, %v7245_v19  ;;  %v7649_v63 = vadd.f32 %v13054_v41, %v7510_v34  ;;  %v7508_v36 = vld [vmem:[#allocation2 + $0x100] sm:$0xff]  ;;  %v5095_v60 = vpop.f32.mrb[177].mxu0  ;;  %v6845_v8 = vpop.f32.mrb[173].mxu1  ;;  %v3591_v11 = vld [vmem:[#allocation2 + $0x168] sm:$0xff]  ;;  %v5752_v10 = vld [vmem:[#allocation2 + $0x150] sm:$0xff] }
 0x23c   :  { %8702 = vst.msk [vmem:[%s13811_s3 + $0x78] sm:$0xf] %vm8671_vm5, %v9512_v21  ;;  %v9511_v39 = vpack.c.bf16 %v8040_v31, %v8040_v31  ;;  %v7248_v47 = vadd.f32 %v6829_v25, %v5746_v42  ;;  %v7251_v22 = vadd.f32 %v10325_v30, %v5749_v43  ;;  %v7647_v32 = vadd.f32 %v13054_v41, %v7508_v36  ;;  %v10199_v2 = vpop.f32.mrb[178].mxu0  ;;  %v10329_v15 = vpop.f32.mrb[174].mxu1  ;;  %v3596_v37 = vld [vmem:[#allocation2 + $0x190] sm:$0xff]  ;;  %v3594_v58 = vld [vmem:[#allocation2 + $0x180] sm:$0xff] }
 0x23d   :  { %8700 = vst.msk [vmem:[%s13811_s3 + $0x70] sm:$0xf] %vm8671_vm5, %v9510_v28  ;;  %8703 = vst.msk [vmem:[%s13811_s3 + $0x7c] sm:$0xf] %vm8671_vm5, %v9513_v29  ;;  %vm7781_vm1 = vcmp.ge.f32.partialorder %v7649_v63, 0.0  ;;  %v7249_v48 = vadd.f32 %v6832_v46, %v5747_v56  ;;  %v5492_v4 = vadd.f32 %v10198_v59, %v3592_v57  ;;  %v5490_v7 = vadd.f32 %v5095_v60, %v3590_v52  ;;  %v5098_v13 = vpop.f32.mrb[179].mxu0 }
 0x23e   :  { %7382 = vst.msk [vmem:[#allocation2 + $0x130] sm:$0xff] %vm1248_vm3, %v7250_v35  ;;  %v7913_v50 = vmul.f32 0.1, %v7649_v63  ;;  %v7511_v53 = vld [vmem:[#allocation2 + $0x118] sm:$0xff]  ;;  %7380 = vst.msk [vmem:[#allocation2 + $0x120] sm:$0xff] %vm1248_vm3, %v7248_v47  ;;  %vm7779_vm11 = vcmp.ge.f32.partialorder %v7647_v32, 0.0  ;;  %v5493_v6 = vadd.f32 %v10199_v2, %v3593_v62  ;;  %v5491_v16 = vadd.f32 %v5098_v13, %v3591_v11 }
 0x23f   :  { %8701 = vst.msk [vmem:[%s13811_s3 + $0x74] sm:$0xf] %vm8671_vm5, %v9511_v39  ;;  %v7650_v51 = vadd.f32 %v13054_v41, %v7511_v53  ;;  %v7911_v5 = vmul.f32 0.1, %v7647_v32  ;;  %v7254_v19 = vadd.f32 %v10328_v54, %v5752_v10  ;;  %v6848_v20 = vpop.f32.mrb[175].mxu1  ;;  %v5750_v23 = vld [vmem:[#allocation2 + $0x140] sm:$0xff] }
 0x240   :  { %7383 = vst.msk [vmem:[#allocation2 + $0x138] sm:$0xff] %vm1248_vm3, %v7251_v22  ;;  %5619 = vst.msk [vmem:[#allocation2 + $0x148] sm:$0xff] %vm1248_vm3, %v5487_v49  ;;  %v8045_v1 = vsel %vm7781_vm1, %v7649_v63, %v7913_v50  ;;  %v7252_v26 = vadd.f32 %v6845_v8, %v5750_v23  ;;  %v10332_v47 = vpop.f32.mrb[176].mxu1 }
 0x241   :  { %v9516_v33 = vpack.c.bf16 %v8045_v1, %v8045_v1  ;;  %vm7782_vm12 = vcmp.ge.f32.partialorder %v7650_v51, 0.0  ;;  %v7914_v55 = vmul.f32 0.1, %v7650_v51  ;;  %7381 = vst.msk [vmem:[#allocation2 + $0x128] sm:$0xff] %vm1248_vm3, %v7249_v48  ;;  %5624 = vst.msk [vmem:[#allocation2 + $0x170] sm:$0xff] %vm1248_vm3, %v5492_v4  ;;  %v8043_v27 = vsel %vm7779_vm11, %v7647_v32, %v7911_v5  ;;  %v5753_v24 = vld [vmem:[#allocation2 + $0x158] sm:$0xff] }
 0x242   :  { %v7509_v3 = vld [vmem:[#allocation2 + $0x108] sm:$0xff]  ;;  %v9514_v17 = vpack.c.bf16 %v8043_v27, %v8043_v27  ;;  %5622 = vst.msk [vmem:[#allocation2 + $0x160] sm:$0xff] %vm1248_vm3, %v5490_v7  ;;  %5625 = vst.msk [vmem:[#allocation2 + $0x178] sm:$0xff] %vm1248_vm3, %v5493_v6  ;;  %v7255_v28 = vadd.f32 %v10329_v15, %v5753_v24  ;;  %v10202_v44 = vpop.f32.mrb[180].mxu0  ;;  %v6861_v53 = vpop.f32.mrb[177].mxu1  ;;  %v3597_v32 = vld [vmem:[#allocation2 + $0x198] sm:$0xff] }
 0x243   :  { %8706 = vst.msk [vmem:[%s13811_s3 + $0x88] sm:$0xf] %vm8671_vm5, %v9516_v33  ;;  %v7648_v61 = vadd.f32 %v13054_v41, %v7509_v3  ;;  %v8046_v18 = vsel %vm7782_vm12, %v7650_v51, %v7914_v55  ;;  %v5496_v63 = vadd.f32 %v10202_v44, %v3596_v37  ;;  %v5111_v42 = vpop.f32.mrb[181].mxu0  ;;  %v10333_v4 = vpop.f32.mrb[178].mxu1  ;;  %v3595_v5 = vld [vmem:[#allocation2 + $0x188] sm:$0xff] }
 0x244   :  { %v9517_v9 = vpack.c.bf16 %v8046_v18, %v8046_v18  ;;  %5623 = vst.msk [vmem:[#allocation2 + $0x168] sm:$0xff] %vm1248_vm3, %v5491_v16  ;;  %7386 = vst.msk [vmem:[#allocation2 + $0x150] sm:$0xff] %vm1248_vm3, %v7254_v19  ;;  %v5494_v22 = vadd.f32 %v5111_v42, %v3594_v58  ;;  %v10203_v51 = vpop.f32.mrb[182].mxu0  ;;  %v6864_v2 = vpop.f32.mrb[179].mxu1  ;;  %v3600_v19 = vld [vmem:[#allocation2 + $0x1b0] sm:$0xff] }
 0x245   :  { %v7514_v12 = vld [vmem:[#allocation2 + $0x130] sm:$0xff]  ;;  %vm7780_vm13 = vcmp.ge.f32.partialorder %v7648_v61, 0.0  ;;  %v7912_v14 = vmul.f32 0.1, %v7648_v61  ;;  %8704 = vst.msk [vmem:[%s13811_s3 + $0x80] sm:$0xf] %vm8671_vm5, %v9514_v17  ;;  %v5497_v1 = vadd.f32 %v10203_v51, %v3597_v32 }
 0x246   :  { %v7653_v21 = vadd.f32 %v13054_v41, %v7514_v12  ;;  %v7512_v40 = vld [vmem:[#allocation2 + $0x120] sm:$0xff]  ;;  %8707 = vst.msk [vmem:[%s13811_s3 + $0x8c] sm:$0xf] %vm8671_vm5, %v9517_v9  ;;  %v5114_v52 = vpop.f32.mrb[183].mxu0 }
 0x247   :  { %v7515_v25 = vld [vmem:[#allocation2 + $0x138] sm:$0xff]  ;;  %v5751_v29 = vld [vmem:[#allocation2 + $0x148] sm:$0xff]  ;;  %v8044_v31 = vsel %vm7780_vm13, %v7648_v61, %v7912_v14  ;;  %v7651_v35 = vadd.f32 %v13054_v41, %v7512_v40  ;;  %7384 = vst.msk [vmem:[#allocation2 + $0x140] sm:$0xff] %vm1248_vm3, %v7252_v26  ;;  %7387 = vst.msk [vmem:[#allocation2 + $0x158] sm:$0xff] %vm1248_vm3, %v7255_v28  ;;  %v5495_v6 = vadd.f32 %v5114_v52, %v3595_v5  ;;  %v10336_v24 = vpop.f32.mrb[180].mxu1 }
 0x248   :  { %vm7785_vm14 = vcmp.ge.f32.partialorder %v7653_v21, 0.0  ;;  %v7917_v34 = vmul.f32 0.1, %v7653_v21  ;;  %v9515_v30 = vpack.c.bf16 %v8044_v31, %v8044_v31  ;;  %v7654_v38 = vadd.f32 %v13054_v41, %v7515_v25  ;;  %v7513_v45 = vld [vmem:[#allocation2 + $0x128] sm:$0xff]  ;;  %v5756_v46 = vld [vmem:[#allocation2 + $0x170] sm:$0xff]  ;;  %5628 = vst.msk [vmem:[#allocation2 + $0x190] sm:$0xff] %vm1248_vm3, %v5496_v63 }
 0x249   :  { %v7253_v39 = vadd.f32 %v6848_v20, %v5751_v29  ;;  %vm7783_vm15 = vcmp.ge.f32.partialorder %v7651_v35, 0.0  ;;  %v7915_v43 = vmul.f32 0.1, %v7651_v35  ;;  %v7652_v36 = vadd.f32 %v13054_v41, %v7513_v45  ;;  %5626 = vst.msk [vmem:[#allocation2 + $0x180] sm:$0xff] %vm1248_vm3, %v5494_v22  ;;  %v5754_v59 = vld [vmem:[#allocation2 + $0x160] sm:$0xff]  ;;  %v5757_v48 = vld [vmem:[#allocation2 + $0x178] sm:$0xff] }
 0x24a   :  { %v8049_v0 = vsel %vm7785_vm14, %v7653_v21, %v7917_v34  ;;  %8705 = vst.msk [vmem:[%s13811_s3 + $0x84] sm:$0xf] %vm8671_vm5, %v9515_v30  ;;  %vm7786_vm0 = vcmp.ge.f32.partialorder %v7654_v38, 0.0  ;;  %v7918_v50 = vmul.f32 0.1, %v7654_v38  ;;  %v7258_v57 = vadd.f32 %v10332_v47, %v5756_v46  ;;  %v10206_v16 = vpop.f32.mrb[184].mxu0 }
 0x24b   :  { %v9520_v49 = vpack.c.bf16 %v8049_v0, %v8049_v0  ;;  %7385 = vst.msk [vmem:[#allocation2 + $0x148] sm:$0xff] %vm1248_vm3, %v7253_v39  ;;  %v8047_v56 = vsel %vm7783_vm15, %v7651_v35, %v7915_v43  ;;  %vm7784_vm2 = vcmp.ge.f32.partialorder %v7652_v36, 0.0  ;;  %v7916_v33 = vmul.f32 0.1, %v7652_v36  ;;  %v5755_v54 = vld [vmem:[#allocation2 + $0x168] sm:$0xff]  ;;  %v7518_v3 = vld [vmem:[#allocation2 + $0x150] sm:$0xff] }
 0x24c   :  { %v9518_v60 = vpack.c.bf16 %v8047_v56, %v8047_v56  ;;  %v8050_v62 = vsel %vm7786_vm0, %v7654_v38, %v7918_v50  ;;  %7390 = vst.msk [vmem:[#allocation2 + $0x170] sm:$0xff] %vm1248_vm3, %v7258_v57  ;;  %v7256_v7 = vadd.f32 %v6861_v53, %v5754_v59  ;;  %5629 = vst.msk [vmem:[#allocation2 + $0x198] sm:$0xff] %vm1248_vm3, %v5497_v1  ;;  %v3598_v20 = vld [vmem:[#allocation2 + $0x1a0] sm:$0xff]  ;;  %v5127_v9 = vpop.f32.mrb[185].mxu0  ;;  %v6877_v31 = vpop.f32.mrb[181].mxu1  ;;  %v3601_v30 = vld [vmem:[#allocation2 + $0x1b8] sm:$0xff] }
 0x24d   :  { %8710 = vst.msk [vmem:[%s13811_s3 + $0x98] sm:$0xf] %vm8671_vm5, %v9520_v49  ;;  %v9521_v55 = vpack.c.bf16 %v8050_v62, %v8050_v62  ;;  %v7259_v8 = vadd.f32 %v10333_v4, %v5757_v48  ;;  %v8048_v11 = vsel %vm7784_vm2, %v7652_v36, %v7916_v33  ;;  %v7657_v13 = vadd.f32 %v13054_v41, %v7518_v3  ;;  %v10207_v25 = vpop.f32.mrb[186].mxu0  ;;  %v10337_v38 = vpop.f32.mrb[182].mxu1  ;;  %v3599_v39 = vld [vmem:[#allocation2 + $0x1a8] sm:$0xff] }
 0x24e   :  { %8708 = vst.msk [vmem:[%s13811_s3 + $0x90] sm:$0xf] %vm8671_vm5, %v9518_v60  ;;  %v7257_v27 = vadd.f32 %v6864_v2, %v5755_v54  ;;  %v9519_v61 = vpack.c.bf16 %v8048_v11, %v8048_v11  ;;  %v7516_v10 = vld [vmem:[#allocation2 + $0x140] sm:$0xff]  ;;  %v7519_v15 = vld [vmem:[#allocation2 + $0x158] sm:$0xff]  ;;  %v5500_v21 = vadd.f32 %v10206_v16, %v3600_v19  ;;  %v5498_v40 = vadd.f32 %v5127_v9, %v3598_v20  ;;  %v5130_v63 = vpop.f32.mrb[187].mxu0  ;;  %v6880_v47 = vpop.f32.mrb[183].mxu1 }
 0x24f   :  { %8711 = vst.msk [vmem:[%s13811_s3 + $0x9c] sm:$0xf] %vm8671_vm5, %v9521_v55  ;;  %vm7789_vm6 = vcmp.ge.f32.partialorder %v7657_v13, 0.0  ;;  %v7921_v17 = vmul.f32 0.1, %v7657_v13  ;;  %v7655_v18 = vadd.f32 %v13054_v41, %v7516_v10  ;;  %v7658_v12 = vadd.f32 %v13054_v41, %v7519_v15  ;;  %v5760_v23 = vld [vmem:[#allocation2 + $0x190] sm:$0xff] }
 0x250   :  { %7388 = vst.msk [vmem:[#allocation2 + $0x160] sm:$0xff] %vm1248_vm3, %v7256_v7  ;;  %7391 = vst.msk [vmem:[#allocation2 + $0x178] sm:$0xff] %vm1248_vm3, %v7259_v8  ;;  %v5758_v29 = vld [vmem:[#allocation2 + $0x180] sm:$0xff]  ;;  %v7262_v44 = vadd.f32 %v10336_v24, %v5760_v23  ;;  %v5501_v43 = vadd.f32 %v10207_v25, %v3601_v30  ;;  %v5499_v46 = vadd.f32 %v5130_v63, %v3599_v39  ;;  %v3604_v54 = vld [vmem:[#allocation2 + $0x1d0] sm:$0xff] }
 0x251   :  { %5627 = vst.msk [vmem:[#allocation2 + $0x188] sm:$0xff] %vm1248_vm3, %v5495_v6  ;;  %7389 = vst.msk [vmem:[#allocation2 + $0x168] sm:$0xff] %vm1248_vm3, %v7257_v27  ;;  %v8053_v26 = vsel %vm7789_vm6, %v7657_v13, %v7921_v17  ;;  %vm7787_vm7 = vcmp.ge.f32.partialorder %v7655_v18, 0.0  ;;  %v7919_v28 = vmul.f32 0.1, %v7655_v18  ;;  %vm7790_vm8 = vcmp.ge.f32.partialorder %v7658_v12, 0.0 }
 0x252   :  { %8709 = vst.msk [vmem:[%s13811_s3 + $0x94] sm:$0xf] %vm8671_vm5, %v9519_v61  ;;  %v7517_v14 = vld [vmem:[#allocation2 + $0x148] sm:$0xff]  ;;  %v9524_v34 = vpack.c.bf16 %v8053_v26, %v8053_v26  ;;  %v7922_v35 = vmul.f32 0.1, %v7658_v12  ;;  %v7260_v0 = vadd.f32 %v6877_v31, %v5758_v29  ;;  %v10210_v60 = vpop.f32.mrb[188].mxu0 }
 0x253   :  { %v7656_v37 = vadd.f32 %v13054_v41, %v7517_v14  ;;  %5632 = vst.msk [vmem:[#allocation2 + $0x1b0] sm:$0xff] %vm1248_vm3, %v5500_v21  ;;  %5630 = vst.msk [vmem:[#allocation2 + $0x1a0] sm:$0xff] %vm1248_vm3, %v5498_v40  ;;  %v8051_v58 = vsel %vm7787_vm7, %v7655_v18, %v7919_v28  ;;  %v7522_v42 = vld [vmem:[#allocation2 + $0x170] sm:$0xff]  ;;  %v5761_v45 = vld [vmem:[#allocation2 + $0x198] sm:$0xff]  ;;  %v5143_v2 = vpop.f32.mrb[189].mxu0  ;;  %v5504_v6 = vadd.f32 %v10210_v60, %v3604_v54  ;;  %v10340_v13 = vpop.f32.mrb[184].mxu1 }
 0x254   :  { %8714 = vst.msk [vmem:[%s13811_s3 + $0xa8] sm:$0xf] %vm8671_vm5, %v9524_v34  ;;  %v9522_v22 = vpack.c.bf16 %v8051_v58, %v8051_v58  ;;  %v8054_v49 = vsel %vm7790_vm8, %v7658_v12, %v7922_v35  ;;  %v7661_v53 = vadd.f32 %v13054_v41, %v7522_v42  ;;  %v7263_v56 = vadd.f32 %v10337_v38, %v5761_v45  ;;  %v3602_v17 = vld [vmem:[#allocation2 + $0x1c0] sm:$0xff]  ;;  %v6893_v18 = vpop.f32.mrb[185].mxu1  ;;  %v10211_v12 = vpop.f32.mrb[190].mxu0  ;;  %v3605_v23 = vld [vmem:[#allocation2 + $0x1d8] sm:$0xff] }
 0x255   :  { %vm7788_vm9 = vcmp.ge.f32.partialorder %v7656_v37, 0.0  ;;  %v7920_v50 = vmul.f32 0.1, %v7656_v37  ;;  %7394 = vst.msk [vmem:[#allocation2 + $0x190] sm:$0xff] %vm1248_vm3, %v7262_v44  ;;  %v9525_v36 = vpack.c.bf16 %v8054_v49, %v8054_v49  ;;  %7392 = vst.msk [vmem:[#allocation2 + $0x180] sm:$0xff] %vm1248_vm3, %v7260_v0  ;;  %v5502_v21 = vadd.f32 %v5143_v2, %v3602_v17  ;;  %v10341_v24 = vpop.f32.mrb[186].mxu1 }
 0x256   :  { %5633 = vst.msk [vmem:[#allocation2 + $0x1b8] sm:$0xff] %vm1248_vm3, %v5501_v43  ;;  %5631 = vst.msk [vmem:[#allocation2 + $0x1a8] sm:$0xff] %vm1248_vm3, %v5499_v46  ;;  %vm7793_vm4 = vcmp.ge.f32.partialorder %v7661_v53, 0.0  ;;  %v7925_v33 = vmul.f32 0.1, %v7661_v53  ;;  %v3603_v40 = vld [vmem:[#allocation2 + $0x1c8] sm:$0xff]  ;;  %v5505_v34 = vadd.f32 %v10211_v12, %v3605_v23 }
 0x257   :  { %v7520_v32 = vld [vmem:[#allocation2 + $0x160] sm:$0xff]  ;;  %v7523_v51 = vld [vmem:[#allocation2 + $0x178] sm:$0xff]  ;;  %8712 = vst.msk [vmem:[%s13811_s3 + $0xa0] sm:$0xf] %vm8671_vm5, %v9522_v22  ;;  %v8052_v59 = vsel %vm7788_vm9, %v7656_v37, %v7920_v50  ;;  %8715 = vst.msk [vmem:[%s13811_s3 + $0xac] sm:$0xf] %vm8671_vm5, %v9525_v36 }
 0x258   :  { %v5759_v57 = vld [vmem:[#allocation2 + $0x188] sm:$0xff]  ;;  %v7659_v1 = vadd.f32 %v13054_v41, %v7520_v32  ;;  %v7662_v48 = vadd.f32 %v13054_v41, %v7523_v51  ;;  %v9523_v62 = vpack.c.bf16 %v8052_v59, %v8052_v59  ;;  %7395 = vst.msk [vmem:[#allocation2 + $0x198] sm:$0xff] %vm1248_vm3, %v7263_v56  ;;  %v8057_v7 = vsel %vm7793_vm4, %v7661_v53, %v7925_v33  ;;  %v5146_v25 = vpop.f32.mrb[191].mxu0  ;;  %v6896_v44 = vpop.f32.mrb[187].mxu1  ;;  %v3608_v0 = vld [vmem:[#allocation2 + $0x1f0] sm:$0xff]  ;;  %v3606_v49 = vld [vmem:[#allocation2 + $0x1e0] sm:$0xff] }
 0x259   :  { %v7521_v4 = vld [vmem:[#allocation2 + $0x168] sm:$0xff]  ;;  %v7261_v52 = vadd.f32 %v6880_v47, %v5759_v57  ;;  %v9528_v61 = vpack.c.bf16 %v8057_v7, %v8057_v7  ;;  %5636 = vst.msk [vmem:[#allocation2 + $0x1d0] sm:$0xff] %vm1248_vm3, %v5504_v6  ;;  %5634 = vst.msk [vmem:[#allocation2 + $0x1c0] sm:$0xff] %vm1248_vm3, %v5502_v21  ;;  %v5503_v39 = vadd.f32 %v5146_v25, %v3603_v40  ;;  %v10214_v43 = vpop.f32.mrb[192].mxu0  ;;  %v10344_v32 = vpop.f32.mrb[188].mxu1  ;;  %v3612_v40 = vld [vmem:[#allocation2 + $0x210] sm:$0xff] }
 0x25a   :  { %v7660_v5 = vadd.f32 %v13054_v41, %v7521_v4  ;;  %vm7791_vm10 = vcmp.ge.f32.partialorder %v7659_v1, 0.0  ;;  %v7923_v55 = vmul.f32 0.1, %v7659_v1  ;;  %vm7794_vm1 = vcmp.ge.f32.partialorder %v7662_v48, 0.0  ;;  %8713 = vst.msk [vmem:[%s13811_s3 + $0xa4] sm:$0xf] %vm8671_vm5, %v9523_v62 }
 0x25b   :  { %v7926_v3 = vmul.f32 0.1, %v7662_v48  ;;  %7393 = vst.msk [vmem:[#allocation2 + $0x188] sm:$0xff] %vm1248_vm3, %v7261_v52  ;;  %v5764_v11 = vld [vmem:[#allocation2 + $0x1b0] sm:$0xff]  ;;  %v5762_v27 = vld [vmem:[#allocation2 + $0x1a0] sm:$0xff]  ;;  %5637 = vst.msk [vmem:[#allocation2 + $0x1d8] sm:$0xff] %vm1248_vm3, %v5505_v34  ;;  %v5508_v22 = vadd.f32 %v10214_v43, %v3608_v0 }
 0x25c   :  { %vm7792_vm11 = vcmp.ge.f32.partialorder %v7660_v5, 0.0  ;;  %v7924_v8 = vmul.f32 0.1, %v7660_v5  ;;  %v8055_v10 = vsel %vm7791_vm10, %v7659_v1, %v7923_v55  ;;  %v7266_v16 = vadd.f32 %v10340_v13, %v5764_v11  ;;  %v7526_v14 = vld [vmem:[#allocation2 + $0x190] sm:$0xff]  ;;  %8718 = vst.msk [vmem:[%s13811_s3 + $0xb8] sm:$0xf] %vm8671_vm5, %v9528_v61 }
 0x25d   :  { %v8058_v15 = vsel %vm7794_vm1, %v7662_v48, %v7926_v3  ;;  %v9526_v19 = vpack.c.bf16 %v8055_v10, %v8055_v10  ;;  %v7665_v28 = vadd.f32 %v13054_v41, %v7526_v14  ;;  %v7524_v29 = vld [vmem:[#allocation2 + $0x180] sm:$0xff]  ;;  %v7264_v31 = vadd.f32 %v6893_v18, %v5762_v27  ;;  %v5765_v35 = vld [vmem:[#allocation2 + $0x1b8] sm:$0xff]  ;;  %v5763_v37 = vld [vmem:[#allocation2 + $0x1a8] sm:$0xff]  ;;  %5635 = vst.msk [vmem:[#allocation2 + $0x1c8] sm:$0xff] %vm1248_vm3, %v5503_v39  ;;  %v5159_v50 = vpop.f32.mrb[193].mxu0  ;;  %v6909_v48 = vpop.f32.mrb[189].mxu1 }
 0x25e   :  { %v9529_v20 = vpack.c.bf16 %v8058_v15, %v8058_v15  ;;  %v8056_v9 = vsel %vm7792_vm11, %v7660_v5, %v7924_v8  ;;  %7398 = vst.msk [vmem:[#allocation2 + $0x1b0] sm:$0xff] %vm1248_vm3, %v7266_v16  ;;  %v7663_v30 = vadd.f32 %v13054_v41, %v7524_v29  ;;  %v7267_v38 = vadd.f32 %v10341_v24, %v5765_v35  ;;  %v10215_v56 = vpop.f32.mrb[194].mxu0  ;;  %v3609_v4 = vld [vmem:[#allocation2 + $0x1f8] sm:$0xff]  ;;  %v10345_v54 = vpop.f32.mrb[190].mxu1  ;;  %v3607_v2 = vld [vmem:[#allocation2 + $0x1e8] sm:$0xff] }
 0x25f   :  { %v9527_v26 = vpack.c.bf16 %v8056_v9, %v8056_v9  ;;  %8716 = vst.msk [vmem:[%s13811_s3 + $0xb0] sm:$0xf] %vm8671_vm5, %v9526_v19  ;;  %v7265_v63 = vadd.f32 %v6896_v44, %v5763_v37  ;;  %vm7797_vm12 = vcmp.ge.f32.partialorder %v7665_v28, 0.0  ;;  %v7929_v58 = vmul.f32 0.1, %v7665_v28  ;;  %v7527_v42 = vld [vmem:[#allocation2 + $0x198] sm:$0xff] }
 0x260   :  { %8719 = vst.msk [vmem:[%s13811_s3 + $0xbc] sm:$0xf] %vm8671_vm5, %v9529_v20  ;;  %vm7795_vm13 = vcmp.ge.f32.partialorder %v7663_v30, 0.0  ;;  %v7927_v45 = vmul.f32 0.1, %v7663_v30  ;;  %v7666_v46 = vadd.f32 %v13054_v41, %v7527_v42  ;;  %v5506_v51 = vadd.f32 %v5159_v50, %v3606_v49  ;;  %v5162_v52 = vpop.f32.mrb[195].mxu0 }
 0x261   :  { %8717 = vst.msk [vmem:[%s13811_s3 + $0xb4] sm:$0xf] %vm8671_vm5, %v9527_v26  ;;  %v8061_v36 = vsel %vm7797_vm12, %v7665_v28, %v7929_v58  ;;  %v5768_v33 = vld [vmem:[#allocation2 + $0x1d0] sm:$0xff]  ;;  %v5509_v5 = vadd.f32 %v10215_v56, %v3609_v4  ;;  %v5507_v8 = vadd.f32 %v5162_v52, %v3607_v2  ;;  %v6912_v6 = vpop.f32.mrb[191].mxu1  ;;  %v5766_v61 = vld [vmem:[#allocation2 + $0x1c0] sm:$0xff]  ;;  %v10218_v25 = vpop.f32.mrb[196].mxu0 }
 0x262   :  { %7396 = vst.msk [vmem:[#allocation2 + $0x1a0] sm:$0xff] %vm1248_vm3, %v7264_v31  ;;  %v7525_v47 = vld [vmem:[#allocation2 + $0x188] sm:$0xff]  ;;  %7399 = vst.msk [vmem:[#allocation2 + $0x1b8] sm:$0xff] %vm1248_vm3, %v7267_v38  ;;  %v9532_v57 = vpack.c.bf16 %v8061_v36, %v8061_v36  ;;  %v8059_v59 = vsel %vm7795_vm13, %v7663_v30, %v7927_v45  ;;  %vm7798_vm14 = vcmp.ge.f32.partialorder %v7666_v46, 0.0  ;;  %v7930_v1 = vmul.f32 0.1, %v7666_v46 }
 0x263   :  { %7397 = vst.msk [vmem:[#allocation2 + $0x1a8] sm:$0xff] %vm1248_vm3, %v7265_v63  ;;  %v7664_v53 = vadd.f32 %v13054_v41, %v7525_v47  ;;  %5640 = vst.msk [vmem:[#allocation2 + $0x1f0] sm:$0xff] %vm1248_vm3, %v5508_v22  ;;  %v9530_v60 = vpack.c.bf16 %v8059_v59, %v8059_v59  ;;  %v7270_v7 = vadd.f32 %v10344_v32, %v5768_v33  ;;  %v5769_v17 = vld [vmem:[#allocation2 + $0x1d8] sm:$0xff]  ;;  %v3610_v26 = vld [vmem:[#allocation2 + $0x200] sm:$0xff]  ;;  %v10348_v35 = vpop.f32.mrb[192].mxu1  ;;  %v5175_v37 = vpop.f32.mrb[197].mxu0 }
 0x264   :  { %5638 = vst.msk [vmem:[#allocation2 + $0x1e0] sm:$0xff] %vm1248_vm3, %v5506_v51  ;;  %v8062_v55 = vsel %vm7798_vm14, %v7666_v46, %v7930_v1  ;;  %5641 = vst.msk [vmem:[#allocation2 + $0x1f8] sm:$0xff] %vm1248_vm3, %v5509_v5  ;;  %v7268_v16 = vadd.f32 %v6909_v48, %v5766_v61  ;;  %v7271_v9 = vadd.f32 %v10345_v54, %v5769_v17  ;;  %v5767_v14 = vld [vmem:[#allocation2 + $0x1c8] sm:$0xff]  ;;  %v6925_v39 = vpop.f32.mrb[193].mxu1  ;;  %v3613_v43 = vld [vmem:[#allocation2 + $0x218] sm:$0xff]  ;;  %v10219_v45 = vpop.f32.mrb[198].mxu0 }
 0x265   :  { %vm7796_vm15 = vcmp.ge.f32.partialorder %v7664_v53, 0.0  ;;  %v7928_v62 = vmul.f32 0.1, %v7664_v53  ;;  %8722 = vst.msk [vmem:[%s13811_s3 + $0xc8] sm:$0xf] %vm8671_vm5, %v9532_v57  ;;  %v7530_v3 = vld [vmem:[#allocation2 + $0x1b0] sm:$0xff]  ;;  %v9533_v11 = vpack.c.bf16 %v8062_v55, %v8062_v55  ;;  %v7269_v24 = vadd.f32 %v6912_v6, %v5767_v14 }
 0x266   :  { %8720 = vst.msk [vmem:[%s13811_s3 + $0xc0] sm:$0xf] %vm8671_vm5, %v9530_v60  ;;  %v7669_v27 = vadd.f32 %v13054_v41, %v7530_v3  ;;  %v5512_v31 = vadd.f32 %v10218_v25, %v3612_v40  ;;  %v5510_v0 = vadd.f32 %v5175_v37, %v3610_v26  ;;  %v10349_v46 = vpop.f32.mrb[194].mxu1  ;;  %v5513_v50 = vadd.f32 %v10219_v45, %v3613_v43  ;;  %v5178_v32 = vpop.f32.mrb[199].mxu0  ;;  %v3616_v5 = vld [vmem:[#allocation2 + $0x230] sm:$0xff] }
 0x267   :  { %v8060_v13 = vsel %vm7796_vm15, %v7664_v53, %v7928_v62  ;;  %7402 = vst.msk [vmem:[#allocation2 + $0x1d0] sm:$0xff] %vm1248_vm3, %v7270_v7  ;;  %5639 = vst.msk [vmem:[#allocation2 + $0x1e8] sm:$0xff] %vm1248_vm3, %v5507_v8  ;;  %v3611_v53 = vld [vmem:[#allocation2 + $0x208] sm:$0xff]  ;;  %v6928_v51 = vpop.f32.mrb[195].mxu1  ;;  %v3614_v8 = vld [vmem:[#allocation2 + $0x220] sm:$0xff] }
 0x268   :  { %v9531_v10 = vpack.c.bf16 %v8060_v13, %v8060_v13  ;;  %8723 = vst.msk [vmem:[%s13811_s3 + $0xcc] sm:$0xf] %vm8671_vm5, %v9533_v11  ;;  %vm7801_vm0 = vcmp.ge.f32.partialorder %v7669_v27, 0.0  ;;  %v7933_v18 = vmul.f32 0.1, %v7669_v27  ;;  %v5511_v48 = vadd.f32 %v5178_v32, %v3611_v53  ;;  %v3620_v32 = vld [vmem:[#allocation2 + $0x250] sm:$0xff] }
 0x269   :  { %v7528_v15 = vld [vmem:[#allocation2 + $0x1a0] sm:$0xff]  ;;  %v7531_v19 = vld [vmem:[#allocation2 + $0x1b8] sm:$0xff]  ;;  %7400 = vst.msk [vmem:[#allocation2 + $0x1c0] sm:$0xff] %vm1248_vm3, %v7268_v16  ;;  %7403 = vst.msk [vmem:[#allocation2 + $0x1d8] sm:$0xff] %vm1248_vm3, %v7271_v9  ;;  %v10222_v54 = vpop.f32.mrb[200].mxu0 }
 0x26a   :  { %v7667_v12 = vadd.f32 %v13054_v41, %v7528_v15  ;;  %v7529_v20 = vld [vmem:[#allocation2 + $0x1a8] sm:$0xff]  ;;  %8721 = vst.msk [vmem:[%s13811_s3 + $0xc4] sm:$0xf] %vm8671_vm5, %v9531_v10  ;;  %v7670_v21 = vadd.f32 %v13054_v41, %v7531_v19  ;;  %v8065_v28 = vsel %vm7801_vm0, %v7669_v27, %v7933_v18  ;;  %v5772_v34 = vld [vmem:[#allocation2 + $0x1f0] sm:$0xff]  ;;  %v5516_v7 = vadd.f32 %v10222_v54, %v3616_v5  ;;  %v5191_v6 = vpop.f32.mrb[201].mxu0  ;;  %v10352_v27 = vpop.f32.mrb[196].mxu1 }
 0x26b   :  { %v7668_v23 = vadd.f32 %v13054_v41, %v7529_v20  ;;  %v9536_v44 = vpack.c.bf16 %v8065_v28, %v8065_v28  ;;  %7401 = vst.msk [vmem:[#allocation2 + $0x1c8] sm:$0xff] %vm1248_vm3, %v7269_v24  ;;  %v5770_v38 = vld [vmem:[#allocation2 + $0x1e0] sm:$0xff]  ;;  %5644 = vst.msk [vmem:[#allocation2 + $0x210] sm:$0xff] %vm1248_vm3, %v5512_v31  ;;  %v7274_v42 = vadd.f32 %v10348_v35, %v5772_v34  ;;  %v5773_v36 = vld [vmem:[#allocation2 + $0x1f8] sm:$0xff]  ;;  %v10223_v10 = vpop.f32.mrb[202].mxu0 }
 0x26c   :  { %vm7799_vm2 = vcmp.ge.f32.partialorder %v7667_v12, 0.0  ;;  %v7931_v29 = vmul.f32 0.1, %v7667_v12  ;;  %vm7802_vm6 = vcmp.ge.f32.partialorder %v7670_v21, 0.0  ;;  %v7934_v30 = vmul.f32 0.1, %v7670_v21 }
 0x26d   :  { %vm7800_vm7 = vcmp.ge.f32.partialorder %v7668_v23, 0.0  ;;  %v7932_v58 = vmul.f32 0.1, %v7668_v23  ;;  %8726 = vst.msk [vmem:[%s13811_s3 + $0xd8] sm:$0xf] %vm8671_vm5, %v9536_v44  ;;  %v7272_v49 = vadd.f32 %v6925_v39, %v5770_v38  ;;  %v7275_v1 = vadd.f32 %v10349_v46, %v5773_v36  ;;  %v5194_v19 = vpop.f32.mrb[203].mxu0 }
 0x26e   :  { %v8063_v63 = vsel %vm7799_vm2, %v7667_v12, %v7931_v29  ;;  %v8066_v22 = vsel %vm7802_vm6, %v7670_v21, %v7934_v30  ;;  %v7534_v59 = vld [vmem:[#allocation2 + $0x1d0] sm:$0xff]  ;;  %7406 = vst.msk [vmem:[#allocation2 + $0x1f0] sm:$0xff] %vm1248_vm3, %v7274_v42  ;;  %5642 = vst.msk [vmem:[#allocation2 + $0x200] sm:$0xff] %vm1248_vm3, %v5510_v0  ;;  %v5771_v4 = vld [vmem:[#allocation2 + $0x1e8] sm:$0xff]  ;;  %v5514_v61 = vadd.f32 %v5191_v6, %v3614_v8  ;;  %v6941_v12 = vpop.f32.mrb[197].mxu1 }
 0x26f   :  { %v9534_v47 = vpack.c.bf16 %v8063_v63, %v8063_v63  ;;  %v9537_v56 = vpack.c.bf16 %v8066_v22, %v8066_v22  ;;  %v8064_v57 = vsel %vm7800_vm7, %v7668_v23, %v7932_v58  ;;  %v7673_v60 = vadd.f32 %v13054_v41, %v7534_v59  ;;  %7404 = vst.msk [vmem:[#allocation2 + $0x1e0] sm:$0xff] %vm1248_vm3, %v7272_v49  ;;  %v3617_v21 = vld [vmem:[#allocation2 + $0x238] sm:$0xff]  ;;  %v10353_v23 = vpop.f32.mrb[198].mxu1  ;;  %v3615_v22 = vld [vmem:[#allocation2 + $0x228] sm:$0xff]  ;;  %v3618_v8 = vld [vmem:[#allocation2 + $0x240] sm:$0xff] }
 0x270   :  { %v9535_v52 = vpack.c.bf16 %v8064_v57, %v8064_v57  ;;  %5645 = vst.msk [vmem:[#allocation2 + $0x218] sm:$0xff] %vm1248_vm3, %v5513_v50  ;;  %v7273_v62 = vadd.f32 %v6928_v51, %v5771_v4  ;;  %v7532_v33 = vld [vmem:[#allocation2 + $0x1c0] sm:$0xff]  ;;  %7407 = vst.msk [vmem:[#allocation2 + $0x1f8] sm:$0xff] %vm1248_vm3, %v7275_v1  ;;  %v7535_v3 = vld [vmem:[#allocation2 + $0x1d8] sm:$0xff]  ;;  %v5517_v28 = vadd.f32 %v10223_v10, %v3617_v21  ;;  %v6944_v29 = vpop.f32.mrb[199].mxu1 }
 0x271   :  { %8724 = vst.msk [vmem:[%s13811_s3 + $0xd0] sm:$0xf] %vm8671_vm5, %v9534_v47  ;;  %8727 = vst.msk [vmem:[%s13811_s3 + $0xdc] sm:$0xf] %vm8671_vm5, %v9537_v56  ;;  %vm7805_vm8 = vcmp.ge.f32.partialorder %v7673_v60, 0.0  ;;  %v7671_v55 = vadd.f32 %v13054_v41, %v7532_v33  ;;  %v7674_v11 = vadd.f32 %v13054_v41, %v7535_v3  ;;  %v10226_v49 = vpop.f32.mrb[204].mxu0  ;;  %v5515_v53 = vadd.f32 %v5194_v19, %v3615_v22 }
 0x272   :  { %5643 = vst.msk [vmem:[#allocation2 + $0x208] sm:$0xff] %vm1248_vm3, %v5511_v48  ;;  %v7937_v2 = vmul.f32 0.1, %v7673_v60  ;;  %7405 = vst.msk [vmem:[#allocation2 + $0x1e8] sm:$0xff] %vm1248_vm3, %v7273_v62  ;;  %v7533_v13 = vld [vmem:[#allocation2 + $0x1c8] sm:$0xff]  ;;  %v5776_v18 = vld [vmem:[#allocation2 + $0x210] sm:$0xff]  ;;  %v5520_v3 = vadd.f32 %v10226_v49, %v3620_v32 }
 0x273   :  { %8725 = vst.msk [vmem:[%s13811_s3 + $0xd4] sm:$0xf] %vm8671_vm5, %v9535_v52  ;;  %vm7803_vm9 = vcmp.ge.f32.partialorder %v7671_v55, 0.0  ;;  %v7935_v16 = vmul.f32 0.1, %v7671_v55  ;;  %v7672_v17 = vadd.f32 %v13054_v41, %v7533_v13  ;;  %vm7806_vm4 = vcmp.ge.f32.partialorder %v7674_v11, 0.0 }
 0x274   :  { %v8069_v15 = vsel %vm7805_vm8, %v7673_v60, %v7937_v2  ;;  %5648 = vst.msk [vmem:[#allocation2 + $0x230] sm:$0xff] %vm1248_vm3, %v5516_v7  ;;  %v7938_v9 = vmul.f32 0.1, %v7674_v11  ;;  %v7278_v14 = vadd.f32 %v10352_v27, %v5776_v18  ;;  %5646 = vst.msk [vmem:[#allocation2 + $0x220] sm:$0xff] %vm1248_vm3, %v5514_v61  ;;  %v5207_v51 = vpop.f32.mrb[205].mxu0  ;;  %v10356_v48 = vpop.f32.mrb[200].mxu1 }
 0x275   :  { %v9540_v20 = vpack.c.bf16 %v8069_v15, %v8069_v15  ;;  %v8067_v24 = vsel %vm7803_vm9, %v7671_v55, %v7935_v16  ;;  %vm7804_vm10 = vcmp.ge.f32.partialorder %v7672_v17, 0.0  ;;  %v7936_v40 = vmul.f32 0.1, %v7672_v17  ;;  %v7538_v25 = vld [vmem:[#allocation2 + $0x1f0] sm:$0xff]  ;;  %v5774_v26 = vld [vmem:[#allocation2 + $0x200] sm:$0xff]  ;;  %5649 = vst.msk [vmem:[#allocation2 + $0x238] sm:$0xff] %vm1248_vm3, %v5517_v28 }
 0x276   :  { %v9538_v31 = vpack.c.bf16 %v8067_v24, %v8067_v24  ;;  %v8070_v34 = vsel %vm7806_vm4, %v7674_v11, %v7938_v9  ;;  %v7677_v35 = vadd.f32 %v13054_v41, %v7538_v25  ;;  %v7536_v37 = vld [vmem:[#allocation2 + $0x1e0] sm:$0xff]  ;;  %7410 = vst.msk [vmem:[#allocation2 + $0x210] sm:$0xff] %vm1248_vm3, %v7278_v14  ;;  %v7276_v44 = vadd.f32 %v6941_v12, %v5774_v26  ;;  %v10227_v4 = vpop.f32.mrb[206].mxu0  ;;  %v6957_v5 = vpop.f32.mrb[201].mxu1  ;;  %v3621_v15 = vld [vmem:[#allocation2 + $0x258] sm:$0xff]  ;;  %v3619_v16 = vld [vmem:[#allocation2 + $0x248] sm:$0xff] }
 0x277   :  { %8730 = vst.msk [vmem:[%s13811_s3 + $0xe8] sm:$0xf] %vm8671_vm5, %v9540_v20  ;;  %v5777_v30 = vld [vmem:[#allocation2 + $0x218] sm:$0xff]  ;;  %v9541_v38 = vpack.c.bf16 %v8070_v34, %v8070_v34  ;;  %v8068_v39 = vsel %vm7804_vm10, %v7672_v17, %v7936_v40  ;;  %v7675_v63 = vadd.f32 %v13054_v41, %v7536_v37  ;;  %v5210_v54 = vpop.f32.mrb[207].mxu0  ;;  %v10357_v6 = vpop.f32.mrb[202].mxu1  ;;  %v5518_v61 = vadd.f32 %v5207_v51, %v3618_v8  ;;  %v3624_v25 = vld [vmem:[#allocation2 + $0x270] sm:$0xff] }
 0x278   :  { %v7539_v58 = vld [vmem:[#allocation2 + $0x1f8] sm:$0xff]  ;;  %v7279_v42 = vadd.f32 %v10353_v23, %v5777_v30  ;;  %8728 = vst.msk [vmem:[%s13811_s3 + $0xe0] sm:$0xf] %vm8671_vm5, %v9538_v31  ;;  %v9539_v43 = vpack.c.bf16 %v8068_v39, %v8068_v39  ;;  %vm7809_vm1 = vcmp.ge.f32.partialorder %v7677_v35, 0.0  ;;  %v7941_v45 = vmul.f32 0.1, %v7677_v35 }
 0x279   :  { %v5775_v0 = vld [vmem:[#allocation2 + $0x208] sm:$0xff]  ;;  %v7678_v46 = vadd.f32 %v13054_v41, %v7539_v58  ;;  %7408 = vst.msk [vmem:[#allocation2 + $0x200] sm:$0xff] %vm1248_vm3, %v7276_v44  ;;  %vm7807_vm11 = vcmp.ge.f32.partialorder %v7675_v63, 0.0  ;;  %v7939_v50 = vmul.f32 0.1, %v7675_v63  ;;  %5647 = vst.msk [vmem:[#allocation2 + $0x228] sm:$0xff] %vm1248_vm3, %v5515_v53  ;;  %v5521_v19 = vadd.f32 %v10227_v4, %v3621_v15 }
 0x27a   :  { %v7537_v47 = vld [vmem:[#allocation2 + $0x1e8] sm:$0xff]  ;;  %8731 = vst.msk [vmem:[%s13811_s3 + $0xec] sm:$0xf] %vm8671_vm5, %v9541_v38  ;;  %8729 = vst.msk [vmem:[%s13811_s3 + $0xe4] sm:$0xf] %vm8671_vm5, %v9539_v43  ;;  %v8073_v56 = vsel %vm7809_vm1, %v7677_v35, %v7941_v45  ;;  %v7277_v59 = vadd.f32 %v6944_v29, %v5775_v0  ;;  %v6960_v17 = vpop.f32.mrb[203].mxu1  ;;  %v5519_v9 = vadd.f32 %v5210_v54, %v3619_v16 }
 0x27b   :  { %v7676_v36 = vadd.f32 %v13054_v41, %v7537_v47  ;;  %7411 = vst.msk [vmem:[#allocation2 + $0x218] sm:$0xff] %vm1248_vm3, %v7279_v42  ;;  %vm7810_vm12 = vcmp.ge.f32.partialorder %v7678_v46, 0.0  ;;  %v7942_v57 = vmul.f32 0.1, %v7678_v46  ;;  %v5780_v1 = vld [vmem:[#allocation2 + $0x230] sm:$0xff]  ;;  %v9544_v52 = vpack.c.bf16 %v8073_v56, %v8073_v56  ;;  %v5778_v33 = vld [vmem:[#allocation2 + $0x220] sm:$0xff] }
 0x27c   :  { %v8071_v60 = vsel %vm7807_vm11, %v7675_v63, %v7939_v50  ;;  %7409 = vst.msk [vmem:[#allocation2 + $0x208] sm:$0xff] %vm1248_vm3, %v7277_v59  ;;  %v7282_v7 = vadd.f32 %v10356_v48, %v5780_v1  ;;  %v7280_v10 = vadd.f32 %v6957_v5, %v5778_v33  ;;  %5652 = vst.msk [vmem:[#allocation2 + $0x250] sm:$0xff] %vm1248_vm3, %v5520_v3  ;;  %v5781_v20 = vld [vmem:[#allocation2 + $0x238] sm:$0xff]  ;;  %v10230_v26 = vpop.f32.mrb[208].mxu0  ;;  %v3622_v31 = vld [vmem:[#allocation2 + $0x260] sm:$0xff]  ;;  %v10360_v39 = vpop.f32.mrb[204].mxu1 }
 0x27d   :  { %vm7808_vm13 = vcmp.ge.f32.partialorder %v7676_v36, 0.0  ;;  %v7940_v62 = vmul.f32 0.1, %v7676_v36  ;;  %v9542_v2 = vpack.c.bf16 %v8071_v60, %v8071_v60  ;;  %v8074_v55 = vsel %vm7810_vm12, %v7678_v46, %v7942_v57  ;;  %8734 = vst.msk [vmem:[%s13811_s3 + $0xf8] sm:$0xf] %vm8671_vm5, %v9544_v52  ;;  %v7542_v27 = vld [vmem:[#allocation2 + $0x210] sm:$0xff] }
 0x27e   :  { %v9545_v11 = vpack.c.bf16 %v8074_v55, %v8074_v55  ;;  %v7681_v12 = vadd.f32 %v13054_v41, %v7542_v27  ;;  %7414 = vst.msk [vmem:[#allocation2 + $0x230] sm:$0xff] %vm1248_vm3, %v7282_v7  ;;  %5650 = vst.msk [vmem:[#allocation2 + $0x240] sm:$0xff] %vm1248_vm3, %v5518_v61  ;;  %v7283_v21 = vadd.f32 %v10357_v6, %v5781_v20  ;;  %v5223_v34 = vpop.f32.mrb[209].mxu0  ;;  %v3625_v35 = vld [vmem:[#allocation2 + $0x278] sm:$0xff]  ;;  %v3623_v37 = vld [vmem:[#allocation2 + $0x268] sm:$0xff] }
 0x27f   :  { %v8072_v13 = vsel %vm7808_vm13, %v7676_v36, %v7940_v62  ;;  %8732 = vst.msk [vmem:[%s13811_s3 + $0xf0] sm:$0xf] %vm8671_vm5, %v9542_v2  ;;  %v5524_v29 = vadd.f32 %v10230_v26, %v3624_v25  ;;  %v5522_v63 = vadd.f32 %v5223_v34, %v3622_v31  ;;  %v10231_v58 = vpop.f32.mrb[210].mxu0  ;;  %v13316_v22 = vld [vmem:[%s13810_s2] ss:$0 sm:$0xff]  ;;  %v3628_v61 = vld [vmem:[#allocation2 + $0x290] sm:$0xff] }
 0x280   :  { %v9543_v18 = vpack.c.bf16 %v8072_v13, %v8072_v13  ;;  %8735 = vst.msk [vmem:[%s13811_s3 + $0xfc] sm:$0xf] %vm8671_vm5, %v9545_v11  ;;  %v7540_v14 = vld [vmem:[#allocation2 + $0x200] sm:$0xff]  ;;  %vm7813_vm14 = vcmp.ge.f32.partialorder %v7681_v12, 0.0  ;;  %v7945_v23 = vmul.f32 0.1, %v7681_v12  ;;  %v5525_v50 = vadd.f32 %v10231_v58, %v3625_v35 }
 0x281   :  { %7412 = vst.msk [vmem:[#allocation2 + $0x220] sm:$0xff] %vm1248_vm3, %v7280_v10  ;;  %v7679_v24 = vadd.f32 %v13054_v41, %v7540_v14  ;;  %5653 = vst.msk [vmem:[#allocation2 + $0x258] sm:$0xff] %vm1248_vm3, %v5521_v19  ;;  %v5779_v38 = vld [vmem:[#allocation2 + $0x228] sm:$0xff]  ;;  %v5226_v46 = vpop.f32.mrb[211].mxu0  ;;  %v3626_v10 = vld [vmem:[#allocation2 + $0x280] sm:$0xff] }
 0x282   :  { %8733 = vst.msk [vmem:[%s13811_s3 + $0xf4] sm:$0xf] %vm8671_vm5, %v9543_v18  ;;  %v7543_v40 = vld [vmem:[#allocation2 + $0x218] sm:$0xff]  ;;  %v8077_v44 = vsel %vm7813_vm14, %v7681_v12, %v7945_v23  ;;  %v7281_v45 = vadd.f32 %v6960_v17, %v5779_v38  ;;  %v5523_v53 = vadd.f32 %v5226_v46, %v3623_v37  ;;  %v10234_v6 = vpop.f32.mrb[212].mxu0 }
 0x283   :  { %5651 = vst.msk [vmem:[#allocation2 + $0x248] sm:$0xff] %vm1248_vm3, %v5519_v9  ;;  %v7682_v28 = vadd.f32 %v13054_v41, %v7543_v40  ;;  %7415 = vst.msk [vmem:[#allocation2 + $0x238] sm:$0xff] %vm1248_vm3, %v7283_v21  ;;  %vm7811_vm15 = vcmp.ge.f32.partialorder %v7679_v24, 0.0  ;;  %v7943_v30 = vmul.f32 0.1, %v7679_v24  ;;  %v9548_v42 = vpack.c.bf16 %v8077_v44, %v8077_v44  ;;  %v7541_v43 = vld [vmem:[#allocation2 + $0x208] sm:$0xff] }
 0x284   :  { %5656 = vst.msk [vmem:[#allocation2 + $0x270] sm:$0xff] %vm1248_vm3, %v5524_v29  ;;  %v6973_v41 = vpop.f32.mrb[205].mxu1  ;;  %v7680_v49 = vadd.f32 %v13316_v22, %v7541_v43  ;;  %5654 = vst.msk [vmem:[#allocation2 + $0x260] sm:$0xff] %vm1248_vm3, %v5522_v63  ;;  %v5784_v57 = vld [vmem:[#allocation2 + $0x250] sm:$0xff]  ;;  %v5239_v15 = vpop.f32.mrb[213].mxu0  ;;  %v5528_v18 = vadd.f32 %v10234_v6, %v3628_v61  ;;  %v3629_v9 = vld [vmem:[#allocation2 + $0x298] sm:$0xff] }
 0x285   :  { %vm7814_vm0 = vcmp.ge.f32.partialorder %v7682_v28, 0.0  ;;  %v7946_v0 = vmul.f32 0.1, %v7682_v28  ;;  %v8075_v47 = vsel %vm7811_vm15, %v7679_v24, %v7943_v30  ;;  %v10361_v36 = vpop.f32.mrb[206].mxu1  ;;  %8738 = vst.msk [vmem:[%s13811_s3 + $0x108] sm:$0xf] %vm8671_vm5, %v9548_v42  ;;  %v7286_v33 = vadd.f32 %v10360_v39, %v5784_v57 }
 0x286   :  { %v9546_v32 = vpack.c.bf16 %v8075_v47, %v8075_v47  ;;  %v7546_v56 = vld [vmem:[#allocation2 + $0x230] sm:$0xff]  ;;  %7413 = vst.msk [vmem:[#allocation2 + $0x228] sm:$0xff] %vm1248_vm3, %v7281_v45  ;;  %v6976_v59 = vpop.f32.mrb[207].mxu1  ;;  %vm7812_vm2 = vcmp.ge.f32.partialorder %v7680_v49, 0.0  ;;  %v7944_v48 = vmul.f32 0.1, %v7680_v49  ;;  %v5526_v20 = vadd.f32 %v5239_v15, %v3626_v10 }
 0x287   :  { %v8078_v51 = vsel %vm7814_vm0, %v7682_v28, %v7946_v0  ;;  %v7685_v4 = vadd.f32 %v13316_v22, %v7546_v56  ;;  %v5782_v60 = vld [vmem:[#allocation2 + $0x240] sm:$0xff]  ;;  %5657 = vst.msk [vmem:[#allocation2 + $0x278] sm:$0xff] %vm1248_vm3, %v5525_v50  ;;  %5655 = vst.msk [vmem:[#allocation2 + $0x268] sm:$0xff] %vm1248_vm3, %v5523_v53  ;;  %v10364_v19 = vpop.f32.mrb[208].mxu1  ;;  %v10235_v14 = vpop.f32.mrb[214].mxu0  ;;  %v3627_v44 = vld [vmem:[#allocation2 + $0x288] sm:$0xff] }
 0x288   :  { %v9549_v1 = vpack.c.bf16 %v8078_v51, %v8078_v51  ;;  %v7544_v52 = vld [vmem:[#allocation2 + $0x220] sm:$0xff]  ;;  %8736 = vst.msk [vmem:[%s13811_s3 + $0x100] sm:$0xf] %vm8671_vm5, %v9546_v32  ;;  %v7284_v5 = vadd.f32 %v6973_v41, %v5782_v60  ;;  %v5785_v54 = vld [vmem:[#allocation2 + $0x258] sm:$0xff]  ;;  %v8076_v55 = vsel %vm7812_vm2, %v7680_v49, %v7944_v48  ;;  %v6989_v25 = vpop.f32.mrb[209].mxu1  ;;  %v5242_v26 = vpop.f32.mrb[215].mxu0  ;;  %v5529_v35 = vadd.f32 %v10235_v14, %v3629_v9 }
 0x289   :  { %v7683_v62 = vadd.f32 %v13316_v22, %v7544_v52  ;;  %vm7817_vm6 = vcmp.ge.f32.partialorder %v7685_v4, 0.0  ;;  %v7949_v3 = vmul.f32 0.1, %v7685_v4  ;;  %v7287_v8 = vadd.f32 %v10361_v36, %v5785_v54  ;;  %7418 = vst.msk [vmem:[#allocation2 + $0x250] sm:$0xff] %vm1248_vm3, %v7286_v33  ;;  %5660 = vst.msk [vmem:[#allocation2 + $0x290] sm:$0xff] %vm1248_vm3, %v5528_v18  ;;  %v10365_v37 = vpop.f32.mrb[210].mxu1 }
 0x28a   :  { %v5783_v2 = vld [vmem:[#allocation2 + $0x248] sm:$0xff]  ;;  %8739 = vst.msk [vmem:[%s13811_s3 + $0x10c] sm:$0xf] %vm8671_vm5, %v9549_v1  ;;  %v7547_v7 = vld [vmem:[#allocation2 + $0x238] sm:$0xff]  ;;  %v9547_v11 = vpack.c.bf16 %v8076_v55, %v8076_v55  ;;  %v5527_v63 = vadd.f32 %v5242_v26, %v3627_v44  ;;  %v6992_v42 = vpop.f32.mrb[211].mxu1  ;;  %v3632_v49 = vld [vmem:[#allocation2 + $0x2b0] sm:$0xff] }
 0x28b   :  { %vm7815_vm7 = vcmp.ge.f32.partialorder %v7683_v62, 0.0  ;;  %v7947_v13 = vmul.f32 0.1, %v7683_v62  ;;  %v7686_v27 = vadd.f32 %v13316_v22, %v7547_v7  ;;  %7416 = vst.msk [vmem:[#allocation2 + $0x240] sm:$0xff] %vm1248_vm3, %v7284_v5  ;;  %v8081_v16 = vsel %vm7817_vm6, %v7685_v4, %v7949_v3  ;;  %7419 = vst.msk [vmem:[#allocation2 + $0x258] sm:$0xff] %vm1248_vm3, %v7287_v8  ;;  %v5788_v12 = vld [vmem:[#allocation2 + $0x270] sm:$0xff] }
 0x28c   :  { %v7285_v17 = vadd.f32 %v6976_v59, %v5783_v2  ;;  %8737 = vst.msk [vmem:[%s13811_s3 + $0x104] sm:$0xf] %vm8671_vm5, %v9547_v11  ;;  %v9552_v21 = vpack.c.bf16 %v8081_v16, %v8081_v16  ;;  %v5786_v40 = vld [vmem:[#allocation2 + $0x260] sm:$0xff]  ;;  %v7290_v31 = vadd.f32 %v10364_v19, %v5788_v12  ;;  %v10238_v50 = vpop.f32.mrb[216].mxu0  ;;  %v10368_v4 = vpop.f32.mrb[212].mxu1  ;;  %v3633_v60 = vld [vmem:[#allocation2 + $0x2b8] sm:$0xff] }
 0x28d   :  { %v8079_v23 = vsel %vm7815_vm7, %v7683_v62, %v7947_v13  ;;  %vm7818_vm8 = vcmp.ge.f32.partialorder %v7686_v27, 0.0  ;;  %v7950_v24 = vmul.f32 0.1, %v7686_v27  ;;  %v7545_v29 = vld [vmem:[#allocation2 + $0x228] sm:$0xff]  ;;  %5658 = vst.msk [vmem:[#allocation2 + $0x280] sm:$0xff] %vm1248_vm3, %v5526_v20  ;;  %v7288_v34 = vadd.f32 %v6989_v25, %v5786_v40  ;;  %5661 = vst.msk [vmem:[#allocation2 + $0x298] sm:$0xff] %vm1248_vm3, %v5529_v35 }
 0x28e   :  { %v9550_v28 = vpack.c.bf16 %v8079_v23, %v8079_v23  ;;  %7417 = vst.msk [vmem:[#allocation2 + $0x248] sm:$0xff] %vm1248_vm3, %v7285_v17  ;;  %v7684_v38 = vadd.f32 %v13316_v22, %v7545_v29  ;;  %v5789_v39 = vld [vmem:[#allocation2 + $0x278] sm:$0xff]  ;;  %v5787_v58 = vld [vmem:[#allocation2 + $0x268] sm:$0xff]  ;;  %7422 = vst.msk [vmem:[#allocation2 + $0x270] sm:$0xff] %vm1248_vm3, %v7290_v31  ;;  %v5532_v56 = vadd.f32 %v10238_v50, %v3632_v49  ;;  %v5255_v59 = vpop.f32.mrb[217].mxu0  ;;  %v7005_v61 = vpop.f32.mrb[213].mxu1 }
 0x28f   :  { %8742 = vst.msk [vmem:[%s13811_s3 + $0x118] sm:$0xf] %vm8671_vm5, %v9552_v21  ;;  %v8082_v30 = vsel %vm7818_vm8, %v7686_v27, %v7950_v24  ;;  %v7291_v43 = vadd.f32 %v10365_v37, %v5789_v39  ;;  %v7289_v45 = vadd.f32 %v6992_v42, %v5787_v58  ;;  %v3630_v57 = vld [vmem:[#allocation2 + $0x2a0] sm:$0xff]  ;;  %v10239_v62 = vpop.f32.mrb[218].mxu0  ;;  %v10369_v19 = vpop.f32.mrb[214].mxu1  ;;  %v3631_v37 = vld [vmem:[#allocation2 + $0x2a8] sm:$0xff] }
 0x290   :  { %8740 = vst.msk [vmem:[%s13811_s3 + $0x110] sm:$0xf] %vm8671_vm5, %v9550_v28  ;;  %v9553_v0 = vpack.c.bf16 %v8082_v30, %v8082_v30  ;;  %vm7816_vm9 = vcmp.ge.f32.partialorder %v7684_v38, 0.0  ;;  %v7948_v41 = vmul.f32 0.1, %v7684_v38  ;;  %v7550_v46 = vld [vmem:[#allocation2 + $0x250] sm:$0xff]  ;;  %v5530_v52 = vadd.f32 %v5255_v59, %v3630_v57 }
 0x291   :  { %7420 = vst.msk [vmem:[#allocation2 + $0x260] sm:$0xff] %vm1248_vm3, %v7288_v34  ;;  %5659 = vst.msk [vmem:[#allocation2 + $0x288] sm:$0xff] %vm1248_vm3, %v5527_v63  ;;  %v7689_v53 = vadd.f32 %v13316_v22, %v7550_v46  ;;  %v5792_v55 = vld [vmem:[#allocation2 + $0x290] sm:$0xff]  ;;  %v5533_v3 = vadd.f32 %v10239_v62, %v3633_v60  ;;  %v5258_v10 = vpop.f32.mrb[219].mxu0  ;;  %v7008_v24 = vpop.f32.mrb[215].mxu1 }
 0x292   :  { %8743 = vst.msk [vmem:[%s13811_s3 + $0x11c] sm:$0xf] %vm8671_vm5, %v9553_v0  ;;  %v7548_v47 = vld [vmem:[#allocation2 + $0x240] sm:$0xff]  ;;  %v8080_v36 = vsel %vm7816_vm9, %v7684_v38, %v7948_v41  ;;  %v7551_v51 = vld [vmem:[#allocation2 + $0x258] sm:$0xff]  ;;  %v7294_v27 = vadd.f32 %v10368_v4, %v5792_v55  ;;  %v10242_v28 = vpop.f32.mrb[220].mxu0  ;;  %v10372_v42 = vpop.f32.mrb[216].mxu1 }
 0x293   :  { %7423 = vst.msk [vmem:[#allocation2 + $0x278] sm:$0xff] %vm1248_vm3, %v7291_v43  ;;  %7421 = vst.msk [vmem:[#allocation2 + $0x268] sm:$0xff] %vm1248_vm3, %v7289_v45  ;;  %v7687_v32 = vadd.f32 %v13316_v22, %v7548_v47  ;;  %v9551_v1 = vpack.c.bf16 %v8080_v36, %v8080_v36  ;;  %v7690_v48 = vadd.f32 %v13316_v22, %v7551_v51  ;;  %vm7821_vm4 = vcmp.ge.f32.partialorder %v7689_v53, 0.0  ;;  %v5271_v30 = vpop.f32.mrb[221].mxu0  ;;  %v7021_v47 = vpop.f32.mrb[217].mxu1  ;;  %v3636_v51 = vld [vmem:[#allocation2 + $0x2d0] sm:$0xff] }
 0x294   :  { %v7953_v33 = vmul.f32 0.1, %v7689_v53  ;;  %5664 = vst.msk [vmem:[#allocation2 + $0x2b0] sm:$0xff] %vm1248_vm3, %v5532_v56  ;;  %5662 = vst.msk [vmem:[#allocation2 + $0x2a0] sm:$0xff] %vm1248_vm3, %v5530_v52  ;;  %v5790_v12 = vld [vmem:[#allocation2 + $0x280] sm:$0xff]  ;;  %v5793_v35 = vld [vmem:[#allocation2 + $0x298] sm:$0xff] }
 0x295   :  { %vm7819_vm10 = vcmp.ge.f32.partialorder %v7687_v32, 0.0  ;;  %v7951_v5 = vmul.f32 0.1, %v7687_v32  ;;  %8741 = vst.msk [vmem:[%s13811_s3 + $0x114] sm:$0xf] %vm8671_vm5, %v9551_v1  ;;  %vm7822_vm1 = vcmp.ge.f32.partialorder %v7690_v48, 0.0  ;;  %v7292_v34 = vadd.f32 %v7005_v61, %v5790_v12 }
 0x296   :  { %v7954_v54 = vmul.f32 0.1, %v7690_v48  ;;  %v7549_v2 = vld [vmem:[#allocation2 + $0x248] sm:$0xff]  ;;  %v8085_v7 = vsel %vm7821_vm4, %v7689_v53, %v7953_v33  ;;  %v7554_v11 = vld [vmem:[#allocation2 + $0x270] sm:$0xff]  ;;  %5665 = vst.msk [vmem:[#allocation2 + $0x2b8] sm:$0xff] %vm1248_vm3, %v5533_v3  ;;  %7426 = vst.msk [vmem:[#allocation2 + $0x290] sm:$0xff] %vm1248_vm3, %v7294_v27  ;;  %v7295_v53 = vadd.f32 %v10369_v19, %v5793_v35 }
 0x297   :  { %v8083_v8 = vsel %vm7819_vm10, %v7687_v32, %v7951_v5  ;;  %v7688_v6 = vadd.f32 %v13316_v22, %v7549_v2  ;;  %v9556_v15 = vpack.c.bf16 %v8085_v7, %v8085_v7  ;;  %v7693_v18 = vadd.f32 %v13316_v22, %v7554_v11  ;;  %v10243_v0 = vpop.f32.mrb[222].mxu0  ;;  %7424 = vst.msk [vmem:[#allocation2 + $0x280] sm:$0xff] %vm1248_vm3, %v7292_v34  ;;  %v10373_v56 = vpop.f32.mrb[218].mxu1  ;;  %v3634_v4 = vld [vmem:[#allocation2 + $0x2c0] sm:$0xff]  ;;  %v3637_v55 = vld [vmem:[#allocation2 + $0x2d8] sm:$0xff]  ;;  %v3635_v3 = vld [vmem:[#allocation2 + $0x2c8] sm:$0xff] }
 0x298   :  { %v7552_v13 = vld [vmem:[#allocation2 + $0x260] sm:$0xff]  ;;  %v9554_v16 = vpack.c.bf16 %v8083_v8, %v8083_v8  ;;  %v8086_v17 = vsel %vm7822_vm1, %v7690_v48, %v7954_v54  ;;  %v5791_v44 = vld [vmem:[#allocation2 + $0x288] sm:$0xff]  ;;  %v5274_v49 = vpop.f32.mrb[223].mxu0  ;;  %v5531_v32 = vadd.f32 %v5258_v10, %v3631_v37  ;;  %v5536_v48 = vadd.f32 %v10242_v28, %v3636_v51  ;;  %v7024_v60 = vpop.f32.mrb[219].mxu1  ;;  %7427 = vst.msk [vmem:[#allocation2 + $0x298] sm:$0xff] %vm1248_vm3, %v7295_v53  ;;  %v3641_v19 = vld [vmem:[#allocation2 + $0x2f8] sm:$0xff] }
 0x299   :  { %v9557_v20 = vpack.c.bf16 %v8086_v17, %v8086_v17  ;;  %vm7820_vm11 = vcmp.ge.f32.partialorder %v7688_v6, 0.0  ;;  %v7952_v9 = vmul.f32 0.1, %v7688_v6  ;;  %v7691_v14 = vadd.f32 %v13316_v22, %v7552_v13  ;;  %8746 = vst.msk [vmem:[%s13811_s3 + $0x128] sm:$0xf] %vm8671_vm5, %v9556_v15  ;;  %v3640_v13 = vld [vmem:[#allocation2 + $0x2f0] sm:$0xff] }
 0x29a   :  { %v7555_v21 = vld [vmem:[#allocation2 + $0x278] sm:$0xff]  ;;  %v7553_v23 = vld [vmem:[#allocation2 + $0x268] sm:$0xff]  ;;  %8744 = vst.msk [vmem:[%s13811_s3 + $0x120] sm:$0xf] %vm8671_vm5, %v9554_v16  ;;  %vm7825_vm12 = vcmp.ge.f32.partialorder %v7693_v18, 0.0  ;;  %v7293_v1 = vadd.f32 %v7008_v24, %v5791_v44  ;;  %v5534_v54 = vadd.f32 %v5271_v30, %v3634_v4  ;;  %v5537_v8 = vadd.f32 %v10243_v0, %v3637_v55  ;;  %v10246_v27 = vpop.f32.mrb[224].mxu0 }
 0x29b   :  { %v7957_v40 = vmul.f32 0.1, %v7693_v18  ;;  %v7694_v25 = vadd.f32 %v13316_v22, %v7555_v21  ;;  %v7692_v26 = vadd.f32 %v13316_v22, %v7553_v23  ;;  %8747 = vst.msk [vmem:[%s13811_s3 + $0x12c] sm:$0xf] %vm8671_vm5, %v9557_v20  ;;  %v8084_v29 = vsel %vm7820_vm11, %v7688_v6, %v7952_v9  ;;  %v5796_v58 = vld [vmem:[#allocation2 + $0x2b0] sm:$0xff]  ;;  %v5794_v46 = vld [vmem:[#allocation2 + $0x2a0] sm:$0xff] }
 0x29c   :  { %vm7823_vm13 = vcmp.ge.f32.partialorder %v7691_v14, 0.0  ;;  %v7955_v31 = vmul.f32 0.1, %v7691_v14  ;;  %v9555_v38 = vpack.c.bf16 %v8084_v29, %v8084_v29  ;;  %5663 = vst.msk [vmem:[#allocation2 + $0x2a8] sm:$0xff] %vm1248_vm3, %v5531_v32  ;;  %v7298_v5 = vadd.f32 %v10372_v42, %v5796_v58  ;;  %7425 = vst.msk [vmem:[#allocation2 + $0x288] sm:$0xff] %vm1248_vm3, %v7293_v1  ;;  %v3638_v15 = vld [vmem:[#allocation2 + $0x2e0] sm:$0xff] }
 0x29d   :  { %v8089_v39 = vsel %vm7825_vm12, %v7693_v18, %v7957_v40  ;;  %vm7826_vm14 = vcmp.ge.f32.partialorder %v7694_v25, 0.0  ;;  %v7958_v63 = vmul.f32 0.1, %v7694_v25  ;;  %vm7824_vm15 = vcmp.ge.f32.partialorder %v7692_v26, 0.0  ;;  %v5797_v52 = vld [vmem:[#allocation2 + $0x2b8] sm:$0xff]  ;;  %v7558_v33 = vld [vmem:[#allocation2 + $0x290] sm:$0xff] }
 0x29e   :  { %v9560_v43 = vpack.c.bf16 %v8089_v39, %v8089_v39  ;;  %v8087_v45 = vsel %vm7823_vm13, %v7691_v14, %v7955_v31  ;;  %v7956_v41 = vmul.f32 0.1, %v7692_v26  ;;  %8745 = vst.msk [vmem:[%s13811_s3 + $0x124] sm:$0xf] %vm8671_vm5, %v9555_v38  ;;  %v7296_v2 = vadd.f32 %v7021_v47, %v5794_v46  ;;  %v5287_v16 = vpop.f32.mrb[225].mxu0  ;;  %v7556_v17 = vld [vmem:[#allocation2 + $0x280] sm:$0xff] }
 0x29f   :  { %v9558_v50 = vpack.c.bf16 %v8087_v45, %v8087_v45  ;;  %v8090_v36 = vsel %vm7826_vm14, %v7694_v25, %v7958_v63  ;;  %v7697_v7 = vadd.f32 %v13316_v22, %v7558_v33  ;;  %5668 = vst.msk [vmem:[#allocation2 + $0x2d0] sm:$0xff] %vm1248_vm3, %v5536_v48  ;;  %v7299_v6 = vadd.f32 %v10373_v56, %v5797_v52  ;;  %v10376_v18 = vpop.f32.mrb[220].mxu1  ;;  %v10247_v20 = vpop.f32.mrb[226].mxu0  ;;  %v3639_v24 = vld [vmem:[#allocation2 + $0x2e8] sm:$0xff]  ;;  %v7559_v31 = vld [vmem:[#allocation2 + $0x298] sm:$0xff] }
 0x2a0   :  { %8750 = vst.msk [vmem:[%s13811_s3 + $0x138] sm:$0xf] %vm8671_vm5, %v9560_v43  ;;  %v9561_v57 = vpack.c.bf16 %v8090_v36, %v8090_v36  ;;  %v8088_v59 = vsel %vm7824_vm15, %v7692_v26, %v7956_v41  ;;  %v5535_v11 = vadd.f32 %v5274_v49, %v3635_v3  ;;  %v5540_v10 = vadd.f32 %v10246_v27, %v3640_v13  ;;  %v7037_v21 = vpop.f32.mrb[221].mxu1  ;;  %v5290_v40 = vpop.f32.mrb[227].mxu0 }
 0x2a1   :  { %8748 = vst.msk [vmem:[%s13811_s3 + $0x130] sm:$0xf] %vm8671_vm5, %v9558_v50  ;;  %v9559_v62 = vpack.c.bf16 %v8088_v59, %v8088_v59  ;;  %vm7829_vm0 = vcmp.ge.f32.partialorder %v7697_v7, 0.0  ;;  %v7961_v61 = vmul.f32 0.1, %v7697_v7  ;;  %v5538_v12 = vadd.f32 %v5287_v16, %v3638_v15  ;;  %v10377_v26 = vpop.f32.mrb[222].mxu1 }
 0x2a2   :  { %8751 = vst.msk [vmem:[%s13811_s3 + $0x13c] sm:$0xf] %vm8671_vm5, %v9561_v57  ;;  %v7695_v14 = vadd.f32 %v13316_v22, %v7556_v17  ;;  %v5541_v23 = vadd.f32 %v10247_v20, %v3641_v19  ;;  %v5539_v28 = vadd.f32 %v5290_v40, %v3639_v24  ;;  %v7040_v35 = vpop.f32.mrb[223].mxu1  ;;  %v7698_v37 = vadd.f32 %v13316_v22, %v7559_v31  ;;  %v10250_v32 = vpop.f32.mrb[228].mxu0  ;;  %v3642_v20 = vld [vmem:[#allocation2 + $0x300] sm:$0xff] }
 0x2a3   :  { %8749 = vst.msk [vmem:[%s13811_s3 + $0x134] sm:$0xf] %vm8671_vm5, %v9559_v62  ;;  %v8093_v9 = vsel %vm7829_vm0, %v7697_v7, %v7961_v61  ;;  %v5795_v34 = vld [vmem:[#allocation2 + $0x2a8] sm:$0xff]  ;;  %v10380_v1 = vpop.f32.mrb[224].mxu1  ;;  %v5303_v48 = vpop.f32.mrb[229].mxu0  ;;  %v3644_v61 = vld [vmem:[#allocation2 + $0x310] sm:$0xff] }
 0x2a4   :  { %7430 = vst.msk [vmem:[#allocation2 + $0x2b0] sm:$0xff] %vm1248_vm3, %v7298_v5  ;;  %5666 = vst.msk [vmem:[#allocation2 + $0x2c0] sm:$0xff] %vm1248_vm3, %v5534_v54  ;;  %v9564_v25 = vpack.c.bf16 %v8093_v9, %v8093_v9  ;;  %vm7827_vm2 = vcmp.ge.f32.partialorder %v7695_v14, 0.0  ;;  %v7959_v29 = vmul.f32 0.1, %v7695_v14  ;;  %v7557_v44 = vld [vmem:[#allocation2 + $0x288] sm:$0xff]  ;;  %v7297_v30 = vadd.f32 %v7024_v60, %v5795_v34 }
 0x2a5   :  { %7428 = vst.msk [vmem:[#allocation2 + $0x2a0] sm:$0xff] %vm1248_vm3, %v7296_v2  ;;  %5669 = vst.msk [vmem:[#allocation2 + $0x2d8] sm:$0xff] %vm1248_vm3, %v5537_v8  ;;  %v7696_v63 = vadd.f32 %v13316_v22, %v7557_v44  ;;  %vm7830_vm6 = vcmp.ge.f32.partialorder %v7698_v37, 0.0  ;;  %v7962_v41 = vmul.f32 0.1, %v7698_v37  ;;  %v7053_v33 = vpop.f32.mrb[225].mxu1 }
 0x2a6   :  { %7431 = vst.msk [vmem:[#allocation2 + $0x2b8] sm:$0xff] %vm1248_vm3, %v7299_v6  ;;  %5667 = vst.msk [vmem:[#allocation2 + $0x2c8] sm:$0xff] %vm1248_vm3, %v5535_v11  ;;  %v5800_v38 = vld [vmem:[#allocation2 + $0x2d0] sm:$0xff]  ;;  %v8091_v39 = vsel %vm7827_vm2, %v7695_v14, %v7959_v29  ;;  %v10251_v5 = vpop.f32.mrb[230].mxu0  ;;  %v10381_v7 = vpop.f32.mrb[226].mxu1  ;;  %v3645_v9 = vld [vmem:[#allocation2 + $0x318] sm:$0xff] }
 0x2a7   :  { %5672 = vst.msk [vmem:[#allocation2 + $0x2f0] sm:$0xff] %vm1248_vm3, %v5540_v10  ;;  %5670 = vst.msk [vmem:[#allocation2 + $0x2e0] sm:$0xff] %vm1248_vm3, %v5538_v12  ;;  %v7302_v0 = vadd.f32 %v10376_v18, %v5800_v38  ;;  %v9562_v45 = vpack.c.bf16 %v8091_v39, %v8091_v39  ;;  %vm7828_vm7 = vcmp.ge.f32.partialorder %v7696_v63, 0.0  ;;  %v7960_v49 = vmul.f32 0.1, %v7696_v63  ;;  %v5306_v8 = vpop.f32.mrb[231].mxu0 }
 0x2a8   :  { %5673 = vst.msk [vmem:[#allocation2 + $0x2f8] sm:$0xff] %vm1248_vm3, %v5541_v23  ;;  %5671 = vst.msk [vmem:[#allocation2 + $0x2e8] sm:$0xff] %vm1248_vm3, %v5539_v28  ;;  %v8094_v51 = vsel %vm7830_vm6, %v7698_v37, %v7962_v41  ;;  %v7056_v16 = vpop.f32.mrb[227].mxu1  ;;  %v5544_v12 = vadd.f32 %v10250_v32, %v3644_v61  ;;  %v5542_v23 = vadd.f32 %v5303_v48, %v3642_v20  ;;  %v3646_v38 = vld [vmem:[#allocation2 + $0x320] sm:$0xff] }
 0x2a9   :  { %8754 = vst.msk [vmem:[%s13811_s3 + $0x148] sm:$0xf] %vm8671_vm5, %v9564_v25  ;;  %8752 = vst.msk [vmem:[%s13811_s3 + $0x140] sm:$0xf] %vm8671_vm5, %v9562_v45  ;;  %v9565_v4 = vpack.c.bf16 %v8094_v51, %v8094_v51  ;;  %v8092_v52 = vsel %vm7828_vm7, %v7696_v63, %v7960_v49  ;;  %v5545_v40 = vadd.f32 %v10251_v5, %v3645_v9  ;;  %v3643_v25 = vld [vmem:[#allocation2 + $0x308] sm:$0xff]  ;;  %v10254_v37 = vpop.f32.mrb[232].mxu0 }
 0x2aa   :  { %7429 = vst.msk [vmem:[#allocation2 + $0x2a8] sm:$0xff] %vm1248_vm3, %v7297_v30  ;;  %7434 = vst.msk [vmem:[#allocation2 + $0x2d0] sm:$0xff] %vm1248_vm3, %v7302_v0  ;;  %v9563_v54 = vpack.c.bf16 %v8092_v52, %v8092_v52  ;;  %v5543_v31 = vadd.f32 %v5306_v8, %v3643_v25  ;;  %v5319_v39 = vpop.f32.mrb[233].mxu0  ;;  %v3649_v63 = vld [vmem:[#allocation2 + $0x338] sm:$0xff]  ;;  %v3647_v45 = vld [vmem:[#allocation2 + $0x328] sm:$0xff] }
 0x2ab   :  { %v7562_v58 = vld [vmem:[#allocation2 + $0x2b0] sm:$0xff]  ;;  %v5798_v43 = vld [vmem:[#allocation2 + $0x2c0] sm:$0xff]  ;;  %8755 = vst.msk [vmem:[%s13811_s3 + $0x14c] sm:$0xf] %vm8671_vm5, %v9565_v4  ;;  %v5546_v0 = vadd.f32 %v5319_v39, %v3646_v38 }
 0x2ac   :  { %v7560_v42 = vld [vmem:[#allocation2 + $0x2a0] sm:$0xff]  ;;  %v7701_v46 = vadd.f32 %v13316_v22, %v7562_v58  ;;  %v5801_v53 = vld [vmem:[#allocation2 + $0x2d8] sm:$0xff]  ;;  %v7300_v57 = vadd.f32 %v7037_v21, %v5798_v43  ;;  %8753 = vst.msk [vmem:[%s13811_s3 + $0x144] sm:$0xf] %vm8671_vm5, %v9563_v54  ;;  %v10255_v43 = vpop.f32.mrb[234].mxu0 }
 0x2ad   :  { %v7563_v47 = vld [vmem:[#allocation2 + $0x2b8] sm:$0xff]  ;;  %v7699_v50 = vadd.f32 %v13316_v22, %v7560_v42  ;;  %v5799_v59 = vld [vmem:[#allocation2 + $0x2c8] sm:$0xff]  ;;  %v7303_v13 = vadd.f32 %v10377_v26, %v5801_v53  ;;  %5676 = vst.msk [vmem:[#allocation2 + $0x310] sm:$0xff] %vm1248_vm3, %v5544_v12  ;;  %5674 = vst.msk [vmem:[#allocation2 + $0x300] sm:$0xff] %vm1248_vm3, %v5542_v23  ;;  %v10384_v42 = vpop.f32.mrb[228].mxu1  ;;  %v5549_v49 = vadd.f32 %v10255_v43, %v3649_v63 }
 0x2ae   :  { %v7702_v36 = vadd.f32 %v13316_v22, %v7563_v47  ;;  %vm7833_vm8 = vcmp.ge.f32.partialorder %v7701_v46, 0.0  ;;  %v7965_v56 = vmul.f32 0.1, %v7701_v46  ;;  %v5804_v62 = vld [vmem:[#allocation2 + $0x2f0] sm:$0xff]  ;;  %7432 = vst.msk [vmem:[#allocation2 + $0x2c0] sm:$0xff] %vm1248_vm3, %v7300_v57  ;;  %v5802_v3 = vld [vmem:[#allocation2 + $0x2e0] sm:$0xff]  ;;  %v7301_v27 = vadd.f32 %v7040_v35, %v5799_v59 }
 0x2af   :  { %vm7831_vm9 = vcmp.ge.f32.partialorder %v7699_v50, 0.0  ;;  %v7963_v60 = vmul.f32 0.1, %v7699_v50  ;;  %v5805_v10 = vld [vmem:[#allocation2 + $0x2f8] sm:$0xff]  ;;  %v5803_v15 = vld [vmem:[#allocation2 + $0x2e8] sm:$0xff]  ;;  %v7306_v19 = vadd.f32 %v10380_v1, %v5804_v62  ;;  %7435 = vst.msk [vmem:[#allocation2 + $0x2d8] sm:$0xff] %vm1248_vm3, %v7303_v13  ;;  %v7304_v24 = vadd.f32 %v7053_v33, %v5802_v3 }
 0x2b0   :  { %v8097_v2 = vsel %vm7833_vm8, %v7701_v46, %v7965_v56  ;;  %vm7834_vm4 = vcmp.ge.f32.partialorder %v7702_v36, 0.0  ;;  %v7966_v55 = vmul.f32 0.1, %v7702_v36  ;;  %7433 = vst.msk [vmem:[#allocation2 + $0x2c8] sm:$0xff] %vm1248_vm3, %v7301_v27  ;;  %v7307_v29 = vadd.f32 %v10381_v7, %v5805_v10  ;;  %v3648_v35 = vld [vmem:[#allocation2 + $0x330] sm:$0xff]  ;;  %5677 = vst.msk [vmem:[#allocation2 + $0x318] sm:$0xff] %vm1248_vm3, %v5545_v40 }
 0x2b1   :  { %v9568_v6 = vpack.c.bf16 %v8097_v2, %v8097_v2  ;;  %v8095_v11 = vsel %vm7831_vm9, %v7699_v50, %v7963_v60  ;;  %v7561_v21 = vld [vmem:[#allocation2 + $0x2a8] sm:$0xff]  ;;  %v7566_v28 = vld [vmem:[#allocation2 + $0x2d0] sm:$0xff]  ;;  %7438 = vst.msk [vmem:[#allocation2 + $0x2f0] sm:$0xff] %vm1248_vm3, %v7306_v19  ;;  %v7305_v34 = vadd.f32 %v7056_v16, %v5803_v15  ;;  %7436 = vst.msk [vmem:[#allocation2 + $0x2e0] sm:$0xff] %vm1248_vm3, %v7304_v24  ;;  %v7069_v47 = vpop.f32.mrb[229].mxu1  ;;  %v5322_v50 = vpop.f32.mrb[235].mxu0 }
 0x2b2   :  { %v9566_v17 = vpack.c.bf16 %v8095_v11, %v8095_v11  ;;  %v8098_v18 = vsel %vm7834_vm4, %v7702_v36, %v7966_v55  ;;  %v7700_v26 = vadd.f32 %v13316_v22, %v7561_v21  ;;  %v7705_v44 = vadd.f32 %v13316_v22, %v7566_v28  ;;  %7439 = vst.msk [vmem:[#allocation2 + $0x2f8] sm:$0xff] %vm1248_vm3, %v7307_v29  ;;  %v13490_v32 = vpop.f32.mrb[230].mxu1  ;;  %v10258_v8 = vpop.f32.mrb[236].mxu0  ;;  %v3652_v40 = vld [vmem:[#allocation2 + $0x350] sm:$0xff] }
 0x2b3   :  { %8758 = vst.msk [vmem:[%s13811_s3 + $0x158] sm:$0xf] %vm8671_vm5, %v9568_v6  ;;  %v9569_v14 = vpack.c.bf16 %v8098_v18, %v8098_v18  ;;  %v5548_v30 = vadd.f32 %v10254_v37, %v3648_v35  ;;  %v5547_v51 = vadd.f32 %v5322_v50, %v3647_v45  ;;  %v13493_v59 = vpop.f32.mrb[231].mxu1  ;;  %v5335_v9 = vpop.f32.mrb[237].mxu0  ;;  %v3650_v45 = vld [vmem:[#allocation2 + $0x340] sm:$0xff] }
 0x2b4   :  { %8756 = vst.msk [vmem:[%s13811_s3 + $0x150] sm:$0xf] %vm8671_vm5, %v9566_v17  ;;  %vm7832_vm10 = vcmp.ge.f32.partialorder %v7700_v26, 0.0  ;;  %v7964_v58 = vmul.f32 0.1, %v7700_v26  ;;  %vm7837_vm1 = vcmp.ge.f32.partialorder %v7705_v44, 0.0 }
 0x2b5   :  { %8759 = vst.msk [vmem:[%s13811_s3 + $0x15c] sm:$0xf] %vm8671_vm5, %v9569_v14  ;;  %v7969_v41 = vmul.f32 0.1, %v7705_v44  ;;  %v7564_v46 = vld [vmem:[#allocation2 + $0x2c0] sm:$0xff]  ;;  %v5808_v5 = vld [vmem:[#allocation2 + $0x310] sm:$0xff] }
 0x2b6   :  { %5675 = vst.msk [vmem:[#allocation2 + $0x308] sm:$0xff] %vm1248_vm3, %v5543_v31  ;;  %7437 = vst.msk [vmem:[#allocation2 + $0x2e8] sm:$0xff] %vm1248_vm3, %v7305_v34  ;;  %v8096_v36 = vsel %vm7832_vm10, %v7700_v26, %v7964_v58  ;;  %v7703_v53 = vadd.f32 %v13316_v22, %v7564_v46  ;;  %v7567_v4 = vld [vmem:[#allocation2 + $0x2d8] sm:$0xff]  ;;  %v7310_v3 = vadd.f32 %v10384_v42, %v5808_v5  ;;  %v5806_v7 = vld [vmem:[#allocation2 + $0x300] sm:$0xff]  ;;  %v10388_v20 = vpop.f32.mrb[232].mxu1  ;;  %v10259_v28 = vpop.f32.mrb[238].mxu0 }
 0x2b7   :  { %5680 = vst.msk [vmem:[#allocation2 + $0x330] sm:$0xff] %vm1248_vm3, %v5548_v30  ;;  %5678 = vst.msk [vmem:[#allocation2 + $0x320] sm:$0xff] %vm1248_vm3, %v5546_v0  ;;  %v9567_v56 = vpack.c.bf16 %v8096_v36, %v8096_v36  ;;  %v8101_v57 = vsel %vm7837_vm1, %v7705_v44, %v7969_v41  ;;  %v7565_v52 = vld [vmem:[#allocation2 + $0x2c8] sm:$0xff]  ;;  %v7706_v60 = vadd.f32 %v13316_v22, %v7567_v4  ;;  %v5809_v19 = vld [vmem:[#allocation2 + $0x318] sm:$0xff]  ;;  %v7085_v26 = vpop.f32.mrb[233].mxu1  ;;  %v5338_v44 = vpop.f32.mrb[239].mxu0 }
 0x2b8   :  { %5681 = vst.msk [vmem:[#allocation2 + $0x338] sm:$0xff] %vm1248_vm3, %v5549_v49  ;;  %v9572_v1 = vpack.c.bf16 %v8101_v57, %v8101_v57  ;;  %vm7835_vm11 = vcmp.ge.f32.partialorder %v7703_v53, 0.0  ;;  %v7967_v48 = vmul.f32 0.1, %v7703_v53  ;;  %5679 = vst.msk [vmem:[#allocation2 + $0x328] sm:$0xff] %vm1248_vm3, %v5547_v51  ;;  %v7704_v62 = vadd.f32 %v13316_v22, %v7565_v52  ;;  %v7570_v33 = vld [vmem:[#allocation2 + $0x2f0] sm:$0xff] }
 0x2b9   :  { %8757 = vst.msk [vmem:[%s13811_s3 + $0x154] sm:$0xf] %vm8671_vm5, %v9567_v56  ;;  %v7709_v2 = vadd.f32 %v13316_v22, %v7570_v33  ;;  %v7568_v55 = vld [vmem:[#allocation2 + $0x2e0] sm:$0xff]  ;;  %vm7838_vm12 = vcmp.ge.f32.partialorder %v7706_v60, 0.0  ;;  %v7970_v11 = vmul.f32 0.1, %v7706_v60  ;;  %v7308_v12 = vadd.f32 %v7069_v47, %v5806_v7 }
 0x2ba   :  { %8762 = vst.msk [vmem:[%s13811_s3 + $0x168] sm:$0xf] %vm8671_vm5, %v9572_v1  ;;  %v8099_v54 = vsel %vm7835_vm11, %v7703_v53, %v7967_v48  ;;  %vm7836_vm13 = vcmp.ge.f32.partialorder %v7704_v62, 0.0  ;;  %v7571_v13 = vld [vmem:[#allocation2 + $0x2f8] sm:$0xff]  ;;  %v7968_v61 = vmul.f32 0.1, %v7704_v62  ;;  %v7707_v15 = vadd.f32 %v13316_v22, %v7568_v55 }
 0x2bb   :  { %v9570_v6 = vpack.c.bf16 %v8099_v54, %v8099_v54  ;;  %vm7841_vm14 = vcmp.ge.f32.partialorder %v7709_v2, 0.0  ;;  %v7973_v10 = vmul.f32 0.1, %v7709_v2  ;;  %7442 = vst.msk [vmem:[#allocation2 + $0x310] sm:$0xff] %vm1248_vm3, %v7310_v3  ;;  %v8102_v16 = vsel %vm7838_vm12, %v7706_v60, %v7970_v11  ;;  %7440 = vst.msk [vmem:[#allocation2 + $0x300] sm:$0xff] %vm1248_vm3, %v7308_v12  ;;  %v10389_v37 = vpop.f32.mrb[234].mxu1 }
 0x2bc   :  { %v7710_v17 = vadd.f32 %v13316_v22, %v7571_v13  ;;  %v9573_v14 = vpack.c.bf16 %v8102_v16, %v8102_v16  ;;  %v8100_v21 = vsel %vm7836_vm13, %v7704_v62, %v7968_v61  ;;  %vm7839_vm15 = vcmp.ge.f32.partialorder %v7707_v15, 0.0  ;;  %v7088_v63 = vpop.f32.mrb[235].mxu1  ;;  %v3653_v53 = vld [vmem:[#allocation2 + $0x358] sm:$0xff]  ;;  %v3651_v48 = vld [vmem:[#allocation2 + $0x348] sm:$0xff]  ;;  %v3656_v5 = vld [vmem:[#allocation2 + $0x370] sm:$0xff] }
 0x2bd   :  { %v7569_v27 = vld [vmem:[#allocation2 + $0x2e8] sm:$0xff]  ;;  %8760 = vst.msk [vmem:[%s13811_s3 + $0x160] sm:$0xf] %vm8671_vm5, %v9570_v6  ;;  %v8105_v23 = vsel %vm7841_vm14, %v7709_v2, %v7973_v10  ;;  %v9571_v29 = vpack.c.bf16 %v8100_v21, %v8100_v21  ;;  %v7971_v34 = vmul.f32 0.1, %v7707_v15  ;;  %v7311_v39 = vadd.f32 %v13490_v32, %v5809_v19  ;;  %v10262_v32 = vpop.f32.mrb[240].mxu0 }
 0x2be   :  { %v7708_v18 = vadd.f32 %v13316_v22, %v7569_v27  ;;  %v5807_v24 = vld [vmem:[#allocation2 + $0x308] sm:$0xff]  ;;  %v5812_v25 = vld [vmem:[#allocation2 + $0x330] sm:$0xff]  ;;  %v9576_v31 = vpack.c.bf16 %v8105_v23, %v8105_v23  ;;  %vm7842_vm0 = vcmp.ge.f32.partialorder %v7710_v17, 0.0  ;;  %v5810_v35 = vld [vmem:[#allocation2 + $0x320] sm:$0xff]  ;;  %8763 = vst.msk [vmem:[%s13811_s3 + $0x16c] sm:$0xf] %vm8671_vm5, %v9573_v14  ;;  %v5552_v0 = vadd.f32 %v10258_v8, %v3652_v40 }
 0x2bf   :  { %v7974_v30 = vmul.f32 0.1, %v7710_v17  ;;  %8761 = vst.msk [vmem:[%s13811_s3 + $0x164] sm:$0xf] %vm8671_vm5, %v9571_v29  ;;  %v8103_v58 = vsel %vm7839_vm15, %v7707_v15, %v7971_v34  ;;  %v7309_v42 = vadd.f32 %v13493_v59, %v5807_v24  ;;  %v7314_v43 = vadd.f32 %v10388_v20, %v5812_v25  ;;  %v5813_v41 = vld [vmem:[#allocation2 + $0x338] sm:$0xff]  ;;  %v5811_v46 = vld [vmem:[#allocation2 + $0x328] sm:$0xff] }
 0x2c0   :  { %vm7840_vm2 = vcmp.ge.f32.partialorder %v7708_v18, 0.0  ;;  %v7972_v38 = vmul.f32 0.1, %v7708_v18  ;;  %8766 = vst.msk [vmem:[%s13811_s3 + $0x178] sm:$0xf] %vm8671_vm5, %v9576_v31  ;;  %v9574_v47 = vpack.c.bf16 %v8103_v58, %v8103_v58  ;;  %v5550_v36 = vadd.f32 %v5335_v9, %v3650_v45  ;;  %v5351_v4 = vpop.f32.mrb[241].mxu0 }
 0x2c1   :  { %v8106_v49 = vsel %vm7842_vm0, %v7710_v17, %v7974_v30  ;;  %7443 = vst.msk [vmem:[#allocation2 + $0x318] sm:$0xff] %vm1248_vm3, %v7311_v39  ;;  %7441 = vst.msk [vmem:[#allocation2 + $0x308] sm:$0xff] %vm1248_vm3, %v7309_v42  ;;  %v7312_v59 = vadd.f32 %v7085_v26, %v5810_v35  ;;  %v5553_v1 = vadd.f32 %v10259_v28, %v3653_v53  ;;  %v10392_v54 = vpop.f32.mrb[236].mxu1  ;;  %v3654_v2 = vld [vmem:[#allocation2 + $0x360] sm:$0xff]  ;;  %v3657_v55 = vld [vmem:[#allocation2 + $0x378] sm:$0xff]  ;;  %v10263_v3 = vpop.f32.mrb[242].mxu0 }
 0x2c2   :  { %v8104_v50 = vsel %vm7840_vm2, %v7708_v18, %v7972_v38  ;;  %v9577_v51 = vpack.c.bf16 %v8106_v49, %v8106_v49  ;;  %v7574_v57 = vld [vmem:[#allocation2 + $0x310] sm:$0xff]  ;;  %5684 = vst.msk [vmem:[#allocation2 + $0x350] sm:$0xff] %vm1248_vm3, %v5552_v0  ;;  %7446 = vst.msk [vmem:[#allocation2 + $0x330] sm:$0xff] %vm1248_vm3, %v7314_v43  ;;  %v7315_v60 = vadd.f32 %v10389_v37, %v5813_v41  ;;  %v7101_v6 = vpop.f32.mrb[237].mxu1  ;;  %v3655_v13 = vld [vmem:[#allocation2 + $0x368] sm:$0xff]  ;;  %v5354_v27 = vpop.f32.mrb[243].mxu0 }
 0x2c3   :  { %v9575_v56 = vpack.c.bf16 %v8104_v50, %v8104_v50  ;;  %8764 = vst.msk [vmem:[%s13811_s3 + $0x170] sm:$0xf] %vm8671_vm5, %v9574_v47  ;;  %v7713_v52 = vadd.f32 %v13316_v22, %v7574_v57  ;;  %v5551_v62 = vadd.f32 %v5338_v44, %v3651_v48  ;;  %v7313_v33 = vadd.f32 %v7088_v63, %v5811_v46  ;;  %v7572_v10 = vld [vmem:[#allocation2 + $0x300] sm:$0xff]  ;;  %v10393_v15 = vpop.f32.mrb[238].mxu1  ;;  %v10266_v40 = vpop.f32.mrb[244].mxu0  ;;  %v3660_v34 = vld [vmem:[#allocation2 + $0x390] sm:$0xff] }
 0x2c4   :  { %5682 = vst.msk [vmem:[#allocation2 + $0x340] sm:$0xff] %vm1248_vm3, %v5550_v36  ;;  %7444 = vst.msk [vmem:[#allocation2 + $0x320] sm:$0xff] %vm1248_vm3, %v7312_v59  ;;  %v5556_v7 = vadd.f32 %v10262_v32, %v3656_v5  ;;  %v5554_v8 = vadd.f32 %v5351_v4, %v3654_v2  ;;  %v5557_v11 = vadd.f32 %v10263_v3, %v3657_v55  ;;  %v13560_v18 = vpop.f32.mrb[239].mxu1  ;;  %v5367_v35 = vpop.f32.mrb[245].mxu0  ;;  %v3658_v2 = vld [vmem:[#allocation2 + $0x380] sm:$0xff] }
 0x2c5   :  { %8767 = vst.msk [vmem:[%s13811_s3 + $0x17c] sm:$0xf] %vm8671_vm5, %v9577_v51  ;;  %8765 = vst.msk [vmem:[%s13811_s3 + $0x174] sm:$0xf] %vm8671_vm5, %v9575_v56  ;;  %vm7845_vm6 = vcmp.ge.f32.partialorder %v7713_v52, 0.0  ;;  %v5555_v16 = vadd.f32 %v5354_v27, %v3655_v13  ;;  %v7711_v17 = vadd.f32 %v13316_v22, %v7572_v10  ;;  %v10396_v63 = vpop.f32.mrb[240].mxu1  ;;  %v5560_v49 = vadd.f32 %v10266_v40, %v3660_v34 }
 0x2c6   :  { %5685 = vst.msk [vmem:[#allocation2 + $0x358] sm:$0xff] %vm1248_vm3, %v5553_v1  ;;  %v7977_v61 = vmul.f32 0.1, %v7713_v52  ;;  %7447 = vst.msk [vmem:[#allocation2 + $0x338] sm:$0xff] %vm1248_vm3, %v7315_v60  ;;  %v7117_v50 = vpop.f32.mrb[241].mxu1  ;;  %v10267_v36 = vpop.f32.mrb[246].mxu0 }
 0x2c7   :  { %5683 = vst.msk [vmem:[#allocation2 + $0x348] sm:$0xff] %vm1248_vm3, %v5551_v62  ;;  %7445 = vst.msk [vmem:[#allocation2 + $0x328] sm:$0xff] %vm1248_vm3, %v7313_v33  ;;  %vm7843_vm7 = vcmp.ge.f32.partialorder %v7711_v17, 0.0  ;;  %v7975_v20 = vmul.f32 0.1, %v7711_v17  ;;  %v10397_v1 = vpop.f32.mrb[242].mxu1 }
 0x2c8   :  { %5688 = vst.msk [vmem:[#allocation2 + $0x370] sm:$0xff] %vm1248_vm3, %v5556_v7  ;;  %5686 = vst.msk [vmem:[#allocation2 + $0x360] sm:$0xff] %vm1248_vm3, %v5554_v8  ;;  %v8109_v12 = vsel %vm7845_vm6, %v7713_v52, %v7977_v61  ;;  %v7575_v9 = vld [vmem:[#allocation2 + $0x318] sm:$0xff]  ;;  %v7573_v21 = vld [vmem:[#allocation2 + $0x308] sm:$0xff]  ;;  %v5370_v48 = vpop.f32.mrb[247].mxu0  ;;  %v7120_v62 = vpop.f32.mrb[243].mxu1  ;;  %v5558_v8 = vadd.f32 %v5367_v35, %v3658_v2 }
 0x2c9   :  { %5689 = vst.msk [vmem:[#allocation2 + $0x378] sm:$0xff] %vm1248_vm3, %v5557_v11  ;;  %5687 = vst.msk [vmem:[#allocation2 + $0x368] sm:$0xff] %vm1248_vm3, %v5555_v16  ;;  %v9580_v19 = vpack.c.bf16 %v8109_v12, %v8109_v12  ;;  %v7714_v14 = vadd.f32 %v13316_v22, %v7575_v9  ;;  %v7578_v23 = vld [vmem:[#allocation2 + $0x330] sm:$0xff]  ;;  %v8107_v25 = vsel %vm7843_vm7, %v7711_v17, %v7975_v20  ;;  %v13582_v56 = vld [vmem:[%s13810_s2] ss:$0 sm:$0xff]  ;;  %v10270_v13 = vpop.f32.mrb[248].mxu0 }
 0x2ca   :  { %v5816_v24 = vld [vmem:[#allocation2 + $0x350] sm:$0xff]  ;;  %v7712_v26 = vadd.f32 %v13316_v22, %v7573_v21  ;;  %v7717_v28 = vadd.f32 %v13316_v22, %v7578_v23  ;;  %v9578_v37 = vpack.c.bf16 %v8107_v25, %v8107_v25  ;;  %5692 = vst.msk [vmem:[#allocation2 + $0x390] sm:$0xff] %vm1248_vm3, %v5560_v49  ;;  %v3659_v16 = vld [vmem:[#allocation2 + $0x388] sm:$0xff]  ;;  %v5383_v17 = vpop.f32.mrb[249].mxu0  ;;  %5690 = vst.msk [vmem:[#allocation2 + $0x380] sm:$0xff] %vm1248_vm3, %v5558_v8  ;;  %v10400_v21 = vpop.f32.mrb[244].mxu1 }
 0x2cb   :  { %8770 = vst.msk [vmem:[%s13811_s3 + $0x188] sm:$0xf] %vm8671_vm5, %v9580_v19  ;;  %v7318_v29 = vadd.f32 %v10392_v54, %v5816_v24  ;;  %v5814_v31 = vld [vmem:[#allocation2 + $0x340] sm:$0xff]  ;;  %vm7846_vm8 = vcmp.ge.f32.partialorder %v7714_v14, 0.0  ;;  %v7978_v44 = vmul.f32 0.1, %v7714_v14  ;;  %v5559_v9 = vadd.f32 %v5370_v48, %v3659_v16 }
 0x2cc   :  { %v7576_v30 = vld [vmem:[#allocation2 + $0x320] sm:$0xff]  ;;  %v7316_v38 = vadd.f32 %v7101_v6, %v5814_v31  ;;  %vm7844_vm9 = vcmp.ge.f32.partialorder %v7712_v26, 0.0  ;;  %v7976_v58 = vmul.f32 0.1, %v7712_v26  ;;  %vm7849_vm4 = vcmp.ge.f32.partialorder %v7717_v28, 0.0  ;;  %v10271_v23 = vpop.f32.mrb[250].mxu0 }
 0x2cd   :  { %v5817_v39 = vld [vmem:[#allocation2 + $0x358] sm:$0xff]  ;;  %v7981_v42 = vmul.f32 0.1, %v7717_v28  ;;  %7450 = vst.msk [vmem:[#allocation2 + $0x350] sm:$0xff] %vm1248_vm3, %v7318_v29  ;;  %v8110_v0 = vsel %vm7846_vm8, %v7714_v14, %v7978_v44  ;;  %v7715_v43 = vadd.f32 %v13316_v22, %v7576_v30  ;;  %v3664_v14 = vld [vmem:[#allocation2 + $0x3b0] sm:$0xff]  ;;  %v3662_v29 = vld [vmem:[#allocation2 + $0x3a0] sm:$0xff] }
 0x2ce   :  { %8768 = vst.msk [vmem:[%s13811_s3 + $0x180] sm:$0xf] %vm8671_vm5, %v9578_v37  ;;  %v7579_v45 = vld [vmem:[#allocation2 + $0x338] sm:$0xff]  ;;  %v7577_v41 = vld [vmem:[#allocation2 + $0x328] sm:$0xff]  ;;  %v7319_v46 = vadd.f32 %v10393_v15, %v5817_v39  ;;  %v9581_v53 = vpack.c.bf16 %v8110_v0, %v8110_v0  ;;  %v8108_v32 = vsel %vm7844_vm9, %v7712_v26, %v7976_v58  ;;  %v7133_v31 = vpop.f32.mrb[245].mxu1  ;;  %v5386_v35 = vpop.f32.mrb[251].mxu0  ;;  %v5562_v30 = vadd.f32 %v5383_v17, %v3662_v29 }
 0x2cf   :  { %7448 = vst.msk [vmem:[#allocation2 + $0x340] sm:$0xff] %vm1248_vm3, %v7316_v38  ;;  %v5815_v47 = vld [vmem:[#allocation2 + $0x348] sm:$0xff]  ;;  %v8113_v51 = vsel %vm7849_vm4, %v7717_v28, %v7981_v42  ;;  %v7718_v22 = vadd.f32 %v13582_v56, %v7579_v45  ;;  %v5820_v57 = vld [vmem:[#allocation2 + $0x370] sm:$0xff]  ;;  %v5818_v59 = vld [vmem:[#allocation2 + $0x360] sm:$0xff]  ;;  %v9579_v4 = vpack.c.bf16 %v8108_v32, %v8108_v32  ;;  %vm7847_vm10 = vcmp.ge.f32.partialorder %v7715_v43, 0.0  ;;  %v10401_v39 = vpop.f32.mrb[246].mxu1 }
 0x2d0   :  { %v9584_v52 = vpack.c.bf16 %v8113_v51, %v8113_v51  ;;  %v7979_v60 = vmul.f32 0.1, %v7715_v43  ;;  %7451 = vst.msk [vmem:[#allocation2 + $0x358] sm:$0xff] %vm1248_vm3, %v7319_v46  ;;  %v7716_v5 = vadd.f32 %v13582_v56, %v7577_v41  ;;  %v7317_v54 = vadd.f32 %v13560_v18, %v5815_v47  ;;  %v5821_v55 = vld [vmem:[#allocation2 + $0x378] sm:$0xff]  ;;  %v5819_v11 = vld [vmem:[#allocation2 + $0x368] sm:$0xff]  ;;  %5691 = vst.msk [vmem:[#allocation2 + $0x388] sm:$0xff] %vm1248_vm3, %v5559_v9 }
 0x2d1   :  { %8771 = vst.msk [vmem:[%s13811_s3 + $0x18c] sm:$0xf] %vm8671_vm5, %v9581_v53  ;;  %vm7850_vm1 = vcmp.ge.f32.partialorder %v7718_v22, 0.0  ;;  %v7982_v33 = vmul.f32 0.1, %v7718_v22  ;;  %v7322_v7 = vadd.f32 %v10396_v63, %v5820_v57  ;;  %v7320_v6 = vadd.f32 %v7117_v50, %v5818_v59  ;;  %v3661_v15 = vld [vmem:[#allocation2 + $0x398] sm:$0xff] }
 0x2d2   :  { %8769 = vst.msk [vmem:[%s13811_s3 + $0x184] sm:$0xf] %vm8671_vm5, %v9579_v4  ;;  %8774 = vst.msk [vmem:[%s13811_s3 + $0x198] sm:$0xf] %vm8671_vm5, %v9584_v52  ;;  %v8111_v3 = vsel %vm7847_vm10, %v7715_v43, %v7979_v60  ;;  %vm7848_vm11 = vcmp.ge.f32.partialorder %v7716_v5, 0.0  ;;  %v5561_v19 = vadd.f32 %v10267_v36, %v3661_v15  ;;  %v7323_v20 = vadd.f32 %v10397_v1, %v5821_v55  ;;  %v3665_v34 = vld [vmem:[#allocation2 + $0x3b8] sm:$0xff] }
 0x2d3   :  { %v9582_v27 = vpack.c.bf16 %v8111_v3, %v8111_v3  ;;  %v8114_v61 = vsel %vm7850_vm1, %v7718_v22, %v7982_v33  ;;  %v7980_v10 = vmul.f32 0.1, %v7716_v5  ;;  %7449 = vst.msk [vmem:[#allocation2 + $0x348] sm:$0xff] %vm1248_vm3, %v7317_v54  ;;  %7454 = vst.msk [vmem:[#allocation2 + $0x370] sm:$0xff] %vm1248_vm3, %v7322_v7  ;;  %v7321_v26 = vadd.f32 %v7120_v62, %v5819_v11  ;;  %v3663_v63 = vld [vmem:[#allocation2 + $0x3a8] sm:$0xff]  ;;  %v5824_v0 = vld [vmem:[#allocation2 + $0x390] sm:$0xff] }
 0x2d4   :  { %v9585_v18 = vpack.c.bf16 %v8114_v61, %v8114_v61  ;;  %v7582_v12 = vld [vmem:[#allocation2 + $0x350] sm:$0xff]  ;;  %7452 = vst.msk [vmem:[#allocation2 + $0x360] sm:$0xff] %vm1248_vm3, %v7320_v6  ;;  %v5564_v28 = vadd.f32 %v10270_v13, %v3664_v14  ;;  %5693 = vst.msk [vmem:[#allocation2 + $0x398] sm:$0xff] %vm1248_vm3, %v5561_v19  ;;  %v5565_v38 = vadd.f32 %v10271_v23, %v3665_v34  ;;  %v7136_v45 = vpop.f32.mrb[247].mxu1  ;;  %v10274_v22 = vpop.f32.mrb[252].mxu0  ;;  %v5822_v4 = vld [vmem:[#allocation2 + $0x380] sm:$0xff] }
 0x2d5   :  { %8772 = vst.msk [vmem:[%s13811_s3 + $0x190] sm:$0xf] %vm8671_vm5, %v9582_v27  ;;  %v8112_v24 = vsel %vm7848_vm11, %v7716_v5, %v7980_v10  ;;  %v7721_v40 = vadd.f32 %v13582_v56, %v7582_v12  ;;  %v5563_v43 = vadd.f32 %v5386_v35, %v3663_v63  ;;  %v7326_v47 = vadd.f32 %v10400_v21, %v5824_v0  ;;  %v3668_v51 = vld [vmem:[#allocation2 + $0x3d0] sm:$0xff]  ;;  %v5399_v60 = vpop.f32.mrb[253].mxu0  ;;  %v10404_v2 = vpop.f32.mrb[248].mxu1  ;;  %v3666_v55 = vld [vmem:[#allocation2 + $0x3c0] sm:$0xff] }
 0x2d6   :  { %v7580_v25 = vld [vmem:[#allocation2 + $0x340] sm:$0xff]  ;;  %8775 = vst.msk [vmem:[%s13811_s3 + $0x19c] sm:$0xf] %vm8671_vm5, %v9585_v18  ;;  %v9583_v37 = vpack.c.bf16 %v8112_v24, %v8112_v24  ;;  %v5568_v52 = vadd.f32 %v10274_v22, %v3668_v51  ;;  %v7324_v54 = vadd.f32 %v7133_v31, %v5822_v4  ;;  %v10275_v3 = vpop.f32.mrb[254].mxu0  ;;  %v5566_v27 = vadd.f32 %v5399_v60, %v3666_v55 }
 0x2d7   :  { %v7719_v44 = vadd.f32 %v13582_v56, %v7580_v25  ;;  %7455 = vst.msk [vmem:[#allocation2 + $0x378] sm:$0xff] %vm1248_vm3, %v7323_v20  ;;  %vm7853_vm12 = vcmp.ge.f32.partialorder %v7721_v40, 0.0  ;;  %v7985_v58 = vmul.f32 0.1, %v7721_v40  ;;  %v7583_v42 = vld [vmem:[#allocation2 + $0x358] sm:$0xff]  ;;  %7453 = vst.msk [vmem:[#allocation2 + $0x368] sm:$0xff] %vm1248_vm3, %v7321_v26 }
 0x2d8   :  { %5696 = vst.msk [vmem:[#allocation2 + $0x3b0] sm:$0xff] %vm1248_vm3, %v5564_v28  ;;  %v7722_v46 = vadd.f32 %v13582_v56, %v7583_v42  ;;  %5694 = vst.msk [vmem:[#allocation2 + $0x3a0] sm:$0xff] %vm1248_vm3, %v5562_v30  ;;  %v5823_v13 = vld [vmem:[#allocation2 + $0x388] sm:$0xff]  ;;  %v7149_v20 = vpop.f32.mrb[249].mxu1  ;;  %v5402_v9 = vpop.f32.mrb[255].mxu0 }
 0x2d9   :  { %8773 = vst.msk [vmem:[%s13811_s3 + $0x194] sm:$0xf] %vm8671_vm5, %v9583_v37  ;;  %vm7851_vm13 = vcmp.ge.f32.partialorder %v7719_v44, 0.0  ;;  %v7983_v41 = vmul.f32 0.1, %v7719_v44  ;;  %v8117_v49 = vsel %vm7853_vm12, %v7721_v40, %v7985_v58  ;;  %v7325_v12 = vadd.f32 %v7136_v45, %v5823_v13  ;;  %v10405_v26 = vpop.f32.mrb[250].mxu1 }
 0x2da   :  { %5697 = vst.msk [vmem:[#allocation2 + $0x3b8] sm:$0xff] %vm1248_vm3, %v5565_v38  ;;  %5695 = vst.msk [vmem:[#allocation2 + $0x3a8] sm:$0xff] %vm1248_vm3, %v5563_v43  ;;  %v9588_v50 = vpack.c.bf16 %v8117_v49, %v8117_v49  ;;  %vm7854_vm14 = vcmp.ge.f32.partialorder %v7722_v46, 0.0  ;;  %v7986_v53 = vmul.f32 0.1, %v7722_v46  ;;  %v7581_v32 = vld [vmem:[#allocation2 + $0x348] sm:$0xff] }
 0x2db   :  { %v8115_v36 = vsel %vm7851_vm13, %v7719_v44, %v7983_v41  ;;  %7458 = vst.msk [vmem:[#allocation2 + $0x390] sm:$0xff] %vm1248_vm3, %v7326_v47  ;;  %v7720_v59 = vadd.f32 %v13582_v56, %v7581_v32  ;;  %v7586_v1 = vld [vmem:[#allocation2 + $0x370] sm:$0xff]  ;;  %v7584_v48 = vld [vmem:[#allocation2 + $0x360] sm:$0xff]  ;;  %v5825_v11 = vld [vmem:[#allocation2 + $0x398] sm:$0xff]  ;;  %v7152_v35 = vpop.f32.mrb[251].mxu1  ;;  %v10278_v63 = vpop.f32.mrb[0].mxu0 }
 0x2dc   :  { %v9586_v57 = vpack.c.bf16 %v8115_v36, %v8115_v36  ;;  %8778 = vst.msk [vmem:[%s13811_s3 + $0x1a8] sm:$0xf] %vm8671_vm5, %v9588_v50  ;;  %v8118_v62 = vsel %vm7854_vm14, %v7722_v46, %v7986_v53  ;;  %v7725_v33 = vadd.f32 %v13582_v56, %v7586_v1  ;;  %v7723_v5 = vadd.f32 %v13582_v56, %v7584_v48  ;;  %v3669_v38 = vld [vmem:[#allocation2 + $0x3d8] sm:$0xff]  ;;  %v3667_v45 = vld [vmem:[#allocation2 + $0x3c8] sm:$0xff]  ;;  %v3672_v41 = vld [vmem:[#allocation2 + $0x3f0] sm:$0xff]  ;;  %v5415_v46 = vpop.f32.mrb[1].mxu0 }
 0x2dd   :  { %v9589_v7 = vpack.c.bf16 %v8118_v62, %v8118_v62  ;;  %vm7852_vm15 = vcmp.ge.f32.partialorder %v7720_v59, 0.0  ;;  %v7984_v8 = vmul.f32 0.1, %v7720_v59  ;;  %5700 = vst.msk [vmem:[#allocation2 + $0x3d0] sm:$0xff] %vm1248_vm3, %v5568_v52  ;;  %7456 = vst.msk [vmem:[#allocation2 + $0x380] sm:$0xff] %vm1248_vm3, %v7324_v54  ;;  %v7327_v18 = vadd.f32 %v10401_v39, %v5825_v11  ;;  %v10408_v53 = vpop.f32.mrb[252].mxu1 }
 0x2de   :  { %8776 = vst.msk [vmem:[%s13811_s3 + $0x1a0] sm:$0xf] %vm8671_vm5, %v9586_v57  ;;  %v7587_v6 = vld [vmem:[#allocation2 + $0x378] sm:$0xff]  ;;  %vm7857_vm0 = vcmp.ge.f32.partialorder %v7725_v33, 0.0  ;;  %v7989_v61 = vmul.f32 0.1, %v7725_v33  ;;  %v5569_v0 = vadd.f32 %v10275_v3, %v3669_v38  ;;  %v5567_v57 = vadd.f32 %v5402_v9, %v3667_v45 }
 0x2df   :  { %vm7855_vm2 = vcmp.ge.f32.partialorder %v7723_v5, 0.0  ;;  %v7987_v10 = vmul.f32 0.1, %v7723_v5  ;;  %8779 = vst.msk [vmem:[%s13811_s3 + $0x1ac] sm:$0xf] %vm8671_vm5, %v9589_v7  ;;  %v8116_v15 = vsel %vm7852_vm15, %v7720_v59, %v7984_v8  ;;  %v7726_v16 = vadd.f32 %v13582_v56, %v7587_v6  ;;  %v7585_v17 = vld [vmem:[#allocation2 + $0x368] sm:$0xff] }
 0x2e0   :  { %v5828_v19 = vld [vmem:[#allocation2 + $0x3b0] sm:$0xff]  ;;  %5698 = vst.msk [vmem:[#allocation2 + $0x3c0] sm:$0xff] %vm1248_vm3, %v5566_v27  ;;  %v9587_v14 = vpack.c.bf16 %v8116_v15, %v8116_v15  ;;  %v8121_v21 = vsel %vm7857_vm0, %v7725_v33, %v7989_v61  ;;  %v7724_v24 = vadd.f32 %v13582_v56, %v7585_v17  ;;  %v5826_v40 = vld [vmem:[#allocation2 + $0x3a0] sm:$0xff]  ;;  %7459 = vst.msk [vmem:[#allocation2 + $0x398] sm:$0xff] %vm1248_vm3, %v7327_v18  ;;  %v10279_v32 = vpop.f32.mrb[2].mxu0  ;;  %v7165_v4 = vpop.f32.mrb[253].mxu1 }
 0x2e1   :  { %v8119_v23 = vsel %vm7855_vm2, %v7723_v5, %v7987_v10  ;;  %v5829_v25 = vld [vmem:[#allocation2 + $0x3b8] sm:$0xff]  ;;  %v9592_v28 = vpack.c.bf16 %v8121_v21, %v8121_v21  ;;  %vm7858_vm6 = vcmp.ge.f32.partialorder %v7726_v16, 0.0  ;;  %v7990_v31 = vmul.f32 0.1, %v7726_v16  ;;  %7457 = vst.msk [vmem:[#allocation2 + $0x388] sm:$0xff] %vm1248_vm3, %v7325_v12  ;;  %v5827_v39 = vld [vmem:[#allocation2 + $0x3a8] sm:$0xff] }
 0x2e2   :  { %v9590_v29 = vpack.c.bf16 %v8119_v23, %v8119_v23  ;;  %v7590_v34 = vld [vmem:[#allocation2 + $0x390] sm:$0xff]  ;;  %8777 = vst.msk [vmem:[%s13811_s3 + $0x1a4] sm:$0xf] %vm8671_vm5, %v9587_v14  ;;  %vm7856_vm7 = vcmp.ge.f32.partialorder %v7724_v24, 0.0  ;;  %v7988_v37 = vmul.f32 0.1, %v7724_v24  ;;  %v7330_v30 = vadd.f32 %v10404_v2, %v5828_v19 }
 0x2e3   :  { %v7729_v44 = vadd.f32 %v13582_v56, %v7590_v34  ;;  %8782 = vst.msk [vmem:[%s13811_s3 + $0x1b8] sm:$0xf] %vm8671_vm5, %v9592_v28  ;;  %v8122_v58 = vsel %vm7858_vm6, %v7726_v16, %v7990_v31  ;;  %v7328_v42 = vadd.f32 %v7149_v20, %v5826_v40  ;;  %v7331_v43 = vadd.f32 %v10405_v26, %v5829_v25  ;;  %v3670_v48 = vld [vmem:[#allocation2 + $0x3e0] sm:$0xff]  ;;  %v5418_v52 = vpop.f32.mrb[3].mxu0  ;;  %v3673_v2 = vld [vmem:[#allocation2 + $0x3f8] sm:$0xff]  ;;  %v10409_v55 = vpop.f32.mrb[254].mxu1 }
 0x2e4   :  { %8780 = vst.msk [vmem:[%s13811_s3 + $0x1b0] sm:$0xf] %vm8671_vm5, %v9590_v29  ;;  %v9593_v47 = vpack.c.bf16 %v8122_v58, %v8122_v58  ;;  %v8120_v49 = vsel %vm7856_vm7, %v7724_v24, %v7988_v37  ;;  %v5832_v36 = vld [vmem:[#allocation2 + $0x3d0] sm:$0xff]  ;;  %v7588_v22 = vld [vmem:[#allocation2 + $0x380] sm:$0xff]  ;;  %v7329_v59 = vadd.f32 %v7152_v35, %v5827_v39  ;;  %v5572_v1 = vadd.f32 %v10278_v63, %v3672_v41  ;;  %v3671_v3 = vld [vmem:[#allocation2 + $0x3e8] sm:$0xff]  ;;  %v13685_v13 = vpop.f32.mrb[255].mxu1 }
 0x2e5   :  { %vm7861_vm8 = vcmp.ge.f32.partialorder %v7729_v44, 0.0  ;;  %v7993_v50 = vmul.f32 0.1, %v7729_v44  ;;  %7462 = vst.msk [vmem:[#allocation2 + $0x3b0] sm:$0xff] %vm1248_vm3, %v7330_v30  ;;  %v9591_v51 = vpack.c.bf16 %v8120_v49, %v8120_v49  ;;  %7460 = vst.msk [vmem:[#allocation2 + $0x3a0] sm:$0xff] %vm1248_vm3, %v7328_v42  ;;  %v7727_v62 = vadd.f32 %v13582_v56, %v7588_v22  ;;  %v3676_v18 = vld [vmem:[#allocation2 + $0x410] sm:$0xff] }
 0x2e6   :  { %5701 = vst.msk [vmem:[#allocation2 + $0x3d8] sm:$0xff] %vm1248_vm3, %v5569_v0  ;;  %7463 = vst.msk [vmem:[#allocation2 + $0x3b8] sm:$0xff] %vm1248_vm3, %v7331_v43  ;;  %v7334_v33 = vadd.f32 %v10408_v53, %v5832_v36  ;;  %v5570_v5 = vadd.f32 %v5415_v46, %v3670_v48  ;;  %v5573_v6 = vadd.f32 %v10279_v32, %v3673_v2  ;;  %v10282_v12 = vpop.f32.mrb[4].mxu0  ;;  %v3674_v19 = vld [vmem:[#allocation2 + $0x400] sm:$0xff]  ;;  %v10412_v29 = vpop.f32.mrb[0].mxu1 }
 0x2e7   :  { %8783 = vst.msk [vmem:[%s13811_s3 + $0x1bc] sm:$0xf] %vm8671_vm5, %v9593_v47  ;;  %v8125_v60 = vsel %vm7861_vm8, %v7729_v44, %v7993_v50  ;;  %v5830_v54 = vld [vmem:[#allocation2 + $0x3c0] sm:$0xff]  ;;  %8781 = vst.msk [vmem:[%s13811_s3 + $0x1b4] sm:$0xf] %vm8671_vm5, %v9591_v51  ;;  %v5571_v11 = vadd.f32 %v5418_v52, %v3671_v3  ;;  %vm7859_vm9 = vcmp.ge.f32.partialorder %v7727_v62, 0.0  ;;  %v5576_v28 = vadd.f32 %v10282_v12, %v3676_v18 }
 0x2e8   :  { %v9596_v7 = vpack.c.bf16 %v8125_v60, %v8125_v60  ;;  %5699 = vst.msk [vmem:[#allocation2 + $0x3c8] sm:$0xff] %vm1248_vm3, %v5567_v57  ;;  %7461 = vst.msk [vmem:[#allocation2 + $0x3a8] sm:$0xff] %vm1248_vm3, %v7329_v59  ;;  %v7332_v8 = vadd.f32 %v7165_v4, %v5830_v54  ;;  %v7991_v27 = vmul.f32 0.1, %v7727_v62  ;;  %v7591_v61 = vld [vmem:[#allocation2 + $0x398] sm:$0xff]  ;;  %v7589_v10 = vld [vmem:[#allocation2 + $0x388] sm:$0xff] }
 0x2e9   :  { %5704 = vst.msk [vmem:[#allocation2 + $0x3f0] sm:$0xff] %vm1248_vm3, %v5572_v1  ;;  %7466 = vst.msk [vmem:[#allocation2 + $0x3d0] sm:$0xff] %vm1248_vm3, %v7334_v33  ;;  %v7730_v15 = vadd.f32 %v13582_v56, %v7591_v61  ;;  %v7728_v16 = vadd.f32 %v13582_v56, %v7589_v10  ;;  %v5431_v21 = vpop.f32.mrb[5].mxu0  ;;  %v7181_v30 = vpop.f32.mrb[1].mxu1 }
 0x2ea   :  { %5702 = vst.msk [vmem:[#allocation2 + $0x3e0] sm:$0xff] %vm1248_vm3, %v5570_v5  ;;  %7464 = vst.msk [vmem:[#allocation2 + $0x3c0] sm:$0xff] %vm1248_vm3, %v7332_v8  ;;  %v8123_v17 = vsel %vm7859_vm9, %v7727_v62, %v7991_v27  ;;  %v5574_v31 = vadd.f32 %v5431_v21, %v3674_v19  ;;  %v10283_v38 = vpop.f32.mrb[6].mxu0  ;;  %v10413_v53 = vpop.f32.mrb[2].mxu1 }
 0x2eb   :  { %8786 = vst.msk [vmem:[%s13811_s3 + $0x1c8] sm:$0xf] %vm8671_vm5, %v9596_v7  ;;  %v9594_v20 = vpack.c.bf16 %v8123_v17, %v8123_v17  ;;  %vm7862_vm4 = vcmp.ge.f32.partialorder %v7730_v15, 0.0  ;;  %v7994_v9 = vmul.f32 0.1, %v7730_v15  ;;  %vm7860_vm10 = vcmp.ge.f32.partialorder %v7728_v16, 0.0 }
 0x2ec   :  { %5705 = vst.msk [vmem:[#allocation2 + $0x3f8] sm:$0xff] %vm1248_vm3, %v5573_v6  ;;  %5703 = vst.msk [vmem:[#allocation2 + $0x3e8] sm:$0xff] %vm1248_vm3, %v5571_v11  ;;  %v7594_v14 = vld [vmem:[#allocation2 + $0x3b0] sm:$0xff]  ;;  %v7992_v23 = vmul.f32 0.1, %v7728_v16  ;;  %v7592_v40 = vld [vmem:[#allocation2 + $0x3a0] sm:$0xff] }
 0x2ed   :  { %v7733_v24 = vadd.f32 %v13582_v56, %v7594_v14  ;;  %v7595_v25 = vld [vmem:[#allocation2 + $0x3b8] sm:$0xff]  ;;  %8784 = vst.msk [vmem:[%s13811_s3 + $0x1c0] sm:$0xf] %vm8671_vm5, %v9594_v20  ;;  %v8126_v34 = vsel %vm7862_vm4, %v7730_v15, %v7994_v9  ;;  %v7731_v35 = vadd.f32 %v13582_v56, %v7592_v40  ;;  %v5434_v32 = vpop.f32.mrb[7].mxu0  ;;  %v7184_v4 = vpop.f32.mrb[3].mxu1  ;;  %v3675_v15 = vld [vmem:[#allocation2 + $0x408] sm:$0xff] }
 0x2ee   :  { %v5833_v26 = vld [vmem:[#allocation2 + $0x3d8] sm:$0xff]  ;;  %v7734_v37 = vadd.f32 %v13582_v56, %v7595_v25  ;;  %v9597_v39 = vpack.c.bf16 %v8126_v34, %v8126_v34  ;;  %v8124_v63 = vsel %vm7860_vm10, %v7728_v16, %v7992_v23  ;;  %5708 = vst.msk [vmem:[#allocation2 + $0x410] sm:$0xff] %vm1248_vm3, %v5576_v28  ;;  %5706 = vst.msk [vmem:[#allocation2 + $0x400] sm:$0xff] %vm1248_vm3, %v5574_v31  ;;  %v10416_v11 = vpop.f32.mrb[4].mxu1 }
 0x2ef   :  { %v7335_v44 = vadd.f32 %v10409_v55, %v5833_v26  ;;  %vm7865_vm1 = vcmp.ge.f32.partialorder %v7733_v24, 0.0  ;;  %v7997_v58 = vmul.f32 0.1, %v7733_v24  ;;  %v7593_v42 = vld [vmem:[#allocation2 + $0x3a8] sm:$0xff]  ;;  %v9595_v43 = vpack.c.bf16 %v8124_v63, %v8124_v63  ;;  %v3677_v6 = vld [vmem:[#allocation2 + $0x418] sm:$0xff]  ;;  %v7197_v18 = vpop.f32.mrb[5].mxu1 }
 0x2f0   :  { %v5831_v0 = vld [vmem:[#allocation2 + $0x3c8] sm:$0xff]  ;;  %vm7863_vm11 = vcmp.ge.f32.partialorder %v7731_v35, 0.0  ;;  %v7995_v45 = vmul.f32 0.1, %v7731_v35  ;;  %vm7866_vm12 = vcmp.ge.f32.partialorder %v7734_v37, 0.0  ;;  %v7598_v41 = vld [vmem:[#allocation2 + $0x3d0] sm:$0xff]  ;;  %v7732_v49 = vadd.f32 %v13582_v56, %v7593_v42 }
 0x2f1   :  { %7467 = vst.msk [vmem:[#allocation2 + $0x3d8] sm:$0xff] %vm1248_vm3, %v7335_v44  ;;  %v8129_v46 = vsel %vm7865_vm1, %v7733_v24, %v7997_v58  ;;  %v7998_v47 = vmul.f32 0.1, %v7734_v37  ;;  %v7737_v50 = vadd.f32 %v13582_v56, %v7598_v41  ;;  %v7596_v36 = vld [vmem:[#allocation2 + $0x3c0] sm:$0xff]  ;;  %v7333_v59 = vadd.f32 %v13685_v13, %v5831_v0  ;;  %v5836_v1 = vld [vmem:[#allocation2 + $0x3f0] sm:$0xff]  ;;  %v10417_v21 = vpop.f32.mrb[6].mxu1 }
 0x2f2   :  { %8787 = vst.msk [vmem:[%s13811_s3 + $0x1cc] sm:$0xf] %vm8671_vm5, %v9597_v39  ;;  %8785 = vst.msk [vmem:[%s13811_s3 + $0x1c4] sm:$0xf] %vm8671_vm5, %v9595_v43  ;;  %v9600_v51 = vpack.c.bf16 %v8129_v46, %v8129_v46  ;;  %v8127_v22 = vsel %vm7863_vm11, %v7731_v35, %v7995_v45  ;;  %v7735_v57 = vadd.f32 %v13582_v56, %v7596_v36  ;;  %v5834_v48 = vld [vmem:[#allocation2 + $0x3e0] sm:$0xff]  ;;  %vm7864_vm13 = vcmp.ge.f32.partialorder %v7732_v49, 0.0 }
 0x2f3   :  { %v9598_v52 = vpack.c.bf16 %v8127_v22, %v8127_v22  ;;  %v8130_v60 = vsel %vm7866_vm12, %v7734_v37, %v7998_v47  ;;  %v7996_v62 = vmul.f32 0.1, %v7732_v49  ;;  %v5837_v33 = vld [vmem:[#allocation2 + $0x3f8] sm:$0xff]  ;;  %vm7869_vm14 = vcmp.ge.f32.partialorder %v7737_v50, 0.0  ;;  %7465 = vst.msk [vmem:[#allocation2 + $0x3c8] sm:$0xff] %vm1248_vm3, %v7333_v59  ;;  %v5835_v2 = vld [vmem:[#allocation2 + $0x3e8] sm:$0xff] }
 0x2f4   :  { %8790 = vst.msk [vmem:[%s13811_s3 + $0x1d8] sm:$0xf] %vm8671_vm5, %v9600_v51  ;;  %v9601_v5 = vpack.c.bf16 %v8130_v60, %v8130_v60  ;;  %v8001_v54 = vmul.f32 0.1, %v7737_v50  ;;  %vm7867_vm15 = vcmp.ge.f32.partialorder %v7735_v57, 0.0  ;;  %v7338_v7 = vadd.f32 %v10412_v29, %v5836_v1  ;;  %v7200_v26 = vpop.f32.mrb[7].mxu1 }
 0x2f5   :  { %8788 = vst.msk [vmem:[%s13811_s3 + $0x1d0] sm:$0xf] %vm8671_vm5, %v9598_v52  ;;  %v8128_v55 = vsel %vm7864_vm13, %v7732_v49, %v7996_v62  ;;  %v7999_v3 = vmul.f32 0.1, %v7735_v57  ;;  %v7336_v8 = vadd.f32 %v7181_v30, %v5834_v48  ;;  %v5577_v61 = vadd.f32 %v10283_v38, %v3677_v6  ;;  %v5840_v16 = vld [vmem:[#allocation2 + $0x410] sm:$0xff]  ;;  %v5838_v17 = vld [vmem:[#allocation2 + $0x400] sm:$0xff] }
 0x2f6   :  { %8791 = vst.msk [vmem:[%s13811_s3 + $0x1dc] sm:$0xf] %vm8671_vm5, %v9601_v5  ;;  %v9599_v13 = vpack.c.bf16 %v8128_v55, %v8128_v55  ;;  %v8133_v27 = vsel %vm7869_vm14, %v7737_v50, %v8001_v54  ;;  %v7339_v10 = vadd.f32 %v10413_v53, %v5837_v33  ;;  %v5575_v9 = vadd.f32 %v5434_v32, %v3675_v15 }
 0x2f7   :  { %v9604_v12 = vpack.c.bf16 %v8133_v27, %v8133_v27  ;;  %v8131_v19 = vsel %vm7867_vm15, %v7735_v57, %v7999_v3  ;;  %7470 = vst.msk [vmem:[#allocation2 + $0x3f0] sm:$0xff] %vm1248_vm3, %v7338_v7  ;;  %7468 = vst.msk [vmem:[#allocation2 + $0x3e0] sm:$0xff] %vm1248_vm3, %v7336_v8  ;;  %v7337_v14 = vadd.f32 %v7184_v4, %v5835_v2 }
 0x2f8   :  { %v7599_v20 = vld [vmem:[#allocation2 + $0x3d8] sm:$0xff]  ;;  %8789 = vst.msk [vmem:[%s13811_s3 + $0x1d4] sm:$0xf] %vm8671_vm5, %v9599_v13  ;;  %v9602_v23 = vpack.c.bf16 %v8131_v19, %v8131_v19  ;;  %v7342_v40 = vadd.f32 %v10416_v11, %v5840_v16  ;;  %v7340_v25 = vadd.f32 %v7197_v18, %v5838_v17 }
 0x2f9   :  { %v7738_v24 = vadd.f32 %v13582_v56, %v7599_v20  ;;  %5709 = vst.msk [vmem:[#allocation2 + $0x418] sm:$0xff] %vm1248_vm3, %v5577_v61  ;;  %7471 = vst.msk [vmem:[#allocation2 + $0x3f8] sm:$0xff] %vm1248_vm3, %v7339_v10 }
 0x2fa   :  { %8794 = vst.msk [vmem:[%s13811_s3 + $0x1e8] sm:$0xf] %vm8671_vm5, %v9604_v12  ;;  %8792 = vst.msk [vmem:[%s13811_s3 + $0x1e0] sm:$0xf] %vm8671_vm5, %v9602_v23  ;;  %v7597_v29 = vld [vmem:[#allocation2 + $0x3c8] sm:$0xff] }
 0x2fb   :  { %5707 = vst.msk [vmem:[#allocation2 + $0x408] sm:$0xff] %vm1248_vm3, %v5575_v9  ;;  %7469 = vst.msk [vmem:[#allocation2 + $0x3e8] sm:$0xff] %vm1248_vm3, %v7337_v14  ;;  %vm7870_vm0 = vcmp.ge.f32.partialorder %v7738_v24, 0.0  ;;  %v8002_v28 = vmul.f32 0.1, %v7738_v24  ;;  %v7736_v34 = vadd.f32 %v13582_v56, %v7597_v29 }
 0x2fc   :  { %7474 = vst.msk [vmem:[#allocation2 + $0x410] sm:$0xff] %vm1248_vm3, %v7342_v40  ;;  %7472 = vst.msk [vmem:[#allocation2 + $0x400] sm:$0xff] %vm1248_vm3, %v7340_v25 }
 0x2fd   :  { %v8134_v31 = vsel %vm7870_vm0, %v7738_v24, %v8002_v28  ;;  %vm7868_vm2 = vcmp.ge.f32.partialorder %v7736_v34, 0.0  ;;  %v8000_v37 = vmul.f32 0.1, %v7736_v34 }
 0x2fe   :  { %v9605_v35 = vpack.c.bf16 %v8134_v31, %v8134_v31  ;;  %v7602_v44 = vld [vmem:[#allocation2 + $0x3f0] sm:$0xff]  ;;  %v7600_v30 = vld [vmem:[#allocation2 + $0x3e0] sm:$0xff] }
 0x2ff   :  { %v7741_v38 = vadd.f32 %v13582_v56, %v7602_v44  ;;  %v7739_v39 = vadd.f32 %v13582_v56, %v7600_v30  ;;  %v8132_v42 = vsel %vm7868_vm2, %v7736_v34, %v8000_v37 }
 0x300   :  { %8795 = vst.msk [vmem:[%s13811_s3 + $0x1ec] sm:$0xf] %vm8671_vm5, %v9605_v35  ;;  %v7603_v63 = vld [vmem:[#allocation2 + $0x3f8] sm:$0xff]  ;;  %v9603_v46 = vpack.c.bf16 %v8132_v42, %v8132_v42 }
 0x301   :  { %v5841_v58 = vld [vmem:[#allocation2 + $0x418] sm:$0xff]  ;;  %v7742_v0 = vadd.f32 %v13582_v56, %v7603_v63  ;;  %vm7873_vm6 = vcmp.ge.f32.partialorder %v7741_v38, 0.0  ;;  %v8005_v47 = vmul.f32 0.1, %v7741_v38  ;;  %vm7871_vm7 = vcmp.ge.f32.partialorder %v7739_v39, 0.0 }
 0x302   :  { %v7601_v43 = vld [vmem:[#allocation2 + $0x3e8] sm:$0xff]  ;;  %v7343_v45 = vadd.f32 %v10417_v21, %v5841_v58  ;;  %v8003_v36 = vmul.f32 0.1, %v7739_v39  ;;  %8793 = vst.msk [vmem:[%s13811_s3 + $0x1e4] sm:$0xf] %vm8671_vm5, %v9603_v46 }
 0x303   :  { %v5839_v41 = vld [vmem:[#allocation2 + $0x408] sm:$0xff]  ;;  %v7606_v49 = vld [vmem:[#allocation2 + $0x410] sm:$0xff]  ;;  %v7604_v50 = vld [vmem:[#allocation2 + $0x400] sm:$0xff]  ;;  %vm7874_vm8 = vcmp.ge.f32.partialorder %v7742_v0, 0.0  ;;  %v8006_v53 = vmul.f32 0.1, %v7742_v0  ;;  %v7740_v32 = vadd.f32 %v13582_v56, %v7601_v43  ;;  %v8137_v51 = vsel %vm7873_vm6, %v7741_v38, %v8005_v47 }
 0x304   :  { %7475 = vst.msk [vmem:[#allocation2 + $0x418] sm:$0xff] %vm1248_vm3, %v7343_v45  ;;  %v7745_v22 = vadd.f32 %v13582_v56, %v7606_v49  ;;  %v7743_v57 = vadd.f32 %v13582_v56, %v7604_v50  ;;  %v7341_v59 = vadd.f32 %v7200_v26, %v5839_v41  ;;  %v9608_v1 = vpack.c.bf16 %v8137_v51, %v8137_v51 }
 0x305   :  { %v8135_v48 = vsel %vm7871_vm7, %v7739_v39, %v8003_v36  ;;  %v8138_v4 = vsel %vm7874_vm8, %v7742_v0, %v8006_v53  ;;  %vm7872_vm9 = vcmp.ge.f32.partialorder %v7740_v32, 0.0  ;;  %v8004_v62 = vmul.f32 0.1, %v7740_v32 }
 0x306   :  { %v9606_v52 = vpack.c.bf16 %v8135_v48, %v8135_v48  ;;  %v9609_v60 = vpack.c.bf16 %v8138_v4, %v8138_v4  ;;  %vm7877_vm4 = vcmp.ge.f32.partialorder %v7745_v22, 0.0  ;;  %7473 = vst.msk [vmem:[#allocation2 + $0x408] sm:$0xff] %vm1248_vm3, %v7341_v59  ;;  %v8009_v33 = vmul.f32 0.1, %v7745_v22 }
 0x307   :  { %8798 = vst.msk [vmem:[%s13811_s3 + $0x1f8] sm:$0xf] %vm8671_vm5, %v9608_v1  ;;  %vm7875_vm10 = vcmp.ge.f32.partialorder %v7743_v57, 0.0  ;;  %v8007_v5 = vmul.f32 0.1, %v7743_v57  ;;  %v8136_v54 = vsel %vm7872_vm9, %v7740_v32, %v8004_v62 }
 0x308   :  { %8796 = vst.msk [vmem:[%s13811_s3 + $0x1f0] sm:$0xf] %vm8671_vm5, %v9606_v52  ;;  %8799 = vst.msk [vmem:[%s13811_s3 + $0x1fc] sm:$0xf] %vm8671_vm5, %v9609_v60  ;;  %v9607_v2 = vpack.c.bf16 %v8136_v54, %v8136_v54  ;;  %v8141_v55 = vsel %vm7877_vm4, %v7745_v22, %v8009_v33 }
 0x309   :  { %v8139_v3 = vsel %vm7875_vm10, %v7743_v57, %v8007_v5  ;;  %v9612_v7 = vpack.c.bf16 %v8141_v55, %v8141_v55 }
 0x30a   :  { %v9610_v8 = vpack.c.bf16 %v8139_v3, %v8139_v3  ;;  %8797 = vst.msk [vmem:[%s13811_s3 + $0x1f4] sm:$0xf] %vm8671_vm5, %v9607_v2 }
 0x30b   :  { %v7607_v6 = vld [vmem:[#allocation2 + $0x418] sm:$0xff]  ;;  %8802 = vst.msk [vmem:[%s13811_s3 + $0x208] sm:$0xf] %vm8671_vm5, %v9612_v7 }
 0x30c   :  { %v7746_v11 = vadd.f32 %v13582_v56, %v7607_v6  ;;  %8800 = vst.msk [vmem:[%s13811_s3 + $0x200] sm:$0xf] %vm8671_vm5, %v9610_v8 }
 0x30d   :  { %v7605_v27 = vld [vmem:[#allocation2 + $0x408] sm:$0xff] }
 0x30e   :  { %vm7878_vm3 = vcmp.ge.f32.partialorder %v7746_v11, 0.0  ;;  %v8010_v13 = vmul.f32 0.1, %v7746_v11  ;;  %v7744_v61 = vadd.f32 %v13582_v56, %v7605_v27 }
 0x310   :  { %v8142_v10 = vsel %vm7878_vm3, %v7746_v11, %v8010_v13  ;;  %vm7876_vm1 = vcmp.ge.f32.partialorder %v7744_v61, 0.0  ;;  %v8008_v16 = vmul.f32 0.1, %v7744_v61 }
 0x311   :  { %v9613_v15 = vpack.c.bf16 %v8142_v10, %v8142_v10 }
 0x312   :  { %v8140_v17 = vsel %vm7876_vm1, %v7744_v61, %v8008_v16 }
 0x313   :  { %8803 = vst.msk [vmem:[%s13811_s3 + $0x20c] sm:$0xf] %vm8671_vm5, %v9613_v15  ;;  %v9611_v18 = vpack.c.bf16 %v8140_v17, %v8140_v17 }
 0x315   :  { %8801 = vst.msk [vmem:[%s13811_s3 + $0x204] sm:$0xf] %vm8671_vm5, %v9611_v18 }

</bundles_post_ra>
